<compile_context>
chip_gen: v6e
topology: v6e:2x2x1
jax: 0.10.0
libtpu: 0.0.40
codegen_flags: <defaults>
</compile_context>

<pallas_src>
import functools

import jax
import jax.numpy as jnp
from jax.experimental import pallas as pl
from jax.experimental.pallas import tpu as pltpu


# ------------------------------ small helpers --------------------------------

def _round_up(x, m):
    return (x + m - 1) // m * m


# --------------------------- tiled matmul kernel ------------------------------

def _mm_kernel(x_ref, w_ref, b_ref, o_ref, acc_ref, *, act):
    # x: (tm, tk) bf16, w: (tk, tn) bf16, b: (1, tn) f32 -> o: (tm, tn) f32
    @pl.when(pl.program_id(2) == 0)
    def _():
        acc_ref[...] = jnp.zeros_like(acc_ref)

    acc_ref[...] += jnp.dot(x_ref[...], w_ref[...],
                            preferred_element_type=jnp.float32)

    @pl.when(pl.program_id(2) == pl.num_programs(2) - 1)
    def _():
        y = acc_ref[...] + b_ref[...]
        if act == "tanh":
            y = jnp.tanh(y)
        o_ref[...] = y.astype(o_ref.dtype)


def pallas_matmul(x, w, b=None, act="none", tm=512, tn=256, tk=256):
    """(M,K) @ (K,N) [+ b] [+ act] with bf16 MXU inputs and f32 accumulation."""
    M, K = x.shape
    K2, Nc = w.shape
    assert K == K2

    # Shrink tiles for small problems (keep (sublane, lane) alignment).
    tm = min(tm, _round_up(M, 16))
    tn = min(tn, _round_up(Nc, 128))
    tk = min(tk, _round_up(K, 128))
    Mp, Kp, Np = _round_up(M, tm), _round_up(K, tk), _round_up(Nc, tn)

    xb = x.astype(jnp.bfloat16)
    wb = w.astype(jnp.bfloat16)
    if (Mp, Kp) != (M, K):
        xb = jnp.pad(xb, ((0, Mp - M), (0, Kp - K)))
    if (Kp, Np) != (K, Nc):
        wb = jnp.pad(wb, ((0, Kp - K), (0, Np - Nc)))
    bb = jnp.zeros((1, Np), jnp.float32)
    if b is not None:
        bb = bb.at[:, :Nc].set(b.reshape(1, Nc).astype(jnp.float32))

    grid = (Mp // tm, Np // tn, Kp // tk)
    out = pl.pallas_call(
        functools.partial(_mm_kernel, act=act),
        out_shape=jax.ShapeDtypeStruct((Mp, Np), jnp.float32),
        grid_spec=pltpu.PrefetchScalarGridSpec(
            num_scalar_prefetch=0,
            grid=grid,
            in_specs=[
                pl.BlockSpec((tm, tk), lambda i, j, k: (i, k)),
                pl.BlockSpec((tk, tn), lambda i, j, k: (k, j)),
                pl.BlockSpec((1, tn), lambda i, j, k: (0, j)),
            ],
            out_specs=pl.BlockSpec((tm, tn), lambda i, j, k: (i, j)),
            scratch_shapes=[pltpu.VMEM((tm, tn), jnp.float32)],
        ),
        compiler_params=pltpu.CompilerParams(
            dimension_semantics=("parallel", "parallel", "arbitrary"),
            vmem_limit_bytes=32 * 1024 * 1024,
        ),
    )(xb, wb, bb)
    return out[:M, :Nc]


# ------------------- fused InstanceNorm (+act, +residual) kernel --------------

def _in_fused_kernel(*refs, act, n_add, eps=1e-5):
    # refs = (x_ref, add_ref_0, ..., add_ref_{n_add-1}, o_ref); blocks (1, HW, Ct)
    x_ref = refs[0]
    o_ref = refs[-1]
    x = x_ref[...].astype(jnp.float32)
    mean = jnp.mean(x, axis=1, keepdims=True)
    xc = x - mean
    var = jnp.mean(xc * xc, axis=1, keepdims=True)
    y = xc * jax.lax.rsqrt(var + eps)
    if act == "relu":
        y = jnp.maximum(y, 0.0)
    elif act == "gelu":
        # tanh-approximation of GELU (nn.GELU default is erf-based; ~1e-3 close).
        y = 0.5 * y * (1.0 + jnp.tanh(0.7978845608028654 * (y + 0.044715 * y * y * y)))
    for r in refs[1:1 + n_add]:
        y = y + r[...].astype(jnp.float32)
    o_ref[...] = y.astype(o_ref.dtype)


def pallas_instance_norm(x, *adds, act="none", c_tile=256):
    """InstanceNorm2d (affine=False) + activation + fused residual adds.

    x: (N, H, W, C) NHWC; each extra `adds` tensor is (N, H, W, C) or (1, H, W, C).
    """
    N, H, W, C = x.shape
    HW = H * W
    ct = min(c_tile, C)
    assert C % ct == 0

    inputs = [x.reshape(N, HW, C)]
    in_specs = [pl.BlockSpec((1, HW, ct), lambda n, c: (n, 0, c))]
    for a in adds:
        An = a.shape[0]
        inputs.append(a.reshape(An, HW, C))
        if An == 1:   # broadcast over the batch (pos_embed)
            in_specs.append(pl.BlockSpec((1, HW, ct), lambda n, c: (0, 0, c)))
        else:
            in_specs.append(pl.BlockSpec((1, HW, ct), lambda n, c: (n, 0, c)))

    out = pl.pallas_call(
        functools.partial(_in_fused_kernel, act=act, n_add=len(adds)),
        out_shape=jax.ShapeDtypeStruct((N, HW, C), jnp.float32),
        grid_spec=pltpu.PrefetchScalarGridSpec(
            num_scalar_prefetch=0,
            grid=(N, C // ct),
            in_specs=in_specs,
            out_specs=pl.BlockSpec((1, HW, ct), lambda n, c: (n, 0, c)),
        ),
        compiler_params=pltpu.CompilerParams(
            dimension_semantics=("parallel", "parallel"),
        ),
    )(*inputs)
    return out.reshape(N, H, W, C)


# ----------------------------- conv glue (NHWC) -------------------------------

def _reflect_pad(x, p):
    return jnp.pad(x, ((0, 0), (p, p), (p, p), (0, 0)), mode="reflect")


def _im2col_nhwc(xp, kh, kw, stride):
    # xp: padded NHWC input.  Returns (N*OH*OW, KH*KW*C) patches (tap-major, C-minor).
    N, Hp, Wp, C = xp.shape
    oh = (Hp - kh) // stride + 1
    ow = (Wp - kw) // stride + 1
    cols = []
    for i in range(kh):
        for j in range(kw):
            cols.append(xp[:, i:i + stride * oh:stride, j:j + stride * ow:stride, :])
    p = jnp.concatenate(cols, axis=-1)                # (N, OH, OW, KH*KW*C)
    return p.reshape(N * oh * ow, kh * kw * C), oh, ow


def conv2d(x, w, b=None, stride=1, padding=0, act="none"):
    # x: (N, H, W, Cin) NHWC;  w: (Cout, Cin, KH, KW) (PyTorch layout); zero padding.
    Cout, Cin, kh, kw = w.shape
    N = x.shape[0]
    if kh == 1 and kw == 1 and stride == 1 and padding == 0:
        H, W = x.shape[1], x.shape[2]
        patches, oh, ow = x.reshape(N * H * W, Cin), H, W
    else:
        if padding > 0:
            x = jnp.pad(x, ((0, 0), (padding, padding), (padding, padding), (0, 0)))
        patches, oh, ow = _im2col_nhwc(x, kh, kw, stride)
    wm = w.transpose(2, 3, 1, 0).reshape(kh * kw * Cin, Cout)   # (KH*KW*Cin, Cout)
    y = pallas_matmul(patches, wm, b, act=act)                  # (N*OH*OW, Cout) f32
    return y.reshape(N, oh, ow, Cout)


def conv_transpose2d(x, w):
    # ConvTranspose2d(k=3, stride=2, padding=1, output_padding=1) via 4 sub-pixel
    # stride-1 convolutions (no zero-dilated input => 4x fewer FLOPs / bytes).
    # w: (Cin, Cout, 3, 3) (PyTorch layout).  Bias is elided (cancelled by the
    # following affine-free InstanceNorm).
    N, H, W, Cin = x.shape
    Cout = w.shape[1]
    wk = w.transpose(2, 3, 0, 1)                      # (3, 3, Cin, Cout)

    def mm(patches, taps):
        wm = jnp.concatenate([wk[ky, kx] for (ky, kx) in taps], axis=0)
        return pallas_matmul(patches, wm).reshape(N, H, W, Cout)

    # phase (even, even): y[2m,2p]     = x[m,p] @ w[1,1]
    p00 = mm(x.reshape(N * H * W, Cin), [(1, 1)])
    # phase (even, odd):  y[2m,2p+1]   = x[m,p] @ w[1,2] + x[m,p+1] @ w[1,0]
    xr = jnp.pad(x, ((0, 0), (0, 0), (0, 1), (0, 0)))
    pat01 = jnp.concatenate([xr[:, :, 0:W, :], xr[:, :, 1:W + 1, :]],
                            axis=-1).reshape(N * H * W, 2 * Cin)
    p01 = mm(pat01, [(1, 2), (1, 0)])
    # phase (odd, even):  y[2m+1,2p]   = x[m,p] @ w[2,1] + x[m+1,p] @ w[0,1]
    xb = jnp.pad(x, ((0, 0), (0, 1), (0, 0), (0, 0)))
    pat10 = jnp.concatenate([xb[:, 0:H, :, :], xb[:, 1:H + 1, :, :]],
                            axis=-1).reshape(N * H * W, 2 * Cin)
    p10 = mm(pat10, [(2, 1), (0, 1)])
    # phase (odd, odd):   4 taps
    xrb = jnp.pad(x, ((0, 0), (0, 1), (0, 1), (0, 0)))
    pat11 = jnp.concatenate([xrb[:, 0:H, 0:W, :], xrb[:, 0:H, 1:W + 1, :],
                             xrb[:, 1:H + 1, 0:W, :], xrb[:, 1:H + 1, 1:W + 1, :]],
                            axis=-1).reshape(N * H * W, 4 * Cin)
    p11 = mm(pat11, [(2, 2), (2, 0), (0, 2), (0, 0)])

    # Interleave the 4 phases: out[n, 2m+a, 2p+b, c] = P[a][b][n, m, p, c]
    row0 = jnp.stack([p00, p01], axis=3)              # (N, H, W, 2, Cout)
    row1 = jnp.stack([p10, p11], axis=3)
    y = jnp.stack([row0, row1], axis=2)               # (N, H, 2, W, 2, Cout)
    return y.reshape(N, 2 * H, 2 * W, Cout)


# ----------------------------- model sub-blocks -------------------------------
# Conv/ConvTranspose biases that feed an affine-free InstanceNorm are exactly
# cancelled by the mean subtraction, so they are not applied (bit-equivalent).

def ffn(x, p):
    shortcut = x
    y = conv2d(x, p["fc1_w"])                              # 1x1 conv
    y = pallas_instance_norm(y, act="gelu")                # IN + GELU fused
    y = conv2d(y, p["fc2_w"])                              # 1x1 conv
    return pallas_instance_norm(y, shortcut)               # IN + shortcut add fused


def vig_block(x, p, pos_embed_nhwc):
    y = x
    # TODO(synk): Grapher (graph conv) source not provided in the reference module; treated as identity.
    y = ffn(y, p["ffn1"])
    y = pallas_instance_norm(y, act="relu")                # InstanceNorm2d + ReLU
    # TODO(synk): second Grapher — identity for the same reason.
    y = ffn(y, p["ffn2"])
    # trailing InstanceNorm + ViG residual (x + ...) + pos_embed, all in one pass
    return pallas_instance_norm(y, x, pos_embed_nhwc)


def residual_block(x, p):
    y = _reflect_pad(x, 1)
    y = conv2d(y, p["w1"])
    y = pallas_instance_norm(y, act="relu")
    y = _reflect_pad(y, 1)
    y = conv2d(y, p["w2"])
    return pallas_instance_norm(y, x)                      # IN + residual add fused


def generator_forward(x_nchw, params):
    x = x_nchw.transpose(0, 2, 3, 1)                       # NCHW -> NHWC (once)
    pe = params["pos_embed"].transpose(0, 2, 3, 1)         # (1, h, w, 256)

    # ----- model_head -----
    y = _reflect_pad(x, 3)
    y = conv2d(y, params["head_c1_w"])                                   # 7x7, in->64
    y = pallas_instance_norm(y, act="relu")
    y = conv2d(y, params["head_c2_w"], stride=2, padding=1)              # 64->128
    y = pallas_instance_norm(y, act="relu")
    y = conv2d(y, params["head_c3_w"], stride=2, padding=1)              # 128->256
    y = pallas_instance_norm(y, act="relu")
    y = vig_block(y, params["vig"], pe)                                  # + pos_embed fused
    # ----- model_body -----
    y = residual_block(y, params["res"])
    # ----- model_tail -----
    y = conv_transpose2d(y, params["t1_w"])                              # 256->128
    y = pallas_instance_norm(y, act="relu")
    y = conv_transpose2d(y, params["t2_w"])                              # 128->64
    y = pallas_instance_norm(y, act="relu")
    y = _reflect_pad(y, 3)
    y = conv2d(y, params["out_w"], b=params["out_b"], act="tanh")        # 7x7, 64->out
    return y.transpose(0, 3, 1, 2)                                       # NHWC -> NCHW (once)


# ----------------------------- parameter init --------------------------------

def init_params(key, input_nc, output_nc, img):
    keys = iter(jax.random.split(key, 40))

    def conv_w(cout, cin, kh, kw):
        fan_in = cin * kh * kw
        return (jax.random.normal(next(keys), (cout, cin, kh, kw), jnp.float32)
                / jnp.sqrt(jnp.float32(fan_in)))

    def bias(c):
        return jax.random.normal(next(keys), (c,), jnp.float32) * 0.01

    def ffn_params(cin, hidden):
        return {
            "fc1_w": conv_w(hidden, cin, 1, 1), "fc1_b": bias(hidden),
            "fc2_w": conv_w(cin, hidden, 1, 1), "fc2_b": bias(cin),
        }

    # NOTE: biases for layers followed by affine-free InstanceNorm are kept in the
    # param tree (reference module has them) but are no-ops in the forward math.
    p = {
        "head_c1_w": conv_w(64, input_nc, 7, 7), "head_c1_b": bias(64),
        "head_c2_w": conv_w(128, 64, 3, 3),      "head_c2_b": bias(128),
        "head_c3_w": conv_w(256, 128, 3, 3),     "head_c3_b": bias(256),
        "vig": {"ffn1": ffn_params(256, 256 * 4), "ffn2": ffn_params(256, 256 * 4)},
        "res": {"w1": conv_w(256, 256, 3, 3), "b1": bias(256),
                "w2": conv_w(256, 256, 3, 3), "b2": bias(256)},
        # ConvTranspose2d weights have (Cin, Cout, KH, KW) layout in PyTorch.
        "t1_w": conv_w(256, 128, 3, 3), "t1_b": bias(128),
        "t2_w": conv_w(128, 64, 3, 3),  "t2_b": bias(64),
        "out_w": conv_w(output_nc, 64, 7, 7), "out_b": bias(output_nc),
        # nn.Parameter(torch.zeros(...)) — zeros, sized to the downsampled grid.
        "pos_embed": jnp.zeros((1, 256, img // 4, img // 4), jnp.float32),
    }
    return p


# ----------------------------------- main -------------------------------------

if __name__ == "__main__":
    INPUT_NC, OUTPUT_NC = 3, 3
    N, IMG = 2, 16   # small image (original module assumes 256x256)

    key = jax.random.PRNGKey(0)
    kx, kp = jax.random.split(key)
    x = jax.random.normal(kx, (N, INPUT_NC, IMG, IMG), jnp.float32)
    params = init_params(kp, INPUT_NC, OUTPUT_NC, IMG)

    fwd = jax.jit(generator_forward)
    out = fwd(x, params)
    out = jax.block_until_ready(out)

    assert out.shape == (N, OUTPUT_NC, IMG, IMG), out.shape
    assert bool(jnp.all(jnp.isfinite(out)))
    print("KERNEL_OK")
</pallas_src>

<mosaic_0001>
module attributes {stable_mosaic.version = 11 : i64} {
  func.func @_mm_kernel(%arg0: i32, %arg1: i32, %arg2: i32, %arg3: memref<512x256xbf16, #tpu.memory_space<vmem>>, %arg4: memref<256x128xbf16, #tpu.memory_space<vmem>>, %arg5: memref<1x128xf32, #tpu.memory_space<vmem>>, %arg6: memref<512x128xf32, #tpu.memory_space<vmem>>, %arg7: memref<512x128xf32, #tpu.memory_space<vmem>>) attributes {dimension_semantics = [#tpu.dimension_semantics<parallel>, #tpu.dimension_semantics<parallel>, #tpu.dimension_semantics<arbitrary>], iteration_bounds = array<i64: 1, 1, 1>, scalar_prefetch = 0 : i64, scratch_operands = 1 : i64, tpu.core_type = #tpu.core_type<tc>, window_params = [{transform_indices = @transform_0, window_bounds = array<i64: 512, 256>}, {transform_indices = @transform_1, window_bounds = array<i64: 256, 128>}, {transform_indices = @transform_2, window_bounds = array<i64: 1, 128>}, {transform_indices = @transform_3, window_bounds = array<i64: 512, 128>}]} {
    %c0_i32 = arith.constant 0 : i32
    %0 = arith.cmpi eq, %arg2, %c0_i32 : i32
    %1 = arith.extui %0 : i1 to i32
    %c0_i32_0 = arith.constant 0 : i32
    %2 = arith.cmpi ne, %1, %c0_i32_0 : i32
    scf.if %2 {
      %cst_10 = arith.constant 0.000000e+00 : f32
      %12 = vector.broadcast %cst_10 : f32 to vector<512x128xf32>
      %c0_11 = arith.constant 0 : index
      %c0_12 = arith.constant 0 : index
      %13 = vector.load %arg7[%c0_11, %c0_12] : memref<512x128xf32, #tpu.memory_space<vmem>>, vector<512x128xf32>
      tpu.vector_store %arg7[%c0_11, %c0_12], %12 {strides = array<i32>} : memref<512x128xf32, #tpu.memory_space<vmem>>, vector<512x128xf32>,
    } else {
    }
    %c0 = arith.constant 0 : index
    %c0_1 = arith.constant 0 : index
    %3 = vector.load %arg7[%c0, %c0_1] : memref<512x128xf32, #tpu.memory_space<vmem>>, vector<512x128xf32>
    %c0_2 = arith.constant 0 : index
    %c0_3 = arith.constant 0 : index
    %4 = vector.load %arg3[%c0_2, %c0_3] : memref<512x256xbf16, #tpu.memory_space<vmem>>, vector<512x256xbf16>
    %c0_4 = arith.constant 0 : index
    %c0_5 = arith.constant 0 : index
    %5 = vector.load %arg4[%c0_4, %c0_5] : memref<256x128xbf16, #tpu.memory_space<vmem>>, vector<256x128xbf16>
    %cst = arith.constant dense<0.000000e+00> : vector<512x128xf32>
    %6 = tpu.matmul %4, %5, %cst {dimension_numbers = #tpu.dot_dimension_numbers<[1], [0], [0], [1], [0, 0, 1, 1], [], []>} : vector<512x256xbf16>, vector<256x128xbf16>, vector<512x128xf32> -> vector<512x128xf32>
    %7 = arith.addf %3, %6 : vector<512x128xf32>
    %c0_6 = arith.constant 0 : index
    %c0_7 = arith.constant 0 : index
    %8 = vector.load %arg7[%c0_6, %c0_7] : memref<512x128xf32, #tpu.memory_space<vmem>>, vector<512x128xf32>
    tpu.vector_store %arg7[%c0_6, %c0_7], %7 {strides = array<i32>} : memref<512x128xf32, #tpu.memory_space<vmem>>, vector<512x128xf32>,
    %c0_i32_8 = arith.constant 0 : i32
    %9 = arith.cmpi eq, %arg2, %c0_i32_8 : i32
    %10 = arith.extui %9 : i1 to i32
    %c0_i32_9 = arith.constant 0 : i32
    %11 = arith.cmpi ne, %10, %c0_i32_9 : i32
    scf.if %11 {
      %c0_10 = arith.constant 0 : index
      %c0_11 = arith.constant 0 : index
      %12 = vector.load %arg7[%c0_10, %c0_11] : memref<512x128xf32, #tpu.memory_space<vmem>>, vector<512x128xf32>
      %c0_12 = arith.constant 0 : index
      %c0_13 = arith.constant 0 : index
      %13 = vector.load %arg5[%c0_12, %c0_13] : memref<1x128xf32, #tpu.memory_space<vmem>>, vector<1x128xf32>
      %14 = vector.broadcast %13 : vector<1x128xf32> to vector<512x128xf32>
      %15 = arith.addf %12, %14 : vector<512x128xf32>
      %c0_14 = arith.constant 0 : index
      %c0_15 = arith.constant 0 : index
      %16 = vector.load %arg6[%c0_14, %c0_15] : memref<512x128xf32, #tpu.memory_space<vmem>>, vector<512x128xf32>
      tpu.vector_store %arg6[%c0_14, %c0_15], %15 {strides = array<i32>} : memref<512x128xf32, #tpu.memory_space<vmem>>, vector<512x128xf32>,
    } else {
    }
    return
  }
  func.func @transform_0(%arg0: i32, %arg1: i32, %arg2: i32) -> (i32, i32) {
    %c0_i32 = arith.constant 0 : i32
    return %arg0, %arg2 : i32, i32
  }
  func.func @transform_1(%arg0: i32, %arg1: i32, %arg2: i32) -> (i32, i32) {
    %c0_i32 = arith.constant 0 : i32
    return %arg2, %arg1 : i32, i32
  }
  func.func @transform_2(%arg0: i32, %arg1: i32, %arg2: i32) -> (i32, i32) {
    %c0_i32 = arith.constant 0 : i32
    %c0_i32_0 = arith.constant 0 : i32
    return %c0_i32, %arg1 : i32, i32
  }
  func.func @transform_3(%arg0: i32, %arg1: i32, %arg2: i32) -> (i32, i32) {
    %c0_i32 = arith.constant 0 : i32
    return %arg0, %arg1 : i32, i32
  }
}

module attributes {stable_mosaic.version = 11 : i64} {
  func.func @_in_fused_kernel(%arg0: i32, %arg1: i32, %arg2: memref<1x256x64xf32, #tpu.memory_space<vmem>>, %arg3: memref<1x256x64xf32, #tpu.memory_space<vmem>>) attributes {dimension_semantics = [#tpu.dimension_semantics<parallel>, #tpu.dimension_semantics<parallel>], iteration_bounds = array<i64: 2, 1>, scalar_prefetch = 0 : i64, scratch_operands = 0 : i64, tpu.core_type = #tpu.core_type<tc>, window_params = [{transform_indices = @transform_0, window_bounds = array<i64: 1, 256, 64>}, {transform_indices = @transform_1, window_bounds = array<i64: 1, 256, 64>}]} {
    %c0 = arith.constant 0 : index
    %c0_0 = arith.constant 0 : index
    %c0_1 = arith.constant 0 : index
    %0 = vector.load %arg2[%c0, %c0_0, %c0_1] : memref<1x256x64xf32, #tpu.memory_space<vmem>>, vector<1x256x64xf32>
    %cst = arith.constant dense<0.000000e+00> : vector<1x64xf32>
    %1 = vector.multi_reduction <add>, %0, %cst [1] : vector<1x256x64xf32> to vector<1x64xf32>
    %2 = vector.shape_cast %1 : vector<1x64xf32> to vector<1x1x64xf32>
    %cst_2 = arith.constant 2.560000e+02 : f32
    %3 = vector.broadcast %cst_2 : f32 to vector<1x1x64xf32>
    %4 = arith.divf %2, %3 : vector<1x1x64xf32>
    %5 = vector.broadcast %4 : vector<1x1x64xf32> to vector<1x256x64xf32>
    %6 = arith.subf %0, %5 : vector<1x256x64xf32>
    %7 = arith.mulf %6, %6 : vector<1x256x64xf32>
    %cst_3 = arith.constant dense<0.000000e+00> : vector<1x64xf32>
    %8 = vector.multi_reduction <add>, %7, %cst_3 [1] : vector<1x256x64xf32> to vector<1x64xf32>
    %9 = vector.shape_cast %8 : vector<1x64xf32> to vector<1x1x64xf32>
    %cst_4 = arith.constant 2.560000e+02 : f32
    %10 = vector.broadcast %cst_4 : f32 to vector<1x1x64xf32>
    %11 = arith.divf %9, %10 : vector<1x1x64xf32>
    %cst_5 = arith.constant 9.99999974E-6 : f32
    %12 = vector.broadcast %cst_5 : f32 to vector<1x1x64xf32>
    %13 = arith.addf %11, %12 : vector<1x1x64xf32>
    %14 = math.rsqrt %13 : vector<1x1x64xf32>
    %15 = vector.broadcast %14 : vector<1x1x64xf32> to vector<1x256x64xf32>
    %16 = arith.mulf %6, %15 : vector<1x256x64xf32>
    %cst_6 = arith.constant 0.000000e+00 : f32
    %17 = vector.broadcast %cst_6 : f32 to vector<1x256x64xf32>
    %18 = arith.maximumf %16, %17 : vector<1x256x64xf32>
    %c0_7 = arith.constant 0 : index
    %c0_8 = arith.constant 0 : index
    %c0_9 = arith.constant 0 : index
    %19 = vector.load %arg3[%c0_7, %c0_8, %c0_9] : memref<1x256x64xf32, #tpu.memory_space<vmem>>, vector<1x256x64xf32>
    tpu.vector_store %arg3[%c0_7, %c0_8, %c0_9], %18 {strides = array<i32>} : memref<1x256x64xf32, #tpu.memory_space<vmem>>, vector<1x256x64xf32>,
    return
  }
  func.func @transform_0(%arg0: i32, %arg1: i32) -> (i32, i32, i32) {
    %c0_i32 = arith.constant 0 : i32
    %c0_i32_0 = arith.constant 0 : i32
    return %arg0, %c0_i32, %arg1 : i32, i32, i32
  }
  func.func @transform_1(%arg0: i32, %arg1: i32) -> (i32, i32, i32) {
    %c0_i32 = arith.constant 0 : i32
    %c0_i32_0 = arith.constant 0 : i32
    return %arg0, %c0_i32, %arg1 : i32, i32, i32
  }
}

module attributes {stable_mosaic.version = 11 : i64} {
  func.func @_mm_kernel(%arg0: i32, %arg1: i32, %arg2: i32, %arg3: memref<128x256xbf16, #tpu.memory_space<vmem>>, %arg4: memref<256x128xbf16, #tpu.memory_space<vmem>>, %arg5: memref<1x128xf32, #tpu.memory_space<vmem>>, %arg6: memref<128x128xf32, #tpu.memory_space<vmem>>, %arg7: memref<128x128xf32, #tpu.memory_space<vmem>>) attributes {dimension_semantics = [#tpu.dimension_semantics<parallel>, #tpu.dimension_semantics<parallel>, #tpu.dimension_semantics<arbitrary>], iteration_bounds = array<i64: 1, 1, 3>, scalar_prefetch = 0 : i64, scratch_operands = 1 : i64, tpu.core_type = #tpu.core_type<tc>, window_params = [{transform_indices = @transform_0, window_bounds = array<i64: 128, 256>}, {transform_indices = @transform_1, window_bounds = array<i64: 256, 128>}, {transform_indices = @transform_2, window_bounds = array<i64: 1, 128>}, {transform_indices = @transform_3, window_bounds = array<i64: 128, 128>}]} {
    %c0_i32 = arith.constant 0 : i32
    %0 = arith.cmpi eq, %arg2, %c0_i32 : i32
    %1 = arith.extui %0 : i1 to i32
    %c0_i32_0 = arith.constant 0 : i32
    %2 = arith.cmpi ne, %1, %c0_i32_0 : i32
    scf.if %2 {
      %cst_9 = arith.constant 0.000000e+00 : f32
      %12 = vector.broadcast %cst_9 : f32 to vector<128x128xf32>
      %c0_10 = arith.constant 0 : index
      %c0_11 = arith.constant 0 : index
      %13 = vector.load %arg7[%c0_10, %c0_11] : memref<128x128xf32, #tpu.memory_space<vmem>>, vector<128x128xf32>
      tpu.vector_store %arg7[%c0_10, %c0_11], %12 {strides = array<i32>} : memref<128x128xf32, #tpu.memory_space<vmem>>, vector<128x128xf32>,
    } else {
    }
    %c0 = arith.constant 0 : index
    %c0_1 = arith.constant 0 : index
    %3 = vector.load %arg7[%c0, %c0_1] : memref<128x128xf32, #tpu.memory_space<vmem>>, vector<128x128xf32>
    %c0_2 = arith.constant 0 : index
    %c0_3 = arith.constant 0 : index
    %4 = vector.load %arg3[%c0_2, %c0_3] : memref<128x256xbf16, #tpu.memory_space<vmem>>, vector<128x256xbf16>
    %c0_4 = arith.constant 0 : index
    %c0_5 = arith.constant 0 : index
    %5 = vector.load %arg4[%c0_4, %c0_5] : memref<256x128xbf16, #tpu.memory_space<vmem>>, vector<256x128xbf16>
    %cst = arith.constant dense<0.000000e+00> : vector<128x128xf32>
    %6 = tpu.matmul %4, %5, %cst {dimension_numbers = #tpu.dot_dimension_numbers<[1], [0], [0], [1], [0, 0, 1, 1], [], []>} : vector<128x256xbf16>, vector<256x128xbf16>, vector<128x128xf32> -> vector<128x128xf32>
    %7 = arith.addf %3, %6 : vector<128x128xf32>
    %c0_6 = arith.constant 0 : index
    %c0_7 = arith.constant 0 : index
    %8 = vector.load %arg7[%c0_6, %c0_7] : memref<128x128xf32, #tpu.memory_space<vmem>>, vector<128x128xf32>
    tpu.vector_store %arg7[%c0_6, %c0_7], %7 {strides = array<i32>} : memref<128x128xf32, #tpu.memory_space<vmem>>, vector<128x128xf32>,
    %c2_i32 = arith.constant 2 : i32
    %9 = arith.cmpi eq, %arg2, %c2_i32 : i32
    %10 = arith.extui %9 : i1 to i32
    %c0_i32_8 = arith.constant 0 : i32
    %11 = arith.cmpi ne, %10, %c0_i32_8 : i32
    scf.if %11 {
      %c0_9 = arith.constant 0 : index
      %c0_10 = arith.constant 0 : index
      %12 = vector.load %arg7[%c0_9, %c0_10] : memref<128x128xf32, #tpu.memory_space<vmem>>, vector<128x128xf32>
      %c0_11 = arith.constant 0 : index
      %c0_12 = arith.constant 0 : index
      %13 = vector.load %arg5[%c0_11, %c0_12] : memref<1x128xf32, #tpu.memory_space<vmem>>, vector<1x128xf32>
      %14 = vector.broadcast %13 : vector<1x128xf32> to vector<128x128xf32>
      %15 = arith.addf %12, %14 : vector<128x128xf32>
      %c0_13 = arith.constant 0 : index
      %c0_14 = arith.constant 0 : index
      %16 = vector.load %arg6[%c0_13, %c0_14] : memref<128x128xf32, #tpu.memory_space<vmem>>, vector<128x128xf32>
      tpu.vector_store %arg6[%c0_13, %c0_14], %15 {strides = array<i32>} : memref<128x128xf32, #tpu.memory_space<vmem>>, vector<128x128xf32>,
    } else {
    }
    return
  }
  func.func @transform_0(%arg0: i32, %arg1: i32, %arg2: i32) -> (i32, i32) {
    %c0_i32 = arith.constant 0 : i32
    return %arg0, %arg2 : i32, i32
  }
  func.func @transform_1(%arg0: i32, %arg1: i32, %arg2: i32) -> (i32, i32) {
    %c0_i32 = arith.constant 0 : i32
    return %arg2, %arg1 : i32, i32
  }
  func.func @transform_2(%arg0: i32, %arg1: i32, %arg2: i32) -> (i32, i32) {
    %c0_i32 = arith.constant 0 : i32
    %c0_i32_0 = arith.constant 0 : i32
    return %c0_i32, %arg1 : i32, i32
  }
  func.func @transform_3(%arg0: i32, %arg1: i32, %arg2: i32) -> (i32, i32) {
    %c0_i32 = arith.constant 0 : i32
    return %arg0, %arg1 : i32, i32
  }
}

module attributes {stable_mosaic.version = 11 : i64} {
  func.func @_in_fused_kernel(%arg0: i32, %arg1: i32, %arg2: memref<1x64x128xf32, #tpu.memory_space<vmem>>, %arg3: memref<1x64x128xf32, #tpu.memory_space<vmem>>) attributes {dimension_semantics = [#tpu.dimension_semantics<parallel>, #tpu.dimension_semantics<parallel>], iteration_bounds = array<i64: 2, 1>, scalar_prefetch = 0 : i64, scratch_operands = 0 : i64, tpu.core_type = #tpu.core_type<tc>, window_params = [{transform_indices = @transform_0, window_bounds = array<i64: 1, 64, 128>}, {transform_indices = @transform_1, window_bounds = array<i64: 1, 64, 128>}]} {
    %c0 = arith.constant 0 : index
    %c0_0 = arith.constant 0 : index
    %c0_1 = arith.constant 0 : index
    %0 = vector.load %arg2[%c0, %c0_0, %c0_1] : memref<1x64x128xf32, #tpu.memory_space<vmem>>, vector<1x64x128xf32>
    %cst = arith.constant dense<0.000000e+00> : vector<1x128xf32>
    %1 = vector.multi_reduction <add>, %0, %cst [1] : vector<1x64x128xf32> to vector<1x128xf32>
    %2 = vector.shape_cast %1 : vector<1x128xf32> to vector<1x1x128xf32>
    %cst_2 = arith.constant 6.400000e+01 : f32
    %3 = vector.broadcast %cst_2 : f32 to vector<1x1x128xf32>
    %4 = arith.divf %2, %3 : vector<1x1x128xf32>
    %5 = vector.broadcast %4 : vector<1x1x128xf32> to vector<1x64x128xf32>
    %6 = arith.subf %0, %5 : vector<1x64x128xf32>
    %7 = arith.mulf %6, %6 : vector<1x64x128xf32>
    %cst_3 = arith.constant dense<0.000000e+00> : vector<1x128xf32>
    %8 = vector.multi_reduction <add>, %7, %cst_3 [1] : vector<1x64x128xf32> to vector<1x128xf32>
    %9 = vector.shape_cast %8 : vector<1x128xf32> to vector<1x1x128xf32>
    %cst_4 = arith.constant 6.400000e+01 : f32
    %10 = vector.broadcast %cst_4 : f32 to vector<1x1x128xf32>
    %11 = arith.divf %9, %10 : vector<1x1x128xf32>
    %cst_5 = arith.constant 9.99999974E-6 : f32
    %12 = vector.broadcast %cst_5 : f32 to vector<1x1x128xf32>
    %13 = arith.addf %11, %12 : vector<1x1x128xf32>
    %14 = math.rsqrt %13 : vector<1x1x128xf32>
    %15 = vector.broadcast %14 : vector<1x1x128xf32> to vector<1x64x128xf32>
    %16 = arith.mulf %6, %15 : vector<1x64x128xf32>
    %cst_6 = arith.constant 0.000000e+00 : f32
    %17 = vector.broadcast %cst_6 : f32 to vector<1x64x128xf32>
    %18 = arith.maximumf %16, %17 : vector<1x64x128xf32>
    %c0_7 = arith.constant 0 : index
    %c0_8 = arith.constant 0 : index
    %c0_9 = arith.constant 0 : index
    %19 = vector.load %arg3[%c0_7, %c0_8, %c0_9] : memref<1x64x128xf32, #tpu.memory_space<vmem>>, vector<1x64x128xf32>
    tpu.vector_store %arg3[%c0_7, %c0_8, %c0_9], %18 {strides = array<i32>} : memref<1x64x128xf32, #tpu.memory_space<vmem>>, vector<1x64x128xf32>,
    return
  }
  func.func @transform_0(%arg0: i32, %arg1: i32) -> (i32, i32, i32) {
    %c0_i32 = arith.constant 0 : i32
    %c0_i32_0 = arith.constant 0 : i32
    return %arg0, %c0_i32, %arg1 : i32, i32, i32
  }
  func.func @transform_1(%arg0: i32, %arg1: i32) -> (i32, i32, i32) {
    %c0_i32 = arith.constant 0 : i32
    %c0_i32_0 = arith.constant 0 : i32
    return %arg0, %c0_i32, %arg1 : i32, i32, i32
  }
}

module attributes {stable_mosaic.version = 11 : i64} {
  func.func @_in_fused_kernel(%arg0: i32, %arg1: i32, %arg2: memref<1x16x256xf32, #tpu.memory_space<vmem>>, %arg3: memref<1x16x256xf32, #tpu.memory_space<vmem>>) attributes {dimension_semantics = [#tpu.dimension_semantics<parallel>, #tpu.dimension_semantics<parallel>], iteration_bounds = array<i64: 2, 1>, scalar_prefetch = 0 : i64, scratch_operands = 0 : i64, tpu.core_type = #tpu.core_type<tc>, window_params = [{transform_indices = @transform_0, window_bounds = array<i64: 1, 16, 256>}, {transform_indices = @transform_1, window_bounds = array<i64: 1, 16, 256>}]} {
    %c0 = arith.constant 0 : index
    %c0_0 = arith.constant 0 : index
    %c0_1 = arith.constant 0 : index
    %0 = vector.load %arg2[%c0, %c0_0, %c0_1] : memref<1x16x256xf32, #tpu.memory_space<vmem>>, vector<1x16x256xf32>
    %cst = arith.constant dense<0.000000e+00> : vector<1x256xf32>
    %1 = vector.multi_reduction <add>, %0, %cst [1] : vector<1x16x256xf32> to vector<1x256xf32>
    %2 = vector.shape_cast %1 : vector<1x256xf32> to vector<1x1x256xf32>
    %cst_2 = arith.constant 1.600000e+01 : f32
    %3 = vector.broadcast %cst_2 : f32 to vector<1x1x256xf32>
    %4 = arith.divf %2, %3 : vector<1x1x256xf32>
    %5 = vector.broadcast %4 : vector<1x1x256xf32> to vector<1x16x256xf32>
    %6 = arith.subf %0, %5 : vector<1x16x256xf32>
    %7 = arith.mulf %6, %6 : vector<1x16x256xf32>
    %cst_3 = arith.constant dense<0.000000e+00> : vector<1x256xf32>
    %8 = vector.multi_reduction <add>, %7, %cst_3 [1] : vector<1x16x256xf32> to vector<1x256xf32>
    %9 = vector.shape_cast %8 : vector<1x256xf32> to vector<1x1x256xf32>
    %cst_4 = arith.constant 1.600000e+01 : f32
    %10 = vector.broadcast %cst_4 : f32 to vector<1x1x256xf32>
    %11 = arith.divf %9, %10 : vector<1x1x256xf32>
    %cst_5 = arith.constant 9.99999974E-6 : f32
    %12 = vector.broadcast %cst_5 : f32 to vector<1x1x256xf32>
    %13 = arith.addf %11, %12 : vector<1x1x256xf32>
    %14 = math.rsqrt %13 : vector<1x1x256xf32>
    %15 = vector.broadcast %14 : vector<1x1x256xf32> to vector<1x16x256xf32>
    %16 = arith.mulf %6, %15 : vector<1x16x256xf32>
    %cst_6 = arith.constant 0.000000e+00 : f32
    %17 = vector.broadcast %cst_6 : f32 to vector<1x16x256xf32>
    %18 = arith.maximumf %16, %17 : vector<1x16x256xf32>
    %c0_7 = arith.constant 0 : index
    %c0_8 = arith.constant 0 : index
    %c0_9 = arith.constant 0 : index
    %19 = vector.load %arg3[%c0_7, %c0_8, %c0_9] : memref<1x16x256xf32, #tpu.memory_space<vmem>>, vector<1x16x256xf32>
    tpu.vector_store %arg3[%c0_7, %c0_8, %c0_9], %18 {strides = array<i32>} : memref<1x16x256xf32, #tpu.memory_space<vmem>>, vector<1x16x256xf32>,
    return
  }
  func.func @transform_0(%arg0: i32, %arg1: i32) -> (i32, i32, i32) {
    %c0_i32 = arith.constant 0 : i32
    %c0_i32_0 = arith.constant 0 : i32
    return %arg0, %c0_i32, %arg1 : i32, i32, i32
  }
  func.func @transform_1(%arg0: i32, %arg1: i32) -> (i32, i32, i32) {
    %c0_i32 = arith.constant 0 : i32
    %c0_i32_0 = arith.constant 0 : i32
    return %arg0, %c0_i32, %arg1 : i32, i32, i32
  }
}

module attributes {stable_mosaic.version = 11 : i64} {
  func.func @_mm_kernel(%arg0: i32, %arg1: i32, %arg2: i32, %arg3: memref<32x256xbf16, #tpu.memory_space<vmem>>, %arg4: memref<256x256xbf16, #tpu.memory_space<vmem>>, %arg5: memref<1x256xf32, #tpu.memory_space<vmem>>, %arg6: memref<32x256xf32, #tpu.memory_space<vmem>>, %arg7: memref<32x256xf32, #tpu.memory_space<vmem>>) attributes {dimension_semantics = [#tpu.dimension_semantics<parallel>, #tpu.dimension_semantics<parallel>, #tpu.dimension_semantics<arbitrary>], iteration_bounds = array<i64: 1, 1, 5>, scalar_prefetch = 0 : i64, scratch_operands = 1 : i64, tpu.core_type = #tpu.core_type<tc>, window_params = [{transform_indices = @transform_0, window_bounds = array<i64: 32, 256>}, {transform_indices = @transform_1, window_bounds = array<i64: 256, 256>}, {transform_indices = @transform_2, window_bounds = array<i64: 1, 256>}, {transform_indices = @transform_3, window_bounds = array<i64: 32, 256>}]} {
    %c0_i32 = arith.constant 0 : i32
    %0 = arith.cmpi eq, %arg2, %c0_i32 : i32
    %1 = arith.extui %0 : i1 to i32
    %c0_i32_0 = arith.constant 0 : i32
    %2 = arith.cmpi ne, %1, %c0_i32_0 : i32
    scf.if %2 {
      %cst_9 = arith.constant 0.000000e+00 : f32
      %12 = vector.broadcast %cst_9 : f32 to vector<32x256xf32>
      %c0_10 = arith.constant 0 : index
      %c0_11 = arith.constant 0 : index
      %13 = vector.load %arg7[%c0_10, %c0_11] : memref<32x256xf32, #tpu.memory_space<vmem>>, vector<32x256xf32>
      tpu.vector_store %arg7[%c0_10, %c0_11], %12 {strides = array<i32>} : memref<32x256xf32, #tpu.memory_space<vmem>>, vector<32x256xf32>,
    } else {
    }
    %c0 = arith.constant 0 : index
    %c0_1 = arith.constant 0 : index
    %3 = vector.load %arg7[%c0, %c0_1] : memref<32x256xf32, #tpu.memory_space<vmem>>, vector<32x256xf32>
    %c0_2 = arith.constant 0 : index
    %c0_3 = arith.constant 0 : index
    %4 = vector.load %arg3[%c0_2, %c0_3] : memref<32x256xbf16, #tpu.memory_space<vmem>>, vector<32x256xbf16>
    %c0_4 = arith.constant 0 : index
    %c0_5 = arith.constant 0 : index
    %5 = vector.load %arg4[%c0_4, %c0_5] : memref<256x256xbf16, #tpu.memory_space<vmem>>, vector<256x256xbf16>
    %cst = arith.constant dense<0.000000e+00> : vector<32x256xf32>
    %6 = tpu.matmul %4, %5, %cst {dimension_numbers = #tpu.dot_dimension_numbers<[1], [0], [0], [1], [0, 0, 1, 1], [], []>} : vector<32x256xbf16>, vector<256x256xbf16>, vector<32x256xf32> -> vector<32x256xf32>
    %7 = arith.addf %3, %6 : vector<32x256xf32>
    %c0_6 = arith.constant 0 : index
    %c0_7 = arith.constant 0 : index
    %8 = vector.load %arg7[%c0_6, %c0_7] : memref<32x256xf32, #tpu.memory_space<vmem>>, vector<32x256xf32>
    tpu.vector_store %arg7[%c0_6, %c0_7], %7 {strides = array<i32>} : memref<32x256xf32, #tpu.memory_space<vmem>>, vector<32x256xf32>,
    %c4_i32 = arith.constant 4 : i32
    %9 = arith.cmpi eq, %arg2, %c4_i32 : i32
    %10 = arith.extui %9 : i1 to i32
    %c0_i32_8 = arith.constant 0 : i32
    %11 = arith.cmpi ne, %10, %c0_i32_8 : i32
    scf.if %11 {
      %c0_9 = arith.constant 0 : index
      %c0_10 = arith.constant 0 : index
      %12 = vector.load %arg7[%c0_9, %c0_10] : memref<32x256xf32, #tpu.memory_space<vmem>>, vector<32x256xf32>
      %c0_11 = arith.constant 0 : index
      %c0_12 = arith.constant 0 : index
      %13 = vector.load %arg5[%c0_11, %c0_12] : memref<1x256xf32, #tpu.memory_space<vmem>>, vector<1x256xf32>
      %14 = vector.broadcast %13 : vector<1x256xf32> to vector<32x256xf32>
      %15 = arith.addf %12, %14 : vector<32x256xf32>
      %c0_13 = arith.constant 0 : index
      %c0_14 = arith.constant 0 : index
      %16 = vector.load %arg6[%c0_13, %c0_14] : memref<32x256xf32, #tpu.memory_space<vmem>>, vector<32x256xf32>
      tpu.vector_store %arg6[%c0_13, %c0_14], %15 {strides = array<i32>} : memref<32x256xf32, #tpu.memory_space<vmem>>, vector<32x256xf32>,
    } else {
    }
    return
  }
  func.func @transform_0(%arg0: i32, %arg1: i32, %arg2: i32) -> (i32, i32) {
    %c0_i32 = arith.constant 0 : i32
    return %arg0, %arg2 : i32, i32
  }
  func.func @transform_1(%arg0: i32, %arg1: i32, %arg2: i32) -> (i32, i32) {
    %c0_i32 = arith.constant 0 : i32
    return %arg2, %arg1 : i32, i32
  }
  func.func @transform_2(%arg0: i32, %arg1: i32, %arg2: i32) -> (i32, i32) {
    %c0_i32 = arith.constant 0 : i32
    %c0_i32_0 = arith.constant 0 : i32
    return %c0_i32, %arg1 : i32, i32
  }
  func.func @transform_3(%arg0: i32, %arg1: i32, %arg2: i32) -> (i32, i32) {
    %c0_i32 = arith.constant 0 : i32
    return %arg0, %arg1 : i32, i32
  }
}

module attributes {stable_mosaic.version = 11 : i64} {
  func.func @_mm_kernel(%arg0: i32, %arg1: i32, %arg2: i32, %arg3: memref<32x256xbf16, #tpu.memory_space<vmem>>, %arg4: memref<256x256xbf16, #tpu.memory_space<vmem>>, %arg5: memref<1x256xf32, #tpu.memory_space<vmem>>, %arg6: memref<32x256xf32, #tpu.memory_space<vmem>>, %arg7: memref<32x256xf32, #tpu.memory_space<vmem>>) attributes {dimension_semantics = [#tpu.dimension_semantics<parallel>, #tpu.dimension_semantics<parallel>, #tpu.dimension_semantics<arbitrary>], iteration_bounds = array<i64: 1, 4, 1>, scalar_prefetch = 0 : i64, scratch_operands = 1 : i64, tpu.core_type = #tpu.core_type<tc>, window_params = [{transform_indices = @transform_0, window_bounds = array<i64: 32, 256>}, {transform_indices = @transform_1, window_bounds = array<i64: 256, 256>}, {transform_indices = @transform_2, window_bounds = array<i64: 1, 256>}, {transform_indices = @transform_3, window_bounds = array<i64: 32, 256>}]} {
    %c0_i32 = arith.constant 0 : i32
    %0 = arith.cmpi eq, %arg2, %c0_i32 : i32
    %1 = arith.extui %0 : i1 to i32
    %c0_i32_0 = arith.constant 0 : i32
    %2 = arith.cmpi ne, %1, %c0_i32_0 : i32
    scf.if %2 {
      %cst_10 = arith.constant 0.000000e+00 : f32
      %12 = vector.broadcast %cst_10 : f32 to vector<32x256xf32>
      %c0_11 = arith.constant 0 : index
      %c0_12 = arith.constant 0 : index
      %13 = vector.load %arg7[%c0_11, %c0_12] : memref<32x256xf32, #tpu.memory_space<vmem>>, vector<32x256xf32>
      tpu.vector_store %arg7[%c0_11, %c0_12], %12 {strides = array<i32>} : memref<32x256xf32, #tpu.memory_space<vmem>>, vector<32x256xf32>,
    } else {
    }
    %c0 = arith.constant 0 : index
    %c0_1 = arith.constant 0 : index
    %3 = vector.load %arg7[%c0, %c0_1] : memref<32x256xf32, #tpu.memory_space<vmem>>, vector<32x256xf32>
    %c0_2 = arith.constant 0 : index
    %c0_3 = arith.constant 0 : index
    %4 = vector.load %arg3[%c0_2, %c0_3] : memref<32x256xbf16, #tpu.memory_space<vmem>>, vector<32x256xbf16>
    %c0_4 = arith.constant 0 : index
    %c0_5 = arith.constant 0 : index
    %5 = vector.load %arg4[%c0_4, %c0_5] : memref<256x256xbf16, #tpu.memory_space<vmem>>, vector<256x256xbf16>
    %cst = arith.constant dense<0.000000e+00> : vector<32x256xf32>
    %6 = tpu.matmul %4, %5, %cst {dimension_numbers = #tpu.dot_dimension_numbers<[1], [0], [0], [1], [0, 0, 1, 1], [], []>} : vector<32x256xbf16>, vector<256x256xbf16>, vector<32x256xf32> -> vector<32x256xf32>
    %7 = arith.addf %3, %6 : vector<32x256xf32>
    %c0_6 = arith.constant 0 : index
    %c0_7 = arith.constant 0 : index
    %8 = vector.load %arg7[%c0_6, %c0_7] : memref<32x256xf32, #tpu.memory_space<vmem>>, vector<32x256xf32>
    tpu.vector_store %arg7[%c0_6, %c0_7], %7 {strides = array<i32>} : memref<32x256xf32, #tpu.memory_space<vmem>>, vector<32x256xf32>,
    %c0_i32_8 = arith.constant 0 : i32
    %9 = arith.cmpi eq, %arg2, %c0_i32_8 : i32
    %10 = arith.extui %9 : i1 to i32
    %c0_i32_9 = arith.constant 0 : i32
    %11 = arith.cmpi ne, %10, %c0_i32_9 : i32
    scf.if %11 {
      %c0_10 = arith.constant 0 : index
      %c0_11 = arith.constant 0 : index
      %12 = vector.load %arg7[%c0_10, %c0_11] : memref<32x256xf32, #tpu.memory_space<vmem>>, vector<32x256xf32>
      %c0_12 = arith.constant 0 : index
      %c0_13 = arith.constant 0 : index
      %13 = vector.load %arg5[%c0_12, %c0_13] : memref<1x256xf32, #tpu.memory_space<vmem>>, vector<1x256xf32>
      %14 = vector.broadcast %13 : vector<1x256xf32> to vector<32x256xf32>
      %15 = arith.addf %12, %14 : vector<32x256xf32>
      %c0_14 = arith.constant 0 : index
      %c0_15 = arith.constant 0 : index
      %16 = vector.load %arg6[%c0_14, %c0_15] : memref<32x256xf32, #tpu.memory_space<vmem>>, vector<32x256xf32>
      tpu.vector_store %arg6[%c0_14, %c0_15], %15 {strides = array<i32>} : memref<32x256xf32, #tpu.memory_space<vmem>>, vector<32x256xf32>,
    } else {
    }
    return
  }
  func.func @transform_0(%arg0: i32, %arg1: i32, %arg2: i32) -> (i32, i32) {
    %c0_i32 = arith.constant 0 : i32
    return %arg0, %arg2 : i32, i32
  }
  func.func @transform_1(%arg0: i32, %arg1: i32, %arg2: i32) -> (i32, i32) {
    %c0_i32 = arith.constant 0 : i32
    return %arg2, %arg1 : i32, i32
  }
  func.func @transform_2(%arg0: i32, %arg1: i32, %arg2: i32) -> (i32, i32) {
    %c0_i32 = arith.constant 0 : i32
    %c0_i32_0 = arith.constant 0 : i32
    return %c0_i32, %arg1 : i32, i32
  }
  func.func @transform_3(%arg0: i32, %arg1: i32, %arg2: i32) -> (i32, i32) {
    %c0_i32 = arith.constant 0 : i32
    return %arg0, %arg1 : i32, i32
  }
}

module attributes {stable_mosaic.version = 11 : i64} {
  func.func @_in_fused_kernel(%arg0: i32, %arg1: i32, %arg2: memref<1x16x256xf32, #tpu.memory_space<vmem>>, %arg3: memref<1x16x256xf32, #tpu.memory_space<vmem>>) attributes {dimension_semantics = [#tpu.dimension_semantics<parallel>, #tpu.dimension_semantics<parallel>], iteration_bounds = array<i64: 2, 4>, scalar_prefetch = 0 : i64, scratch_operands = 0 : i64, tpu.core_type = #tpu.core_type<tc>, window_params = [{transform_indices = @transform_0, window_bounds = array<i64: 1, 16, 256>}, {transform_indices = @transform_1, window_bounds = array<i64: 1, 16, 256>}]} {
    %c0 = arith.constant 0 : index
    %c0_0 = arith.constant 0 : index
    %c0_1 = arith.constant 0 : index
    %0 = vector.load %arg2[%c0, %c0_0, %c0_1] : memref<1x16x256xf32, #tpu.memory_space<vmem>>, vector<1x16x256xf32>
    %cst = arith.constant dense<0.000000e+00> : vector<1x256xf32>
    %1 = vector.multi_reduction <add>, %0, %cst [1] : vector<1x16x256xf32> to vector<1x256xf32>
    %2 = vector.shape_cast %1 : vector<1x256xf32> to vector<1x1x256xf32>
    %cst_2 = arith.constant 1.600000e+01 : f32
    %3 = vector.broadcast %cst_2 : f32 to vector<1x1x256xf32>
    %4 = arith.divf %2, %3 : vector<1x1x256xf32>
    %5 = vector.broadcast %4 : vector<1x1x256xf32> to vector<1x16x256xf32>
    %6 = arith.subf %0, %5 : vector<1x16x256xf32>
    %7 = arith.mulf %6, %6 : vector<1x16x256xf32>
    %cst_3 = arith.constant dense<0.000000e+00> : vector<1x256xf32>
    %8 = vector.multi_reduction <add>, %7, %cst_3 [1] : vector<1x16x256xf32> to vector<1x256xf32>
    %9 = vector.shape_cast %8 : vector<1x256xf32> to vector<1x1x256xf32>
    %cst_4 = arith.constant 1.600000e+01 : f32
    %10 = vector.broadcast %cst_4 : f32 to vector<1x1x256xf32>
    %11 = arith.divf %9, %10 : vector<1x1x256xf32>
    %cst_5 = arith.constant 9.99999974E-6 : f32
    %12 = vector.broadcast %cst_5 : f32 to vector<1x1x256xf32>
    %13 = arith.addf %11, %12 : vector<1x1x256xf32>
    %14 = math.rsqrt %13 : vector<1x1x256xf32>
    %15 = vector.broadcast %14 : vector<1x1x256xf32> to vector<1x16x256xf32>
    %16 = arith.mulf %6, %15 : vector<1x16x256xf32>
    %cst_6 = arith.constant 5.000000e-01 : f32
    %17 = vector.broadcast %cst_6 : f32 to vector<1x16x256xf32>
    %18 = arith.mulf %17, %16 : vector<1x16x256xf32>
    %cst_7 = arith.constant 4.471500e-02 : f32
    %19 = vector.broadcast %cst_7 : f32 to vector<1x16x256xf32>
    %20 = arith.mulf %19, %16 : vector<1x16x256xf32>
    %21 = arith.mulf %20, %16 : vector<1x16x256xf32>
    %22 = arith.mulf %21, %16 : vector<1x16x256xf32>
    %23 = arith.addf %16, %22 : vector<1x16x256xf32>
    %cst_8 = arith.constant 0.797884583 : f32
    %24 = vector.broadcast %cst_8 : f32 to vector<1x16x256xf32>
    %25 = arith.mulf %24, %23 : vector<1x16x256xf32>
    %26 = math.tanh %25 : vector<1x16x256xf32>
    %cst_9 = arith.constant 1.000000e+00 : f32
    %27 = vector.broadcast %cst_9 : f32 to vector<1x16x256xf32>
    %28 = arith.addf %27, %26 : vector<1x16x256xf32>
    %29 = arith.mulf %18, %28 : vector<1x16x256xf32>
    %c0_10 = arith.constant 0 : index
    %c0_11 = arith.constant 0 : index
    %c0_12 = arith.constant 0 : index
    %30 = vector.load %arg3[%c0_10, %c0_11, %c0_12] : memref<1x16x256xf32, #tpu.memory_space<vmem>>, vector<1x16x256xf32>
    tpu.vector_store %arg3[%c0_10, %c0_11, %c0_12], %29 {strides = array<i32>} : memref<1x16x256xf32, #tpu.memory_space<vmem>>, vector<1x16x256xf32>,
    return
  }
  func.func @transform_0(%arg0: i32, %arg1: i32) -> (i32, i32, i32) {
    %c0_i32 = arith.constant 0 : i32
    %c0_i32_0 = arith.constant 0 : i32
    return %arg0, %c0_i32, %arg1 : i32, i32, i32
  }
  func.func @transform_1(%arg0: i32, %arg1: i32) -> (i32, i32, i32) {
    %c0_i32 = arith.constant 0 : i32
    %c0_i32_0 = arith.constant 0 : i32
    return %arg0, %c0_i32, %arg1 : i32, i32, i32
  }
}

module attributes {stable_mosaic.version = 11 : i64} {
  func.func @_mm_kernel(%arg0: i32, %arg1: i32, %arg2: i32, %arg3: memref<32x256xbf16, #tpu.memory_space<vmem>>, %arg4: memref<256x256xbf16, #tpu.memory_space<vmem>>, %arg5: memref<1x256xf32, #tpu.memory_space<vmem>>, %arg6: memref<32x256xf32, #tpu.memory_space<vmem>>, %arg7: memref<32x256xf32, #tpu.memory_space<vmem>>) attributes {dimension_semantics = [#tpu.dimension_semantics<parallel>, #tpu.dimension_semantics<parallel>, #tpu.dimension_semantics<arbitrary>], iteration_bounds = array<i64: 1, 1, 4>, scalar_prefetch = 0 : i64, scratch_operands = 1 : i64, tpu.core_type = #tpu.core_type<tc>, window_params = [{transform_indices = @transform_0, window_bounds = array<i64: 32, 256>}, {transform_indices = @transform_1, window_bounds = array<i64: 256, 256>}, {transform_indices = @transform_2, window_bounds = array<i64: 1, 256>}, {transform_indices = @transform_3, window_bounds = array<i64: 32, 256>}]} {
    %c0_i32 = arith.constant 0 : i32
    %0 = arith.cmpi eq, %arg2, %c0_i32 : i32
    %1 = arith.extui %0 : i1 to i32
    %c0_i32_0 = arith.constant 0 : i32
    %2 = arith.cmpi ne, %1, %c0_i32_0 : i32
    scf.if %2 {
      %cst_9 = arith.constant 0.000000e+00 : f32
      %12 = vector.broadcast %cst_9 : f32 to vector<32x256xf32>
      %c0_10 = arith.constant 0 : index
      %c0_11 = arith.constant 0 : index
      %13 = vector.load %arg7[%c0_10, %c0_11] : memref<32x256xf32, #tpu.memory_space<vmem>>, vector<32x256xf32>
      tpu.vector_store %arg7[%c0_10, %c0_11], %12 {strides = array<i32>} : memref<32x256xf32, #tpu.memory_space<vmem>>, vector<32x256xf32>,
    } else {
    }
    %c0 = arith.constant 0 : index
    %c0_1 = arith.constant 0 : index
    %3 = vector.load %arg7[%c0, %c0_1] : memref<32x256xf32, #tpu.memory_space<vmem>>, vector<32x256xf32>
    %c0_2 = arith.constant 0 : index
    %c0_3 = arith.constant 0 : index
    %4 = vector.load %arg3[%c0_2, %c0_3] : memref<32x256xbf16, #tpu.memory_space<vmem>>, vector<32x256xbf16>
    %c0_4 = arith.constant 0 : index
    %c0_5 = arith.constant 0 : index
    %5 = vector.load %arg4[%c0_4, %c0_5] : memref<256x256xbf16, #tpu.memory_space<vmem>>, vector<256x256xbf16>
    %cst = arith.constant dense<0.000000e+00> : vector<32x256xf32>
    %6 = tpu.matmul %4, %5, %cst {dimension_numbers = #tpu.dot_dimension_numbers<[1], [0], [0], [1], [0, 0, 1, 1], [], []>} : vector<32x256xbf16>, vector<256x256xbf16>, vector<32x256xf32> -> vector<32x256xf32>
    %7 = arith.addf %3, %6 : vector<32x256xf32>
    %c0_6 = arith.constant 0 : index
    %c0_7 = arith.constant 0 : index
    %8 = vector.load %arg7[%c0_6, %c0_7] : memref<32x256xf32, #tpu.memory_space<vmem>>, vector<32x256xf32>
    tpu.vector_store %arg7[%c0_6, %c0_7], %7 {strides = array<i32>} : memref<32x256xf32, #tpu.memory_space<vmem>>, vector<32x256xf32>,
    %c3_i32 = arith.constant 3 : i32
    %9 = arith.cmpi eq, %arg2, %c3_i32 : i32
    %10 = arith.extui %9 : i1 to i32
    %c0_i32_8 = arith.constant 0 : i32
    %11 = arith.cmpi ne, %10, %c0_i32_8 : i32
    scf.if %11 {
      %c0_9 = arith.constant 0 : index
      %c0_10 = arith.constant 0 : index
      %12 = vector.load %arg7[%c0_9, %c0_10] : memref<32x256xf32, #tpu.memory_space<vmem>>, vector<32x256xf32>
      %c0_11 = arith.constant 0 : index
      %c0_12 = arith.constant 0 : index
      %13 = vector.load %arg5[%c0_11, %c0_12] : memref<1x256xf32, #tpu.memory_space<vmem>>, vector<1x256xf32>
      %14 = vector.broadcast %13 : vector<1x256xf32> to vector<32x256xf32>
      %15 = arith.addf %12, %14 : vector<32x256xf32>
      %c0_13 = arith.constant 0 : index
      %c0_14 = arith.constant 0 : index
      %16 = vector.load %arg6[%c0_13, %c0_14] : memref<32x256xf32, #tpu.memory_space<vmem>>, vector<32x256xf32>
      tpu.vector_store %arg6[%c0_13, %c0_14], %15 {strides = array<i32>} : memref<32x256xf32, #tpu.memory_space<vmem>>, vector<32x256xf32>,
    } else {
    }
    return
  }
  func.func @transform_0(%arg0: i32, %arg1: i32, %arg2: i32) -> (i32, i32) {
    %c0_i32 = arith.constant 0 : i32
    return %arg0, %arg2 : i32, i32
  }
  func.func @transform_1(%arg0: i32, %arg1: i32, %arg2: i32) -> (i32, i32) {
    %c0_i32 = arith.constant 0 : i32
    return %arg2, %arg1 : i32, i32
  }
  func.func @transform_2(%arg0: i32, %arg1: i32, %arg2: i32) -> (i32, i32) {
    %c0_i32 = arith.constant 0 : i32
    %c0_i32_0 = arith.constant 0 : i32
    return %c0_i32, %arg1 : i32, i32
  }
  func.func @transform_3(%arg0: i32, %arg1: i32, %arg2: i32) -> (i32, i32) {
    %c0_i32 = arith.constant 0 : i32
    return %arg0, %arg1 : i32, i32
  }
}

module attributes {stable_mosaic.version = 11 : i64} {
  func.func @_in_fused_kernel(%arg0: i32, %arg1: i32, %arg2: memref<1x16x256xf32, #tpu.memory_space<vmem>>, %arg3: memref<1x16x256xf32, #tpu.memory_space<vmem>>, %arg4: memref<1x16x256xf32, #tpu.memory_space<vmem>>) attributes {dimension_semantics = [#tpu.dimension_semantics<parallel>, #tpu.dimension_semantics<parallel>], iteration_bounds = array<i64: 2, 1>, scalar_prefetch = 0 : i64, scratch_operands = 0 : i64, tpu.core_type = #tpu.core_type<tc>, window_params = [{transform_indices = @transform_0, window_bounds = array<i64: 1, 16, 256>}, {transform_indices = @transform_1, window_bounds = array<i64: 1, 16, 256>}, {transform_indices = @transform_2, window_bounds = array<i64: 1, 16, 256>}]} {
    %c0 = arith.constant 0 : index
    %c0_0 = arith.constant 0 : index
    %c0_1 = arith.constant 0 : index
    %0 = vector.load %arg2[%c0, %c0_0, %c0_1] : memref<1x16x256xf32, #tpu.memory_space<vmem>>, vector<1x16x256xf32>
    %cst = arith.constant dense<0.000000e+00> : vector<1x256xf32>
    %1 = vector.multi_reduction <add>, %0, %cst [1] : vector<1x16x256xf32> to vector<1x256xf32>
    %2 = vector.shape_cast %1 : vector<1x256xf32> to vector<1x1x256xf32>
    %cst_2 = arith.constant 1.600000e+01 : f32
    %3 = vector.broadcast %cst_2 : f32 to vector<1x1x256xf32>
    %4 = arith.divf %2, %3 : vector<1x1x256xf32>
    %5 = vector.broadcast %4 : vector<1x1x256xf32> to vector<1x16x256xf32>
    %6 = arith.subf %0, %5 : vector<1x16x256xf32>
    %7 = arith.mulf %6, %6 : vector<1x16x256xf32>
    %cst_3 = arith.constant dense<0.000000e+00> : vector<1x256xf32>
    %8 = vector.multi_reduction <add>, %7, %cst_3 [1] : vector<1x16x256xf32> to vector<1x256xf32>
    %9 = vector.shape_cast %8 : vector<1x256xf32> to vector<1x1x256xf32>
    %cst_4 = arith.constant 1.600000e+01 : f32
    %10 = vector.broadcast %cst_4 : f32 to vector<1x1x256xf32>
    %11 = arith.divf %9, %10 : vector<1x1x256xf32>
    %cst_5 = arith.constant 9.99999974E-6 : f32
    %12 = vector.broadcast %cst_5 : f32 to vector<1x1x256xf32>
    %13 = arith.addf %11, %12 : vector<1x1x256xf32>
    %14 = math.rsqrt %13 : vector<1x1x256xf32>
    %15 = vector.broadcast %14 : vector<1x1x256xf32> to vector<1x16x256xf32>
    %16 = arith.mulf %6, %15 : vector<1x16x256xf32>
    %c0_6 = arith.constant 0 : index
    %c0_7 = arith.constant 0 : index
    %c0_8 = arith.constant 0 : index
    %17 = vector.load %arg3[%c0_6, %c0_7, %c0_8] : memref<1x16x256xf32, #tpu.memory_space<vmem>>, vector<1x16x256xf32>
    %18 = arith.addf %16, %17 : vector<1x16x256xf32>
    %c0_9 = arith.constant 0 : index
    %c0_10 = arith.constant 0 : index
    %c0_11 = arith.constant 0 : index
    %19 = vector.load %arg4[%c0_9, %c0_10, %c0_11] : memref<1x16x256xf32, #tpu.memory_space<vmem>>, vector<1x16x256xf32>
    tpu.vector_store %arg4[%c0_9, %c0_10, %c0_11], %18 {strides = array<i32>} : memref<1x16x256xf32, #tpu.memory_space<vmem>>, vector<1x16x256xf32>,
    return
  }
  func.func @transform_0(%arg0: i32, %arg1: i32) -> (i32, i32, i32) {
    %c0_i32 = arith.constant 0 : i32
    %c0_i32_0 = arith.constant 0 : i32
    return %arg0, %c0_i32, %arg1 : i32, i32, i32
  }
  func.func @transform_1(%arg0: i32, %arg1: i32) -> (i32, i32, i32) {
    %c0_i32 = arith.constant 0 : i32
    %c0_i32_0 = arith.constant 0 : i32
    return %arg0, %c0_i32, %arg1 : i32, i32, i32
  }
  func.func @transform_2(%arg0: i32, %arg1: i32) -> (i32, i32, i32) {
    %c0_i32 = arith.constant 0 : i32
    %c0_i32_0 = arith.constant 0 : i32
    return %arg0, %c0_i32, %arg1 : i32, i32, i32
  }
}

module attributes {stable_mosaic.version = 11 : i64} {
  func.func @_in_fused_kernel(%arg0: i32, %arg1: i32, %arg2: memref<1x16x256xf32, #tpu.memory_space<vmem>>, %arg3: memref<1x16x256xf32, #tpu.memory_space<vmem>>, %arg4: memref<1x16x256xf32, #tpu.memory_space<vmem>>, %arg5: memref<1x16x256xf32, #tpu.memory_space<vmem>>) attributes {dimension_semantics = [#tpu.dimension_semantics<parallel>, #tpu.dimension_semantics<parallel>], iteration_bounds = array<i64: 2, 1>, scalar_prefetch = 0 : i64, scratch_operands = 0 : i64, tpu.core_type = #tpu.core_type<tc>, window_params = [{transform_indices = @transform_0, window_bounds = array<i64: 1, 16, 256>}, {transform_indices = @transform_1, window_bounds = array<i64: 1, 16, 256>}, {transform_indices = @transform_2, window_bounds = array<i64: 1, 16, 256>}, {transform_indices = @transform_3, window_bounds = array<i64: 1, 16, 256>}]} {
    %c0 = arith.constant 0 : index
    %c0_0 = arith.constant 0 : index
    %c0_1 = arith.constant 0 : index
    %0 = vector.load %arg2[%c0, %c0_0, %c0_1] : memref<1x16x256xf32, #tpu.memory_space<vmem>>, vector<1x16x256xf32>
    %cst = arith.constant dense<0.000000e+00> : vector<1x256xf32>
    %1 = vector.multi_reduction <add>, %0, %cst [1] : vector<1x16x256xf32> to vector<1x256xf32>
    %2 = vector.shape_cast %1 : vector<1x256xf32> to vector<1x1x256xf32>
    %cst_2 = arith.constant 1.600000e+01 : f32
    %3 = vector.broadcast %cst_2 : f32 to vector<1x1x256xf32>
    %4 = arith.divf %2, %3 : vector<1x1x256xf32>
    %5 = vector.broadcast %4 : vector<1x1x256xf32> to vector<1x16x256xf32>
    %6 = arith.subf %0, %5 : vector<1x16x256xf32>
    %7 = arith.mulf %6, %6 : vector<1x16x256xf32>
    %cst_3 = arith.constant dense<0.000000e+00> : vector<1x256xf32>
    %8 = vector.multi_reduction <add>, %7, %cst_3 [1] : vector<1x16x256xf32> to vector<1x256xf32>
    %9 = vector.shape_cast %8 : vector<1x256xf32> to vector<1x1x256xf32>
    %cst_4 = arith.constant 1.600000e+01 : f32
    %10 = vector.broadcast %cst_4 : f32 to vector<1x1x256xf32>
    %11 = arith.divf %9, %10 : vector<1x1x256xf32>
    %cst_5 = arith.constant 9.99999974E-6 : f32
    %12 = vector.broadcast %cst_5 : f32 to vector<1x1x256xf32>
    %13 = arith.addf %11, %12 : vector<1x1x256xf32>
    %14 = math.rsqrt %13 : vector<1x1x256xf32>
    %15 = vector.broadcast %14 : vector<1x1x256xf32> to vector<1x16x256xf32>
    %16 = arith.mulf %6, %15 : vector<1x16x256xf32>
    %c0_6 = arith.constant 0 : index
    %c0_7 = arith.constant 0 : index
    %c0_8 = arith.constant 0 : index
    %17 = vector.load %arg3[%c0_6, %c0_7, %c0_8] : memref<1x16x256xf32, #tpu.memory_space<vmem>>, vector<1x16x256xf32>
    %18 = arith.addf %16, %17 : vector<1x16x256xf32>
    %c0_9 = arith.constant 0 : index
    %c0_10 = arith.constant 0 : index
    %c0_11 = arith.constant 0 : index
    %19 = vector.load %arg4[%c0_9, %c0_10, %c0_11] : memref<1x16x256xf32, #tpu.memory_space<vmem>>, vector<1x16x256xf32>
    %20 = arith.addf %18, %19 : vector<1x16x256xf32>
    %c0_12 = arith.constant 0 : index
    %c0_13 = arith.constant 0 : index
    %c0_14 = arith.constant 0 : index
    %21 = vector.load %arg5[%c0_12, %c0_13, %c0_14] : memref<1x16x256xf32, #tpu.memory_space<vmem>>, vector<1x16x256xf32>
    tpu.vector_store %arg5[%c0_12, %c0_13, %c0_14], %20 {strides = array<i32>} : memref<1x16x256xf32, #tpu.memory_space<vmem>>, vector<1x16x256xf32>,
    return
  }
  func.func @transform_0(%arg0: i32, %arg1: i32) -> (i32, i32, i32) {
    %c0_i32 = arith.constant 0 : i32
    %c0_i32_0 = arith.constant 0 : i32
    return %arg0, %c0_i32, %arg1 : i32, i32, i32
  }
  func.func @transform_1(%arg0: i32, %arg1: i32) -> (i32, i32, i32) {
    %c0_i32 = arith.constant 0 : i32
    %c0_i32_0 = arith.constant 0 : i32
    return %arg0, %c0_i32, %arg1 : i32, i32, i32
  }
  func.func @transform_2(%arg0: i32, %arg1: i32) -> (i32, i32, i32) {
    %c0_i32 = arith.constant 0 : i32
    %c0_i32_0 = arith.constant 0 : i32
    %c0_i32_1 = arith.constant 0 : i32
    return %c0_i32, %c0_i32_0, %arg1 : i32, i32, i32
  }
  func.func @transform_3(%arg0: i32, %arg1: i32) -> (i32, i32, i32) {
    %c0_i32 = arith.constant 0 : i32
    %c0_i32_0 = arith.constant 0 : i32
    return %arg0, %c0_i32, %arg1 : i32, i32, i32
  }
}

module attributes {stable_mosaic.version = 11 : i64} {
  func.func @_mm_kernel(%arg0: i32, %arg1: i32, %arg2: i32, %arg3: memref<32x256xbf16, #tpu.memory_space<vmem>>, %arg4: memref<256x256xbf16, #tpu.memory_space<vmem>>, %arg5: memref<1x256xf32, #tpu.memory_space<vmem>>, %arg6: memref<32x256xf32, #tpu.memory_space<vmem>>, %arg7: memref<32x256xf32, #tpu.memory_space<vmem>>) attributes {dimension_semantics = [#tpu.dimension_semantics<parallel>, #tpu.dimension_semantics<parallel>, #tpu.dimension_semantics<arbitrary>], iteration_bounds = array<i64: 1, 1, 9>, scalar_prefetch = 0 : i64, scratch_operands = 1 : i64, tpu.core_type = #tpu.core_type<tc>, window_params = [{transform_indices = @transform_0, window_bounds = array<i64: 32, 256>}, {transform_indices = @transform_1, window_bounds = array<i64: 256, 256>}, {transform_indices = @transform_2, window_bounds = array<i64: 1, 256>}, {transform_indices = @transform_3, window_bounds = array<i64: 32, 256>}]} {
    %c0_i32 = arith.constant 0 : i32
    %0 = arith.cmpi eq, %arg2, %c0_i32 : i32
    %1 = arith.extui %0 : i1 to i32
    %c0_i32_0 = arith.constant 0 : i32
    %2 = arith.cmpi ne, %1, %c0_i32_0 : i32
    scf.if %2 {
      %cst_9 = arith.constant 0.000000e+00 : f32
      %12 = vector.broadcast %cst_9 : f32 to vector<32x256xf32>
      %c0_10 = arith.constant 0 : index
      %c0_11 = arith.constant 0 : index
      %13 = vector.load %arg7[%c0_10, %c0_11] : memref<32x256xf32, #tpu.memory_space<vmem>>, vector<32x256xf32>
      tpu.vector_store %arg7[%c0_10, %c0_11], %12 {strides = array<i32>} : memref<32x256xf32, #tpu.memory_space<vmem>>, vector<32x256xf32>,
    } else {
    }
    %c0 = arith.constant 0 : index
    %c0_1 = arith.constant 0 : index
    %3 = vector.load %arg7[%c0, %c0_1] : memref<32x256xf32, #tpu.memory_space<vmem>>, vector<32x256xf32>
    %c0_2 = arith.constant 0 : index
    %c0_3 = arith.constant 0 : index
    %4 = vector.load %arg3[%c0_2, %c0_3] : memref<32x256xbf16, #tpu.memory_space<vmem>>, vector<32x256xbf16>
    %c0_4 = arith.constant 0 : index
    %c0_5 = arith.constant 0 : index
    %5 = vector.load %arg4[%c0_4, %c0_5] : memref<256x256xbf16, #tpu.memory_space<vmem>>, vector<256x256xbf16>
    %cst = arith.constant dense<0.000000e+00> : vector<32x256xf32>
    %6 = tpu.matmul %4, %5, %cst {dimension_numbers = #tpu.dot_dimension_numbers<[1], [0], [0], [1], [0, 0, 1, 1], [], []>} : vector<32x256xbf16>, vector<256x256xbf16>, vector<32x256xf32> -> vector<32x256xf32>
    %7 = arith.addf %3, %6 : vector<32x256xf32>
    %c0_6 = arith.constant 0 : index
    %c0_7 = arith.constant 0 : index
    %8 = vector.load %arg7[%c0_6, %c0_7] : memref<32x256xf32, #tpu.memory_space<vmem>>, vector<32x256xf32>
    tpu.vector_store %arg7[%c0_6, %c0_7], %7 {strides = array<i32>} : memref<32x256xf32, #tpu.memory_space<vmem>>, vector<32x256xf32>,
    %c8_i32 = arith.constant 8 : i32
    %9 = arith.cmpi eq, %arg2, %c8_i32 : i32
    %10 = arith.extui %9 : i1 to i32
    %c0_i32_8 = arith.constant 0 : i32
    %11 = arith.cmpi ne, %10, %c0_i32_8 : i32
    scf.if %11 {
      %c0_9 = arith.constant 0 : index
      %c0_10 = arith.constant 0 : index
      %12 = vector.load %arg7[%c0_9, %c0_10] : memref<32x256xf32, #tpu.memory_space<vmem>>, vector<32x256xf32>
      %c0_11 = arith.constant 0 : index
      %c0_12 = arith.constant 0 : index
      %13 = vector.load %arg5[%c0_11, %c0_12] : memref<1x256xf32, #tpu.memory_space<vmem>>, vector<1x256xf32>
      %14 = vector.broadcast %13 : vector<1x256xf32> to vector<32x256xf32>
      %15 = arith.addf %12, %14 : vector<32x256xf32>
      %c0_13 = arith.constant 0 : index
      %c0_14 = arith.constant 0 : index
      %16 = vector.load %arg6[%c0_13, %c0_14] : memref<32x256xf32, #tpu.memory_space<vmem>>, vector<32x256xf32>
      tpu.vector_store %arg6[%c0_13, %c0_14], %15 {strides = array<i32>} : memref<32x256xf32, #tpu.memory_space<vmem>>, vector<32x256xf32>,
    } else {
    }
    return
  }
  func.func @transform_0(%arg0: i32, %arg1: i32, %arg2: i32) -> (i32, i32) {
    %c0_i32 = arith.constant 0 : i32
    return %arg0, %arg2 : i32, i32
  }
  func.func @transform_1(%arg0: i32, %arg1: i32, %arg2: i32) -> (i32, i32) {
    %c0_i32 = arith.constant 0 : i32
    return %arg2, %arg1 : i32, i32
  }
  func.func @transform_2(%arg0: i32, %arg1: i32, %arg2: i32) -> (i32, i32) {
    %c0_i32 = arith.constant 0 : i32
    %c0_i32_0 = arith.constant 0 : i32
    return %c0_i32, %arg1 : i32, i32
  }
  func.func @transform_3(%arg0: i32, %arg1: i32, %arg2: i32) -> (i32, i32) {
    %c0_i32 = arith.constant 0 : i32
    return %arg0, %arg1 : i32, i32
  }
}

module attributes {stable_mosaic.version = 11 : i64} {
  func.func @_mm_kernel(%arg0: i32, %arg1: i32, %arg2: i32, %arg3: memref<32x256xbf16, #tpu.memory_space<vmem>>, %arg4: memref<256x128xbf16, #tpu.memory_space<vmem>>, %arg5: memref<1x128xf32, #tpu.memory_space<vmem>>, %arg6: memref<32x128xf32, #tpu.memory_space<vmem>>, %arg7: memref<32x128xf32, #tpu.memory_space<vmem>>) attributes {dimension_semantics = [#tpu.dimension_semantics<parallel>, #tpu.dimension_semantics<parallel>, #tpu.dimension_semantics<arbitrary>], iteration_bounds = array<i64: 1, 1, 1>, scalar_prefetch = 0 : i64, scratch_operands = 1 : i64, tpu.core_type = #tpu.core_type<tc>, window_params = [{transform_indices = @transform_0, window_bounds = array<i64: 32, 256>}, {transform_indices = @transform_1, window_bounds = array<i64: 256, 128>}, {transform_indices = @transform_2, window_bounds = array<i64: 1, 128>}, {transform_indices = @transform_3, window_bounds = array<i64: 32, 128>}]} {
    %c0_i32 = arith.constant 0 : i32
    %0 = arith.cmpi eq, %arg2, %c0_i32 : i32
    %1 = arith.extui %0 : i1 to i32
    %c0_i32_0 = arith.constant 0 : i32
    %2 = arith.cmpi ne, %1, %c0_i32_0 : i32
    scf.if %2 {
      %cst_10 = arith.constant 0.000000e+00 : f32
      %12 = vector.broadcast %cst_10 : f32 to vector<32x128xf32>
      %c0_11 = arith.constant 0 : index
      %c0_12 = arith.constant 0 : index
      %13 = vector.load %arg7[%c0_11, %c0_12] : memref<32x128xf32, #tpu.memory_space<vmem>>, vector<32x128xf32>
      tpu.vector_store %arg7[%c0_11, %c0_12], %12 {strides = array<i32>} : memref<32x128xf32, #tpu.memory_space<vmem>>, vector<32x128xf32>,
    } else {
    }
    %c0 = arith.constant 0 : index
    %c0_1 = arith.constant 0 : index
    %3 = vector.load %arg7[%c0, %c0_1] : memref<32x128xf32, #tpu.memory_space<vmem>>, vector<32x128xf32>
    %c0_2 = arith.constant 0 : index
    %c0_3 = arith.constant 0 : index
    %4 = vector.load %arg3[%c0_2, %c0_3] : memref<32x256xbf16, #tpu.memory_space<vmem>>, vector<32x256xbf16>
    %c0_4 = arith.constant 0 : index
    %c0_5 = arith.constant 0 : index
    %5 = vector.load %arg4[%c0_4, %c0_5] : memref<256x128xbf16, #tpu.memory_space<vmem>>, vector<256x128xbf16>
    %cst = arith.constant dense<0.000000e+00> : vector<32x128xf32>
    %6 = tpu.matmul %4, %5, %cst {dimension_numbers = #tpu.dot_dimension_numbers<[1], [0], [0], [1], [0, 0, 1, 1], [], []>} : vector<32x256xbf16>, vector<256x128xbf16>, vector<32x128xf32> -> vector<32x128xf32>
    %7 = arith.addf %3, %6 : vector<32x128xf32>
    %c0_6 = arith.constant 0 : index
    %c0_7 = arith.constant 0 : index
    %8 = vector.load %arg7[%c0_6, %c0_7] : memref<32x128xf32, #tpu.memory_space<vmem>>, vector<32x128xf32>
    tpu.vector_store %arg7[%c0_6, %c0_7], %7 {strides = array<i32>} : memref<32x128xf32, #tpu.memory_space<vmem>>, vector<32x128xf32>,
    %c0_i32_8 = arith.constant 0 : i32
    %9 = arith.cmpi eq, %arg2, %c0_i32_8 : i32
    %10 = arith.extui %9 : i1 to i32
    %c0_i32_9 = arith.constant 0 : i32
    %11 = arith.cmpi ne, %10, %c0_i32_9 : i32
    scf.if %11 {
      %c0_10 = arith.constant 0 : index
      %c0_11 = arith.constant 0 : index
      %12 = vector.load %arg7[%c0_10, %c0_11] : memref<32x128xf32, #tpu.memory_space<vmem>>, vector<32x128xf32>
      %c0_12 = arith.constant 0 : index
      %c0_13 = arith.constant 0 : index
      %13 = vector.load %arg5[%c0_12, %c0_13] : memref<1x128xf32, #tpu.memory_space<vmem>>, vector<1x128xf32>
      %14 = vector.broadcast %13 : vector<1x128xf32> to vector<32x128xf32>
      %15 = arith.addf %12, %14 : vector<32x128xf32>
      %c0_14 = arith.constant 0 : index
      %c0_15 = arith.constant 0 : index
      %16 = vector.load %arg6[%c0_14, %c0_15] : memref<32x128xf32, #tpu.memory_space<vmem>>, vector<32x128xf32>
      tpu.vector_store %arg6[%c0_14, %c0_15], %15 {strides = array<i32>} : memref<32x128xf32, #tpu.memory_space<vmem>>, vector<32x128xf32>,
    } else {
    }
    return
  }
  func.func @transform_0(%arg0: i32, %arg1: i32, %arg2: i32) -> (i32, i32) {
    %c0_i32 = arith.constant 0 : i32
    return %arg0, %arg2 : i32, i32
  }
  func.func @transform_1(%arg0: i32, %arg1: i32, %arg2: i32) -> (i32, i32) {
    %c0_i32 = arith.constant 0 : i32
    return %arg2, %arg1 : i32, i32
  }
  func.func @transform_2(%arg0: i32, %arg1: i32, %arg2: i32) -> (i32, i32) {
    %c0_i32 = arith.constant 0 : i32
    %c0_i32_0 = arith.constant 0 : i32
    return %c0_i32, %arg1 : i32, i32
  }
  func.func @transform_3(%arg0: i32, %arg1: i32, %arg2: i32) -> (i32, i32) {
    %c0_i32 = arith.constant 0 : i32
    return %arg0, %arg1 : i32, i32
  }
}

module attributes {stable_mosaic.version = 11 : i64} {
  func.func @_mm_kernel(%arg0: i32, %arg1: i32, %arg2: i32, %arg3: memref<32x256xbf16, #tpu.memory_space<vmem>>, %arg4: memref<256x128xbf16, #tpu.memory_space<vmem>>, %arg5: memref<1x128xf32, #tpu.memory_space<vmem>>, %arg6: memref<32x128xf32, #tpu.memory_space<vmem>>, %arg7: memref<32x128xf32, #tpu.memory_space<vmem>>) attributes {dimension_semantics = [#tpu.dimension_semantics<parallel>, #tpu.dimension_semantics<parallel>, #tpu.dimension_semantics<arbitrary>], iteration_bounds = array<i64: 1, 1, 2>, scalar_prefetch = 0 : i64, scratch_operands = 1 : i64, tpu.core_type = #tpu.core_type<tc>, window_params = [{transform_indices = @transform_0, window_bounds = array<i64: 32, 256>}, {transform_indices = @transform_1, window_bounds = array<i64: 256, 128>}, {transform_indices = @transform_2, window_bounds = array<i64: 1, 128>}, {transform_indices = @transform_3, window_bounds = array<i64: 32, 128>}]} {
    %c0_i32 = arith.constant 0 : i32
    %0 = arith.cmpi eq, %arg2, %c0_i32 : i32
    %1 = arith.extui %0 : i1 to i32
    %c0_i32_0 = arith.constant 0 : i32
    %2 = arith.cmpi ne, %1, %c0_i32_0 : i32
    scf.if %2 {
      %cst_9 = arith.constant 0.000000e+00 : f32
      %12 = vector.broadcast %cst_9 : f32 to vector<32x128xf32>
      %c0_10 = arith.constant 0 : index
      %c0_11 = arith.constant 0 : index
      %13 = vector.load %arg7[%c0_10, %c0_11] : memref<32x128xf32, #tpu.memory_space<vmem>>, vector<32x128xf32>
      tpu.vector_store %arg7[%c0_10, %c0_11], %12 {strides = array<i32>} : memref<32x128xf32, #tpu.memory_space<vmem>>, vector<32x128xf32>,
    } else {
    }
    %c0 = arith.constant 0 : index
    %c0_1 = arith.constant 0 : index
    %3 = vector.load %arg7[%c0, %c0_1] : memref<32x128xf32, #tpu.memory_space<vmem>>, vector<32x128xf32>
    %c0_2 = arith.constant 0 : index
    %c0_3 = arith.constant 0 : index
    %4 = vector.load %arg3[%c0_2, %c0_3] : memref<32x256xbf16, #tpu.memory_space<vmem>>, vector<32x256xbf16>
    %c0_4 = arith.constant 0 : index
    %c0_5 = arith.constant 0 : index
    %5 = vector.load %arg4[%c0_4, %c0_5] : memref<256x128xbf16, #tpu.memory_space<vmem>>, vector<256x128xbf16>
    %cst = arith.constant dense<0.000000e+00> : vector<32x128xf32>
    %6 = tpu.matmul %4, %5, %cst {dimension_numbers = #tpu.dot_dimension_numbers<[1], [0], [0], [1], [0, 0, 1, 1], [], []>} : vector<32x256xbf16>, vector<256x128xbf16>, vector<32x128xf32> -> vector<32x128xf32>
    %7 = arith.addf %3, %6 : vector<32x128xf32>
    %c0_6 = arith.constant 0 : index
    %c0_7 = arith.constant 0 : index
    %8 = vector.load %arg7[%c0_6, %c0_7] : memref<32x128xf32, #tpu.memory_space<vmem>>, vector<32x128xf32>
    tpu.vector_store %arg7[%c0_6, %c0_7], %7 {strides = array<i32>} : memref<32x128xf32, #tpu.memory_space<vmem>>, vector<32x128xf32>,
    %c1_i32 = arith.constant 1 : i32
    %9 = arith.cmpi eq, %arg2, %c1_i32 : i32
    %10 = arith.extui %9 : i1 to i32
    %c0_i32_8 = arith.constant 0 : i32
    %11 = arith.cmpi ne, %10, %c0_i32_8 : i32
    scf.if %11 {
      %c0_9 = arith.constant 0 : index
      %c0_10 = arith.constant 0 : index
      %12 = vector.load %arg7[%c0_9, %c0_10] : memref<32x128xf32, #tpu.memory_space<vmem>>, vector<32x128xf32>
      %c0_11 = arith.constant 0 : index
      %c0_12 = arith.constant 0 : index
      %13 = vector.load %arg5[%c0_11, %c0_12] : memref<1x128xf32, #tpu.memory_space<vmem>>, vector<1x128xf32>
      %14 = vector.broadcast %13 : vector<1x128xf32> to vector<32x128xf32>
      %15 = arith.addf %12, %14 : vector<32x128xf32>
      %c0_13 = arith.constant 0 : index
      %c0_14 = arith.constant 0 : index
      %16 = vector.load %arg6[%c0_13, %c0_14] : memref<32x128xf32, #tpu.memory_space<vmem>>, vector<32x128xf32>
      tpu.vector_store %arg6[%c0_13, %c0_14], %15 {strides = array<i32>} : memref<32x128xf32, #tpu.memory_space<vmem>>, vector<32x128xf32>,
    } else {
    }
    return
  }
  func.func @transform_0(%arg0: i32, %arg1: i32, %arg2: i32) -> (i32, i32) {
    %c0_i32 = arith.constant 0 : i32
    return %arg0, %arg2 : i32, i32
  }
  func.func @transform_1(%arg0: i32, %arg1: i32, %arg2: i32) -> (i32, i32) {
    %c0_i32 = arith.constant 0 : i32
    return %arg2, %arg1 : i32, i32
  }
  func.func @transform_2(%arg0: i32, %arg1: i32, %arg2: i32) -> (i32, i32) {
    %c0_i32 = arith.constant 0 : i32
    %c0_i32_0 = arith.constant 0 : i32
    return %c0_i32, %arg1 : i32, i32
  }
  func.func @transform_3(%arg0: i32, %arg1: i32, %arg2: i32) -> (i32, i32) {
    %c0_i32 = arith.constant 0 : i32
    return %arg0, %arg1 : i32, i32
  }
}

module attributes {stable_mosaic.version = 11 : i64} {
  func.func @_mm_kernel(%arg0: i32, %arg1: i32, %arg2: i32, %arg3: memref<32x256xbf16, #tpu.memory_space<vmem>>, %arg4: memref<256x128xbf16, #tpu.memory_space<vmem>>, %arg5: memref<1x128xf32, #tpu.memory_space<vmem>>, %arg6: memref<32x128xf32, #tpu.memory_space<vmem>>, %arg7: memref<32x128xf32, #tpu.memory_space<vmem>>) attributes {dimension_semantics = [#tpu.dimension_semantics<parallel>, #tpu.dimension_semantics<parallel>, #tpu.dimension_semantics<arbitrary>], iteration_bounds = array<i64: 1, 1, 4>, scalar_prefetch = 0 : i64, scratch_operands = 1 : i64, tpu.core_type = #tpu.core_type<tc>, window_params = [{transform_indices = @transform_0, window_bounds = array<i64: 32, 256>}, {transform_indices = @transform_1, window_bounds = array<i64: 256, 128>}, {transform_indices = @transform_2, window_bounds = array<i64: 1, 128>}, {transform_indices = @transform_3, window_bounds = array<i64: 32, 128>}]} {
    %c0_i32 = arith.constant 0 : i32
    %0 = arith.cmpi eq, %arg2, %c0_i32 : i32
    %1 = arith.extui %0 : i1 to i32
    %c0_i32_0 = arith.constant 0 : i32
    %2 = arith.cmpi ne, %1, %c0_i32_0 : i32
    scf.if %2 {
      %cst_9 = arith.constant 0.000000e+00 : f32
      %12 = vector.broadcast %cst_9 : f32 to vector<32x128xf32>
      %c0_10 = arith.constant 0 : index
      %c0_11 = arith.constant 0 : index
      %13 = vector.load %arg7[%c0_10, %c0_11] : memref<32x128xf32, #tpu.memory_space<vmem>>, vector<32x128xf32>
      tpu.vector_store %arg7[%c0_10, %c0_11], %12 {strides = array<i32>} : memref<32x128xf32, #tpu.memory_space<vmem>>, vector<32x128xf32>,
    } else {
    }
    %c0 = arith.constant 0 : index
    %c0_1 = arith.constant 0 : index
    %3 = vector.load %arg7[%c0, %c0_1] : memref<32x128xf32, #tpu.memory_space<vmem>>, vector<32x128xf32>
    %c0_2 = arith.constant 0 : index
    %c0_3 = arith.constant 0 : index
    %4 = vector.load %arg3[%c0_2, %c0_3] : memref<32x256xbf16, #tpu.memory_space<vmem>>, vector<32x256xbf16>
    %c0_4 = arith.constant 0 : index
    %c0_5 = arith.constant 0 : index
    %5 = vector.load %arg4[%c0_4, %c0_5] : memref<256x128xbf16, #tpu.memory_space<vmem>>, vector<256x128xbf16>
    %cst = arith.constant dense<0.000000e+00> : vector<32x128xf32>
    %6 = tpu.matmul %4, %5, %cst {dimension_numbers = #tpu.dot_dimension_numbers<[1], [0], [0], [1], [0, 0, 1, 1], [], []>} : vector<32x256xbf16>, vector<256x128xbf16>, vector<32x128xf32> -> vector<32x128xf32>
    %7 = arith.addf %3, %6 : vector<32x128xf32>
    %c0_6 = arith.constant 0 : index
    %c0_7 = arith.constant 0 : index
    %8 = vector.load %arg7[%c0_6, %c0_7] : memref<32x128xf32, #tpu.memory_space<vmem>>, vector<32x128xf32>
    tpu.vector_store %arg7[%c0_6, %c0_7], %7 {strides = array<i32>} : memref<32x128xf32, #tpu.memory_space<vmem>>, vector<32x128xf32>,
    %c3_i32 = arith.constant 3 : i32
    %9 = arith.cmpi eq, %arg2, %c3_i32 : i32
    %10 = arith.extui %9 : i1 to i32
    %c0_i32_8 = arith.constant 0 : i32
    %11 = arith.cmpi ne, %10, %c0_i32_8 : i32
    scf.if %11 {
      %c0_9 = arith.constant 0 : index
      %c0_10 = arith.constant 0 : index
      %12 = vector.load %arg7[%c0_9, %c0_10] : memref<32x128xf32, #tpu.memory_space<vmem>>, vector<32x128xf32>
      %c0_11 = arith.constant 0 : index
      %c0_12 = arith.constant 0 : index
      %13 = vector.load %arg5[%c0_11, %c0_12] : memref<1x128xf32, #tpu.memory_space<vmem>>, vector<1x128xf32>
      %14 = vector.broadcast %13 : vector<1x128xf32> to vector<32x128xf32>
      %15 = arith.addf %12, %14 : vector<32x128xf32>
      %c0_13 = arith.constant 0 : index
      %c0_14 = arith.constant 0 : index
      %16 = vector.load %arg6[%c0_13, %c0_14] : memref<32x128xf32, #tpu.memory_space<vmem>>, vector<32x128xf32>
      tpu.vector_store %arg6[%c0_13, %c0_14], %15 {strides = array<i32>} : memref<32x128xf32, #tpu.memory_space<vmem>>, vector<32x128xf32>,
    } else {
    }
    return
  }
  func.func @transform_0(%arg0: i32, %arg1: i32, %arg2: i32) -> (i32, i32) {
    %c0_i32 = arith.constant 0 : i32
    return %arg0, %arg2 : i32, i32
  }
  func.func @transform_1(%arg0: i32, %arg1: i32, %arg2: i32) -> (i32, i32) {
    %c0_i32 = arith.constant 0 : i32
    return %arg2, %arg1 : i32, i32
  }
  func.func @transform_2(%arg0: i32, %arg1: i32, %arg2: i32) -> (i32, i32) {
    %c0_i32 = arith.constant 0 : i32
    %c0_i32_0 = arith.constant 0 : i32
    return %c0_i32, %arg1 : i32, i32
  }
  func.func @transform_3(%arg0: i32, %arg1: i32, %arg2: i32) -> (i32, i32) {
    %c0_i32 = arith.constant 0 : i32
    return %arg0, %arg1 : i32, i32
  }
}

module attributes {stable_mosaic.version = 11 : i64} {
  func.func @_mm_kernel(%arg0: i32, %arg1: i32, %arg2: i32, %arg3: memref<128x256xbf16, #tpu.memory_space<vmem>>, %arg4: memref<256x128xbf16, #tpu.memory_space<vmem>>, %arg5: memref<1x128xf32, #tpu.memory_space<vmem>>, %arg6: memref<128x128xf32, #tpu.memory_space<vmem>>, %arg7: memref<128x128xf32, #tpu.memory_space<vmem>>) attributes {dimension_semantics = [#tpu.dimension_semantics<parallel>, #tpu.dimension_semantics<parallel>, #tpu.dimension_semantics<arbitrary>], iteration_bounds = array<i64: 1, 1, 1>, scalar_prefetch = 0 : i64, scratch_operands = 1 : i64, tpu.core_type = #tpu.core_type<tc>, window_params = [{transform_indices = @transform_0, window_bounds = array<i64: 128, 256>}, {transform_indices = @transform_1, window_bounds = array<i64: 256, 128>}, {transform_indices = @transform_2, window_bounds = array<i64: 1, 128>}, {transform_indices = @transform_3, window_bounds = array<i64: 128, 128>}]} {
    %c0_i32 = arith.constant 0 : i32
    %0 = arith.cmpi eq, %arg2, %c0_i32 : i32
    %1 = arith.extui %0 : i1 to i32
    %c0_i32_0 = arith.constant 0 : i32
    %2 = arith.cmpi ne, %1, %c0_i32_0 : i32
    scf.if %2 {
      %cst_10 = arith.constant 0.000000e+00 : f32
      %12 = vector.broadcast %cst_10 : f32 to vector<128x128xf32>
      %c0_11 = arith.constant 0 : index
      %c0_12 = arith.constant 0 : index
      %13 = vector.load %arg7[%c0_11, %c0_12] : memref<128x128xf32, #tpu.memory_space<vmem>>, vector<128x128xf32>
      tpu.vector_store %arg7[%c0_11, %c0_12], %12 {strides = array<i32>} : memref<128x128xf32, #tpu.memory_space<vmem>>, vector<128x128xf32>,
    } else {
    }
    %c0 = arith.constant 0 : index
    %c0_1 = arith.constant 0 : index
    %3 = vector.load %arg7[%c0, %c0_1] : memref<128x128xf32, #tpu.memory_space<vmem>>, vector<128x128xf32>
    %c0_2 = arith.constant 0 : index
    %c0_3 = arith.constant 0 : index
    %4 = vector.load %arg3[%c0_2, %c0_3] : memref<128x256xbf16, #tpu.memory_space<vmem>>, vector<128x256xbf16>
    %c0_4 = arith.constant 0 : index
    %c0_5 = arith.constant 0 : index
    %5 = vector.load %arg4[%c0_4, %c0_5] : memref<256x128xbf16, #tpu.memory_space<vmem>>, vector<256x128xbf16>
    %cst = arith.constant dense<0.000000e+00> : vector<128x128xf32>
    %6 = tpu.matmul %4, %5, %cst {dimension_numbers = #tpu.dot_dimension_numbers<[1], [0], [0], [1], [0, 0, 1, 1], [], []>} : vector<128x256xbf16>, vector<256x128xbf16>, vector<128x128xf32> -> vector<128x128xf32>
    %7 = arith.addf %3, %6 : vector<128x128xf32>
    %c0_6 = arith.constant 0 : index
    %c0_7 = arith.constant 0 : index
    %8 = vector.load %arg7[%c0_6, %c0_7] : memref<128x128xf32, #tpu.memory_space<vmem>>, vector<128x128xf32>
    tpu.vector_store %arg7[%c0_6, %c0_7], %7 {strides = array<i32>} : memref<128x128xf32, #tpu.memory_space<vmem>>, vector<128x128xf32>,
    %c0_i32_8 = arith.constant 0 : i32
    %9 = arith.cmpi eq, %arg2, %c0_i32_8 : i32
    %10 = arith.extui %9 : i1 to i32
    %c0_i32_9 = arith.constant 0 : i32
    %11 = arith.cmpi ne, %10, %c0_i32_9 : i32
    scf.if %11 {
      %c0_10 = arith.constant 0 : index
      %c0_11 = arith.constant 0 : index
      %12 = vector.load %arg7[%c0_10, %c0_11] : memref<128x128xf32, #tpu.memory_space<vmem>>, vector<128x128xf32>
      %c0_12 = arith.constant 0 : index
      %c0_13 = arith.constant 0 : index
      %13 = vector.load %arg5[%c0_12, %c0_13] : memref<1x128xf32, #tpu.memory_space<vmem>>, vector<1x128xf32>
      %14 = vector.broadcast %13 : vector<1x128xf32> to vector<128x128xf32>
      %15 = arith.addf %12, %14 : vector<128x128xf32>
      %c0_14 = arith.constant 0 : index
      %c0_15 = arith.constant 0 : index
      %16 = vector.load %arg6[%c0_14, %c0_15] : memref<128x128xf32, #tpu.memory_space<vmem>>, vector<128x128xf32>
      tpu.vector_store %arg6[%c0_14, %c0_15], %15 {strides = array<i32>} : memref<128x128xf32, #tpu.memory_space<vmem>>, vector<128x128xf32>,
    } else {
    }
    return
  }
  func.func @transform_0(%arg0: i32, %arg1: i32, %arg2: i32) -> (i32, i32) {
    %c0_i32 = arith.constant 0 : i32
    return %arg0, %arg2 : i32, i32
  }
  func.func @transform_1(%arg0: i32, %arg1: i32, %arg2: i32) -> (i32, i32) {
    %c0_i32 = arith.constant 0 : i32
    return %arg2, %arg1 : i32, i32
  }
  func.func @transform_2(%arg0: i32, %arg1: i32, %arg2: i32) -> (i32, i32) {
    %c0_i32 = arith.constant 0 : i32
    %c0_i32_0 = arith.constant 0 : i32
    return %c0_i32, %arg1 : i32, i32
  }
  func.func @transform_3(%arg0: i32, %arg1: i32, %arg2: i32) -> (i32, i32) {
    %c0_i32 = arith.constant 0 : i32
    return %arg0, %arg1 : i32, i32
  }
}

module attributes {stable_mosaic.version = 11 : i64} {
  func.func @_mm_kernel(%arg0: i32, %arg1: i32, %arg2: i32, %arg3: memref<128x128xbf16, #tpu.memory_space<vmem>>, %arg4: memref<128x128xbf16, #tpu.memory_space<vmem>>, %arg5: memref<1x128xf32, #tpu.memory_space<vmem>>, %arg6: memref<128x128xf32, #tpu.memory_space<vmem>>, %arg7: memref<128x128xf32, #tpu.memory_space<vmem>>) attributes {dimension_semantics = [#tpu.dimension_semantics<parallel>, #tpu.dimension_semantics<parallel>, #tpu.dimension_semantics<arbitrary>], iteration_bounds = array<i64: 1, 1, 1>, scalar_prefetch = 0 : i64, scratch_operands = 1 : i64, tpu.core_type = #tpu.core_type<tc>, window_params = [{transform_indices = @transform_0, window_bounds = array<i64: 128, 128>}, {transform_indices = @transform_1, window_bounds = array<i64: 128, 128>}, {transform_indices = @transform_2, window_bounds = array<i64: 1, 128>}, {transform_indices = @transform_3, window_bounds = array<i64: 128, 128>}]} {
    %c0_i32 = arith.constant 0 : i32
    %0 = arith.cmpi eq, %arg2, %c0_i32 : i32
    %1 = arith.extui %0 : i1 to i32
    %c0_i32_0 = arith.constant 0 : i32
    %2 = arith.cmpi ne, %1, %c0_i32_0 : i32
    scf.if %2 {
      %cst_10 = arith.constant 0.000000e+00 : f32
      %12 = vector.broadcast %cst_10 : f32 to vector<128x128xf32>
      %c0_11 = arith.constant 0 : index
      %c0_12 = arith.constant 0 : index
      %13 = vector.load %arg7[%c0_11, %c0_12] : memref<128x128xf32, #tpu.memory_space<vmem>>, vector<128x128xf32>
      tpu.vector_store %arg7[%c0_11, %c0_12], %12 {strides = array<i32>} : memref<128x128xf32, #tpu.memory_space<vmem>>, vector<128x128xf32>,
    } else {
    }
    %c0 = arith.constant 0 : index
    %c0_1 = arith.constant 0 : index
    %3 = vector.load %arg7[%c0, %c0_1] : memref<128x128xf32, #tpu.memory_space<vmem>>, vector<128x128xf32>
    %c0_2 = arith.constant 0 : index
    %c0_3 = arith.constant 0 : index
    %4 = vector.load %arg3[%c0_2, %c0_3] : memref<128x128xbf16, #tpu.memory_space<vmem>>, vector<128x128xbf16>
    %c0_4 = arith.constant 0 : index
    %c0_5 = arith.constant 0 : index
    %5 = vector.load %arg4[%c0_4, %c0_5] : memref<128x128xbf16, #tpu.memory_space<vmem>>, vector<128x128xbf16>
    %cst = arith.constant dense<0.000000e+00> : vector<128x128xf32>
    %6 = tpu.matmul %4, %5, %cst {dimension_numbers = #tpu.dot_dimension_numbers<[1], [0], [0], [1], [0, 0, 1, 1], [], []>} : vector<128x128xbf16>, vector<128x128xbf16>, vector<128x128xf32> -> vector<128x128xf32>
    %7 = arith.addf %3, %6 : vector<128x128xf32>
    %c0_6 = arith.constant 0 : index
    %c0_7 = arith.constant 0 : index
    %8 = vector.load %arg7[%c0_6, %c0_7] : memref<128x128xf32, #tpu.memory_space<vmem>>, vector<128x128xf32>
    tpu.vector_store %arg7[%c0_6, %c0_7], %7 {strides = array<i32>} : memref<128x128xf32, #tpu.memory_space<vmem>>, vector<128x128xf32>,
    %c0_i32_8 = arith.constant 0 : i32
    %9 = arith.cmpi eq, %arg2, %c0_i32_8 : i32
    %10 = arith.extui %9 : i1 to i32
    %c0_i32_9 = arith.constant 0 : i32
    %11 = arith.cmpi ne, %10, %c0_i32_9 : i32
    scf.if %11 {
      %c0_10 = arith.constant 0 : index
      %c0_11 = arith.constant 0 : index
      %12 = vector.load %arg7[%c0_10, %c0_11] : memref<128x128xf32, #tpu.memory_space<vmem>>, vector<128x128xf32>
      %c0_12 = arith.constant 0 : index
      %c0_13 = arith.constant 0 : index
      %13 = vector.load %arg5[%c0_12, %c0_13] : memref<1x128xf32, #tpu.memory_space<vmem>>, vector<1x128xf32>
      %14 = vector.broadcast %13 : vector<1x128xf32> to vector<128x128xf32>
      %15 = arith.addf %12, %14 : vector<128x128xf32>
      %c0_14 = arith.constant 0 : index
      %c0_15 = arith.constant 0 : index
      %16 = vector.load %arg6[%c0_14, %c0_15] : memref<128x128xf32, #tpu.memory_space<vmem>>, vector<128x128xf32>
      tpu.vector_store %arg6[%c0_14, %c0_15], %15 {strides = array<i32>} : memref<128x128xf32, #tpu.memory_space<vmem>>, vector<128x128xf32>,
    } else {
    }
    return
  }
  func.func @transform_0(%arg0: i32, %arg1: i32, %arg2: i32) -> (i32, i32) {
    %c0_i32 = arith.constant 0 : i32
    return %arg0, %arg2 : i32, i32
  }
  func.func @transform_1(%arg0: i32, %arg1: i32, %arg2: i32) -> (i32, i32) {
    %c0_i32 = arith.constant 0 : i32
    return %arg2, %arg1 : i32, i32
  }
  func.func @transform_2(%arg0: i32, %arg1: i32, %arg2: i32) -> (i32, i32) {
    %c0_i32 = arith.constant 0 : i32
    %c0_i32_0 = arith.constant 0 : i32
    return %c0_i32, %arg1 : i32, i32
  }
  func.func @transform_3(%arg0: i32, %arg1: i32, %arg2: i32) -> (i32, i32) {
    %c0_i32 = arith.constant 0 : i32
    return %arg0, %arg1 : i32, i32
  }
}

module attributes {stable_mosaic.version = 11 : i64} {
  func.func @_mm_kernel(%arg0: i32, %arg1: i32, %arg2: i32, %arg3: memref<128x256xbf16, #tpu.memory_space<vmem>>, %arg4: memref<256x128xbf16, #tpu.memory_space<vmem>>, %arg5: memref<1x128xf32, #tpu.memory_space<vmem>>, %arg6: memref<128x128xf32, #tpu.memory_space<vmem>>, %arg7: memref<128x128xf32, #tpu.memory_space<vmem>>) attributes {dimension_semantics = [#tpu.dimension_semantics<parallel>, #tpu.dimension_semantics<parallel>, #tpu.dimension_semantics<arbitrary>], iteration_bounds = array<i64: 1, 1, 2>, scalar_prefetch = 0 : i64, scratch_operands = 1 : i64, tpu.core_type = #tpu.core_type<tc>, window_params = [{transform_indices = @transform_0, window_bounds = array<i64: 128, 256>}, {transform_indices = @transform_1, window_bounds = array<i64: 256, 128>}, {transform_indices = @transform_2, window_bounds = array<i64: 1, 128>}, {transform_indices = @transform_3, window_bounds = array<i64: 128, 128>}]} {
    %c0_i32 = arith.constant 0 : i32
    %0 = arith.cmpi eq, %arg2, %c0_i32 : i32
    %1 = arith.extui %0 : i1 to i32
    %c0_i32_0 = arith.constant 0 : i32
    %2 = arith.cmpi ne, %1, %c0_i32_0 : i32
    scf.if %2 {
      %cst_9 = arith.constant 0.000000e+00 : f32
      %12 = vector.broadcast %cst_9 : f32 to vector<128x128xf32>
      %c0_10 = arith.constant 0 : index
      %c0_11 = arith.constant 0 : index
      %13 = vector.load %arg7[%c0_10, %c0_11] : memref<128x128xf32, #tpu.memory_space<vmem>>, vector<128x128xf32>
      tpu.vector_store %arg7[%c0_10, %c0_11], %12 {strides = array<i32>} : memref<128x128xf32, #tpu.memory_space<vmem>>, vector<128x128xf32>,
    } else {
    }
    %c0 = arith.constant 0 : index
    %c0_1 = arith.constant 0 : index
    %3 = vector.load %arg7[%c0, %c0_1] : memref<128x128xf32, #tpu.memory_space<vmem>>, vector<128x128xf32>
    %c0_2 = arith.constant 0 : index
    %c0_3 = arith.constant 0 : index
    %4 = vector.load %arg3[%c0_2, %c0_3] : memref<128x256xbf16, #tpu.memory_space<vmem>>, vector<128x256xbf16>
    %c0_4 = arith.constant 0 : index
    %c0_5 = arith.constant 0 : index
    %5 = vector.load %arg4[%c0_4, %c0_5] : memref<256x128xbf16, #tpu.memory_space<vmem>>, vector<256x128xbf16>
    %cst = arith.constant dense<0.000000e+00> : vector<128x128xf32>
    %6 = tpu.matmul %4, %5, %cst {dimension_numbers = #tpu.dot_dimension_numbers<[1], [0], [0], [1], [0, 0, 1, 1], [], []>} : vector<128x256xbf16>, vector<256x128xbf16>, vector<128x128xf32> -> vector<128x128xf32>
    %7 = arith.addf %3, %6 : vector<128x128xf32>
    %c0_6 = arith.constant 0 : index
    %c0_7 = arith.constant 0 : index
    %8 = vector.load %arg7[%c0_6, %c0_7] : memref<128x128xf32, #tpu.memory_space<vmem>>, vector<128x128xf32>
    tpu.vector_store %arg7[%c0_6, %c0_7], %7 {strides = array<i32>} : memref<128x128xf32, #tpu.memory_space<vmem>>, vector<128x128xf32>,
    %c1_i32 = arith.constant 1 : i32
    %9 = arith.cmpi eq, %arg2, %c1_i32 : i32
    %10 = arith.extui %9 : i1 to i32
    %c0_i32_8 = arith.constant 0 : i32
    %11 = arith.cmpi ne, %10, %c0_i32_8 : i32
    scf.if %11 {
      %c0_9 = arith.constant 0 : index
      %c0_10 = arith.constant 0 : index
      %12 = vector.load %arg7[%c0_9, %c0_10] : memref<128x128xf32, #tpu.memory_space<vmem>>, vector<128x128xf32>
      %c0_11 = arith.constant 0 : index
      %c0_12 = arith.constant 0 : index
      %13 = vector.load %arg5[%c0_11, %c0_12] : memref<1x128xf32, #tpu.memory_space<vmem>>, vector<1x128xf32>
      %14 = vector.broadcast %13 : vector<1x128xf32> to vector<128x128xf32>
      %15 = arith.addf %12, %14 : vector<128x128xf32>
      %c0_13 = arith.constant 0 : index
      %c0_14 = arith.constant 0 : index
      %16 = vector.load %arg6[%c0_13, %c0_14] : memref<128x128xf32, #tpu.memory_space<vmem>>, vector<128x128xf32>
      tpu.vector_store %arg6[%c0_13, %c0_14], %15 {strides = array<i32>} : memref<128x128xf32, #tpu.memory_space<vmem>>, vector<128x128xf32>,
    } else {
    }
    return
  }
  func.func @transform_0(%arg0: i32, %arg1: i32, %arg2: i32) -> (i32, i32) {
    %c0_i32 = arith.constant 0 : i32
    return %arg0, %arg2 : i32, i32
  }
  func.func @transform_1(%arg0: i32, %arg1: i32, %arg2: i32) -> (i32, i32) {
    %c0_i32 = arith.constant 0 : i32
    return %arg2, %arg1 : i32, i32
  }
  func.func @transform_2(%arg0: i32, %arg1: i32, %arg2: i32) -> (i32, i32) {
    %c0_i32 = arith.constant 0 : i32
    %c0_i32_0 = arith.constant 0 : i32
    return %c0_i32, %arg1 : i32, i32
  }
  func.func @transform_3(%arg0: i32, %arg1: i32, %arg2: i32) -> (i32, i32) {
    %c0_i32 = arith.constant 0 : i32
    return %arg0, %arg1 : i32, i32
  }
}

module attributes {stable_mosaic.version = 11 : i64} {
  func.func @_mm_kernel(%arg0: i32, %arg1: i32, %arg2: i32, %arg3: memref<512x256xbf16, #tpu.memory_space<vmem>>, %arg4: memref<256x128xbf16, #tpu.memory_space<vmem>>, %arg5: memref<1x128xf32, #tpu.memory_space<vmem>>, %arg6: memref<512x128xf32, #tpu.memory_space<vmem>>, %arg7: memref<512x128xf32, #tpu.memory_space<vmem>>) attributes {dimension_semantics = [#tpu.dimension_semantics<parallel>, #tpu.dimension_semantics<parallel>, #tpu.dimension_semantics<arbitrary>], iteration_bounds = array<i64: 1, 1, 13>, scalar_prefetch = 0 : i64, scratch_operands = 1 : i64, tpu.core_type = #tpu.core_type<tc>, window_params = [{transform_indices = @transform_0, window_bounds = array<i64: 512, 256>}, {transform_indices = @transform_1, window_bounds = array<i64: 256, 128>}, {transform_indices = @transform_2, window_bounds = array<i64: 1, 128>}, {transform_indices = @transform_3, window_bounds = array<i64: 512, 128>}]} {
    %c0_i32 = arith.constant 0 : i32
    %0 = arith.cmpi eq, %arg2, %c0_i32 : i32
    %1 = arith.extui %0 : i1 to i32
    %c0_i32_0 = arith.constant 0 : i32
    %2 = arith.cmpi ne, %1, %c0_i32_0 : i32
    scf.if %2 {
      %cst_9 = arith.constant 0.000000e+00 : f32
      %12 = vector.broadcast %cst_9 : f32 to vector<512x128xf32>
      %c0_10 = arith.constant 0 : index
      %c0_11 = arith.constant 0 : index
      %13 = vector.load %arg7[%c0_10, %c0_11] : memref<512x128xf32, #tpu.memory_space<vmem>>, vector<512x128xf32>
      tpu.vector_store %arg7[%c0_10, %c0_11], %12 {strides = array<i32>} : memref<512x128xf32, #tpu.memory_space<vmem>>, vector<512x128xf32>,
    } else {
    }
    %c0 = arith.constant 0 : index
    %c0_1 = arith.constant 0 : index
    %3 = vector.load %arg7[%c0, %c0_1] : memref<512x128xf32, #tpu.memory_space<vmem>>, vector<512x128xf32>
    %c0_2 = arith.constant 0 : index
    %c0_3 = arith.constant 0 : index
    %4 = vector.load %arg3[%c0_2, %c0_3] : memref<512x256xbf16, #tpu.memory_space<vmem>>, vector<512x256xbf16>
    %c0_4 = arith.constant 0 : index
    %c0_5 = arith.constant 0 : index
    %5 = vector.load %arg4[%c0_4, %c0_5] : memref<256x128xbf16, #tpu.memory_space<vmem>>, vector<256x128xbf16>
    %cst = arith.constant dense<0.000000e+00> : vector<512x128xf32>
    %6 = tpu.matmul %4, %5, %cst {dimension_numbers = #tpu.dot_dimension_numbers<[1], [0], [0], [1], [0, 0, 1, 1], [], []>} : vector<512x256xbf16>, vector<256x128xbf16>, vector<512x128xf32> -> vector<512x128xf32>
    %7 = arith.addf %3, %6 : vector<512x128xf32>
    %c0_6 = arith.constant 0 : index
    %c0_7 = arith.constant 0 : index
    %8 = vector.load %arg7[%c0_6, %c0_7] : memref<512x128xf32, #tpu.memory_space<vmem>>, vector<512x128xf32>
    tpu.vector_store %arg7[%c0_6, %c0_7], %7 {strides = array<i32>} : memref<512x128xf32, #tpu.memory_space<vmem>>, vector<512x128xf32>,
    %c12_i32 = arith.constant 12 : i32
    %9 = arith.cmpi eq, %arg2, %c12_i32 : i32
    %10 = arith.extui %9 : i1 to i32
    %c0_i32_8 = arith.constant 0 : i32
    %11 = arith.cmpi ne, %10, %c0_i32_8 : i32
    scf.if %11 {
      %c0_9 = arith.constant 0 : index
      %c0_10 = arith.constant 0 : index
      %12 = vector.load %arg7[%c0_9, %c0_10] : memref<512x128xf32, #tpu.memory_space<vmem>>, vector<512x128xf32>
      %c0_11 = arith.constant 0 : index
      %c0_12 = arith.constant 0 : index
      %13 = vector.load %arg5[%c0_11, %c0_12] : memref<1x128xf32, #tpu.memory_space<vmem>>, vector<1x128xf32>
      %14 = vector.broadcast %13 : vector<1x128xf32> to vector<512x128xf32>
      %15 = arith.addf %12, %14 : vector<512x128xf32>
      %16 = math.tanh %15 : vector<512x128xf32>
      %c0_13 = arith.constant 0 : index
      %c0_14 = arith.constant 0 : index
      %17 = vector.load %arg6[%c0_13, %c0_14] : memref<512x128xf32, #tpu.memory_space<vmem>>, vector<512x128xf32>
      tpu.vector_store %arg6[%c0_13, %c0_14], %16 {strides = array<i32>} : memref<512x128xf32, #tpu.memory_space<vmem>>, vector<512x128xf32>,
    } else {
    }
    return
  }
  func.func @transform_0(%arg0: i32, %arg1: i32, %arg2: i32) -> (i32, i32) {
    %c0_i32 = arith.constant 0 : i32
    return %arg0, %arg2 : i32, i32
  }
  func.func @transform_1(%arg0: i32, %arg1: i32, %arg2: i32) -> (i32, i32) {
    %c0_i32 = arith.constant 0 : i32
    return %arg2, %arg1 : i32, i32
  }
  func.func @transform_2(%arg0: i32, %arg1: i32, %arg2: i32) -> (i32, i32) {
    %c0_i32 = arith.constant 0 : i32
    %c0_i32_0 = arith.constant 0 : i32
    return %c0_i32, %arg1 : i32, i32
  }
  func.func @transform_3(%arg0: i32, %arg1: i32, %arg2: i32) -> (i32, i32) {
    %c0_i32 = arith.constant 0 : i32
    return %arg0, %arg1 : i32, i32
  }
}

</mosaic_0001>

<bundles_post_ra>
// kernel: generator_forward.32
= control target key start
LH: loop header
LB: loop body
LE: loop exit
PB: predicated region body
PF: predicated region fallthrough
CT: control target
= control target key end

     0   :  { %s640_s6 = smov 0   ;;  %s642_s7 = smov 0   ;;  %s1200_s0 = inlined_call_operand.vmem [shape: f32[2,256,64], index: 0, kind: input, shape index: {}]   ;;  %s1201_s1 = inlined_call_operand.vmem [shape: f32[2,256,64], index: 1, kind: output, shape index: {}]  }
   0x1   :  { %s644_s8 = smov 0  }
   0x2 LB: > { %s23_s9 = sadd.s32 1, %s624_s7  ;;  %p571_p0 = scmp.ge.s32.totalorder %s628_s8, 1  ;;  %s628_s8 = sphi %s644_s8, %s11_s8   ;;  %s624_s7 = sphi %s642_s7, %s1203_s7   ;;  %s620_s6 = sphi %s640_s6, %s1202_s6  }
   0x3   : > { %p25_p1 = scmp.ge.s32.totalorder %s23_s9, 2  ;;  %p106_p2 = scmp.lt.s32.totalorder %s628_s8, 3 }
   0x5   : > { %s1205_s9 = smov (%p25_p1, %s23_s9), 0  ;;  %p107_p3 = pnand %p571_p0, %p106_p2 }
   0x6   : > { %p132_p4 = scmp.lt.s32.totalorder (!%p107_p3), %s620_s6, 1 }
   0x7   : > { %110 = sbr.rel (%p107_p3) target bundleno = 211 (0xd3), region = 24 }
   0xc   : > { %s1207_s6 = smov (!%p132_p4, %s620_s6), 1  ;;  %vm180_vm0 = vcmask 523264  }
   0xd   : > { %s578_s10 = sshll.u32 %s1207_s6, 8 }
   0xe   : > { %s666_s13 = scalar_lea.vmem %s1200_s0, %s578_s10  ;;  %s1069_s16 = scalar_lea.vmem %s1201_s1, %s578_s10 }
   0xf   : > { %v669_v0 = vld [vmem:[%s666_s13] sm:$0xff]  ;;  %v672_v1 = vld [vmem:[%s666_s13 + $0x8] sm:$0xff]  ;;  %v675_v2 = vld [vmem:[%s666_s13 + $0x10] sm:$0xff] }
  0x10   : > { %v678_v3 = vld [vmem:[%s666_s13 + $0x18] sm:$0xff]  ;;  %v181_v4 = vsel %vm180_vm0, %v669_v0, 0.0  ;;  %v182_v5 = vsel %vm180_vm0, %v672_v1, 0.0  ;;  %v184_v6 = vsel %vm180_vm0, %v675_v2, 0.0  ;;  %v687_v7 = vld [vmem:[%s666_s13 + $0x20] sm:$0xff]  ;;  %v692_v10 = vld [vmem:[%s666_s13 + $0x28] sm:$0xff] }
  0x11   : > { %v183_v8 = vadd.f32 %v182_v5, %v181_v4  ;;  %v186_v9 = vsel %vm180_vm0, %v678_v3, 0.0  ;;  %v188_v12 = vsel %vm180_vm0, %v687_v7, 0.0  ;;  %v697_v13 = vld [vmem:[%s666_s13 + $0x30] sm:$0xff]  ;;  %v190_v15 = vsel %vm180_vm0, %v692_v10, 0.0  ;;  %v702_v16 = vld [vmem:[%s666_s13 + $0x38] sm:$0xff]  ;;  %v707_v19 = vld [vmem:[%s666_s13 + $0x40] sm:$0xff] }
  0x12   : > { %v192_v18 = vsel %vm180_vm0, %v697_v13, 0.0  ;;  %v194_v21 = vsel %vm180_vm0, %v702_v16, 0.0  ;;  %v712_v22 = vld [vmem:[%s666_s13 + $0x48] sm:$0xff]  ;;  %v196_v24 = vsel %vm180_vm0, %v707_v19, 0.0  ;;  %v717_v25 = vld [vmem:[%s666_s13 + $0x50] sm:$0xff]  ;;  %v722_v28 = vld [vmem:[%s666_s13 + $0x58] sm:$0xff] }
  0x13   : > { %v185_v11 = vadd.f32 %v184_v6, %v183_v8  ;;  %v198_v27 = vsel %vm180_vm0, %v712_v22, 0.0  ;;  %v200_v30 = vsel %vm180_vm0, %v717_v25, 0.0  ;;  %v727_v31 = vld [vmem:[%s666_s13 + $0x60] sm:$0xff]  ;;  %v202_v33 = vsel %vm180_vm0, %v722_v28, 0.0  ;;  %v732_v34 = vld [vmem:[%s666_s13 + $0x68] sm:$0xff]  ;;  %v737_v37 = vld [vmem:[%s666_s13 + $0x70] sm:$0xff] }
  0x14   : > { %v204_v36 = vsel %vm180_vm0, %v727_v31, 0.0  ;;  %v206_v39 = vsel %vm180_vm0, %v732_v34, 0.0  ;;  %v742_v40 = vld [vmem:[%s666_s13 + $0x78] sm:$0xff]  ;;  %v208_v42 = vsel %vm180_vm0, %v737_v37, 0.0  ;;  %v747_v43 = vld [vmem:[%s666_s13 + $0x80] sm:$0xff]  ;;  %v752_v46 = vld [vmem:[%s666_s13 + $0x88] sm:$0xff] }
  0x15   : > { %v187_v14 = vadd.f32 %v186_v9, %v185_v11  ;;  %v210_v45 = vsel %vm180_vm0, %v742_v40, 0.0  ;;  %v212_v48 = vsel %vm180_vm0, %v747_v43, 0.0  ;;  %v757_v49 = vld [vmem:[%s666_s13 + $0x90] sm:$0xff]  ;;  %v214_v51 = vsel %vm180_vm0, %v752_v46, 0.0  ;;  %v762_v52 = vld [vmem:[%s666_s13 + $0x98] sm:$0xff]  ;;  %v767_v55 = vld [vmem:[%s666_s13 + $0xa0] sm:$0xff] }
  0x16   : > { %v216_v54 = vsel %vm180_vm0, %v757_v49, 0.0  ;;  %v218_v57 = vsel %vm180_vm0, %v762_v52, 0.0  ;;  %v772_v58 = vld [vmem:[%s666_s13 + $0xa8] sm:$0xff]  ;;  %v220_v60 = vsel %vm180_vm0, %v767_v55, 0.0  ;;  %v777_v61 = vld [vmem:[%s666_s13 + $0xb0] sm:$0xff]  ;;  %v782_v4 = vld [vmem:[%s666_s13 + $0xb8] sm:$0xff] }
  0x17   : > { %v189_v17 = vadd.f32 %v188_v12, %v187_v14  ;;  %v222_v63 = vsel %vm180_vm0, %v772_v58, 0.0  ;;  %v224_v6 = vsel %vm180_vm0, %v777_v61, 0.0  ;;  %v787_v8 = vld [vmem:[%s666_s13 + $0xc0] sm:$0xff]  ;;  %v226_v11 = vsel %vm180_vm0, %v782_v4, 0.0  ;;  %v792_v12 = vld [vmem:[%s666_s13 + $0xc8] sm:$0xff] }
  0x19   : > { %v191_v20 = vadd.f32 %v190_v15, %v189_v17  ;;  %v228_v15 = vsel %vm180_vm0, %v787_v8, 0.0  ;;  %v797_v17 = vld [vmem:[%s666_s13 + $0xd0] sm:$0xff] }
  0x1b   : > { %v193_v23 = vadd.f32 %v192_v18, %v191_v20  ;;  %v230_v20 = vsel %vm180_vm0, %v792_v12, 0.0 }
  0x1d   : > { %v195_v26 = vadd.f32 %v194_v21, %v193_v23  ;;  %v802_v21 = vld [vmem:[%s666_s13 + $0xd8] sm:$0xff] }
  0x1f   : > { %v197_v29 = vadd.f32 %v196_v24, %v195_v26  ;;  %v232_v24 = vsel %vm180_vm0, %v797_v17, 0.0  ;;  %v807_v26 = vld [vmem:[%s666_s13 + $0xe0] sm:$0xff] }
  0x21   : > { %v199_v32 = vadd.f32 %v198_v27, %v197_v29  ;;  %v234_v29 = vsel %vm180_vm0, %v802_v21, 0.0 }
  0x23   : > { %v201_v35 = vadd.f32 %v200_v30, %v199_v32  ;;  %v812_v30 = vld [vmem:[%s666_s13 + $0xe8] sm:$0xff] }
  0x25   : > { %v203_v38 = vadd.f32 %v202_v33, %v201_v35  ;;  %v236_v33 = vsel %vm180_vm0, %v807_v26, 0.0  ;;  %v817_v35 = vld [vmem:[%s666_s13 + $0xf0] sm:$0xff] }
  0x27   : > { %v205_v41 = vadd.f32 %v204_v36, %v203_v38  ;;  %v238_v38 = vsel %vm180_vm0, %v812_v30, 0.0 }
  0x29   : > { %v207_v44 = vadd.f32 %v206_v39, %v205_v41  ;;  %v822_v39 = vld [vmem:[%s666_s13 + $0xf8] sm:$0xff] }
  0x2b   : > { %v209_v47 = vadd.f32 %v208_v42, %v207_v44  ;;  %v240_v42 = vsel %vm180_vm0, %v817_v35, 0.0 }
  0x2d   : > { %v211_v50 = vadd.f32 %v210_v45, %v209_v47  ;;  %v242_v45 = vsel %vm180_vm0, %v822_v39, 0.0 }
  0x2f   : > { %v213_v53 = vadd.f32 %v212_v48, %v211_v50 }
  0x31   : > { %v215_v56 = vadd.f32 %v214_v51, %v213_v53 }
  0x33   : > { %v217_v59 = vadd.f32 %v216_v54, %v215_v56 }
  0x35   : > { %v219_v62 = vadd.f32 %v218_v57, %v217_v59 }
  0x37   : > { %v221_v5 = vadd.f32 %v220_v60, %v219_v62 }
  0x39   : > { %v223_v9 = vadd.f32 %v222_v63, %v221_v5 }
  0x3b   : > { %v225_v14 = vadd.f32 %v224_v6, %v223_v9 }
  0x3d   : > { %v227_v18 = vadd.f32 %v226_v11, %v225_v14 }
  0x3f   : > { %v229_v23 = vadd.f32 %v228_v15, %v227_v18 }
  0x41   : > { %v231_v27 = vadd.f32 %v230_v20, %v229_v23 }
  0x43   : > { %v233_v32 = vadd.f32 %v232_v24, %v231_v27 }
  0x45   : > { %v235_v36 = vadd.f32 %v234_v29, %v233_v32 }
  0x47   : > { %v237_v41 = vadd.f32 %v236_v33, %v235_v36 }
  0x49   : > { %v239_v44 = vadd.f32 %v238_v38, %v237_v41 }
  0x4b   : > { %v241_v47 = vadd.f32 %v240_v42, %v239_v44 }
  0x4d   : > { %v243_v48 = vadd.f32 %v242_v45, %v241_v47 }
  0x4f   : > { %v244_v50 = vrot.slane %v243_v48, 4 }
  0x51   : > { %v245_v51 = vadd.f32 %v244_v50, %v243_v48 }
  0x53   : > { %v246_v53 = vrot.slane %v245_v51, 2 }
  0x55   : > { %v247_v54 = vadd.f32 %v246_v53, %v245_v51 }
  0x57   : > { %v248_v56 = vrot.slane %v247_v54, 1 }
  0x59   : > { %v249_v57 = vadd.f32 %v248_v56, %v247_v54 }
  0x5b   : > { %v828_v59 = vmul.f32 0.00390625, %v249_v57 }
  0x5d   : > { %v832_v60 = vsub.f32 %v669_v0, %v828_v59  ;;  %v836_v62 = vsub.f32 %v672_v1, %v828_v59  ;;  %v840_v63 = vsub.f32 %v675_v2, %v828_v59  ;;  %v844_v5 = vsub.f32 %v678_v3, %v828_v59 }
  0x5e   : > { %v848_v6 = vsub.f32 %v687_v7, %v828_v59  ;;  %v858_v2 = vsub.f32 %v692_v10, %v828_v59  ;;  %v864_v7 = vsub.f32 %v697_v13, %v828_v59  ;;  %v873_v10 = vsub.f32 %v702_v16, %v828_v59 }
  0x5f   : > { %v284_v0 = vmul.f32 %v832_v60, %v832_v60  ;;  %v285_v9 = vmul.f32 %v836_v62, %v836_v62  ;;  %v286_v1 = vmul.f32 %v840_v63, %v840_v63  ;;  %v287_v3 = vmul.f32 %v844_v5, %v844_v5 }
  0x60   : > { %v288_v11 = vmul.f32 %v848_v6, %v848_v6  ;;  %v289_v23 = vmul.f32 %v858_v2, %v858_v2  ;;  %v880_v27 = vsub.f32 %v707_v19, %v828_v59  ;;  %v290_v29 = vmul.f32 %v864_v7, %v864_v7 }
  0x61   : > { %v316_v14 = vsel %vm180_vm0, %v284_v0, 0.0  ;;  %v317_v15 = vsel %vm180_vm0, %v285_v9, 0.0  ;;  %v319_v18 = vsel %vm180_vm0, %v286_v1, 0.0  ;;  %v321_v13 = vsel %vm180_vm0, %v287_v3, 0.0 }
  0x62   : > { %v318_v20 = vadd.f32 %v317_v15, %v316_v14  ;;  %v323_v32 = vsel %vm180_vm0, %v288_v11, 0.0  ;;  %v887_v16 = vsub.f32 %v712_v22, %v828_v59  ;;  %v291_v36 = vmul.f32 %v873_v10, %v873_v10 }
  0x63   : > { %v325_v38 = vsel %vm180_vm0, %v289_v23, 0.0  ;;  %v894_v19 = vsub.f32 %v717_v25, %v828_v59  ;;  %v292_v42 = vmul.f32 %v880_v27, %v880_v27  ;;  %v327_v44 = vsel %vm180_vm0, %v290_v29, 0.0 }
  0x64   : > { %v320_v24 = vadd.f32 %v319_v18, %v318_v20  ;;  %v901_v22 = vsub.f32 %v722_v28, %v828_v59  ;;  %v293_v47 = vmul.f32 %v887_v16, %v887_v16  ;;  %v329_v48 = vsel %vm180_vm0, %v291_v36, 0.0 }
  0x65   : > { %v908_v25 = vsub.f32 %v727_v31, %v828_v59  ;;  %v294_v51 = vmul.f32 %v894_v19, %v894_v19  ;;  %v331_v53 = vsel %vm180_vm0, %v292_v42, 0.0  ;;  %v915_v28 = vsub.f32 %v732_v34, %v828_v59 }
  0x66   : > { %v322_v33 = vadd.f32 %v321_v13, %v320_v24  ;;  %v295_v56 = vmul.f32 %v901_v22, %v901_v22  ;;  %v333_v57 = vsel %vm180_vm0, %v293_v47, 0.0  ;;  %v922_v31 = vsub.f32 %v737_v37, %v828_v59 }
  0x67   : > { %v296_v9 = vmul.f32 %v908_v25, %v908_v25  ;;  %v335_v1 = vsel %vm180_vm0, %v294_v51, 0.0  ;;  %v929_v34 = vsub.f32 %v742_v40, %v828_v59  ;;  %v297_v11 = vmul.f32 %v915_v28, %v915_v28 }
  0x68   : > { %v324_v41 = vadd.f32 %v323_v32, %v322_v33  ;;  %v337_v14 = vsel %vm180_vm0, %v295_v56, 0.0  ;;  %v936_v37 = vsub.f32 %v747_v43, %v828_v59  ;;  %v298_v18 = vmul.f32 %v922_v31, %v922_v31 }
  0x69   : > { %v339_v20 = vsel %vm180_vm0, %v296_v9, 0.0  ;;  %v943_v40 = vsub.f32 %v752_v46, %v828_v59  ;;  %v299_v13 = vmul.f32 %v929_v34, %v929_v34  ;;  %v341_v24 = vsel %vm180_vm0, %v297_v11, 0.0 }
  0x6a   : > { %v326_v45 = vadd.f32 %v325_v38, %v324_v41  ;;  %v950_v43 = vsub.f32 %v757_v49, %v828_v59  ;;  %v300_v32 = vmul.f32 %v936_v37, %v936_v37  ;;  %v343_v33 = vsel %vm180_vm0, %v298_v18, 0.0 }
  0x6b   : > { %v957_v46 = vsub.f32 %v762_v52, %v828_v59  ;;  %v301_v38 = vmul.f32 %v943_v40, %v943_v40  ;;  %v345_v41 = vsel %vm180_vm0, %v299_v13, 0.0  ;;  %v964_v49 = vsub.f32 %v767_v55, %v828_v59 }
  0x6c   : > { %v328_v50 = vadd.f32 %v327_v44, %v326_v45  ;;  %v302_v44 = vmul.f32 %v950_v43, %v950_v43  ;;  %v347_v45 = vsel %vm180_vm0, %v300_v32, 0.0  ;;  %v971_v52 = vsub.f32 %v772_v58, %v828_v59 }
  0x6d   : > { %v978_v55 = vsub.f32 %v777_v61, %v828_v59  ;;  %v985_v58 = vsub.f32 %v782_v4, %v828_v59  ;;  %v992_v61 = vsub.f32 %v787_v8, %v828_v59  ;;  %v999_v4 = vsub.f32 %v792_v12, %v828_v59 }
  0x6e   : > { %v330_v54 = vadd.f32 %v329_v48, %v328_v50  ;;  %v303_v48 = vmul.f32 %v957_v46, %v957_v46  ;;  %v349_v50 = vsel %vm180_vm0, %v301_v38, 0.0  ;;  %v1006_v8 = vsub.f32 %v797_v17, %v828_v59 }
  0x6f   : > { %v1013_v12 = vsub.f32 %v802_v21, %v828_v59  ;;  %v1020_v17 = vsub.f32 %v807_v26, %v828_v59  ;;  %v1027_v21 = vsub.f32 %v812_v30, %v828_v59  ;;  %v1034_v26 = vsub.f32 %v817_v35, %v828_v59 }
  0x70   : > { %v332_v0 = vadd.f32 %v331_v53, %v330_v54  ;;  %v304_v53 = vmul.f32 %v964_v49, %v964_v49  ;;  %v351_v54 = vsel %vm180_vm0, %v302_v44, 0.0  ;;  %v1041_v30 = vsub.f32 %v822_v39, %v828_v59 }
  0x71   : > { %v314_v35 = vmul.f32 %v1034_v26, %v1034_v26 }
  0x72   : > { %v334_v3 = vadd.f32 %v333_v57, %v332_v0  ;;  %v305_v57 = vmul.f32 %v971_v52, %v971_v52  ;;  %v353_v0 = vsel %vm180_vm0, %v303_v48, 0.0 }
  0x73   : > { %v375_v39 = vsel %vm180_vm0, %v314_v35, 0.0 }
  0x74   : > { %v336_v15 = vadd.f32 %v335_v1, %v334_v3  ;;  %v306_v1 = vmul.f32 %v978_v55, %v978_v55  ;;  %v355_v3 = vsel %vm180_vm0, %v304_v53, 0.0 }
  0x76   : > { %v338_v23 = vadd.f32 %v337_v14, %v336_v15  ;;  %v307_v14 = vmul.f32 %v985_v58, %v985_v58  ;;  %v357_v15 = vsel %vm180_vm0, %v305_v57, 0.0  ;;  %v315_v57 = vmul.f32 %v1041_v30, %v1041_v30 }
  0x78   : > { %v340_v29 = vadd.f32 %v339_v20, %v338_v23  ;;  %v308_v20 = vmul.f32 %v992_v61, %v992_v61  ;;  %v359_v23 = vsel %vm180_vm0, %v306_v1, 0.0  ;;  %v377_v1 = vsel %vm180_vm0, %v315_v57, 0.0 }
  0x7a   : > { %v342_v36 = vadd.f32 %v341_v24, %v340_v29  ;;  %v309_v24 = vmul.f32 %v999_v4, %v999_v4  ;;  %v361_v29 = vsel %vm180_vm0, %v307_v14, 0.0 }
  0x7c   : > { %v344_v42 = vadd.f32 %v343_v33, %v342_v36  ;;  %v310_v33 = vmul.f32 %v1006_v8, %v1006_v8  ;;  %v363_v36 = vsel %vm180_vm0, %v308_v20, 0.0 }
  0x7e   : > { %v346_v47 = vadd.f32 %v345_v41, %v344_v42  ;;  %v311_v41 = vmul.f32 %v1013_v12, %v1013_v12  ;;  %v365_v42 = vsel %vm180_vm0, %v309_v24, 0.0 }
  0x80   : > { %v348_v51 = vadd.f32 %v347_v45, %v346_v47  ;;  %v312_v45 = vmul.f32 %v1020_v17, %v1020_v17  ;;  %v367_v47 = vsel %vm180_vm0, %v310_v33, 0.0 }
  0x82   : > { %v350_v56 = vadd.f32 %v349_v50, %v348_v51  ;;  %v313_v50 = vmul.f32 %v1027_v21, %v1027_v21  ;;  %v369_v51 = vsel %vm180_vm0, %v311_v41, 0.0 }
  0x84   : > { %v352_v9 = vadd.f32 %v351_v54, %v350_v56  ;;  %v371_v54 = vsel %vm180_vm0, %v312_v45, 0.0 }
  0x86   : > { %v354_v11 = vadd.f32 %v353_v0, %v352_v9  ;;  %v373_v0 = vsel %vm180_vm0, %v313_v50, 0.0 }
  0x88   : > { %v356_v18 = vadd.f32 %v355_v3, %v354_v11 }
  0x8a   : > { %v358_v13 = vadd.f32 %v357_v15, %v356_v18 }
  0x8c   : > { %v360_v32 = vadd.f32 %v359_v23, %v358_v13 }
  0x8e   : > { %v362_v38 = vadd.f32 %v361_v29, %v360_v32 }
  0x90   : > { %v364_v44 = vadd.f32 %v363_v36, %v362_v38 }
  0x92   : > { %v366_v48 = vadd.f32 %v365_v42, %v364_v44 }
  0x94   : > { %v368_v53 = vadd.f32 %v367_v47, %v366_v48 }
  0x96   : > { %v370_v56 = vadd.f32 %v369_v51, %v368_v53 }
  0x98   : > { %v372_v9 = vadd.f32 %v371_v54, %v370_v56 }
  0x9a   : > { %v374_v59 = vadd.f32 %v373_v0, %v372_v9 }
  0x9c   : > { %v376_v3 = vadd.f32 %v375_v39, %v374_v59 }
  0x9e   : > { %v378_v11 = vadd.f32 %v377_v1, %v376_v3 }
  0xa0   : > { %v379_v14 = vrot.slane %v378_v11, 4 }
  0xa2   : > { %v380_v15 = vadd.f32 %v379_v14, %v378_v11 }
  0xa4   : > { %v381_v18 = vrot.slane %v380_v15, 2 }
  0xa6   : > { %v382_v20 = vadd.f32 %v381_v18, %v380_v15 }
  0xa8   : > { %v383_v23 = vrot.slane %v382_v20, 1 }
  0xaa   : > { %v384_v13 = vadd.f32 %v383_v23, %v382_v20 }
  0xac   : > { %v385_v24 = vmul.f32 0.00390625, %v384_v13 }
  0xae   : > { %v386_v29 = vadd.f32 1e-05, %v385_v24 }
  0xb0   : > { %604 = vrsqrt.f32 %v386_v29 }
  0xbd   : > { %v1054_v32 = vpop.eup %604 }
  0xbe   : > { %v388_v33 = vmul.f32 %v1054_v32, %v832_v60  ;;  %v389_v36 = vmul.f32 %v1054_v32, %v836_v62  ;;  %v390_v38 = vmul.f32 %v1054_v32, %v840_v63  ;;  %v391_v41 = vmul.f32 %v1054_v32, %v844_v5 }
  0xbf   : > { %v392_v60 = vmul.f32 %v1054_v32, %v848_v6  ;;  %v393_v62 = vmul.f32 %v1054_v32, %v858_v2  ;;  %v394_v63 = vmul.f32 %v1054_v32, %v864_v7  ;;  %v395_v5 = vmul.f32 %v1054_v32, %v873_v10 }
  0xc0   : > { %v420_v42 = vmax.f32 %v388_v33, 0.0  ;;  %v421_v44 = vmax.f32 %v389_v36, 0.0  ;;  %v422_v45 = vmax.f32 %v390_v38, 0.0  ;;  %v423_v47 = vmax.f32 %v391_v41, 0.0 }
  0xc1   : > { %v424_v48 = vmax.f32 %v392_v60, 0.0  ;;  %v425_v50 = vmax.f32 %v393_v62, 0.0  ;;  %v426_v6 = vmax.f32 %v394_v63, 0.0  ;;  %v427_v51 = vmax.f32 %v395_v5, 0.0 }
  0xc2   : > { %452 = vst.msk [vmem:[%s1069_s16] sm:$0xff] %vm180_vm0, %v420_v42  ;;  %453 = vst.msk [vmem:[%s1069_s16 + $0x8] sm:$0xff] %vm180_vm0, %v421_v44  ;;  %v396_v2 = vmul.f32 %v1054_v32, %v880_v27  ;;  %v397_v7 = vmul.f32 %v1054_v32, %v887_v16  ;;  %v398_v10 = vmul.f32 %v1054_v32, %v894_v19 }
  0xc3   : > { %454 = vst.msk [vmem:[%s1069_s16 + $0x10] sm:$0xff] %vm180_vm0, %v422_v45  ;;  %455 = vst.msk [vmem:[%s1069_s16 + $0x18] sm:$0xff] %vm180_vm0, %v423_v47  ;;  %v399_v53 = vmul.f32 %v1054_v32, %v901_v22  ;;  %v400_v27 = vmul.f32 %v1054_v32, %v908_v25  ;;  %v401_v16 = vmul.f32 %v1054_v32, %v915_v28 }
  0xc4   : > { %456 = vst.msk [vmem:[%s1069_s16 + $0x20] sm:$0xff] %vm180_vm0, %v424_v48  ;;  %457 = vst.msk [vmem:[%s1069_s16 + $0x28] sm:$0xff] %vm180_vm0, %v425_v50  ;;  %v402_v19 = vmul.f32 %v1054_v32, %v922_v31  ;;  %v403_v22 = vmul.f32 %v1054_v32, %v929_v34  ;;  %v428_v35 = vmax.f32 %v396_v2, 0.0  ;;  %v429_v54 = vmax.f32 %v397_v7, 0.0 }
  0xc5   : > { %458 = vst.msk [vmem:[%s1069_s16 + $0x30] sm:$0xff] %vm180_vm0, %v426_v6  ;;  %459 = vst.msk [vmem:[%s1069_s16 + $0x38] sm:$0xff] %vm180_vm0, %v427_v51  ;;  %v430_v56 = vmax.f32 %v398_v10, 0.0  ;;  %v431_v57 = vmax.f32 %v399_v53, 0.0  ;;  %v432_v0 = vmax.f32 %v400_v27, 0.0  ;;  %v433_v9 = vmax.f32 %v401_v16, 0.0 }
  0xc6   : > { %v434_v25 = vmax.f32 %v402_v19, 0.0  ;;  %v435_v39 = vmax.f32 %v403_v22, 0.0  ;;  %460 = vst.msk [vmem:[%s1069_s16 + $0x40] sm:$0xff] %vm180_vm0, %v428_v35  ;;  %461 = vst.msk [vmem:[%s1069_s16 + $0x48] sm:$0xff] %vm180_vm0, %v429_v54  ;;  %v404_v28 = vmul.f32 %v1054_v32, %v936_v37  ;;  %v405_v31 = vmul.f32 %v1054_v32, %v943_v40 }
  0xc7   : > { %462 = vst.msk [vmem:[%s1069_s16 + $0x50] sm:$0xff] %vm180_vm0, %v430_v56  ;;  %463 = vst.msk [vmem:[%s1069_s16 + $0x58] sm:$0xff] %vm180_vm0, %v431_v57  ;;  %v406_v34 = vmul.f32 %v1054_v32, %v950_v43  ;;  %v407_v59 = vmul.f32 %v1054_v32, %v957_v46  ;;  %v408_v37 = vmul.f32 %v1054_v32, %v964_v49 }
  0xc8   : > { %464 = vst.msk [vmem:[%s1069_s16 + $0x60] sm:$0xff] %vm180_vm0, %v432_v0  ;;  %465 = vst.msk [vmem:[%s1069_s16 + $0x68] sm:$0xff] %vm180_vm0, %v433_v9  ;;  %v409_v40 = vmul.f32 %v1054_v32, %v971_v52  ;;  %v410_v43 = vmul.f32 %v1054_v32, %v978_v55  ;;  %v411_v46 = vmul.f32 %v1054_v32, %v985_v58  ;;  %v436_v1 = vmax.f32 %v404_v28, 0.0 }
  0xc9   : > { %466 = vst.msk [vmem:[%s1069_s16 + $0x70] sm:$0xff] %vm180_vm0, %v434_v25  ;;  %467 = vst.msk [vmem:[%s1069_s16 + $0x78] sm:$0xff] %vm180_vm0, %v435_v39  ;;  %v437_v3 = vmax.f32 %v405_v31, 0.0  ;;  %v438_v11 = vmax.f32 %v406_v34, 0.0  ;;  %v439_v14 = vmax.f32 %v407_v59, 0.0  ;;  %v440_v15 = vmax.f32 %v408_v37, 0.0 }
  0xca   : > { %v441_v18 = vmax.f32 %v409_v40, 0.0  ;;  %v442_v49 = vmax.f32 %v410_v43, 0.0  ;;  %v443_v20 = vmax.f32 %v411_v46, 0.0  ;;  %468 = vst.msk [vmem:[%s1069_s16 + $0x80] sm:$0xff] %vm180_vm0, %v436_v1  ;;  %v412_v52 = vmul.f32 %v1054_v32, %v992_v61 }
  0xcb   : > { %469 = vst.msk [vmem:[%s1069_s16 + $0x88] sm:$0xff] %vm180_vm0, %v437_v3  ;;  %470 = vst.msk [vmem:[%s1069_s16 + $0x90] sm:$0xff] %vm180_vm0, %v438_v11  ;;  %v413_v55 = vmul.f32 %v1054_v32, %v999_v4  ;;  %v414_v58 = vmul.f32 %v1054_v32, %v1006_v8  ;;  %v415_v23 = vmul.f32 %v1054_v32, %v1013_v12 }
  0xcc   : > { %471 = vst.msk [vmem:[%s1069_s16 + $0x98] sm:$0xff] %vm180_vm0, %v439_v14  ;;  %472 = vst.msk [vmem:[%s1069_s16 + $0xa0] sm:$0xff] %vm180_vm0, %v440_v15  ;;  %v416_v61 = vmul.f32 %v1054_v32, %v1020_v17  ;;  %v417_v4 = vmul.f32 %v1054_v32, %v1027_v21  ;;  %v418_v8 = vmul.f32 %v1054_v32, %v1034_v26  ;;  %v444_v13 = vmax.f32 %v412_v52, 0.0 }
  0xcd   : > { %473 = vst.msk [vmem:[%s1069_s16 + $0xa8] sm:$0xff] %vm180_vm0, %v441_v18  ;;  %474 = vst.msk [vmem:[%s1069_s16 + $0xb0] sm:$0xff] %vm180_vm0, %v442_v49  ;;  %v419_v12 = vmul.f32 %v1054_v32, %v1041_v30  ;;  %v445_v24 = vmax.f32 %v413_v55, 0.0  ;;  %v446_v29 = vmax.f32 %v414_v58, 0.0  ;;  %v447_v33 = vmax.f32 %v415_v23, 0.0 }
  0xce   : > { %475 = vst.msk [vmem:[%s1069_s16 + $0xb8] sm:$0xff] %vm180_vm0, %v443_v20  ;;  %v448_v36 = vmax.f32 %v416_v61, 0.0  ;;  %v449_v38 = vmax.f32 %v417_v4, 0.0  ;;  %v450_v17 = vmax.f32 %v418_v8, 0.0  ;;  %476 = vst.msk [vmem:[%s1069_s16 + $0xc0] sm:$0xff] %vm180_vm0, %v444_v13 }
  0xcf   : > { %v451_v41 = vmax.f32 %v419_v12, 0.0  ;;  %477 = vst.msk [vmem:[%s1069_s16 + $0xc8] sm:$0xff] %vm180_vm0, %v445_v24  ;;  %478 = vst.msk [vmem:[%s1069_s16 + $0xd0] sm:$0xff] %vm180_vm0, %v446_v29 }
  0xd0   : > { %479 = vst.msk [vmem:[%s1069_s16 + $0xd8] sm:$0xff] %vm180_vm0, %v447_v33  ;;  %480 = vst.msk [vmem:[%s1069_s16 + $0xe0] sm:$0xff] %vm180_vm0, %v448_v36 }
  0xd1   : > { %481 = vst.msk [vmem:[%s1069_s16 + $0xe8] sm:$0xff] %vm180_vm0, %v449_v38  ;;  %482 = vst.msk [vmem:[%s1069_s16 + $0xf0] sm:$0xff] %vm180_vm0, %v450_v17 }
  0xd2   : > { %483 = vst.msk [vmem:[%s1069_s16 + $0xf8] sm:$0xff] %vm180_vm0, %v451_v41 }
  0xd3 PF: > { %s11_s8 = sadd.s32 1, %s628_s8   ;;  %s1202_s6 = smov %s624_s7 }
  0xd4   : > { %p8_p5 = scmp.ge.s32.totalorder %s11_s8, 4   ;;  %s1203_s7 = smov %s1205_s9 }
  0xd6   :  { %10 = sbr.rel (!%p8_p5) target bundleno = 2 (0x2), region = 54 }

// kernel: generator_forward.31
= control target key start
LH: loop header
LB: loop body
LE: loop exit
PB: predicated region body
PF: predicated region fallthrough
CT: control target
= control target key end

     0   :  { %v1508_v0 = vmov 0   ;;  %s2062_s1 = inlined_call_operand.vmem [shape: bf16[256,128], index: 1, kind: input, shape index: {}]   ;;  %s2063_s0 = inlined_call_operand.vmem [shape: bf16[512,256], index: 0, kind: input, shape index: {}]   ;;  %s2064_s2 = inlined_call_operand.vmem [shape: f32[1,128], index: 2, kind: input, shape index: {}]   ;;  %s2065_s3 = inlined_call_operand.vmem [shape: f32[512,128], index: 3, kind: output, shape index: {}]  }
   0x1   :  { %659 = vmatprep.subr.bf16.mxu0 %v1508_v0  ;;  %1363 = vmatprep.subr.bf16.mxu1 %v1508_v0  ;;  %v1396_v1 = vld [vmem:[%s2062_s1 + $0x38] sm:$0xff]   ;;  %v1397_v2 = vld [vmem:[%s2062_s1 + $0x30] sm:$0xff]   ;;  %v1398_v3 = vld [vmem:[%s2062_s1 + $0x28] sm:$0xff]  }
   0x2   :  { %660 = vmatpush1.bf16.msra.mxu0 %v1396_v1  ;;  %1379 = vmatpush1.bf16.msra.mxu1 %v1396_v1  ;;  %v1399_v4 = vld [vmem:[%s2062_s1 + $0x20] sm:$0xff]   ;;  %v1400_v5 = vld [vmem:[%s2062_s1 + $0x18] sm:$0xff]   ;;  %v1401_v7 = vld [vmem:[%s2062_s1 + $0x10] sm:$0xff]  }
   0x3   :  { %661 = vmatprep.subr.bf16.mxu0 %v1508_v0  ;;  %1364 = vmatprep.subr.bf16.mxu1 %v1508_v0  ;;  %v1414_v6 = vld [vmem:[%s2063_s0 + $0x4] ss:$8 sps:$4 sm:$0xff]   ;;  %v1404_v11 = vld [vmem:[%s2062_s1 + $0x78] sm:$0xff]   ;;  %v1405_v12 = vld [vmem:[%s2062_s1 + $0x70] sm:$0xff]  }
   0x4   :  { %v1417_v8 = vld [vmem:[%s2063_s0 + $0x104] ss:$8 sps:$4 sm:$0xff]   ;;  %691 = vmatprep.mubr.bf16.mxu0 %v1414_v6  ;;  %v1408_v15 = vld [vmem:[%s2062_s1 + $0x58] sm:$0xff]   ;;  %v1409_v16 = vld [vmem:[%s2062_s1 + $0x50] sm:$0xff]  }
   0x5   :  { %819 = vmatprep.mubr.bf16.mxu1 %v1417_v8  ;;  %v1402_v9 = vld [vmem:[%s2062_s1 + $0x8] sm:$0xff]   ;;  %v1403_v10 = vld [vmem:[%s2062_s1] sm:$0xff]   ;;  %v1418_v21 = vld [vmem:[%s2063_s0 + $0x14] ss:$8 sps:$4 sm:$0xff]  }
   0x6   :  { %662 = vmatpush1.bf16.msra.mxu0 %v1397_v2  ;;  %1380 = vmatpush1.bf16.msra.mxu1 %v1397_v2  ;;  %v1406_v13 = vld [vmem:[%s2062_s1 + $0x68] sm:$0xff]   ;;  %v1407_v14 = vld [vmem:[%s2062_s1 + $0x60] sm:$0xff]   ;;  %v1420_v22 = vld [vmem:[%s2063_s0 + $0x114] ss:$8 sps:$4 sm:$0xff]  }
   0x7   :  { %663 = vmatprep.subr.bf16.mxu0 %v1508_v0  ;;  %1365 = vmatprep.subr.bf16.mxu1 %v1508_v0  ;;  %v1410_v17 = vld [vmem:[%s2062_s1 + $0x48] sm:$0xff]   ;;  %v1411_v18 = vld [vmem:[%s2062_s1 + $0x40] sm:$0xff]   ;;  %v1422_v23 = vld [vmem:[%s2063_s0 + $0x10] ss:$8 sps:$4 sm:$0xff]  }
   0x8   :  { %v1412_v19 = vld [vmem:[%s2063_s0] ss:$8 sps:$4 sm:$0xff]   ;;  %v1423_v24 = vld [vmem:[%s2063_s0 + $0x110] ss:$8 sps:$4 sm:$0xff]   ;;  %v1424_v25 = vld [vmem:[%s2063_s0 + $0x24] ss:$8 sps:$4 sm:$0xff]  }
   0x9   :  { %v1415_v20 = vld [vmem:[%s2063_s0 + $0x100] ss:$8 sps:$4 sm:$0xff]   ;;  %v1426_v26 = vld [vmem:[%s2063_s0 + $0x124] ss:$8 sps:$4 sm:$0xff]   ;;  %v1430_v29 = vld [vmem:[%s2063_s0 + $0x34] ss:$8 sps:$4 sm:$0xff]  }
   0xa   :  { %664 = vmatpush1.bf16.msra.mxu0 %v1398_v3  ;;  %1381 = vmatpush1.bf16.msra.mxu1 %v1398_v3  ;;  %v1428_v27 = vld [vmem:[%s2063_s0 + $0x20] ss:$8 sps:$4 sm:$0xff]   ;;  %v1432_v30 = vld [vmem:[%s2063_s0 + $0x134] ss:$8 sps:$4 sm:$0xff]   ;;  %v1434_v31 = vld [vmem:[%s2063_s0 + $0x30] ss:$8 sps:$4 sm:$0xff]  }
   0xb   :  { %665 = vmatprep.subr.bf16.mxu0 %v1508_v0  ;;  %1366 = vmatprep.subr.bf16.mxu1 %v1508_v0  ;;  %v1429_v28 = vld [vmem:[%s2063_s0 + $0x120] ss:$8 sps:$4 sm:$0xff]   ;;  %v1435_v32 = vld [vmem:[%s2063_s0 + $0x130] ss:$8 sps:$4 sm:$0xff]   ;;  %v1436_v33 = vld [vmem:[%s2063_s0 + $0x44] ss:$8 sps:$4 sm:$0xff]  }
   0xc   :  { %v1438_v34 = vld [vmem:[%s2063_s0 + $0x144] ss:$8 sps:$4 sm:$0xff]   ;;  %v1440_v35 = vld [vmem:[%s2063_s0 + $0x40] ss:$8 sps:$4 sm:$0xff]   ;;  %v1442_v37 = vld [vmem:[%s2063_s0 + $0x54] ss:$8 sps:$4 sm:$0xff]  }
   0xd   :  { %v1441_v36 = vld [vmem:[%s2063_s0 + $0x140] ss:$8 sps:$4 sm:$0xff]   ;;  %v1444_v38 = vld [vmem:[%s2063_s0 + $0x154] ss:$8 sps:$4 sm:$0xff]   ;;  %v1446_v39 = vld [vmem:[%s2063_s0 + $0x50] ss:$8 sps:$4 sm:$0xff]  }
   0xe   :  { %666 = vmatpush1.bf16.msra.mxu0 %v1399_v4  ;;  %1382 = vmatpush1.bf16.msra.mxu1 %v1399_v4  ;;  %v1447_v40 = vld [vmem:[%s2063_s0 + $0x150] ss:$8 sps:$4 sm:$0xff]   ;;  %v1448_v41 = vld [vmem:[%s2063_s0 + $0x64] ss:$8 sps:$4 sm:$0xff]   ;;  %v1452_v43 = vld [vmem:[%s2063_s0 + $0x60] ss:$8 sps:$4 sm:$0xff]  }
   0xf   :  { %667 = vmatprep.subr.bf16.mxu0 %v1508_v0  ;;  %1367 = vmatprep.subr.bf16.mxu1 %v1508_v0  ;;  %v1450_v42 = vld [vmem:[%s2063_s0 + $0x164] ss:$8 sps:$4 sm:$0xff]   ;;  %v1453_v44 = vld [vmem:[%s2063_s0 + $0x160] ss:$8 sps:$4 sm:$0xff]   ;;  %v1454_v45 = vld [vmem:[%s2063_s0 + $0x74] ss:$8 sps:$4 sm:$0xff]  }
  0x10   :  { %v1456_v46 = vld [vmem:[%s2063_s0 + $0x174] ss:$8 sps:$4 sm:$0xff]   ;;  %v1458_v47 = vld [vmem:[%s2063_s0 + $0x70] ss:$8 sps:$4 sm:$0xff]   ;;  %v1460_v49 = vld [vmem:[%s2063_s0 + $0x84] ss:$8 sps:$4 sm:$0xff]  }
  0x11   :  { %v1459_v48 = vld [vmem:[%s2063_s0 + $0x170] ss:$8 sps:$4 sm:$0xff]   ;;  %v1462_v50 = vld [vmem:[%s2063_s0 + $0x184] ss:$8 sps:$4 sm:$0xff]   ;;  %v1464_v51 = vld [vmem:[%s2063_s0 + $0x80] ss:$8 sps:$4 sm:$0xff]  }
  0x12   :  { %668 = vmatpush1.bf16.msra.mxu0 %v1400_v5  ;;  %1383 = vmatpush1.bf16.msra.mxu1 %v1400_v5  ;;  %v1465_v52 = vld [vmem:[%s2063_s0 + $0x180] ss:$8 sps:$4 sm:$0xff]   ;;  %v1466_v53 = vld [vmem:[%s2063_s0 + $0x94] ss:$8 sps:$4 sm:$0xff]   ;;  %v1470_v55 = vld [vmem:[%s2063_s0 + $0x90] ss:$8 sps:$4 sm:$0xff]  }
  0x13   :  { %669 = vmatprep.subr.bf16.mxu0 %v1508_v0  ;;  %1368 = vmatprep.subr.bf16.mxu1 %v1508_v0  ;;  %v1468_v54 = vld [vmem:[%s2063_s0 + $0x194] ss:$8 sps:$4 sm:$0xff]   ;;  %v1471_v56 = vld [vmem:[%s2063_s0 + $0x190] ss:$8 sps:$4 sm:$0xff]   ;;  %v1472_v57 = vld [vmem:[%s2063_s0 + $0xa4] ss:$8 sps:$4 sm:$0xff]  }
  0x14   :  { %v1474_v58 = vld [vmem:[%s2063_s0 + $0x1a4] ss:$8 sps:$4 sm:$0xff]   ;;  %v1476_v59 = vld [vmem:[%s2063_s0 + $0xa0] ss:$8 sps:$4 sm:$0xff]   ;;  %v1478_v61 = vld [vmem:[%s2063_s0 + $0xb4] ss:$8 sps:$4 sm:$0xff]  }
  0x15   :  { %v1477_v60 = vld [vmem:[%s2063_s0 + $0x1a0] ss:$8 sps:$4 sm:$0xff]   ;;  %v1480_v62 = vld [vmem:[%s2063_s0 + $0x1b4] ss:$8 sps:$4 sm:$0xff]   ;;  %v1482_v63 = vld [vmem:[%s2063_s0 + $0xb0] ss:$8 sps:$4 sm:$0xff]  }
  0x16   :  { %670 = vmatpush1.bf16.msra.mxu0 %v1401_v7  ;;  %1384 = vmatpush1.bf16.msra.mxu1 %v1401_v7  ;;  %v1484_v1 = vld [vmem:[%s2063_s0 + $0xc4] ss:$8 sps:$4 sm:$0xff]   ;;  %v1488_v3 = vld [vmem:[%s2063_s0 + $0xc0] ss:$8 sps:$4 sm:$0xff]   ;;  %v1490_v5 = vld [vmem:[%s2063_s0 + $0xd4] ss:$8 sps:$4 sm:$0xff]  }
  0x17   :  { %671 = vmatprep.subr.bf16.mxu0 %v1508_v0  ;;  %1369 = vmatprep.subr.bf16.mxu1 %v1508_v0  ;;  %v1486_v2 = vld [vmem:[%s2063_s0 + $0x1c4] ss:$8 sps:$4 sm:$0xff]   ;;  %v1489_v4 = vld [vmem:[%s2063_s0 + $0x1c0] ss:$8 sps:$4 sm:$0xff]   ;;  %v1492_v6 = vld [vmem:[%s2063_s0 + $0x1d4] ss:$8 sps:$4 sm:$0xff]  }
  0x18   :  { %v1494_v7 = vld [vmem:[%s2063_s0 + $0xd0] ss:$8 sps:$4 sm:$0xff]  }
  0x19   :  { %v1495_v8 = vld [vmem:[%s2063_s0 + $0x1d0] ss:$8 sps:$4 sm:$0xff]  }
  0x1a   :  { %672 = vmatpush1.bf16.msra.mxu0 %v1402_v9  ;;  %1385 = vmatpush1.bf16.msra.mxu1 %v1402_v9  ;;  %v1496_v9 = vld [vmem:[%s2063_s0 + $0xe4] ss:$8 sps:$4 sm:$0xff]  }
  0x1b   :  { %673 = vmatprep.subr.bf16.mxu0 %v1508_v0  ;;  %1370 = vmatprep.subr.bf16.mxu1 %v1508_v0 }
  0x1e   :  { %674 = vmatpush1.bf16.msra.mxu0 %v1403_v10  ;;  %1386 = vmatpush1.bf16.msra.mxu1 %v1403_v10  ;;  %v1498_v10 = vld [vmem:[%s2063_s0 + $0x1e4] ss:$8 sps:$4 sm:$0xff]  }
  0x1f   :  { %675 = vmatprep.subr.bf16.mxu0 %v1508_v0  ;;  %1371 = vmatprep.subr.bf16.mxu1 %v1508_v0 }
  0x22   :  { %676 = vmatpush2.bf16.msra.mxu0 %v1404_v11  ;;  %1387 = vmatpush2.bf16.msra.mxu1 %v1404_v11  ;;  %v1500_v11 = vld [vmem:[%s2063_s0 + $0xe0] ss:$8 sps:$4 sm:$0xff]  }
  0x23   :  { %677 = vmatprep.subr.bf16.mxu0 %v1508_v0  ;;  %1372 = vmatprep.subr.bf16.mxu1 %v1508_v0 }
  0x26   :  { %678 = vmatpush2.bf16.msra.mxu0 %v1405_v12  ;;  %1388 = vmatpush2.bf16.msra.mxu1 %v1405_v12  ;;  %v1501_v12 = vld [vmem:[%s2063_s0 + $0x1e0] ss:$8 sps:$4 sm:$0xff]  }
  0x27   :  { %679 = vmatprep.subr.bf16.mxu0 %v1508_v0  ;;  %1373 = vmatprep.subr.bf16.mxu1 %v1508_v0 }
  0x2a   :  { %680 = vmatpush2.bf16.msra.mxu0 %v1406_v13  ;;  %1389 = vmatpush2.bf16.msra.mxu1 %v1406_v13  ;;  %v1502_v13 = vld [vmem:[%s2063_s0 + $0xf4] ss:$8 sps:$4 sm:$0xff]  }
  0x2b   :  { %681 = vmatprep.subr.bf16.mxu0 %v1508_v0  ;;  %1374 = vmatprep.subr.bf16.mxu1 %v1508_v0 }
  0x2e   :  { %682 = vmatpush2.bf16.msra.mxu0 %v1407_v14  ;;  %1390 = vmatpush2.bf16.msra.mxu1 %v1407_v14  ;;  %v1504_v14 = vld [vmem:[%s2063_s0 + $0x1f4] ss:$8 sps:$4 sm:$0xff]  }
  0x2f   :  { %683 = vmatprep.subr.bf16.mxu0 %v1508_v0  ;;  %1375 = vmatprep.subr.bf16.mxu1 %v1508_v0 }
  0x32   :  { %684 = vmatpush2.bf16.msra.mxu0 %v1408_v15  ;;  %1391 = vmatpush2.bf16.msra.mxu1 %v1408_v15  ;;  %v1506_v15 = vld [vmem:[%s2063_s0 + $0xf0] ss:$8 sps:$4 sm:$0xff]  }
  0x33   :  { %685 = vmatprep.subr.bf16.mxu0 %v1508_v0  ;;  %1376 = vmatprep.subr.bf16.mxu1 %v1508_v0 }
  0x36   :  { %686 = vmatpush2.bf16.msra.mxu0 %v1409_v16  ;;  %1392 = vmatpush2.bf16.msra.mxu1 %v1409_v16  ;;  %v1507_v16 = vld [vmem:[%s2063_s0 + $0x1f0] ss:$8 sps:$4 sm:$0xff]  }
  0x37   :  { %687 = vmatprep.subr.bf16.mxu0 %v1508_v0  ;;  %1377 = vmatprep.subr.bf16.mxu1 %v1508_v0 }
  0x3a   :  { %688 = vmatpush2.bf16.msra.mxu0 %v1410_v17  ;;  %1393 = vmatpush2.bf16.msra.mxu1 %v1410_v17  ;;  %v1804_v17 = vld [vmem:[%s2064_s2] ss:$0 sm:$0xff] }
  0x3b   :  { %689 = vmatprep.subr.bf16.mxu0 %v1508_v0  ;;  %1378 = vmatprep.subr.bf16.mxu1 %v1508_v0  ;;  %v1483_v0 = vld [vmem:[%s2063_s0 + $0x1b0] ss:$8 sps:$4 sm:$0xff]  }
  0x3e   :  { %690 = vmatpush2.bf16.msra.mxu0 %v1411_v18  ;;  %1394 = vmatpush2.bf16.msra.mxu1 %v1411_v18 }
  0x41   :  { %692 = vmatmul.mubr.bf16.vlgmr.msra.gmra.mxu0 %v1412_v19  ;;  %820 = vmatmul.mubr.bf16.vlgmr.msra.gmra.mxu1 %v1415_v20 }
  0x42   :  { %699 = vmatprep.mubr.bf16.mxu0 %v1418_v21  ;;  %827 = vmatprep.mubr.bf16.mxu1 %v1420_v22 }
  0x49   :  { %700 = vmatmul.mubr.bf16.gmra.mxu0 %v1422_v23  ;;  %828 = vmatmul.mubr.bf16.gmra.mxu1 %v1423_v24 }
  0x4a   :  { %707 = vmatprep.mubr.bf16.mxu0 %v1424_v25  ;;  %835 = vmatprep.mubr.bf16.mxu1 %v1426_v26 }
  0x51   :  { %708 = vmatmul.mubr.bf16.gmra.mxu0 %v1428_v27  ;;  %836 = vmatmul.mubr.bf16.gmra.mxu1 %v1429_v28 }
  0x52   :  { %715 = vmatprep.mubr.bf16.mxu0 %v1430_v29  ;;  %843 = vmatprep.mubr.bf16.mxu1 %v1432_v30 }
  0x59   :  { %716 = vmatmul.mubr.bf16.gmra.mxu0 %v1434_v31  ;;  %844 = vmatmul.mubr.bf16.gmra.mxu1 %v1435_v32 }
  0x5a   :  { %723 = vmatprep.mubr.bf16.mxu0 %v1436_v33  ;;  %851 = vmatprep.mubr.bf16.mxu1 %v1438_v34 }
  0x61   :  { %724 = vmatmul.mubr.bf16.gmra.mxu0 %v1440_v35  ;;  %852 = vmatmul.mubr.bf16.gmra.mxu1 %v1441_v36 }
  0x62   :  { %731 = vmatprep.mubr.bf16.mxu0 %v1442_v37  ;;  %859 = vmatprep.mubr.bf16.mxu1 %v1444_v38 }
  0x69   :  { %732 = vmatmul.mubr.bf16.gmra.mxu0 %v1446_v39  ;;  %860 = vmatmul.mubr.bf16.gmra.mxu1 %v1447_v40 }
  0x6a   :  { %739 = vmatprep.mubr.bf16.mxu0 %v1448_v41  ;;  %867 = vmatprep.mubr.bf16.mxu1 %v1450_v42 }
  0x71   :  { %740 = vmatmul.mubr.bf16.gmra.mxu0 %v1452_v43  ;;  %868 = vmatmul.mubr.bf16.gmra.mxu1 %v1453_v44 }
  0x72   :  { %747 = vmatprep.mubr.bf16.mxu0 %v1454_v45  ;;  %875 = vmatprep.mubr.bf16.mxu1 %v1456_v46 }
  0x79   :  { %748 = vmatmul.mubr.bf16.gmra.mxu0 %v1458_v47  ;;  %876 = vmatmul.mubr.bf16.gmra.mxu1 %v1459_v48 }
  0x7a   :  { %755 = vmatprep.mubr.bf16.mxu0 %v1460_v49  ;;  %883 = vmatprep.mubr.bf16.mxu1 %v1462_v50 }
  0x81   :  { %756 = vmatmul.mubr.bf16.gmra.mxu0 %v1464_v51  ;;  %884 = vmatmul.mubr.bf16.gmra.mxu1 %v1465_v52 }
  0x82   :  { %763 = vmatprep.mubr.bf16.mxu0 %v1466_v53  ;;  %891 = vmatprep.mubr.bf16.mxu1 %v1468_v54 }
  0x89   :  { %764 = vmatmul.mubr.bf16.gmra.mxu0 %v1470_v55  ;;  %892 = vmatmul.mubr.bf16.gmra.mxu1 %v1471_v56 }
  0x8a   :  { %771 = vmatprep.mubr.bf16.mxu0 %v1472_v57  ;;  %899 = vmatprep.mubr.bf16.mxu1 %v1474_v58 }
  0x91   :  { %772 = vmatmul.mubr.bf16.gmra.mxu0 %v1476_v59  ;;  %900 = vmatmul.mubr.bf16.gmra.mxu1 %v1477_v60 }
  0x92   :  { %779 = vmatprep.mubr.bf16.mxu0 %v1478_v61  ;;  %907 = vmatprep.mubr.bf16.mxu1 %v1480_v62 }
  0x99   :  { %780 = vmatmul.mubr.bf16.gmra.mxu0 %v1482_v63  ;;  %908 = vmatmul.mubr.bf16.gmra.mxu1 %v1483_v0 }
  0x9a   :  { %787 = vmatprep.mubr.bf16.mxu0 %v1484_v1  ;;  %915 = vmatprep.mubr.bf16.mxu1 %v1486_v2 }
  0xa1   :  { %788 = vmatmul.mubr.bf16.gmra.mxu0 %v1488_v3  ;;  %916 = vmatmul.mubr.bf16.gmra.mxu1 %v1489_v4 }
  0xa2   :  { %795 = vmatprep.mubr.bf16.mxu0 %v1490_v5  ;;  %923 = vmatprep.mubr.bf16.mxu1 %v1492_v6 }
  0xa9   :  { %796 = vmatmul.mubr.bf16.gmra.mxu0 %v1494_v7  ;;  %924 = vmatmul.mubr.bf16.gmra.mxu1 %v1495_v8 }
  0xaa   :  { %803 = vmatprep.mubr.bf16.mxu0 %v1496_v9  ;;  %931 = vmatprep.mubr.bf16.mxu1 %v1498_v10 }
  0xb1   :  { %804 = vmatmul.mubr.bf16.gmra.mxu0 %v1500_v11  ;;  %932 = vmatmul.mubr.bf16.gmra.mxu1 %v1501_v12 }
  0xb2   :  { %811 = vmatprep.mubr.bf16.mxu0 %v1502_v13  ;;  %939 = vmatprep.mubr.bf16.mxu1 %v1504_v14 }
  0xb9   :  { %812 = vmatmul.mubr.bf16.gmra.mxu0 %v1506_v15  ;;  %940 = vmatmul.mubr.bf16.gmra.mxu1 %v1507_v16 }
 0x101   :  { %v693_v18 = vpop.f32.mrf.mxu0  ;;  %v821_v19 = vpop.f32.mrf.mxu1 }
 0x102   :  { %v1150_v20 = vadd.f32 %v1804_v17, %v693_v18  ;;  %v1182_v21 = vadd.f32 %v1804_v17, %v821_v19 }
 0x103   :  { %v695_v22 = vpop.f32.mrf.mxu0  ;;  %v823_v23 = vpop.f32.mrf.mxu1 }
 0x104   :  { %1214 = vst [vmem:[%s2065_s3] sm:$0xff] %v1150_v20  ;;  %1246 = vst [vmem:[%s2065_s3 + $0x100] sm:$0xff] %v1182_v21 }
 0x105   :  { %v696_v24 = vpop.f32.mrf.mxu0  ;;  %v824_v25 = vpop.f32.mrf.mxu1 }
 0x106   :  { %v1151_v26 = vadd.f32 %v1804_v17, %v696_v24  ;;  %v1183_v27 = vadd.f32 %v1804_v17, %v824_v25 }
 0x107   :  { %v698_v28 = vpop.f32.mrf.mxu0  ;;  %v826_v29 = vpop.f32.mrf.mxu1 }
 0x108   :  { %1215 = vst [vmem:[%s2065_s3 + $0x8] sm:$0xff] %v1151_v26  ;;  %1247 = vst [vmem:[%s2065_s3 + $0x108] sm:$0xff] %v1183_v27 }
 0x109   :  { %v701_v30 = vpop.f32.mrf.mxu0  ;;  %v829_v31 = vpop.f32.mrf.mxu1 }
 0x10a   :  { %v1152_v32 = vadd.f32 %v1804_v17, %v701_v30  ;;  %v1184_v33 = vadd.f32 %v1804_v17, %v829_v31 }
 0x10b   :  { %v703_v34 = vpop.f32.mrf.mxu0  ;;  %v831_v35 = vpop.f32.mrf.mxu1 }
 0x10c   :  { %1216 = vst [vmem:[%s2065_s3 + $0x10] sm:$0xff] %v1152_v32  ;;  %1248 = vst [vmem:[%s2065_s3 + $0x110] sm:$0xff] %v1184_v33 }
 0x10d   :  { %v704_v36 = vpop.f32.mrf.mxu0  ;;  %v832_v37 = vpop.f32.mrf.mxu1 }
 0x10e   :  { %v1153_v38 = vadd.f32 %v1804_v17, %v704_v36  ;;  %v1185_v39 = vadd.f32 %v1804_v17, %v832_v37 }
 0x10f   :  { %v706_v40 = vpop.f32.mrf.mxu0  ;;  %v834_v41 = vpop.f32.mrf.mxu1 }
 0x110   :  { %1217 = vst [vmem:[%s2065_s3 + $0x18] sm:$0xff] %v1153_v38  ;;  %1249 = vst [vmem:[%s2065_s3 + $0x118] sm:$0xff] %v1185_v39 }
 0x111   :  { %v709_v42 = vpop.f32.mrf.mxu0  ;;  %v837_v43 = vpop.f32.mrf.mxu1 }
 0x112   :  { %v1154_v44 = vadd.f32 %v1804_v17, %v709_v42  ;;  %v1186_v45 = vadd.f32 %v1804_v17, %v837_v43 }
 0x113   :  { %v711_v46 = vpop.f32.mrf.mxu0  ;;  %v839_v47 = vpop.f32.mrf.mxu1 }
 0x114   :  { %1218 = vst [vmem:[%s2065_s3 + $0x20] sm:$0xff] %v1154_v44  ;;  %1250 = vst [vmem:[%s2065_s3 + $0x120] sm:$0xff] %v1186_v45 }
 0x115   :  { %v712_v48 = vpop.f32.mrf.mxu0  ;;  %v840_v49 = vpop.f32.mrf.mxu1 }
 0x116   :  { %v1155_v50 = vadd.f32 %v1804_v17, %v712_v48  ;;  %v1187_v51 = vadd.f32 %v1804_v17, %v840_v49 }
 0x117   :  { %v714_v52 = vpop.f32.mrf.mxu0  ;;  %v842_v53 = vpop.f32.mrf.mxu1 }
 0x118   :  { %1219 = vst [vmem:[%s2065_s3 + $0x28] sm:$0xff] %v1155_v50  ;;  %1251 = vst [vmem:[%s2065_s3 + $0x128] sm:$0xff] %v1187_v51 }
 0x119   :  { %v717_v54 = vpop.f32.mrf.mxu0  ;;  %v845_v55 = vpop.f32.mrf.mxu1 }
 0x11a   :  { %v1156_v56 = vadd.f32 %v1804_v17, %v717_v54  ;;  %v1188_v57 = vadd.f32 %v1804_v17, %v845_v55 }
 0x11b   :  { %v719_v58 = vpop.f32.mrf.mxu0  ;;  %v847_v59 = vpop.f32.mrf.mxu1 }
 0x11c   :  { %1220 = vst [vmem:[%s2065_s3 + $0x30] sm:$0xff] %v1156_v56  ;;  %1252 = vst [vmem:[%s2065_s3 + $0x130] sm:$0xff] %v1188_v57 }
 0x11d   :  { %v720_v60 = vpop.f32.mrf.mxu0  ;;  %v848_v61 = vpop.f32.mrf.mxu1 }
 0x11e   :  { %v1157_v62 = vadd.f32 %v1804_v17, %v720_v60  ;;  %v1189_v63 = vadd.f32 %v1804_v17, %v848_v61 }
 0x11f   :  { %v722_v0 = vpop.f32.mrf.mxu0  ;;  %v850_v1 = vpop.f32.mrf.mxu1 }
 0x120   :  { %1221 = vst [vmem:[%s2065_s3 + $0x38] sm:$0xff] %v1157_v62  ;;  %1253 = vst [vmem:[%s2065_s3 + $0x138] sm:$0xff] %v1189_v63 }
 0x121   :  { %v725_v2 = vpop.f32.mrf.mxu0  ;;  %v853_v3 = vpop.f32.mrf.mxu1 }
 0x122   :  { %v1158_v4 = vadd.f32 %v1804_v17, %v725_v2  ;;  %v1190_v5 = vadd.f32 %v1804_v17, %v853_v3 }
 0x123   :  { %v727_v6 = vpop.f32.mrf.mxu0  ;;  %v855_v7 = vpop.f32.mrf.mxu1 }
 0x124   :  { %1222 = vst [vmem:[%s2065_s3 + $0x40] sm:$0xff] %v1158_v4  ;;  %1254 = vst [vmem:[%s2065_s3 + $0x140] sm:$0xff] %v1190_v5 }
 0x125   :  { %v728_v8 = vpop.f32.mrf.mxu0  ;;  %v856_v9 = vpop.f32.mrf.mxu1 }
 0x126   :  { %v1159_v10 = vadd.f32 %v1804_v17, %v728_v8  ;;  %v1191_v11 = vadd.f32 %v1804_v17, %v856_v9 }
 0x127   :  { %v730_v12 = vpop.f32.mrf.mxu0  ;;  %v858_v13 = vpop.f32.mrf.mxu1 }
 0x128   :  { %1223 = vst [vmem:[%s2065_s3 + $0x48] sm:$0xff] %v1159_v10  ;;  %1255 = vst [vmem:[%s2065_s3 + $0x148] sm:$0xff] %v1191_v11 }
 0x129   :  { %v733_v14 = vpop.f32.mrf.mxu0  ;;  %v861_v15 = vpop.f32.mrf.mxu1 }
 0x12a   :  { %v1160_v16 = vadd.f32 %v1804_v17, %v733_v14  ;;  %v1192_v18 = vadd.f32 %v1804_v17, %v861_v15 }
 0x12b   :  { %v735_v19 = vpop.f32.mrf.mxu0  ;;  %v863_v20 = vpop.f32.mrf.mxu1 }
 0x12c   :  { %1224 = vst [vmem:[%s2065_s3 + $0x50] sm:$0xff] %v1160_v16  ;;  %1256 = vst [vmem:[%s2065_s3 + $0x150] sm:$0xff] %v1192_v18 }
 0x12d   :  { %v736_v21 = vpop.f32.mrf.mxu0  ;;  %v864_v22 = vpop.f32.mrf.mxu1 }
 0x12e   :  { %v1161_v23 = vadd.f32 %v1804_v17, %v736_v21  ;;  %v1193_v24 = vadd.f32 %v1804_v17, %v864_v22 }
 0x12f   :  { %v738_v25 = vpop.f32.mrf.mxu0  ;;  %v866_v26 = vpop.f32.mrf.mxu1 }
 0x130   :  { %1225 = vst [vmem:[%s2065_s3 + $0x58] sm:$0xff] %v1161_v23  ;;  %1257 = vst [vmem:[%s2065_s3 + $0x158] sm:$0xff] %v1193_v24 }
 0x131   :  { %v741_v27 = vpop.f32.mrf.mxu0  ;;  %v869_v28 = vpop.f32.mrf.mxu1 }
 0x132   :  { %v1162_v29 = vadd.f32 %v1804_v17, %v741_v27  ;;  %v1194_v30 = vadd.f32 %v1804_v17, %v869_v28 }
 0x133   :  { %v743_v31 = vpop.f32.mrf.mxu0  ;;  %v871_v32 = vpop.f32.mrf.mxu1 }
 0x134   :  { %1226 = vst [vmem:[%s2065_s3 + $0x60] sm:$0xff] %v1162_v29  ;;  %1258 = vst [vmem:[%s2065_s3 + $0x160] sm:$0xff] %v1194_v30 }
 0x135   :  { %v744_v33 = vpop.f32.mrf.mxu0  ;;  %v872_v34 = vpop.f32.mrf.mxu1 }
 0x136   :  { %v1163_v35 = vadd.f32 %v1804_v17, %v744_v33  ;;  %v1195_v36 = vadd.f32 %v1804_v17, %v872_v34 }
 0x137   :  { %v746_v37 = vpop.f32.mrf.mxu0  ;;  %v874_v38 = vpop.f32.mrf.mxu1 }
 0x138   :  { %1227 = vst [vmem:[%s2065_s3 + $0x68] sm:$0xff] %v1163_v35  ;;  %1259 = vst [vmem:[%s2065_s3 + $0x168] sm:$0xff] %v1195_v36 }
 0x139   :  { %v749_v39 = vpop.f32.mrf.mxu0  ;;  %v877_v40 = vpop.f32.mrf.mxu1 }
 0x13a   :  { %v1164_v41 = vadd.f32 %v1804_v17, %v749_v39  ;;  %v1196_v42 = vadd.f32 %v1804_v17, %v877_v40 }
 0x13b   :  { %v751_v43 = vpop.f32.mrf.mxu0  ;;  %v879_v44 = vpop.f32.mrf.mxu1 }
 0x13c   :  { %1228 = vst [vmem:[%s2065_s3 + $0x70] sm:$0xff] %v1164_v41  ;;  %1260 = vst [vmem:[%s2065_s3 + $0x170] sm:$0xff] %v1196_v42 }
 0x13d   :  { %v752_v45 = vpop.f32.mrf.mxu0  ;;  %v880_v46 = vpop.f32.mrf.mxu1 }
 0x13e   :  { %v1165_v47 = vadd.f32 %v1804_v17, %v752_v45  ;;  %v1197_v48 = vadd.f32 %v1804_v17, %v880_v46 }
 0x13f   :  { %v754_v49 = vpop.f32.mrf.mxu0  ;;  %v882_v50 = vpop.f32.mrf.mxu1 }
 0x140   :  { %1229 = vst [vmem:[%s2065_s3 + $0x78] sm:$0xff] %v1165_v47  ;;  %1261 = vst [vmem:[%s2065_s3 + $0x178] sm:$0xff] %v1197_v48 }
 0x141   :  { %v757_v51 = vpop.f32.mrf.mxu0  ;;  %v885_v52 = vpop.f32.mrf.mxu1 }
 0x142   :  { %v1166_v53 = vadd.f32 %v1804_v17, %v757_v51  ;;  %v1198_v54 = vadd.f32 %v1804_v17, %v885_v52 }
 0x143   :  { %v759_v55 = vpop.f32.mrf.mxu0  ;;  %v887_v56 = vpop.f32.mrf.mxu1 }
 0x144   :  { %1230 = vst [vmem:[%s2065_s3 + $0x80] sm:$0xff] %v1166_v53  ;;  %1262 = vst [vmem:[%s2065_s3 + $0x180] sm:$0xff] %v1198_v54 }
 0x145   :  { %v760_v57 = vpop.f32.mrf.mxu0  ;;  %v888_v58 = vpop.f32.mrf.mxu1 }
 0x146   :  { %v1167_v59 = vadd.f32 %v1804_v17, %v760_v57  ;;  %v1199_v60 = vadd.f32 %v1804_v17, %v888_v58 }
 0x147   :  { %v762_v61 = vpop.f32.mrf.mxu0  ;;  %v890_v62 = vpop.f32.mrf.mxu1 }
 0x148   :  { %1231 = vst [vmem:[%s2065_s3 + $0x88] sm:$0xff] %v1167_v59  ;;  %1263 = vst [vmem:[%s2065_s3 + $0x188] sm:$0xff] %v1199_v60 }
 0x149   :  { %v765_v63 = vpop.f32.mrf.mxu0  ;;  %v893_v0 = vpop.f32.mrf.mxu1 }
 0x14a   :  { %v1168_v1 = vadd.f32 %v1804_v17, %v765_v63  ;;  %v1200_v2 = vadd.f32 %v1804_v17, %v893_v0 }
 0x14b   :  { %v767_v3 = vpop.f32.mrf.mxu0  ;;  %v895_v4 = vpop.f32.mrf.mxu1 }
 0x14c   :  { %1232 = vst [vmem:[%s2065_s3 + $0x90] sm:$0xff] %v1168_v1  ;;  %1264 = vst [vmem:[%s2065_s3 + $0x190] sm:$0xff] %v1200_v2 }
 0x14d   :  { %v768_v5 = vpop.f32.mrf.mxu0  ;;  %v896_v6 = vpop.f32.mrf.mxu1 }
 0x14e   :  { %v1169_v7 = vadd.f32 %v1804_v17, %v768_v5  ;;  %v1201_v8 = vadd.f32 %v1804_v17, %v896_v6 }
 0x14f   :  { %v770_v9 = vpop.f32.mrf.mxu0  ;;  %v898_v10 = vpop.f32.mrf.mxu1 }
 0x150   :  { %1233 = vst [vmem:[%s2065_s3 + $0x98] sm:$0xff] %v1169_v7  ;;  %1265 = vst [vmem:[%s2065_s3 + $0x198] sm:$0xff] %v1201_v8 }
 0x151   :  { %v773_v11 = vpop.f32.mrf.mxu0  ;;  %v901_v12 = vpop.f32.mrf.mxu1 }
 0x152   :  { %v1170_v13 = vadd.f32 %v1804_v17, %v773_v11  ;;  %v1202_v14 = vadd.f32 %v1804_v17, %v901_v12 }
 0x153   :  { %v775_v15 = vpop.f32.mrf.mxu0  ;;  %v903_v16 = vpop.f32.mrf.mxu1 }
 0x154   :  { %1234 = vst [vmem:[%s2065_s3 + $0xa0] sm:$0xff] %v1170_v13  ;;  %1266 = vst [vmem:[%s2065_s3 + $0x1a0] sm:$0xff] %v1202_v14 }
 0x155   :  { %v776_v18 = vpop.f32.mrf.mxu0  ;;  %v904_v19 = vpop.f32.mrf.mxu1 }
 0x156   :  { %v1171_v20 = vadd.f32 %v1804_v17, %v776_v18  ;;  %v1203_v21 = vadd.f32 %v1804_v17, %v904_v19 }
 0x157   :  { %v778_v22 = vpop.f32.mrf.mxu0  ;;  %v906_v23 = vpop.f32.mrf.mxu1 }
 0x158   :  { %1235 = vst [vmem:[%s2065_s3 + $0xa8] sm:$0xff] %v1171_v20  ;;  %1267 = vst [vmem:[%s2065_s3 + $0x1a8] sm:$0xff] %v1203_v21 }
 0x159   :  { %v781_v24 = vpop.f32.mrf.mxu0  ;;  %v909_v25 = vpop.f32.mrf.mxu1 }
 0x15a   :  { %v1172_v26 = vadd.f32 %v1804_v17, %v781_v24  ;;  %v1204_v27 = vadd.f32 %v1804_v17, %v909_v25 }
 0x15b   :  { %v783_v28 = vpop.f32.mrf.mxu0  ;;  %v911_v29 = vpop.f32.mrf.mxu1 }
 0x15c   :  { %1236 = vst [vmem:[%s2065_s3 + $0xb0] sm:$0xff] %v1172_v26  ;;  %1268 = vst [vmem:[%s2065_s3 + $0x1b0] sm:$0xff] %v1204_v27 }
 0x15d   :  { %v784_v30 = vpop.f32.mrf.mxu0  ;;  %v912_v31 = vpop.f32.mrf.mxu1 }
 0x15e   :  { %v1173_v32 = vadd.f32 %v1804_v17, %v784_v30  ;;  %v1205_v33 = vadd.f32 %v1804_v17, %v912_v31 }
 0x15f   :  { %v786_v34 = vpop.f32.mrf.mxu0  ;;  %v914_v35 = vpop.f32.mrf.mxu1 }
 0x160   :  { %1237 = vst [vmem:[%s2065_s3 + $0xb8] sm:$0xff] %v1173_v32  ;;  %1269 = vst [vmem:[%s2065_s3 + $0x1b8] sm:$0xff] %v1205_v33 }
 0x161   :  { %v789_v36 = vpop.f32.mrf.mxu0  ;;  %v917_v37 = vpop.f32.mrf.mxu1 }
 0x162   :  { %v1174_v38 = vadd.f32 %v1804_v17, %v789_v36  ;;  %v1206_v39 = vadd.f32 %v1804_v17, %v917_v37 }
 0x163   :  { %v791_v40 = vpop.f32.mrf.mxu0  ;;  %v919_v41 = vpop.f32.mrf.mxu1 }
 0x164   :  { %1238 = vst [vmem:[%s2065_s3 + $0xc0] sm:$0xff] %v1174_v38  ;;  %1270 = vst [vmem:[%s2065_s3 + $0x1c0] sm:$0xff] %v1206_v39 }
 0x165   :  { %v792_v42 = vpop.f32.mrf.mxu0  ;;  %v920_v43 = vpop.f32.mrf.mxu1 }
 0x166   :  { %v1175_v44 = vadd.f32 %v1804_v17, %v792_v42  ;;  %v1207_v45 = vadd.f32 %v1804_v17, %v920_v43 }
 0x167   :  { %v794_v46 = vpop.f32.mrf.mxu0  ;;  %v922_v47 = vpop.f32.mrf.mxu1 }
 0x168   :  { %1239 = vst [vmem:[%s2065_s3 + $0xc8] sm:$0xff] %v1175_v44  ;;  %1271 = vst [vmem:[%s2065_s3 + $0x1c8] sm:$0xff] %v1207_v45 }
 0x169   :  { %v797_v48 = vpop.f32.mrf.mxu0  ;;  %v925_v49 = vpop.f32.mrf.mxu1 }
 0x16a   :  { %v1176_v50 = vadd.f32 %v1804_v17, %v797_v48  ;;  %v1208_v51 = vadd.f32 %v1804_v17, %v925_v49 }
 0x16b   :  { %v799_v52 = vpop.f32.mrf.mxu0  ;;  %v927_v53 = vpop.f32.mrf.mxu1 }
 0x16c   :  { %1240 = vst [vmem:[%s2065_s3 + $0xd0] sm:$0xff] %v1176_v50  ;;  %1272 = vst [vmem:[%s2065_s3 + $0x1d0] sm:$0xff] %v1208_v51 }
 0x16d   :  { %v800_v54 = vpop.f32.mrf.mxu0  ;;  %v928_v55 = vpop.f32.mrf.mxu1 }
 0x16e   :  { %v1177_v56 = vadd.f32 %v1804_v17, %v800_v54  ;;  %v1209_v57 = vadd.f32 %v1804_v17, %v928_v55 }
 0x16f   :  { %v802_v58 = vpop.f32.mrf.mxu0  ;;  %v930_v59 = vpop.f32.mrf.mxu1 }
 0x170   :  { %1241 = vst [vmem:[%s2065_s3 + $0xd8] sm:$0xff] %v1177_v56  ;;  %1273 = vst [vmem:[%s2065_s3 + $0x1d8] sm:$0xff] %v1209_v57 }
 0x171   :  { %v805_v60 = vpop.f32.mrf.mxu0  ;;  %v933_v61 = vpop.f32.mrf.mxu1 }
 0x172   :  { %v1178_v62 = vadd.f32 %v1804_v17, %v805_v60  ;;  %v1210_v63 = vadd.f32 %v1804_v17, %v933_v61 }
 0x173   :  { %v807_v0 = vpop.f32.mrf.mxu0  ;;  %v935_v1 = vpop.f32.mrf.mxu1 }
 0x174   :  { %1242 = vst [vmem:[%s2065_s3 + $0xe0] sm:$0xff] %v1178_v62  ;;  %1274 = vst [vmem:[%s2065_s3 + $0x1e0] sm:$0xff] %v1210_v63 }
 0x175   :  { %v808_v2 = vpop.f32.mrf.mxu0  ;;  %v936_v3 = vpop.f32.mrf.mxu1 }
 0x176   :  { %v1179_v4 = vadd.f32 %v1804_v17, %v808_v2  ;;  %v1211_v5 = vadd.f32 %v1804_v17, %v936_v3 }
 0x177   :  { %v810_v6 = vpop.f32.mrf.mxu0  ;;  %v938_v7 = vpop.f32.mrf.mxu1 }
 0x178   :  { %1243 = vst [vmem:[%s2065_s3 + $0xe8] sm:$0xff] %v1179_v4  ;;  %1275 = vst [vmem:[%s2065_s3 + $0x1e8] sm:$0xff] %v1211_v5 }
 0x179   :  { %v813_v8 = vpop.f32.mrf.mxu0  ;;  %v941_v9 = vpop.f32.mrf.mxu1 }
 0x17a   :  { %v1180_v10 = vadd.f32 %v1804_v17, %v813_v8  ;;  %v1212_v11 = vadd.f32 %v1804_v17, %v941_v9 }
 0x17b   :  { %v815_v12 = vpop.f32.mrf.mxu0  ;;  %v943_v13 = vpop.f32.mrf.mxu1 }
 0x17c   :  { %1244 = vst [vmem:[%s2065_s3 + $0xf0] sm:$0xff] %v1180_v10  ;;  %1276 = vst [vmem:[%s2065_s3 + $0x1f0] sm:$0xff] %v1212_v11 }
 0x17d   :  { %v816_v14 = vpop.f32.mrf.mxu0  ;;  %v944_v15 = vpop.f32.mrf.mxu1 }
 0x17e   :  { %v1181_v16 = vadd.f32 %v1804_v17, %v816_v14  ;;  %v1213_v18 = vadd.f32 %v1804_v17, %v944_v15 }
 0x17f   :  { %v818_v19 = vpop.f32.mrf.mxu0  ;;  %v946_v20 = vpop.f32.mrf.mxu1 }
 0x180   :  { %1245 = vst [vmem:[%s2065_s3 + $0xf8] sm:$0xff] %v1181_v16  ;;  %1277 = vst [vmem:[%s2065_s3 + $0x1f8] sm:$0xff] %v1213_v18 }

// kernel: generator_forward.33
= control target key start
LH: loop header
LB: loop body
LE: loop exit
PB: predicated region body
PF: predicated region fallthrough
CT: control target
= control target key end

     0   :  { %s1182_s12 = smov 0   ;;  %s1184_s13 = smov 0   ;;  %s1354_s0 = inlined_call_operand.vmem [shape: bf16[128,768], index: 0, kind: input, shape index: {}]   ;;  %s1355_s1 = inlined_call_operand.vmem [shape: bf16[768,128], index: 1, kind: input, shape index: {}]   ;;  %s1356_s2 = inlined_call_operand.vmem [shape: f32[1,128], index: 2, kind: input, shape index: {}]   ;;  %s1357_s3 = inlined_call_operand.vmem [shape: f32[128,128], index: 3, kind: output, shape index: {}]  }
   0x1   :  { %s1186_s14 = smov 0   ;;  %s1188_s15 = smov 0  }
   0x2   :  { %s1190_s16 = smov 0  }
   0x3 LB: > { %s25_s17 = sadd.s32 1, %s1155_s15  ;;  %p48_p1 = scmp.ne.s32.totalorder %s1147_s13, %s1143_s12  ;;  %s1159_s16 = sphi %s1190_s16, %s13_s16   ;;  %s1155_s15 = sphi %s1188_s15, %s1361_s15   ;;  %s1151_s14 = sphi %s1186_s14, %s1360_s14   ;;  %s1147_s13 = sphi %s1184_s13, %s1359_s13   ;;  %s1143_s12 = sphi %s1182_s12, %s1358_s12  }
   0x4   : > { %p26_p0 = scmp.ge.s32.totalorder %s25_s17, 3  ;;  %p49_p2 = scmp.eq.s32.totalorder %s1159_s16, 0 }
   0x5   : > { %s41_s19 = sadd.s32 1, %s1147_s13  ;;  %p912_p5 = scmp.ge.s32.totalorder %s1159_s16, 3 }
   0x6   : > { %s1363_s17 = smov (%p26_p0, %s25_s17), 0  ;;  %p50_p3 = por %p49_p2, %p48_p1 }
   0x7   : > { %s37_s18 = ssub.s32 %s1155_s15, %s1363_s17  ;;  %162 = sbr.rel (%p912_p5) target bundleno = 24 (0x18), region = 20 }
   0x8   : > { %p39_p4 = scmp.eq.s32.totalorder %s37_s18, 0 }
   0xa   : > { %s1217_s20 = scalar_select %p39_p4, %s1147_s13, %s41_s19  }
   0xc   : > { %165 = sbr.rel (!%p50_p3) target bundleno = 24 (0x18), region = 24  ;;  %s167_s21 = sand.u32 (%p50_p3), 1, %s1147_s13  }
   0xd   : > { %s959_s22 = sshll.u32 (%p50_p3), %s1155_s15, 3  ;;  %s913_s23 = sshll.u32 (%p50_p3), %s167_s21, 7 }
   0xe   : > { %s1225_s26 = scalar_lea.vmem (%p50_p3), %s1354_s0, %s959_s22  ;;  %s169_s27 = scalar_lea.vmem (%p50_p3), [#allocation3], %s913_s23 }
   0xf   : > { %v234_v0 = vld [vmem:[%s1225_s26] sm:$0xff] (%p50_p3)  ;;  %v236_v1 = vld [vmem:[%s1225_s26 + $0x18] sm:$0xff] (%p50_p3)  ;;  %v238_v2 = vld [vmem:[%s1225_s26 + $0x30] sm:$0xff] (%p50_p3) }
  0x10   : > { %235 = vst [vmem:[%s169_s27] sm:$0xff] (%p50_p3), %v234_v0  ;;  %237 = vst [vmem:[%s169_s27 + $0x8] sm:$0xff] (%p50_p3), %v236_v1  ;;  %v240_v3 = vld [vmem:[%s1225_s26 + $0x48] sm:$0xff] (%p50_p3)  ;;  %v242_v4 = vld [vmem:[%s1225_s26 + $0x60] sm:$0xff] (%p50_p3) }
  0x11   : > { %239 = vst [vmem:[%s169_s27 + $0x10] sm:$0xff] %v238_v2  ;;  %v244_v5 = vld [vmem:[%s1225_s26 + $0x78] sm:$0xff]  ;;  %241 = vst [vmem:[%s169_s27 + $0x18] sm:$0xff] %v240_v3  ;;  %v246_v6 = vld [vmem:[%s1225_s26 + $0x90] sm:$0xff] }
  0x12   : > { %243 = vst [vmem:[%s169_s27 + $0x20] sm:$0xff] %v242_v4  ;;  %245 = vst [vmem:[%s169_s27 + $0x28] sm:$0xff] %v244_v5  ;;  %v248_v7 = vld [vmem:[%s1225_s26 + $0xa8] sm:$0xff]  ;;  %v250_v8 = vld [vmem:[%s1225_s26 + $0xc0] sm:$0xff] }
  0x13   : > { %247 = vst [vmem:[%s169_s27 + $0x30] sm:$0xff] %v246_v6  ;;  %249 = vst [vmem:[%s169_s27 + $0x38] sm:$0xff] %v248_v7  ;;  %v252_v9 = vld [vmem:[%s1225_s26 + $0xd8] sm:$0xff]  ;;  %v254_v10 = vld [vmem:[%s1225_s26 + $0xf0] sm:$0xff] }
  0x14   : > { %251 = vst [vmem:[%s169_s27 + $0x40] sm:$0xff] %v250_v8  ;;  %v256_v11 = vld [vmem:[%s1225_s26 + $0x108] sm:$0xff]  ;;  %253 = vst [vmem:[%s169_s27 + $0x48] sm:$0xff] %v252_v9  ;;  %v258_v12 = vld [vmem:[%s1225_s26 + $0x120] sm:$0xff] }
  0x15   : > { %255 = vst [vmem:[%s169_s27 + $0x50] sm:$0xff] %v254_v10  ;;  %257 = vst [vmem:[%s169_s27 + $0x58] sm:$0xff] %v256_v11  ;;  %v260_v13 = vld [vmem:[%s1225_s26 + $0x138] sm:$0xff]  ;;  %v262_v14 = vld [vmem:[%s1225_s26 + $0x150] sm:$0xff] }
  0x16   : > { %259 = vst [vmem:[%s169_s27 + $0x60] sm:$0xff] %v258_v12  ;;  %261 = vst [vmem:[%s169_s27 + $0x68] sm:$0xff] %v260_v13  ;;  %v264_v15 = vld [vmem:[%s1225_s26 + $0x168] sm:$0xff] }
  0x17   : > { %263 = vst [vmem:[%s169_s27 + $0x70] sm:$0xff] %v262_v14  ;;  %265 = vst [vmem:[%s169_s27 + $0x78] sm:$0xff] %v264_v15 }
  0x18 PF: > { %p916_p6 = scmp.ge.s32.totalorder %s1159_s16, 1  ;;  %p282_p7 = scmp.lt.s32.totalorder %s1159_s16, 4 }
  0x1a   : > { %p283_p8 = pnand %p916_p6, %p282_p7 }
  0x1b   : > { %s289_s28 = sand.u32 (!%p283_p8), 1, %s1143_s12   ;;  %s918_s29 = sshll.u32 (!%p283_p8), %s1151_s14, 5 }
  0x1c   : > { %286 = sbr.rel (%p283_p8) target bundleno = 319 (0x13f), region = 66  ;;  %s917_s30 = sshll.u32 (!%p283_p8), %s289_s28, 7 }
  0x1d   : > { %p329_p9 = scmp.lt.s32.totalorder (!%p283_p8), %s918_s29, 95  ;;  %s1252_s8 = scalar_lea.vmem (!%p283_p8), [#allocation3], %s917_s30 }
  0x1e   : > { %p920_p10 = scmp.ne.s32.totalorder (!%p283_p8), %s1151_s14, 0 }
  0x21   : > { %s1365_s29 = smov (!%p329_p9, %s918_s29), 95  ;;  %353 = sbr.rel (%p920_p10) target bundleno = 47 (0x2f), region = 74 }
  0x22   : > { %s919_s4 = sshll.u32 %s1365_s29, 2 }
  0x23   : > { %s1250_s7 = scalar_lea.vmem %s1355_s1, %s919_s4 }
  0x26   : > { %v1161_v16 = vmov 0.0  }
  0x27   : > { %354 = vst [vmem:[#allocation2 + $0x30] sm:$0xff] %v1161_v16  ;;  %355 = vst [vmem:[#allocation2] sm:$0xff] %v1161_v16 }
  0x28   : > { %356 = vst [vmem:[#allocation2 + $0x58] sm:$0xff] %v1161_v16  ;;  %357 = vst [vmem:[#allocation2 + $0x18] sm:$0xff] %v1161_v16 }
  0x29   : > { %358 = vst [vmem:[#allocation2 + $0x50] sm:$0xff] %v1161_v16  ;;  %359 = vst [vmem:[#allocation2 + $0x68] sm:$0xff] %v1161_v16 }
  0x2a   : > { %360 = vst [vmem:[#allocation2 + $0x8] sm:$0xff] %v1161_v16  ;;  %361 = vst [vmem:[#allocation2 + $0x48] sm:$0xff] %v1161_v16 }
  0x2b   : > { %362 = vst [vmem:[#allocation2 + $0x40] sm:$0xff] %v1161_v16  ;;  %363 = vst [vmem:[#allocation2 + $0x20] sm:$0xff] %v1161_v16 }
  0x2c   : > { %364 = vst [vmem:[#allocation2 + $0x10] sm:$0xff] %v1161_v16  ;;  %365 = vst [vmem:[#allocation2 + $0x38] sm:$0xff] %v1161_v16 }
  0x2d   : > { %366 = vst [vmem:[#allocation2 + $0x60] sm:$0xff] %v1161_v16  ;;  %367 = vst [vmem:[#allocation2 + $0x70] sm:$0xff] %v1161_v16 }
  0x2e   : > { %368 = vst [vmem:[#allocation2 + $0x78] sm:$0xff] %v1161_v16  ;;  %369 = vst [vmem:[#allocation2 + $0x28] sm:$0xff] %v1161_v16 }
  0x2f PF: > { %v1081_v17 = vld [vmem:[%s1250_s7 + $0x78] sm:$0xff]   ;;  %v1083_v19 = vld [vmem:[%s1250_s7 + $0x70] sm:$0xff]   ;;  %v1085_v21 = vld [vmem:[%s1250_s7 + $0x68] sm:$0xff]   ;;  %p953_p11 = scmp.ne.s32.totalorder %s1151_s14, 2 }
  0x30   : > { %v1082_v18 = vld [vmem:[%s1250_s7 + $0x38] sm:$0xff]   ;;  %960 = vmatprep.subr.bf16.mxu0 %v1081_v17  ;;  %1024 = vmatprep.subr.bf16.mxu1 %v1081_v17  ;;  %v1084_v20 = vld [vmem:[%s1250_s7 + $0x30] sm:$0xff]   ;;  %v1086_v22 = vld [vmem:[%s1250_s7 + $0x28] sm:$0xff]  }
  0x31   : > { %961 = vmatpush3.bf16.msra.mxu0 %v1082_v18  ;;  %1032 = vmatpush3.bf16.msra.mxu1 %v1082_v18  ;;  %v1087_v23 = vld [vmem:[%s1250_s7 + $0x60] sm:$0xff]   ;;  %v1089_v25 = vld [vmem:[%s1250_s7 + $0x58] sm:$0xff]   ;;  %v1091_v27 = vld [vmem:[%s1250_s7 + $0x50] sm:$0xff]  }
  0x32   : > { %962 = vmatprep.subr.bf16.mxu0 %v1083_v19  ;;  %1025 = vmatprep.subr.bf16.mxu1 %v1083_v19  ;;  %v1088_v24 = vld [vmem:[%s1250_s7 + $0x20] sm:$0xff]   ;;  %v1090_v26 = vld [vmem:[%s1250_s7 + $0x18] sm:$0xff]   ;;  %v1092_v30 = vld [vmem:[%s1250_s7 + $0x10] sm:$0xff]  }
  0x33   : > { %v1099_v28 = vld [vmem:[%s1252_s8 + $0x4] ss:$8 sps:$4 sm:$0xff]   ;;  %v1097_v35 = vld [vmem:[%s1252_s8] ss:$8 sps:$4 sm:$0xff]   ;;  %v1103_v37 = vld [vmem:[%s1252_s8 + $0x14] ss:$8 sps:$4 sm:$0xff]  }
  0x34   : > { %v1102_v29 = vld [vmem:[%s1252_s8 + $0x44] ss:$8 sps:$4 sm:$0xff]   ;;  %642 = vmatprep.mubr.bf16.mxu0 %v1099_v28  ;;  %v1100_v36 = vld [vmem:[%s1252_s8 + $0x40] ss:$8 sps:$4 sm:$0xff]   ;;  %v1105_v38 = vld [vmem:[%s1252_s8 + $0x54] ss:$8 sps:$4 sm:$0xff]  }
  0x35   : > { %963 = vmatpush3.bf16.msra.mxu0 %v1084_v20  ;;  %1033 = vmatpush3.bf16.msra.mxu1 %v1084_v20  ;;  %v1093_v31 = vld [vmem:[%s1250_s7 + $0x48] sm:$0xff]   ;;  %v1095_v33 = vld [vmem:[%s1250_s7 + $0x40] sm:$0xff]   ;;  %v1107_v39 = vld [vmem:[%s1252_s8 + $0x10] ss:$8 sps:$4 sm:$0xff]  }
  0x36   : > { %964 = vmatprep.subr.bf16.mxu0 %v1085_v21  ;;  %1026 = vmatprep.subr.bf16.mxu1 %v1085_v21  ;;  %v1094_v32 = vld [vmem:[%s1250_s7 + $0x8] sm:$0xff]   ;;  %v1096_v34 = vld [vmem:[%s1250_s7] sm:$0xff]   ;;  %v1108_v40 = vld [vmem:[%s1252_s8 + $0x50] ss:$8 sps:$4 sm:$0xff]  }
  0x37   : > { %674 = vmatprep.mubr.bf16.mxu1 %v1102_v29  ;;  %v1109_v41 = vld [vmem:[%s1252_s8 + $0x24] ss:$8 sps:$4 sm:$0xff]   ;;  %v1113_v43 = vld [vmem:[%s1252_s8 + $0x20] ss:$8 sps:$4 sm:$0xff]   ;;  %v1115_v45 = vld [vmem:[%s1252_s8 + $0x34] ss:$8 sps:$4 sm:$0xff]  }
  0x38   : > { %v1111_v42 = vld [vmem:[%s1252_s8 + $0x64] ss:$8 sps:$4 sm:$0xff]   ;;  %v1114_v44 = vld [vmem:[%s1252_s8 + $0x60] ss:$8 sps:$4 sm:$0xff]   ;;  %v1117_v46 = vld [vmem:[%s1252_s8 + $0x74] ss:$8 sps:$4 sm:$0xff]  }
  0x39   : > { %965 = vmatpush3.bf16.msra.mxu0 %v1086_v22  ;;  %1034 = vmatpush3.bf16.msra.mxu1 %v1086_v22  ;;  %v1119_v47 = vld [vmem:[%s1252_s8 + $0x30] ss:$8 sps:$4 sm:$0xff]   ;;  %v378_v53 = vld [vmem:[#allocation2 + $0x40] sm:$0xff] }
  0x3a   : > { %966 = vmatprep.subr.bf16.mxu0 %v1087_v23  ;;  %1027 = vmatprep.subr.bf16.mxu1 %v1087_v23  ;;  %v1120_v48 = vld [vmem:[%s1252_s8 + $0x70] ss:$8 sps:$4 sm:$0xff]   ;;  %v371_v61 = vld [vmem:[#allocation2] sm:$0xff] }
  0x3b   : > { %v370_v51 = vld [vmem:[#allocation2 + $0x30] sm:$0xff]  ;;  %v379_v63 = vld [vmem:[#allocation2 + $0x20] sm:$0xff]  ;;  %v372_v7 = vld [vmem:[#allocation2 + $0x58] sm:$0xff] }
  0x3c   : > { %v380_v9 = vld [vmem:[#allocation2 + $0x10] sm:$0xff]  ;;  %v373_v17 = vld [vmem:[#allocation2 + $0x18] sm:$0xff]  ;;  %v382_v29 = vld [vmem:[#allocation2 + $0x60] sm:$0xff] }
  0x3d   : > { %967 = vmatpush3.bf16.msra.mxu0 %v1088_v24  ;;  %1035 = vmatpush3.bf16.msra.mxu1 %v1088_v24  ;;  %v381_v19 = vld [vmem:[#allocation2 + $0x38] sm:$0xff] }
  0x3e   : > { %968 = vmatprep.subr.bf16.mxu0 %v1089_v25  ;;  %1028 = vmatprep.subr.bf16.mxu1 %v1089_v25 }
  0x41   : > { %969 = vmatpush3.bf16.msra.mxu0 %v1090_v26  ;;  %1036 = vmatpush3.bf16.msra.mxu1 %v1090_v26 }
  0x42   : > { %970 = vmatprep.subr.bf16.mxu0 %v1091_v27  ;;  %1029 = vmatprep.subr.bf16.mxu1 %v1091_v27  ;;  %v374_v27 = vld [vmem:[#allocation2 + $0x50] sm:$0xff] }
  0x45   : > { %971 = vmatpush3.bf16.msra.mxu0 %v1092_v30  ;;  %1037 = vmatpush3.bf16.msra.mxu1 %v1092_v30 }
  0x46   : > { %972 = vmatprep.subr.bf16.mxu0 %v1093_v31  ;;  %1030 = vmatprep.subr.bf16.mxu1 %v1093_v31 }
  0x49   : > { %973 = vmatpush3.bf16.msra.mxu0 %v1094_v32  ;;  %1038 = vmatpush3.bf16.msra.mxu1 %v1094_v32 }
  0x4a   : > { %974 = vmatprep.subr.bf16.mxu0 %v1095_v33  ;;  %1031 = vmatprep.subr.bf16.mxu1 %v1095_v33 }
  0x4d   : > { %975 = vmatpush3.bf16.msra.mxu0 %v1096_v34  ;;  %1039 = vmatpush3.bf16.msra.mxu1 %v1096_v34 }
  0x50   : > { %643 = vmatmul.mubr.bf16.vlgmr.msra.gmra.mxu0 %v1097_v35  ;;  %675 = vmatmul.mubr.bf16.vlgmr.msra.gmra.mxu1 %v1100_v36 }
  0x51   : > { %650 = vmatprep.mubr.bf16.mxu0 %v1103_v37  ;;  %682 = vmatprep.mubr.bf16.mxu1 %v1105_v38  ;;  %v375_v37 = vld [vmem:[#allocation2 + $0x68] sm:$0xff] }
  0x58   : > { %651 = vmatmul.mubr.bf16.gmra.mxu0 %v1107_v39  ;;  %683 = vmatmul.mubr.bf16.gmra.mxu1 %v1108_v40  ;;  %v383_v39 = vld [vmem:[#allocation2 + $0x70] sm:$0xff] }
  0x59   : > { %658 = vmatprep.mubr.bf16.mxu0 %v1109_v41  ;;  %690 = vmatprep.mubr.bf16.mxu1 %v1111_v42 }
  0x60   : > { %659 = vmatmul.mubr.bf16.gmra.mxu0 %v1113_v43  ;;  %691 = vmatmul.mubr.bf16.gmra.mxu1 %v1114_v44 }
  0x61   : > { %666 = vmatprep.mubr.bf16.mxu0 %v1115_v45  ;;  %698 = vmatprep.mubr.bf16.mxu1 %v1117_v46 }
  0x68   : > { %667 = vmatmul.mubr.bf16.gmra.mxu0 %v1119_v47  ;;  %699 = vmatmul.mubr.bf16.gmra.mxu1 %v1120_v48  ;;  %v376_v47 = vld [vmem:[#allocation2 + $0x8] sm:$0xff] }
 0x110   : > { %v976_v49 = vpop.f32.mrf.mxu0  ;;  %v1000_v50 = vpop.f32.mrf.mxu1 }
 0x112   : > { %v977_v52 = vpop.f32.mrf.mxu0  ;;  %v1001_v54 = vpop.f32.mrf.mxu1 }
 0x113   : > { %v978_v55 = vadd.f32 %v977_v52, %v976_v49  ;;  %v1002_v56 = vadd.f32 %v1001_v54, %v1000_v50  ;;  %v384_v49 = vld [vmem:[#allocation2 + $0x78] sm:$0xff] }
 0x114   : > { %v979_v57 = vpop.f32.mrf.mxu0  ;;  %v1003_v58 = vpop.f32.mrf.mxu1 }
 0x115   : > { %v707_v59 = vadd.f32 %v978_v55, %v370_v51  ;;  %v715_v60 = vadd.f32 %v1002_v56, %v378_v53 }
 0x116   : > { %v980_v62 = vpop.f32.mrf.mxu0  ;;  %v1004_v0 = vpop.f32.mrf.mxu1 }
 0x117   : > { %723 = vst [vmem:[#allocation2 + $0x30] sm:$0xff] %v707_v59  ;;  %731 = vst [vmem:[#allocation2 + $0x40] sm:$0xff] %v715_v60  ;;  %v981_v1 = vadd.f32 %v980_v62, %v979_v57  ;;  %v1005_v2 = vadd.f32 %v1004_v0, %v1003_v58  ;;  %v377_v57 = vld [vmem:[#allocation2 + $0x48] sm:$0xff] }
 0x118   : > { %v982_v3 = vpop.f32.mrf.mxu0  ;;  %v1006_v4 = vpop.f32.mrf.mxu1  ;;  %v385_v59 = vld [vmem:[#allocation2 + $0x28] sm:$0xff] }
 0x119   : > { %v708_v5 = vadd.f32 %v981_v1, %v371_v61  ;;  %v716_v6 = vadd.f32 %v1005_v2, %v379_v63 }
 0x11a   : > { %v983_v8 = vpop.f32.mrf.mxu0  ;;  %v1007_v10 = vpop.f32.mrf.mxu1 }
 0x11b   : > { %724 = vst [vmem:[#allocation2] sm:$0xff] %v708_v5  ;;  %732 = vst [vmem:[#allocation2 + $0x20] sm:$0xff] %v716_v6  ;;  %v984_v11 = vadd.f32 %v983_v8, %v982_v3  ;;  %v1008_v12 = vadd.f32 %v1007_v10, %v1006_v4 }
 0x11c   : > { %v985_v13 = vpop.f32.mrf.mxu0  ;;  %v1009_v14 = vpop.f32.mrf.mxu1 }
 0x11d   : > { %v709_v15 = vadd.f32 %v984_v11, %v372_v7  ;;  %v717_v16 = vadd.f32 %v1008_v12, %v380_v9 }
 0x11e   : > { %v986_v18 = vpop.f32.mrf.mxu0  ;;  %v1010_v20 = vpop.f32.mrf.mxu1 }
 0x11f   : > { %725 = vst [vmem:[#allocation2 + $0x58] sm:$0xff] %v709_v15  ;;  %733 = vst [vmem:[#allocation2 + $0x10] sm:$0xff] %v717_v16  ;;  %v987_v21 = vadd.f32 %v986_v18, %v985_v13  ;;  %v1011_v22 = vadd.f32 %v1010_v20, %v1009_v14 }
 0x120   : > { %v988_v23 = vpop.f32.mrf.mxu0  ;;  %v1012_v24 = vpop.f32.mrf.mxu1 }
 0x121   : > { %v710_v25 = vadd.f32 %v987_v21, %v373_v17  ;;  %v718_v26 = vadd.f32 %v1011_v22, %v381_v19 }
 0x122   : > { %v989_v28 = vpop.f32.mrf.mxu0  ;;  %v1013_v30 = vpop.f32.mrf.mxu1 }
 0x123   : > { %726 = vst [vmem:[#allocation2 + $0x18] sm:$0xff] %v710_v25  ;;  %734 = vst [vmem:[#allocation2 + $0x38] sm:$0xff] %v718_v26  ;;  %v990_v31 = vadd.f32 %v989_v28, %v988_v23  ;;  %v1014_v32 = vadd.f32 %v1013_v30, %v1012_v24 }
 0x124   : > { %v991_v33 = vpop.f32.mrf.mxu0  ;;  %v1015_v34 = vpop.f32.mrf.mxu1 }
 0x125   : > { %v711_v35 = vadd.f32 %v990_v31, %v374_v27  ;;  %v719_v36 = vadd.f32 %v1014_v32, %v382_v29 }
 0x126   : > { %v992_v38 = vpop.f32.mrf.mxu0  ;;  %v1016_v40 = vpop.f32.mrf.mxu1 }
 0x127   : > { %727 = vst [vmem:[#allocation2 + $0x50] sm:$0xff] %v711_v35  ;;  %735 = vst [vmem:[#allocation2 + $0x60] sm:$0xff] %v719_v36  ;;  %v993_v41 = vadd.f32 %v992_v38, %v991_v33  ;;  %v1017_v42 = vadd.f32 %v1016_v40, %v1015_v34 }
 0x128   : > { %v994_v43 = vpop.f32.mrf.mxu0  ;;  %v1018_v44 = vpop.f32.mrf.mxu1 }
 0x129   : > { %v712_v45 = vadd.f32 %v993_v41, %v375_v37  ;;  %v720_v46 = vadd.f32 %v1017_v42, %v383_v39 }
 0x12a   : > { %v995_v48 = vpop.f32.mrf.mxu0  ;;  %v1019_v50 = vpop.f32.mrf.mxu1 }
 0x12b   : > { %728 = vst [vmem:[#allocation2 + $0x68] sm:$0xff] %v712_v45  ;;  %736 = vst [vmem:[#allocation2 + $0x70] sm:$0xff] %v720_v46  ;;  %v996_v51 = vadd.f32 %v995_v48, %v994_v43  ;;  %v1020_v52 = vadd.f32 %v1019_v50, %v1018_v44 }
 0x12c   : > { %v997_v53 = vpop.f32.mrf.mxu0  ;;  %v1021_v54 = vpop.f32.mrf.mxu1 }
 0x12d   : > { %v713_v55 = vadd.f32 %v996_v51, %v376_v47  ;;  %v721_v56 = vadd.f32 %v1020_v52, %v384_v49 }
 0x12e   : > { %v998_v58 = vpop.f32.mrf.mxu0  ;;  %v1022_v60 = vpop.f32.mrf.mxu1 }
 0x12f   : > { %729 = vst [vmem:[#allocation2 + $0x8] sm:$0xff] %v713_v55  ;;  %737 = vst [vmem:[#allocation2 + $0x78] sm:$0xff] %v721_v56  ;;  %v999_v61 = vadd.f32 %v998_v58, %v997_v53  ;;  %v1023_v62 = vadd.f32 %v1022_v60, %v1021_v54  ;;  %742 = sbr.rel (%p953_p11) target bundleno = 319 (0x13f), region = 78 }
 0x131   : > { %v714_v63 = vadd.f32 %v999_v61, %v377_v57  ;;  %v722_v0 = vadd.f32 %v1023_v62, %v385_v59 }
 0x133   : > { %730 = vst [vmem:[#allocation2 + $0x48] sm:$0xff] %v714_v63  ;;  %738 = vst [vmem:[#allocation2 + $0x28] sm:$0xff] %v722_v0 }
 0x134   : > { %v743_v1 = vld [vmem:[#allocation2 + $0x30] sm:$0xff]  ;;  %v954_v2 = vld [vmem:[%s1356_s2] ss:$0 sm:$0xff]  ;;  %v745_v6 = vld [vmem:[#allocation2 + $0x58] sm:$0xff] }
 0x135   : > { %v744_v3 = vld [vmem:[#allocation2] sm:$0xff]  ;;  %v766_v4 = vadd.f32 %v954_v2, %v743_v1  ;;  %v746_v7 = vld [vmem:[#allocation2 + $0x18] sm:$0xff]  ;;  %v747_v8 = vld [vmem:[#allocation2 + $0x50] sm:$0xff]  ;;  %v768_v9 = vadd.f32 %v954_v2, %v745_v6 }
 0x136   : > { %v767_v5 = vadd.f32 %v954_v2, %v744_v3  ;;  %v769_v10 = vadd.f32 %v954_v2, %v746_v7  ;;  %v770_v11 = vadd.f32 %v954_v2, %v747_v8  ;;  %v748_v12 = vld [vmem:[#allocation2 + $0x68] sm:$0xff]  ;;  %v751_v18 = vld [vmem:[#allocation2 + $0x40] sm:$0xff]  ;;  %v753_v20 = vld [vmem:[#allocation2 + $0x10] sm:$0xff] }
 0x137   : > { %v749_v13 = vld [vmem:[#allocation2 + $0x8] sm:$0xff]  ;;  %782 = vst [vmem:[%s1357_s3] sm:$0xff] %v766_v4  ;;  %v771_v15 = vadd.f32 %v954_v2, %v748_v12  ;;  %v752_v19 = vld [vmem:[#allocation2 + $0x20] sm:$0xff]  ;;  %784 = vst [vmem:[%s1357_s3 + $0x10] sm:$0xff] %v768_v9  ;;  %v774_v21 = vadd.f32 %v954_v2, %v751_v18  ;;  %v776_v23 = vadd.f32 %v954_v2, %v753_v20 }
 0x138   : > { %783 = vst [vmem:[%s1357_s3 + $0x8] sm:$0xff] %v767_v5  ;;  %v772_v16 = vadd.f32 %v954_v2, %v749_v13  ;;  %785 = vst [vmem:[%s1357_s3 + $0x18] sm:$0xff] %v769_v10  ;;  %v775_v22 = vadd.f32 %v954_v2, %v752_v19  ;;  %v754_v24 = vld [vmem:[#allocation2 + $0x38] sm:$0xff]  ;;  %v755_v25 = vld [vmem:[#allocation2 + $0x60] sm:$0xff] }
 0x139   : > { %786 = vst [vmem:[%s1357_s3 + $0x20] sm:$0xff] %v770_v11  ;;  %v756_v26 = vld [vmem:[#allocation2 + $0x70] sm:$0xff]  ;;  %787 = vst [vmem:[%s1357_s3 + $0x28] sm:$0xff] %v771_v15  ;;  %v777_v27 = vadd.f32 %v954_v2, %v754_v24  ;;  %v778_v28 = vadd.f32 %v954_v2, %v755_v25  ;;  %v757_v30 = vld [vmem:[#allocation2 + $0x78] sm:$0xff] }
 0x13a   : > { %v750_v14 = vld [vmem:[#allocation2 + $0x48] sm:$0xff]  ;;  %788 = vst [vmem:[%s1357_s3 + $0x30] sm:$0xff] %v772_v16  ;;  %v779_v29 = vadd.f32 %v954_v2, %v756_v26  ;;  %790 = vst [vmem:[%s1357_s3 + $0x40] sm:$0xff] %v774_v21  ;;  %v780_v32 = vadd.f32 %v954_v2, %v757_v30 }
 0x13b   : > { %v773_v17 = vadd.f32 %v954_v2, %v750_v14  ;;  %v758_v31 = vld [vmem:[#allocation2 + $0x28] sm:$0xff]  ;;  %791 = vst [vmem:[%s1357_s3 + $0x48] sm:$0xff] %v775_v22  ;;  %792 = vst [vmem:[%s1357_s3 + $0x50] sm:$0xff] %v776_v23 }
 0x13c   : > { %v781_v33 = vadd.f32 %v954_v2, %v758_v31  ;;  %793 = vst [vmem:[%s1357_s3 + $0x58] sm:$0xff] %v777_v27  ;;  %794 = vst [vmem:[%s1357_s3 + $0x60] sm:$0xff] %v778_v28 }
 0x13d   : > { %789 = vst [vmem:[%s1357_s3 + $0x38] sm:$0xff] %v773_v17  ;;  %795 = vst [vmem:[%s1357_s3 + $0x68] sm:$0xff] %v779_v29 }
 0x13e   : > { %796 = vst [vmem:[%s1357_s3 + $0x70] sm:$0xff] %v780_v32  ;;  %797 = vst [vmem:[%s1357_s3 + $0x78] sm:$0xff] %v781_v33 }
 0x13f PF: > { %s13_s16 = sadd.s32 1, %s1159_s16   ;;  %s1358_s12 = smov %s1147_s13 }
 0x140   : > { %p10_p12 = scmp.ge.s32.totalorder %s13_s16, 5   ;;  %s1359_s13 = smov %s1217_s20 }
 0x141   : > { %s1360_s14 = smov %s1155_s15  ;;  %s1361_s15 = smov %s1363_s17 }
 0x142   :  { %12 = sbr.rel (!%p10_p12) target bundleno = 3 (0x3), region = 119 }

// kernel: generator_forward.34
= control target key start
LH: loop header
LB: loop body
LE: loop exit
PB: predicated region body
PF: predicated region fallthrough
CT: control target
= control target key end

     0   :  { %s383_s6 = smov 0   ;;  %s385_s7 = smov 0   ;;  %s423_s0 = inlined_call_operand.vmem [shape: f32[2,64,128], index: 0, kind: input, shape index: {}]   ;;  %s424_s1 = inlined_call_operand.vmem [shape: f32[2,64,128], index: 1, kind: output, shape index: {}]  }
   0x1   :  { %s387_s8 = smov 0  }
   0x2 LB: > { %s23_s9 = sadd.s32 1, %s367_s7  ;;  %p314_p0 = scmp.ge.s32.totalorder %s371_s8, 1  ;;  %s371_s8 = sphi %s387_s8, %s11_s8   ;;  %s367_s7 = sphi %s385_s7, %s426_s7   ;;  %s363_s6 = sphi %s383_s6, %s425_s6  }
   0x3   : > { %p25_p1 = scmp.ge.s32.totalorder %s23_s9, 2  ;;  %p106_p2 = scmp.lt.s32.totalorder %s371_s8, 3 }
   0x5   : > { %s428_s9 = smov (%p25_p1, %s23_s9), 0  ;;  %p107_p3 = pnand %p314_p0, %p106_p2 }
   0x6   : > { %p132_p4 = scmp.lt.s32.totalorder (!%p107_p3), %s363_s6, 1 }
   0x7   : > { %110 = sbr.rel (%p107_p3) target bundleno = 100 (0x64), region = 24 }
   0xc   : > { %s430_s6 = smov (!%p132_p4, %s363_s6), 1 }
   0xd   : > { %s321_s10 = sshll.u32 %s430_s6, 6 }
   0xe   : > { %s139_s13 = scalar_lea.vmem %s423_s0, %s321_s10  ;;  %s147_s16 = scalar_lea.vmem %s424_s1, %s321_s10 }
   0xf   : > { %v148_v0 = vld [vmem:[%s139_s13] sm:$0xff]  ;;  %v149_v1 = vld [vmem:[%s139_s13 + $0x8] sm:$0xff]  ;;  %v150_v2 = vld [vmem:[%s139_s13 + $0x10] sm:$0xff] }
  0x10   : > { %v156_v3 = vadd.f32 %v149_v1, %v148_v0  ;;  %v151_v4 = vld [vmem:[%s139_s13 + $0x18] sm:$0xff]  ;;  %v152_v6 = vld [vmem:[%s139_s13 + $0x20] sm:$0xff]  ;;  %v153_v8 = vld [vmem:[%s139_s13 + $0x28] sm:$0xff] }
  0x11   : > { %v154_v10 = vld [vmem:[%s139_s13 + $0x30] sm:$0xff]  ;;  %v155_v12 = vld [vmem:[%s139_s13 + $0x38] sm:$0xff] }
  0x12   : > { %v157_v5 = vadd.f32 %v156_v3, %v150_v2 }
  0x14   : > { %v158_v7 = vadd.f32 %v157_v5, %v151_v4 }
  0x16   : > { %v159_v9 = vadd.f32 %v158_v7, %v152_v6 }
  0x18   : > { %v160_v11 = vadd.f32 %v159_v9, %v153_v8 }
  0x1a   : > { %v161_v13 = vadd.f32 %v160_v11, %v154_v10 }
  0x1c   : > { %v162_v14 = vadd.f32 %v161_v13, %v155_v12 }
  0x1e   : > { %v163_v15 = vrot.slane %v162_v14, 4 }
  0x20   : > { %v164_v16 = vadd.f32 %v163_v15, %v162_v14 }
  0x22   : > { %v165_v17 = vrot.slane %v164_v16, 2 }
  0x24   : > { %v166_v18 = vadd.f32 %v165_v17, %v164_v16 }
  0x26   : > { %v167_v19 = vrot.slane %v166_v18, 1 }
  0x28   : > { %v168_v20 = vadd.f32 %v167_v19, %v166_v18 }
  0x2a   : > { %v170_v21 = vmul.f32 0.015625, %v168_v20 }
  0x2c   : > { %v171_v22 = vsub.f32 %v148_v0, %v170_v21  ;;  %v172_v23 = vsub.f32 %v149_v1, %v170_v21  ;;  %v173_v24 = vsub.f32 %v150_v2, %v170_v21  ;;  %v174_v25 = vsub.f32 %v151_v4, %v170_v21 }
  0x2d   : > { %v175_v26 = vsub.f32 %v152_v6, %v170_v21  ;;  %v176_v30 = vsub.f32 %v153_v8, %v170_v21  ;;  %v177_v33 = vsub.f32 %v154_v10, %v170_v21  ;;  %v178_v36 = vsub.f32 %v155_v12, %v170_v21 }
  0x2e   : > { %v179_v27 = vmul.f32 %v171_v22, %v171_v22  ;;  %v180_v28 = vmul.f32 %v172_v23, %v172_v23  ;;  %v181_v29 = vmul.f32 %v173_v24, %v173_v24  ;;  %v182_v31 = vmul.f32 %v174_v25, %v174_v25 }
  0x2f   : > { %v183_v34 = vmul.f32 %v175_v26, %v175_v26  ;;  %v184_v37 = vmul.f32 %v176_v30, %v176_v30  ;;  %v185_v39 = vmul.f32 %v177_v33, %v177_v33  ;;  %v186_v41 = vmul.f32 %v178_v36, %v178_v36 }
  0x30   : > { %v187_v32 = vadd.f32 %v180_v28, %v179_v27 }
  0x32   : > { %v188_v35 = vadd.f32 %v187_v32, %v181_v29 }
  0x34   : > { %v189_v38 = vadd.f32 %v188_v35, %v182_v31 }
  0x36   : > { %v190_v40 = vadd.f32 %v189_v38, %v183_v34 }
  0x38   : > { %v191_v42 = vadd.f32 %v190_v40, %v184_v37 }
  0x3a   : > { %v192_v43 = vadd.f32 %v191_v42, %v185_v39 }
  0x3c   : > { %v193_v44 = vadd.f32 %v192_v43, %v186_v41 }
  0x3e   : > { %v194_v45 = vrot.slane %v193_v44, 4 }
  0x40   : > { %v195_v46 = vadd.f32 %v194_v45, %v193_v44 }
  0x42   : > { %v196_v47 = vrot.slane %v195_v46, 2 }
  0x44   : > { %v197_v48 = vadd.f32 %v196_v47, %v195_v46 }
  0x46   : > { %v198_v49 = vrot.slane %v197_v48, 1 }
  0x48   : > { %v199_v50 = vadd.f32 %v198_v49, %v197_v48 }
  0x4a   : > { %v200_v51 = vmul.f32 0.015625, %v199_v50 }
  0x4c   : > { %v201_v52 = vadd.f32 1e-05, %v200_v51 }
  0x4e   : > { %347 = vrsqrt.f32 %v201_v52 }
  0x5b   : > { %v348_v53 = vpop.eup %347 }
  0x5c   : > { %v203_v54 = vmul.f32 %v348_v53, %v171_v22  ;;  %v204_v55 = vmul.f32 %v348_v53, %v172_v23  ;;  %v205_v56 = vmul.f32 %v348_v53, %v173_v24  ;;  %v206_v57 = vmul.f32 %v348_v53, %v174_v25 }
  0x5d   : > { %v207_v58 = vmul.f32 %v348_v53, %v175_v26  ;;  %v208_v59 = vmul.f32 %v348_v53, %v176_v30  ;;  %v209_v60 = vmul.f32 %v348_v53, %v177_v33  ;;  %v210_v61 = vmul.f32 %v348_v53, %v178_v36 }
  0x5e   : > { %v211_v62 = vmax.f32 %v203_v54, 0.0  ;;  %v212_v63 = vmax.f32 %v204_v55, 0.0  ;;  %v213_v0 = vmax.f32 %v205_v56, 0.0  ;;  %v214_v1 = vmax.f32 %v206_v57, 0.0 }
  0x5f   : > { %v215_v2 = vmax.f32 %v207_v58, 0.0  ;;  %v216_v3 = vmax.f32 %v208_v59, 0.0  ;;  %v217_v4 = vmax.f32 %v209_v60, 0.0  ;;  %v218_v5 = vmax.f32 %v210_v61, 0.0 }
  0x60   : > { %219 = vst [vmem:[%s147_s16] sm:$0xff] %v211_v62  ;;  %220 = vst [vmem:[%s147_s16 + $0x8] sm:$0xff] %v212_v63 }
  0x61   : > { %221 = vst [vmem:[%s147_s16 + $0x10] sm:$0xff] %v213_v0  ;;  %222 = vst [vmem:[%s147_s16 + $0x18] sm:$0xff] %v214_v1 }
  0x62   : > { %223 = vst [vmem:[%s147_s16 + $0x20] sm:$0xff] %v215_v2  ;;  %224 = vst [vmem:[%s147_s16 + $0x28] sm:$0xff] %v216_v3 }
  0x63   : > { %225 = vst [vmem:[%s147_s16 + $0x30] sm:$0xff] %v217_v4  ;;  %226 = vst [vmem:[%s147_s16 + $0x38] sm:$0xff] %v218_v5 }
  0x64 PF: > { %s11_s8 = sadd.s32 1, %s371_s8   ;;  %s425_s6 = smov %s367_s7 }
  0x65   : > { %p8_p5 = scmp.ge.s32.totalorder %s11_s8, 4   ;;  %s426_s7 = smov %s428_s9 }
  0x67   :  { %10 = sbr.rel (!%p8_p5) target bundleno = 2 (0x2), region = 54 }

// kernel: generator_forward.36
= control target key start
LH: loop header
LB: loop body
LE: loop exit
PB: predicated region body
PF: predicated region fallthrough
CT: control target
= control target key end

     0   :  { %s379_s6 = smov 0   ;;  %s381_s7 = smov 0   ;;  %s419_s0 = inlined_call_operand.vmem [shape: f32[2,16,256], index: 0, kind: input, shape index: {}]   ;;  %s420_s1 = inlined_call_operand.vmem [shape: f32[2,16,256], index: 1, kind: output, shape index: {}]  }
   0x1   :  { %s383_s8 = smov 0  }
   0x2 LB: > { %s23_s9 = sadd.s32 1, %s363_s7  ;;  %p308_p0 = scmp.ge.s32.totalorder %s367_s8, 1  ;;  %s367_s8 = sphi %s383_s8, %s11_s8   ;;  %s363_s7 = sphi %s381_s7, %s422_s7   ;;  %s359_s6 = sphi %s379_s6, %s421_s6  }
   0x3   : > { %p25_p1 = scmp.ge.s32.totalorder %s23_s9, 2  ;;  %p108_p2 = scmp.lt.s32.totalorder %s367_s8, 3 }
   0x5   : > { %s424_s9 = smov (%p25_p1, %s23_s9), 0  ;;  %p109_p3 = pnand %p308_p0, %p108_p2 }
   0x6   : > { %p137_p4 = scmp.lt.s32.totalorder (!%p109_p3), %s359_s6, 1 }
   0x7   : > { %112 = sbr.rel (%p109_p3) target bundleno = 74 (0x4a), region = 24 }
   0xc   : > { %s426_s6 = smov (!%p137_p4, %s359_s6), 1 }
   0xd   : > { %s315_s10 = sshll.u32 %s426_s6, 5 }
   0xe   : > { %s144_s13 = scalar_lea.vmem %s419_s0, %s315_s10  ;;  %s154_s16 = scalar_lea.vmem %s420_s1, %s315_s10 }
   0xf   : > { %v156_v0 = vld [vmem:[%s144_s13] sm:$0xff]  ;;  %v158_v1 = vld [vmem:[%s144_s13 + $0x10] sm:$0xff]  ;;  %v157_v2 = vld [vmem:[%s144_s13 + $0x8] sm:$0xff] }
  0x10   : > { %v160_v3 = vadd.f32 %v158_v1, %v156_v0  ;;  %v159_v4 = vld [vmem:[%s144_s13 + $0x18] sm:$0xff] }
  0x11   : > { %v167_v5 = vadd.f32 %v159_v4, %v157_v2 }
  0x12   : > { %v161_v6 = vrot.slane %v160_v3, 4 }
  0x13   : > { %v168_v7 = vrot.slane %v167_v5, 4 }
  0x14   : > { %v162_v8 = vadd.f32 %v161_v6, %v160_v3 }
  0x15   : > { %v169_v9 = vadd.f32 %v168_v7, %v167_v5 }
  0x16   : > { %v163_v10 = vrot.slane %v162_v8, 2 }
  0x17   : > { %v170_v11 = vrot.slane %v169_v9, 2 }
  0x18   : > { %v164_v12 = vadd.f32 %v163_v10, %v162_v8 }
  0x19   : > { %v171_v13 = vadd.f32 %v170_v11, %v169_v9 }
  0x1a   : > { %v165_v14 = vrot.slane %v164_v12, 1 }
  0x1b   : > { %v172_v15 = vrot.slane %v171_v13, 1 }
  0x1c   : > { %v166_v16 = vadd.f32 %v165_v14, %v164_v12 }
  0x1d   : > { %v173_v17 = vadd.f32 %v172_v15, %v171_v13 }
  0x1e   : > { %v175_v18 = vmul.f32 0.0625, %v166_v16 }
  0x1f   : > { %v176_v19 = vmul.f32 0.0625, %v173_v17 }
  0x20   : > { %v177_v20 = vsub.f32 %v156_v0, %v175_v18  ;;  %v179_v21 = vsub.f32 %v158_v1, %v175_v18 }
  0x21   : > { %v178_v22 = vsub.f32 %v157_v2, %v176_v19  ;;  %v180_v23 = vsub.f32 %v159_v4, %v176_v19 }
  0x22   : > { %v181_v24 = vmul.f32 %v177_v20, %v177_v20  ;;  %v183_v25 = vmul.f32 %v179_v21, %v179_v21 }
  0x23   : > { %v182_v26 = vmul.f32 %v178_v22, %v178_v22  ;;  %v184_v27 = vmul.f32 %v180_v23, %v180_v23 }
  0x24   : > { %v185_v28 = vadd.f32 %v183_v25, %v181_v24 }
  0x25   : > { %v192_v29 = vadd.f32 %v184_v27, %v182_v26 }
  0x26   : > { %v186_v30 = vrot.slane %v185_v28, 4 }
  0x27   : > { %v193_v31 = vrot.slane %v192_v29, 4 }
  0x28   : > { %v187_v32 = vadd.f32 %v186_v30, %v185_v28 }
  0x29   : > { %v194_v33 = vadd.f32 %v193_v31, %v192_v29 }
  0x2a   : > { %v188_v34 = vrot.slane %v187_v32, 2 }
  0x2b   : > { %v195_v35 = vrot.slane %v194_v33, 2 }
  0x2c   : > { %v189_v36 = vadd.f32 %v188_v34, %v187_v32 }
  0x2d   : > { %v196_v37 = vadd.f32 %v195_v35, %v194_v33 }
  0x2e   : > { %v190_v38 = vrot.slane %v189_v36, 1 }
  0x2f   : > { %v197_v39 = vrot.slane %v196_v37, 1 }
  0x30   : > { %v191_v40 = vadd.f32 %v190_v38, %v189_v36 }
  0x31   : > { %v198_v41 = vadd.f32 %v197_v39, %v196_v37 }
  0x32   : > { %v199_v42 = vmul.f32 0.0625, %v191_v40 }
  0x33   : > { %v200_v43 = vmul.f32 0.0625, %v198_v41 }
  0x34   : > { %v201_v44 = vadd.f32 1e-05, %v199_v42 }
  0x35   : > { %v202_v45 = vadd.f32 1e-05, %v200_v43 }
  0x36   : > { %341 = vrsqrt.f32 %v201_v44 }
  0x37   : > { %343 = vrsqrt.f32 %v202_v45 }
  0x43   : > { %v342_v46 = vpop.eup %341 }
  0x44   : > { %v344_v47 = vpop.eup %343  ;;  %v205_v48 = vmul.f32 %v342_v46, %v177_v20  ;;  %v207_v49 = vmul.f32 %v342_v46, %v179_v21 }
  0x45   : > { %v206_v50 = vmul.f32 %v344_v47, %v178_v22  ;;  %v208_v51 = vmul.f32 %v344_v47, %v180_v23 }
  0x46   : > { %v209_v52 = vmax.f32 %v205_v48, 0.0  ;;  %v211_v53 = vmax.f32 %v207_v49, 0.0 }
  0x47   : > { %v210_v54 = vmax.f32 %v206_v50, 0.0  ;;  %v212_v55 = vmax.f32 %v208_v51, 0.0 }
  0x48   : > { %213 = vst [vmem:[%s154_s16] sm:$0xff] %v209_v52  ;;  %215 = vst [vmem:[%s154_s16 + $0x10] sm:$0xff] %v211_v53 }
  0x49   : > { %214 = vst [vmem:[%s154_s16 + $0x8] sm:$0xff] %v210_v54  ;;  %216 = vst [vmem:[%s154_s16 + $0x18] sm:$0xff] %v212_v55 }
  0x4a PF: > { %s11_s8 = sadd.s32 1, %s367_s8   ;;  %s421_s6 = smov %s363_s7 }
  0x4b   : > { %p8_p5 = scmp.ge.s32.totalorder %s11_s8, 4   ;;  %s422_s7 = smov %s424_s9 }
  0x4d   :  { %10 = sbr.rel (!%p8_p5) target bundleno = 2 (0x2), region = 54 }

// kernel: generator_forward.35
= control target key start
LH: loop header
LB: loop body
LE: loop exit
PB: predicated region body
PF: predicated region fallthrough
CT: control target
= control target key end

     0   :  { %s1031_s12 = smov 0   ;;  %s1033_s13 = smov 0   ;;  %s1165_s0 = inlined_call_operand.vmem [shape: bf16[32,1280], index: 0, kind: input, shape index: {}]   ;;  %s1166_s1 = inlined_call_operand.vmem [shape: bf16[1280,256], index: 1, kind: input, shape index: {}]   ;;  %s1167_s2 = inlined_call_operand.vmem [shape: f32[1,256], index: 2, kind: input, shape index: {}]   ;;  %s1168_s3 = inlined_call_operand.vmem [shape: f32[32,256], index: 3, kind: output, shape index: {}]  }
   0x1   :  { %s1035_s14 = smov 0   ;;  %s1037_s15 = smov 0  }
   0x2   :  { %s1039_s16 = smov 0  }
   0x3 LB: > { %s25_s17 = sadd.s32 1, %s1004_s15  ;;  %p48_p1 = scmp.ne.s32.totalorder %s996_s13, %s992_s12  ;;  %s1008_s16 = sphi %s1039_s16, %s13_s16   ;;  %s1004_s15 = sphi %s1037_s15, %s1172_s15   ;;  %s1000_s14 = sphi %s1035_s14, %s1171_s14   ;;  %s996_s13 = sphi %s1033_s13, %s1170_s13   ;;  %s992_s12 = sphi %s1031_s12, %s1169_s12  }
   0x4   : > { %p26_p0 = scmp.ge.s32.totalorder %s25_s17, 5  ;;  %p49_p2 = scmp.eq.s32.totalorder %s1008_s16, 0 }
   0x5   : > { %s41_s19 = sadd.s32 1, %s996_s13  ;;  %p790_p5 = scmp.ge.s32.totalorder %s1008_s16, 5 }
   0x6   : > { %s1174_s17 = smov (%p26_p0, %s25_s17), 0  ;;  %p50_p3 = por %p49_p2, %p48_p1 }
   0x7   : > { %s37_s18 = ssub.s32 %s1004_s15, %s1174_s17  ;;  %164 = sbr.rel (%p790_p5) target bundleno = 18 (0x12), region = 20 }
   0x8   : > { %p39_p4 = scmp.eq.s32.totalorder %s37_s18, 0 }
   0xa   : > { %s1066_s20 = scalar_select %p39_p4, %s996_s13, %s41_s19  }
   0xc   : > { %167 = sbr.rel (!%p50_p3) target bundleno = 18 (0x12), region = 24  ;;  %s169_s21 = sand.u32 (%p50_p3), 1, %s996_s13  }
   0xd   : > { %s841_s22 = sshll.u32 (%p50_p3), %s1004_s15, 3  ;;  %s791_s23 = sshll.u32 (%p50_p3), %s169_s21, 5 }
   0xe   : > { %s177_s26 = scalar_lea.vmem (%p50_p3), %s1165_s0, %s841_s22  ;;  %s171_s27 = scalar_lea.vmem (%p50_p3), [#allocation3], %s791_s23 }
   0xf   : > { %v212_v0 = vld [vmem:[%s177_s26] sm:$0xff] (%p50_p3)  ;;  %v214_v1 = vld [vmem:[%s177_s26 + $0x28] sm:$0xff] (%p50_p3)  ;;  %v216_v2 = vld [vmem:[%s177_s26 + $0x50] sm:$0xff] (%p50_p3) }
  0x10   : > { %213 = vst [vmem:[%s171_s27] sm:$0xff] (%p50_p3), %v212_v0  ;;  %215 = vst [vmem:[%s171_s27 + $0x8] sm:$0xff] (%p50_p3), %v214_v1  ;;  %v218_v3 = vld [vmem:[%s177_s26 + $0x78] sm:$0xff] (%p50_p3) }
  0x11   : > { %217 = vst [vmem:[%s171_s27 + $0x10] sm:$0xff] %v216_v2  ;;  %219 = vst [vmem:[%s171_s27 + $0x18] sm:$0xff] %v218_v3 }
  0x12 PF: > { %p794_p6 = scmp.ge.s32.totalorder %s1008_s16, 1  ;;  %p239_p7 = scmp.lt.s32.totalorder %s1008_s16, 6 }
  0x14   : > { %p240_p8 = pnand %p794_p6, %p239_p7 }
  0x15   : > { %s246_s28 = sand.u32 (!%p240_p8), 1, %s992_s12   ;;  %s796_s29 = sshll.u32 (!%p240_p8), %s1000_s14, 5 }
  0x16   : > { %243 = sbr.rel (%p240_p8) target bundleno = 318 (0x13e), region = 66  ;;  %s795_s30 = sshll.u32 (!%p240_p8), %s246_s28, 5 }
  0x17   : > { %p292_p9 = scmp.lt.s32.totalorder (!%p240_p8), %s796_s29, 159  ;;  %s1083_s8 = scalar_lea.vmem (!%p240_p8), [#allocation3], %s795_s30 }
  0x18   : > { %p799_p10 = scmp.ne.s32.totalorder (!%p240_p8), %s1000_s14, 0 }
  0x1b   : > { %s1176_s29 = smov (!%p292_p9, %s796_s29), 159  ;;  %322 = sbr.rel (%p799_p10) target bundleno = 37 (0x25), region = 74 }
  0x1c   : > { %s842_s4 = sshll.u32 %s1176_s29, 3 }
  0x1d   : > { %s1081_s7 = scalar_lea.vmem %s1166_s1, %s842_s4 }
  0x20   : > { %v1010_v4 = vmov 0.0  }
  0x21   : > { %323 = vst [vmem:[#allocation2 + $0x30] sm:$0xff] %v1010_v4  ;;  %324 = vst [vmem:[#allocation2] sm:$0xff] %v1010_v4 }
  0x22   : > { %325 = vst [vmem:[#allocation2 + $0x18] sm:$0xff] %v1010_v4  ;;  %326 = vst [vmem:[#allocation2 + $0x10] sm:$0xff] %v1010_v4 }
  0x23   : > { %327 = vst [vmem:[#allocation2 + $0x8] sm:$0xff] %v1010_v4  ;;  %328 = vst [vmem:[#allocation2 + $0x20] sm:$0xff] %v1010_v4 }
  0x24   : > { %329 = vst [vmem:[#allocation2 + $0x28] sm:$0xff] %v1010_v4  ;;  %330 = vst [vmem:[#allocation2 + $0x38] sm:$0xff] %v1010_v4 }
  0x25 PF: > { %v916_v5 = vld [vmem:[%s1081_s7 + $0x74] ss:$8 sps:$4 sm:$0xff]   ;;  %v918_v6 = vld [vmem:[%s1081_s7 + $0x70] ss:$8 sps:$4 sm:$0xff]   ;;  %v919_v7 = vld [vmem:[%s1081_s7 + $0x64] ss:$8 sps:$4 sm:$0xff]  }
  0x26   : > { %555 = vmatprep.subr.bf16.mxu0 %v916_v5  ;;  %843 = vmatprep.subr.bf16.mxu1 %v916_v5  ;;  %v921_v8 = vld [vmem:[%s1081_s7 + $0x60] ss:$8 sps:$4 sm:$0xff]   ;;  %v922_v9 = vld [vmem:[%s1081_s7 + $0x54] ss:$8 sps:$4 sm:$0xff]   ;;  %v924_v10 = vld [vmem:[%s1081_s7 + $0x50] ss:$8 sps:$4 sm:$0xff]  }
  0x27   : > { %556 = vmatpush1.bf16.msra.mxu0 %v918_v6  ;;  %859 = vmatpush1.bf16.msra.mxu1 %v918_v6  ;;  %v925_v11 = vld [vmem:[%s1081_s7 + $0x44] ss:$8 sps:$4 sm:$0xff]   ;;  %v927_v12 = vld [vmem:[%s1081_s7 + $0x40] ss:$8 sps:$4 sm:$0xff]   ;;  %v928_v13 = vld [vmem:[%s1081_s7 + $0x34] ss:$8 sps:$4 sm:$0xff]  }
  0x28   : > { %557 = vmatprep.subr.bf16.mxu0 %v919_v7  ;;  %844 = vmatprep.subr.bf16.mxu1 %v919_v7  ;;  %v930_v14 = vld [vmem:[%s1081_s7 + $0x30] ss:$8 sps:$4 sm:$0xff]   ;;  %v931_v15 = vld [vmem:[%s1081_s7 + $0x24] ss:$8 sps:$4 sm:$0xff]   ;;  %v933_v16 = vld [vmem:[%s1081_s7 + $0x20] ss:$8 sps:$4 sm:$0xff]  }
  0x29   : > { %v934_v17 = vld [vmem:[%s1081_s7 + $0x14] ss:$8 sps:$4 sm:$0xff]   ;;  %v966_v18 = vld [vmem:[%s1083_s8 + $0x4] ss:$8 sps:$4 sm:$0xff]   ;;  %v936_v19 = vld [vmem:[%s1081_s7 + $0x10] ss:$8 sps:$4 sm:$0xff]  }
  0x2a   : > { %v969_v20 = vld [vmem:[%s1083_s8 + $0x14] ss:$8 sps:$4 sm:$0xff]   ;;  %v937_v21 = vld [vmem:[%s1081_s7 + $0x4] ss:$8 sps:$4 sm:$0xff]   ;;  %587 = vmatprep.mubr.bf16.mxu0 %v966_v18  ;;  %v939_v22 = vld [vmem:[%s1081_s7] ss:$8 sps:$4 sm:$0xff]  }
  0x2b   : > { %558 = vmatpush1.bf16.msra.mxu0 %v921_v8  ;;  %860 = vmatpush1.bf16.msra.mxu1 %v921_v8  ;;  %v940_v23 = vld [vmem:[%s1081_s7 + $0xf4] ss:$8 sps:$4 sm:$0xff]   ;;  %v942_v24 = vld [vmem:[%s1081_s7 + $0xf0] ss:$8 sps:$4 sm:$0xff]   ;;  %v943_v25 = vld [vmem:[%s1081_s7 + $0xe4] ss:$8 sps:$4 sm:$0xff]  }
  0x2c   : > { %559 = vmatprep.subr.bf16.mxu0 %v922_v9  ;;  %845 = vmatprep.subr.bf16.mxu1 %v922_v9  ;;  %v945_v26 = vld [vmem:[%s1081_s7 + $0xe0] ss:$8 sps:$4 sm:$0xff]   ;;  %v946_v27 = vld [vmem:[%s1081_s7 + $0xd4] ss:$8 sps:$4 sm:$0xff]   ;;  %v948_v28 = vld [vmem:[%s1081_s7 + $0xd0] ss:$8 sps:$4 sm:$0xff]  }
  0x2d   : > { %597 = vmatprep.mubr.bf16.mxu1 %v969_v20  ;;  %v949_v29 = vld [vmem:[%s1081_s7 + $0xc4] ss:$8 sps:$4 sm:$0xff]   ;;  %v951_v30 = vld [vmem:[%s1081_s7 + $0xc0] ss:$8 sps:$4 sm:$0xff]   ;;  %v952_v31 = vld [vmem:[%s1081_s7 + $0xb4] ss:$8 sps:$4 sm:$0xff]  }
  0x2e   : > { %v954_v32 = vld [vmem:[%s1081_s7 + $0xb0] ss:$8 sps:$4 sm:$0xff]   ;;  %v955_v33 = vld [vmem:[%s1081_s7 + $0xa4] ss:$8 sps:$4 sm:$0xff]   ;;  %v957_v34 = vld [vmem:[%s1081_s7 + $0xa0] ss:$8 sps:$4 sm:$0xff]  }
  0x2f   : > { %560 = vmatpush1.bf16.msra.mxu0 %v924_v10  ;;  %861 = vmatpush1.bf16.msra.mxu1 %v924_v10  ;;  %v958_v35 = vld [vmem:[%s1081_s7 + $0x94] ss:$8 sps:$4 sm:$0xff]   ;;  %v960_v36 = vld [vmem:[%s1081_s7 + $0x90] ss:$8 sps:$4 sm:$0xff]   ;;  %v961_v37 = vld [vmem:[%s1081_s7 + $0x84] ss:$8 sps:$4 sm:$0xff]  }
  0x30   : > { %561 = vmatprep.subr.bf16.mxu0 %v925_v11  ;;  %846 = vmatprep.subr.bf16.mxu1 %v925_v11  ;;  %v963_v38 = vld [vmem:[%s1081_s7 + $0x80] ss:$8 sps:$4 sm:$0xff]   ;;  %v967_v40 = vld [vmem:[%s1083_s8 + $0x10] ss:$8 sps:$4 sm:$0xff]   ;;  %p836_p11 = scmp.ne.s32.totalorder %s1000_s14, 4 }
  0x31   : > { %v964_v39 = vld [vmem:[%s1083_s8] ss:$8 sps:$4 sm:$0xff]   ;;  %v331_v41 = vld [vmem:[#allocation2 + $0x30] sm:$0xff]  ;;  %v333_v51 = vld [vmem:[#allocation2 + $0x18] sm:$0xff] }
  0x32   : > { %v335_v42 = vld [vmem:[#allocation2 + $0x8] sm:$0xff]  ;;  %v332_v45 = vld [vmem:[#allocation2] sm:$0xff]  ;;  %v334_v57 = vld [vmem:[#allocation2 + $0x10] sm:$0xff] }
  0x33   : > { %562 = vmatpush1.bf16.msra.mxu0 %v927_v12  ;;  %862 = vmatpush1.bf16.msra.mxu1 %v927_v12  ;;  %v336_v46 = vld [vmem:[#allocation2 + $0x20] sm:$0xff]  ;;  %v337_v52 = vld [vmem:[#allocation2 + $0x28] sm:$0xff]  ;;  %v338_v58 = vld [vmem:[#allocation2 + $0x38] sm:$0xff] }
  0x34   : > { %563 = vmatprep.subr.bf16.mxu0 %v928_v13  ;;  %847 = vmatprep.subr.bf16.mxu1 %v928_v13 }
  0x37   : > { %564 = vmatpush1.bf16.msra.mxu0 %v930_v14  ;;  %863 = vmatpush1.bf16.msra.mxu1 %v930_v14 }
  0x38   : > { %565 = vmatprep.subr.bf16.mxu0 %v931_v15  ;;  %848 = vmatprep.subr.bf16.mxu1 %v931_v15 }
  0x3b   : > { %566 = vmatpush1.bf16.msra.mxu0 %v933_v16  ;;  %864 = vmatpush1.bf16.msra.mxu1 %v933_v16 }
  0x3c   : > { %567 = vmatprep.subr.bf16.mxu0 %v934_v17  ;;  %849 = vmatprep.subr.bf16.mxu1 %v934_v17 }
  0x3f   : > { %568 = vmatpush1.bf16.msra.mxu0 %v936_v19  ;;  %865 = vmatpush1.bf16.msra.mxu1 %v936_v19 }
  0x40   : > { %569 = vmatprep.subr.bf16.mxu0 %v937_v21  ;;  %850 = vmatprep.subr.bf16.mxu1 %v937_v21 }
  0x43   : > { %570 = vmatpush1.bf16.msra.mxu0 %v939_v22  ;;  %866 = vmatpush1.bf16.msra.mxu1 %v939_v22 }
  0x44   : > { %571 = vmatprep.subr.bf16.mxu0 %v940_v23  ;;  %851 = vmatprep.subr.bf16.mxu1 %v940_v23 }
  0x47   : > { %572 = vmatpush2.bf16.msra.mxu0 %v942_v24  ;;  %867 = vmatpush2.bf16.msra.mxu1 %v942_v24 }
  0x48   : > { %573 = vmatprep.subr.bf16.mxu0 %v943_v25  ;;  %852 = vmatprep.subr.bf16.mxu1 %v943_v25 }
  0x4b   : > { %574 = vmatpush2.bf16.msra.mxu0 %v945_v26  ;;  %868 = vmatpush2.bf16.msra.mxu1 %v945_v26 }
  0x4c   : > { %575 = vmatprep.subr.bf16.mxu0 %v946_v27  ;;  %853 = vmatprep.subr.bf16.mxu1 %v946_v27 }
  0x4f   : > { %576 = vmatpush2.bf16.msra.mxu0 %v948_v28  ;;  %869 = vmatpush2.bf16.msra.mxu1 %v948_v28 }
  0x50   : > { %577 = vmatprep.subr.bf16.mxu0 %v949_v29  ;;  %854 = vmatprep.subr.bf16.mxu1 %v949_v29 }
  0x53   : > { %578 = vmatpush2.bf16.msra.mxu0 %v951_v30  ;;  %870 = vmatpush2.bf16.msra.mxu1 %v951_v30 }
  0x54   : > { %579 = vmatprep.subr.bf16.mxu0 %v952_v31  ;;  %855 = vmatprep.subr.bf16.mxu1 %v952_v31 }
  0x57   : > { %580 = vmatpush2.bf16.msra.mxu0 %v954_v32  ;;  %871 = vmatpush2.bf16.msra.mxu1 %v954_v32 }
  0x58   : > { %581 = vmatprep.subr.bf16.mxu0 %v955_v33  ;;  %856 = vmatprep.subr.bf16.mxu1 %v955_v33 }
  0x5b   : > { %582 = vmatpush2.bf16.msra.mxu0 %v957_v34  ;;  %872 = vmatpush2.bf16.msra.mxu1 %v957_v34 }
  0x5c   : > { %583 = vmatprep.subr.bf16.mxu0 %v958_v35  ;;  %857 = vmatprep.subr.bf16.mxu1 %v958_v35 }
  0x5f   : > { %584 = vmatpush2.bf16.msra.mxu0 %v960_v36  ;;  %873 = vmatpush2.bf16.msra.mxu1 %v960_v36 }
  0x60   : > { %585 = vmatprep.subr.bf16.mxu0 %v961_v37  ;;  %858 = vmatprep.subr.bf16.mxu1 %v961_v37 }
  0x63   : > { %586 = vmatpush2.bf16.msra.mxu0 %v963_v38  ;;  %874 = vmatpush2.bf16.msra.mxu1 %v963_v38 }
  0x66   : > { %588 = vmatmul.mubr.bf16.vlgmr.msra.gmra.mxu0 %v964_v39  ;;  %598 = vmatmul.mubr.bf16.vlgmr.msra.gmra.mxu1 %v967_v40 }
 0x126   : > { %v589_v43 = vpop.f32.mrf.mxu0  ;;  %v599_v44 = vpop.f32.mrf.mxu1 }
 0x127   : > { %v608_v47 = vadd.f32 %v589_v43, %v331_v41  ;;  %v612_v48 = vadd.f32 %v599_v44, %v335_v42 }
 0x128   : > { %v591_v49 = vpop.f32.mrf.mxu0  ;;  %v601_v50 = vpop.f32.mrf.mxu1 }
 0x129   : > { %616 = vst [vmem:[#allocation2 + $0x30] sm:$0xff] %v608_v47  ;;  %620 = vst [vmem:[#allocation2 + $0x8] sm:$0xff] %v612_v48  ;;  %v609_v53 = vadd.f32 %v591_v49, %v332_v45  ;;  %v613_v54 = vadd.f32 %v601_v50, %v336_v46 }
 0x12a   : > { %v593_v55 = vpop.f32.mrf.mxu0  ;;  %v603_v56 = vpop.f32.mrf.mxu1 }
 0x12b   : > { %617 = vst [vmem:[#allocation2] sm:$0xff] %v609_v53  ;;  %621 = vst [vmem:[#allocation2 + $0x20] sm:$0xff] %v613_v54  ;;  %v610_v59 = vadd.f32 %v593_v55, %v333_v51  ;;  %v614_v60 = vadd.f32 %v603_v56, %v337_v52  ;;  %627 = sbr.rel (%p836_p11) target bundleno = 318 (0x13e), region = 78 }
 0x12c   : > { %v595_v61 = vpop.f32.mrf.mxu0  ;;  %v605_v62 = vpop.f32.mrf.mxu1 }
 0x12d   : > { %618 = vst [vmem:[#allocation2 + $0x18] sm:$0xff] %v610_v59  ;;  %622 = vst [vmem:[#allocation2 + $0x28] sm:$0xff] %v614_v60  ;;  %v611_v63 = vadd.f32 %v595_v61, %v334_v57  ;;  %v615_v0 = vadd.f32 %v605_v62, %v338_v58 }
 0x12f   : > { %619 = vst [vmem:[#allocation2 + $0x10] sm:$0xff] %v611_v63  ;;  %623 = vst [vmem:[#allocation2 + $0x38] sm:$0xff] %v615_v0 }
 0x130   : > { %v638_v1 = vlaneseq  ;;  %v636_v3 = vld [vmem:[%s1167_s2] sm:$0x3]  ;;  %v628_v4 = vld [vmem:[#allocation2 + $0x30] sm:$0xff]  ;;  %v632_v10 = vld [vmem:[#allocation2 + $0x8] sm:$0xff] }
 0x132   : > { %v639_v2 = vshrl.u32 %v638_v1, 7  ;;  %v629_v6 = vld [vmem:[#allocation2] sm:$0xff] }
 0x133   : > { %v633_v13 = vld [vmem:[#allocation2 + $0x20] sm:$0xff] }
 0x134   : > { %v640_v5 = vsub.s32 0, %v639_v2  ;;  %v644_v7 = vsub.s32 1, %v639_v2  ;;  %v630_v8 = vld [vmem:[#allocation2 + $0x18] sm:$0xff]  ;;  %v634_v14 = vld [vmem:[#allocation2 + $0x28] sm:$0xff] }
 0x136   : > { %v631_v9 = vld [vmem:[#allocation2 + $0x10] sm:$0xff]  ;;  %v641_v11 = vrot.slane %v636_v3, %v640_v5  ;;  %v645_v12 = vrot.slane %v636_v3, %v644_v7  ;;  %v635_v15 = vld [vmem:[#allocation2 + $0x38] sm:$0xff] }
 0x138   : > { %v648_v16 = vadd.f32 %v641_v11, %v628_v4  ;;  %v649_v17 = vadd.f32 %v645_v12, %v629_v6  ;;  %v650_v18 = vadd.f32 %v641_v11, %v630_v8  ;;  %v651_v19 = vadd.f32 %v645_v12, %v631_v9 }
 0x139   : > { %v652_v20 = vadd.f32 %v641_v11, %v632_v10  ;;  %v653_v21 = vadd.f32 %v645_v12, %v633_v13  ;;  %v654_v22 = vadd.f32 %v641_v11, %v634_v14  ;;  %v655_v23 = vadd.f32 %v645_v12, %v635_v15 }
 0x13a   : > { %656 = vst [vmem:[%s1168_s3] sm:$0xff] %v648_v16  ;;  %657 = vst [vmem:[%s1168_s3 + $0x8] sm:$0xff] %v649_v17 }
 0x13b   : > { %658 = vst [vmem:[%s1168_s3 + $0x10] sm:$0xff] %v650_v18  ;;  %659 = vst [vmem:[%s1168_s3 + $0x18] sm:$0xff] %v651_v19 }
 0x13c   : > { %660 = vst [vmem:[%s1168_s3 + $0x20] sm:$0xff] %v652_v20  ;;  %661 = vst [vmem:[%s1168_s3 + $0x28] sm:$0xff] %v653_v21 }
 0x13d   : > { %662 = vst [vmem:[%s1168_s3 + $0x30] sm:$0xff] %v654_v22  ;;  %663 = vst [vmem:[%s1168_s3 + $0x38] sm:$0xff] %v655_v23 }
 0x13e PF: > { %s13_s16 = sadd.s32 1, %s1008_s16   ;;  %s1169_s12 = smov %s996_s13 }
 0x13f   : > { %p10_p12 = scmp.ge.s32.totalorder %s13_s16, 7   ;;  %s1170_s13 = smov %s1066_s20 }
 0x140   : > { %s1171_s14 = smov %s1004_s15  ;;  %s1172_s15 = smov %s1174_s17 }
 0x141   :  { %12 = sbr.rel (!%p10_p12) target bundleno = 3 (0x3), region = 119 }

// kernel: generator_forward.37
= control target key start
LH: loop header
LB: loop body
LE: loop exit
PB: predicated region body
PF: predicated region fallthrough
CT: control target
= control target key end

     0   :  { %s1148_s12 = smov 0   ;;  %s1150_s13 = smov 0   ;;  %s1360_s0 = inlined_call_operand.vmem [shape: bf16[32,256], index: 0, kind: input, shape index: {}]   ;;  %s1361_s1 = inlined_call_operand.vmem [shape: bf16[256,1024], index: 1, kind: input, shape index: {}]   ;;  %s1362_s2 = inlined_call_operand.vmem [shape: f32[1,1024], index: 2, kind: input, shape index: {}]   ;;  %s1363_s3 = inlined_call_operand.vmem [shape: f32[32,1024], index: 3, kind: output, shape index: {}]  }
   0x1   :  { %s1152_s14 = smov 0   ;;  %s1154_s15 = smov 0  }
   0x2   :  { %s1156_s16 = smov 0  }
   0x3 LB: > { %s28_s17 = sadd.s32 1, %s1122_s15  ;;  %s907_s18 = sadd.s32 4294967295, %s1126_s16   ;;  %s1126_s16 = sphi %s1156_s16, %s13_s16   ;;  %s1122_s15 = sphi %s1154_s15, %s1368_s15   ;;  %s1118_s14 = sphi %s1152_s14, %s1367_s14   ;;  %s1114_s13 = sphi %s1150_s13, %s1366_s13   ;;  %s1110_s12 = sphi %s1148_s12, %s1365_s12  }
   0x4   : > { %p30_p0 = scmp.ge.s32.totalorder %s28_s17, 4  ;;  %p76_p1 = scmp.ne.s32.totalorder %s1114_s13, %s1110_s12 }
   0x5   : > { %p77_p2 = scmp.eq.s32.totalorder %s1126_s16, 0  ;;  %p134_p4 = scmp.eq.s32.totalorder %s907_s18, 3 }
   0x6   : > { %s1370_s17 = smov (%p30_p0, %s28_s17), 0  ;;  %s69_s20 = sadd.s32 1, %s1114_s13 }
   0x7   : > { %p78_p3 = por %p77_p2, %p76_p1  ;;  %s65_s19 = ssub.s32 %s1122_s15, %s1370_s17 }
   0x8   : > { %p67_p5 = scmp.eq.s32.totalorder %s65_s19, 0  ;;  %p1183_p6 = por %p134_p4, %p76_p1 }
   0x9   : > { %p911_p7 = scmp.ge.s32.totalorder %s1126_s16, 4 }
   0xa   : > { %s1188_s22 = scalar_select %p67_p5, %s1114_s13, %s69_s20  }
   0xb   : > { %171 = sbr.rel (%p911_p7) target bundleno = 52 (0x34), region = 20 }
  0x10   : > { %174 = sbr.rel (!%p78_p3) target bundleno = 52 (0x34), region = 24  ;;  %s176_s23 = sand.u32 (%p78_p3), 1, %s1114_s13  }
  0x11   : > { %s960_s24 = sshll.u32 (%p78_p3), %s1122_s15, 3  ;;  %s912_s25 = sshll.u32 (%p78_p3), %s176_s23, 8 }
  0x12   : > { %s1196_s28 = scalar_lea.vmem (%p78_p3), %s1361_s1, %s960_s24  ;;  %s1201_s29 = scalar_lea.vmem (%p78_p3), [#allocation3], %s912_s25 }
  0x13   : > { %v275_v0 = vld [vmem:[%s1196_s28] sm:$0xff] (%p78_p3) }
  0x14   : > { %v277_v1 = vld [vmem:[%s1196_s28 + $0x20] sm:$0xff] (%p78_p3)  ;;  %276 = vst [vmem:[%s1201_s29] sm:$0xff] (%p78_p3), %v275_v0 }
  0x15   : > { %v279_v2 = vld [vmem:[%s1196_s28 + $0x40] sm:$0xff]  ;;  %278 = vst [vmem:[%s1201_s29 + $0x8] sm:$0xff] %v277_v1 }
  0x16   : > { %280 = vst [vmem:[%s1201_s29 + $0x10] sm:$0xff] %v279_v2  ;;  %v281_v3 = vld [vmem:[%s1196_s28 + $0x60] sm:$0xff] }
  0x17   : > { %v283_v4 = vld [vmem:[%s1196_s28 + $0x80] sm:$0xff]  ;;  %282 = vst [vmem:[%s1201_s29 + $0x18] sm:$0xff] %v281_v3 }
  0x18   : > { %v285_v5 = vld [vmem:[%s1196_s28 + $0xa0] sm:$0xff]  ;;  %284 = vst [vmem:[%s1201_s29 + $0x20] sm:$0xff] %v283_v4 }
  0x19   : > { %286 = vst [vmem:[%s1201_s29 + $0x28] sm:$0xff] %v285_v5  ;;  %v287_v6 = vld [vmem:[%s1196_s28 + $0xc0] sm:$0xff] }
  0x1a   : > { %v289_v7 = vld [vmem:[%s1196_s28 + $0xe0] sm:$0xff]  ;;  %288 = vst [vmem:[%s1201_s29 + $0x30] sm:$0xff] %v287_v6 }
  0x1b   : > { %v291_v8 = vld [vmem:[%s1196_s28 + $0x100] sm:$0xff]  ;;  %290 = vst [vmem:[%s1201_s29 + $0x38] sm:$0xff] %v289_v7 }
  0x1c   : > { %292 = vst [vmem:[%s1201_s29 + $0x40] sm:$0xff] %v291_v8  ;;  %v293_v9 = vld [vmem:[%s1196_s28 + $0x120] sm:$0xff] }
  0x1d   : > { %v295_v10 = vld [vmem:[%s1196_s28 + $0x140] sm:$0xff]  ;;  %294 = vst [vmem:[%s1201_s29 + $0x48] sm:$0xff] %v293_v9 }
  0x1e   : > { %v297_v11 = vld [vmem:[%s1196_s28 + $0x160] sm:$0xff]  ;;  %296 = vst [vmem:[%s1201_s29 + $0x50] sm:$0xff] %v295_v10 }
  0x1f   : > { %298 = vst [vmem:[%s1201_s29 + $0x58] sm:$0xff] %v297_v11  ;;  %v299_v12 = vld [vmem:[%s1196_s28 + $0x180] sm:$0xff] }
  0x20   : > { %v301_v13 = vld [vmem:[%s1196_s28 + $0x1a0] sm:$0xff]  ;;  %300 = vst [vmem:[%s1201_s29 + $0x60] sm:$0xff] %v299_v12 }
  0x21   : > { %v303_v14 = vld [vmem:[%s1196_s28 + $0x1c0] sm:$0xff]  ;;  %302 = vst [vmem:[%s1201_s29 + $0x68] sm:$0xff] %v301_v13 }
  0x22   : > { %304 = vst [vmem:[%s1201_s29 + $0x70] sm:$0xff] %v303_v14  ;;  %v305_v15 = vld [vmem:[%s1196_s28 + $0x1e0] sm:$0xff] }
  0x23   : > { %v307_v16 = vld [vmem:[%s1196_s28 + $0x200] sm:$0xff]  ;;  %306 = vst [vmem:[%s1201_s29 + $0x78] sm:$0xff] %v305_v15 }
  0x24   : > { %v309_v17 = vld [vmem:[%s1196_s28 + $0x220] sm:$0xff]  ;;  %308 = vst [vmem:[%s1201_s29 + $0x80] sm:$0xff] %v307_v16 }
  0x25   : > { %310 = vst [vmem:[%s1201_s29 + $0x88] sm:$0xff] %v309_v17  ;;  %v311_v18 = vld [vmem:[%s1196_s28 + $0x240] sm:$0xff] }
  0x26   : > { %v313_v19 = vld [vmem:[%s1196_s28 + $0x260] sm:$0xff]  ;;  %312 = vst [vmem:[%s1201_s29 + $0x90] sm:$0xff] %v311_v18 }
  0x27   : > { %v315_v20 = vld [vmem:[%s1196_s28 + $0x280] sm:$0xff]  ;;  %314 = vst [vmem:[%s1201_s29 + $0x98] sm:$0xff] %v313_v19 }
  0x28   : > { %316 = vst [vmem:[%s1201_s29 + $0xa0] sm:$0xff] %v315_v20  ;;  %v317_v21 = vld [vmem:[%s1196_s28 + $0x2a0] sm:$0xff] }
  0x29   : > { %v319_v22 = vld [vmem:[%s1196_s28 + $0x2c0] sm:$0xff]  ;;  %318 = vst [vmem:[%s1201_s29 + $0xa8] sm:$0xff] %v317_v21 }
  0x2a   : > { %v321_v23 = vld [vmem:[%s1196_s28 + $0x2e0] sm:$0xff]  ;;  %320 = vst [vmem:[%s1201_s29 + $0xb0] sm:$0xff] %v319_v22 }
  0x2b   : > { %322 = vst [vmem:[%s1201_s29 + $0xb8] sm:$0xff] %v321_v23  ;;  %v323_v24 = vld [vmem:[%s1196_s28 + $0x300] sm:$0xff] }
  0x2c   : > { %v325_v25 = vld [vmem:[%s1196_s28 + $0x320] sm:$0xff]  ;;  %324 = vst [vmem:[%s1201_s29 + $0xc0] sm:$0xff] %v323_v24 }
  0x2d   : > { %v327_v26 = vld [vmem:[%s1196_s28 + $0x340] sm:$0xff]  ;;  %326 = vst [vmem:[%s1201_s29 + $0xc8] sm:$0xff] %v325_v25 }
  0x2e   : > { %328 = vst [vmem:[%s1201_s29 + $0xd0] sm:$0xff] %v327_v26  ;;  %v329_v27 = vld [vmem:[%s1196_s28 + $0x360] sm:$0xff] }
  0x2f   : > { %v331_v28 = vld [vmem:[%s1196_s28 + $0x380] sm:$0xff]  ;;  %330 = vst [vmem:[%s1201_s29 + $0xd8] sm:$0xff] %v329_v27 }
  0x30   : > { %v333_v29 = vld [vmem:[%s1196_s28 + $0x3a0] sm:$0xff]  ;;  %332 = vst [vmem:[%s1201_s29 + $0xe0] sm:$0xff] %v331_v28 }
  0x31   : > { %334 = vst [vmem:[%s1201_s29 + $0xe8] sm:$0xff] %v333_v29  ;;  %v335_v30 = vld [vmem:[%s1196_s28 + $0x3c0] sm:$0xff] }
  0x32   : > { %v337_v31 = vld [vmem:[%s1196_s28 + $0x3e0] sm:$0xff]  ;;  %336 = vst [vmem:[%s1201_s29 + $0xf0] sm:$0xff] %v335_v30 }
  0x33   : > { %338 = vst [vmem:[%s1201_s29 + $0xf8] sm:$0xff] %v337_v31 }
  0x34 PF: > { %p915_p8 = scmp.ge.s32.totalorder %s1126_s16, 1  ;;  %p351_p9 = scmp.lt.s32.totalorder %s1126_s16, 5 }
  0x36   : > { %p352_p10 = pnand %p915_p8, %p351_p9 }
  0x37   : > { %s358_s30 = sand.u32 (!%p352_p10), 1, %s1110_s12   ;;  %s918_s20 = sshll.u32 (!%p352_p10), %s1118_s14, 1 }
  0x38   : > { %355 = sbr.rel (%p352_p10) target bundleno = 338 (0x152), region = 66  ;;  %s916_s4 = sshll.u32 (!%p352_p10), %s358_s30, 8 }
  0x39   : > { %s1275_s9 = scalar_lea.vmem (!%p352_p10), [#allocation3], %s916_s4  ;;  %p409_p11 = scmp.lt.s32.totalorder (!%p352_p10), %s918_s20, 7 }
  0x3a   : > { %s917_s26 = sshll.u32 (!%p352_p10), %s358_s30, 6 }
  0x3b   : > { %s1321_s27 = scalar_lea.vmem (!%p352_p10), [#allocation4], %s917_s26 }
  0x3d   : > { %v1084_v32 = vld [vmem:[%s1360_s0 + $0x4] ss:$8 sps:$4 sm:$0xff]   ;;  %v1087_v33 = vld [vmem:[%s1360_s0 + $0x14] ss:$8 sps:$4 sm:$0xff]   ;;  %v1036_v35 = vld [vmem:[%s1275_s9 + $0x70] ss:$8 sps:$4 sm:$0xff]   ;;  %v733_v4 = vlaneseq }
  0x3e   : > { %v1034_v34 = vld [vmem:[%s1275_s9 + $0x74] ss:$8 sps:$4 sm:$0xff]   ;;  %683 = vmatprep.mubr.bf16.mxu0 %v1084_v32  ;;  %693 = vmatprep.mubr.bf16.mxu1 %v1087_v33  ;;  %v1037_v36 = vld [vmem:[%s1275_s9 + $0x64] ss:$8 sps:$4 sm:$0xff]   ;;  %v1039_v37 = vld [vmem:[%s1275_s9 + $0x60] ss:$8 sps:$4 sm:$0xff]  }
  0x3f   : > { %651 = vmatprep.subr.bf16.mxu0 %v1034_v34  ;;  %962 = vmatprep.subr.bf16.mxu1 %v1034_v34  ;;  %v1040_v38 = vld [vmem:[%s1275_s9 + $0x54] ss:$8 sps:$4 sm:$0xff]   ;;  %v1042_v39 = vld [vmem:[%s1275_s9 + $0x50] ss:$8 sps:$4 sm:$0xff]   ;;  %v1043_v40 = vld [vmem:[%s1275_s9 + $0x44] ss:$8 sps:$4 sm:$0xff]  }
  0x40   : > { %652 = vmatpush1.bf16.msra.mxu0 %v1036_v35  ;;  %978 = vmatpush1.bf16.msra.mxu1 %v1036_v35  ;;  %v1045_v41 = vld [vmem:[%s1275_s9 + $0x40] ss:$8 sps:$4 sm:$0xff]   ;;  %v1046_v42 = vld [vmem:[%s1275_s9 + $0x34] ss:$8 sps:$4 sm:$0xff]   ;;  %v1048_v43 = vld [vmem:[%s1275_s9 + $0x30] ss:$8 sps:$4 sm:$0xff]  }
  0x41   : > { %653 = vmatprep.subr.bf16.mxu0 %v1037_v36  ;;  %963 = vmatprep.subr.bf16.mxu1 %v1037_v36  ;;  %v1049_v44 = vld [vmem:[%s1275_s9 + $0x24] ss:$8 sps:$4 sm:$0xff]   ;;  %v1051_v45 = vld [vmem:[%s1275_s9 + $0x20] ss:$8 sps:$4 sm:$0xff]   ;;  %v1052_v46 = vld [vmem:[%s1275_s9 + $0x14] ss:$8 sps:$4 sm:$0xff]  }
  0x42   : > { %v1054_v47 = vld [vmem:[%s1275_s9 + $0x10] ss:$8 sps:$4 sm:$0xff]   ;;  %v1055_v48 = vld [vmem:[%s1275_s9 + $0x4] ss:$8 sps:$4 sm:$0xff]   ;;  %v1057_v49 = vld [vmem:[%s1275_s9] ss:$8 sps:$4 sm:$0xff]  }
  0x43   : > { %v1058_v50 = vld [vmem:[%s1275_s9 + $0xf4] ss:$8 sps:$4 sm:$0xff]   ;;  %v1060_v51 = vld [vmem:[%s1275_s9 + $0xf0] ss:$8 sps:$4 sm:$0xff]   ;;  %v1061_v52 = vld [vmem:[%s1275_s9 + $0xe4] ss:$8 sps:$4 sm:$0xff]  }
  0x44   : > { %654 = vmatpush1.bf16.msra.mxu0 %v1039_v37  ;;  %979 = vmatpush1.bf16.msra.mxu1 %v1039_v37  ;;  %v1063_v53 = vld [vmem:[%s1275_s9 + $0xe0] ss:$8 sps:$4 sm:$0xff]   ;;  %v1064_v54 = vld [vmem:[%s1275_s9 + $0xd4] ss:$8 sps:$4 sm:$0xff]   ;;  %v1066_v55 = vld [vmem:[%s1275_s9 + $0xd0] ss:$8 sps:$4 sm:$0xff]  }
  0x45   : > { %655 = vmatprep.subr.bf16.mxu0 %v1040_v38  ;;  %964 = vmatprep.subr.bf16.mxu1 %v1040_v38  ;;  %v1067_v56 = vld [vmem:[%s1275_s9 + $0xc4] ss:$8 sps:$4 sm:$0xff]   ;;  %v1069_v57 = vld [vmem:[%s1275_s9 + $0xc0] ss:$8 sps:$4 sm:$0xff]   ;;  %v1070_v58 = vld [vmem:[%s1275_s9 + $0xb4] ss:$8 sps:$4 sm:$0xff]  }
  0x46   : > { %v1072_v59 = vld [vmem:[%s1275_s9 + $0xb0] ss:$8 sps:$4 sm:$0xff]   ;;  %v1073_v60 = vld [vmem:[%s1275_s9 + $0xa4] ss:$8 sps:$4 sm:$0xff]   ;;  %v1075_v61 = vld [vmem:[%s1275_s9 + $0xa0] ss:$8 sps:$4 sm:$0xff]  }
  0x47   : > { %v1076_v62 = vld [vmem:[%s1275_s9 + $0x94] ss:$8 sps:$4 sm:$0xff]   ;;  %v1078_v63 = vld [vmem:[%s1275_s9 + $0x90] ss:$8 sps:$4 sm:$0xff]   ;;  %v1079_v0 = vld [vmem:[%s1275_s9 + $0x84] ss:$8 sps:$4 sm:$0xff]  }
  0x48   : > { %656 = vmatpush1.bf16.msra.mxu0 %v1042_v39  ;;  %980 = vmatpush1.bf16.msra.mxu1 %v1042_v39  ;;  %v1081_v1 = vld [vmem:[%s1275_s9 + $0x80] ss:$8 sps:$4 sm:$0xff]   ;;  %v1085_v3 = vld [vmem:[%s1360_s0 + $0x10] ss:$8 sps:$4 sm:$0xff]   ;;  %s1372_s20 = smov (!%p409_p11, %s918_s20), 7  ;;  %v734_v5 = vshrl.u32 %v733_v4, 7 }
  0x49   : > { %657 = vmatprep.subr.bf16.mxu0 %v1043_v40  ;;  %965 = vmatprep.subr.bf16.mxu1 %v1043_v40  ;;  %v1082_v2 = vld [vmem:[%s1360_s0] ss:$8 sps:$4 sm:$0xff]   ;;  %s411_s25 = scalar_lea.vmem %s1362_s2, %s1372_s20  ;;  %s961_s12 = sshll.u32 (%p1183_p6), %s1118_s14, 4 }
  0x4a   : > { %v735_v6 = vsub.s32 0, %v734_v5  ;;  %v731_v7 = vld [vmem:[%s411_s25] sm:$0x3]  ;;  %v739_v8 = vsub.s32 1, %v734_v5  ;;  %s771_s30 = scalar_lea.vmem (%p1183_p6), %s1363_s3, %s961_s12 }
  0x4c   : > { %658 = vmatpush1.bf16.msra.mxu0 %v1045_v41  ;;  %981 = vmatpush1.bf16.msra.mxu1 %v1045_v41  ;;  %v736_v9 = vrot.slane %v731_v7, %v735_v6  ;;  %v740_v10 = vrot.slane %v731_v7, %v739_v8 }
  0x4d   : > { %659 = vmatprep.subr.bf16.mxu0 %v1046_v42  ;;  %966 = vmatprep.subr.bf16.mxu1 %v1046_v42 }
  0x50   : > { %660 = vmatpush1.bf16.msra.mxu0 %v1048_v43  ;;  %982 = vmatpush1.bf16.msra.mxu1 %v1048_v43 }
  0x51   : > { %661 = vmatprep.subr.bf16.mxu0 %v1049_v44  ;;  %967 = vmatprep.subr.bf16.mxu1 %v1049_v44 }
  0x54   : > { %662 = vmatpush1.bf16.msra.mxu0 %v1051_v45  ;;  %983 = vmatpush1.bf16.msra.mxu1 %v1051_v45 }
  0x55   : > { %663 = vmatprep.subr.bf16.mxu0 %v1052_v46  ;;  %968 = vmatprep.subr.bf16.mxu1 %v1052_v46 }
  0x58   : > { %664 = vmatpush1.bf16.msra.mxu0 %v1054_v47  ;;  %984 = vmatpush1.bf16.msra.mxu1 %v1054_v47 }
  0x59   : > { %665 = vmatprep.subr.bf16.mxu0 %v1055_v48  ;;  %969 = vmatprep.subr.bf16.mxu1 %v1055_v48 }
  0x5c   : > { %666 = vmatpush1.bf16.msra.mxu0 %v1057_v49  ;;  %985 = vmatpush1.bf16.msra.mxu1 %v1057_v49 }
  0x5d   : > { %667 = vmatprep.subr.bf16.mxu0 %v1058_v50  ;;  %970 = vmatprep.subr.bf16.mxu1 %v1058_v50 }
  0x60   : > { %668 = vmatpush2.bf16.msra.mxu0 %v1060_v51  ;;  %986 = vmatpush2.bf16.msra.mxu1 %v1060_v51 }
  0x61   : > { %669 = vmatprep.subr.bf16.mxu0 %v1061_v52  ;;  %971 = vmatprep.subr.bf16.mxu1 %v1061_v52 }
  0x64   : > { %670 = vmatpush2.bf16.msra.mxu0 %v1063_v53  ;;  %987 = vmatpush2.bf16.msra.mxu1 %v1063_v53 }
  0x65   : > { %671 = vmatprep.subr.bf16.mxu0 %v1064_v54  ;;  %972 = vmatprep.subr.bf16.mxu1 %v1064_v54 }
  0x68   : > { %672 = vmatpush2.bf16.msra.mxu0 %v1066_v55  ;;  %988 = vmatpush2.bf16.msra.mxu1 %v1066_v55 }
  0x69   : > { %673 = vmatprep.subr.bf16.mxu0 %v1067_v56  ;;  %973 = vmatprep.subr.bf16.mxu1 %v1067_v56 }
  0x6c   : > { %674 = vmatpush2.bf16.msra.mxu0 %v1069_v57  ;;  %989 = vmatpush2.bf16.msra.mxu1 %v1069_v57 }
  0x6d   : > { %675 = vmatprep.subr.bf16.mxu0 %v1070_v58  ;;  %974 = vmatprep.subr.bf16.mxu1 %v1070_v58 }
  0x70   : > { %676 = vmatpush2.bf16.msra.mxu0 %v1072_v59  ;;  %990 = vmatpush2.bf16.msra.mxu1 %v1072_v59 }
  0x71   : > { %677 = vmatprep.subr.bf16.mxu0 %v1073_v60  ;;  %975 = vmatprep.subr.bf16.mxu1 %v1073_v60 }
  0x74   : > { %678 = vmatpush2.bf16.msra.mxu0 %v1075_v61  ;;  %991 = vmatpush2.bf16.msra.mxu1 %v1075_v61 }
  0x75   : > { %679 = vmatprep.subr.bf16.mxu0 %v1076_v62  ;;  %976 = vmatprep.subr.bf16.mxu1 %v1076_v62 }
  0x78   : > { %680 = vmatpush2.bf16.msra.mxu0 %v1078_v63  ;;  %992 = vmatpush2.bf16.msra.mxu1 %v1078_v63 }
  0x79   : > { %681 = vmatprep.subr.bf16.mxu0 %v1079_v0  ;;  %977 = vmatprep.subr.bf16.mxu1 %v1079_v0 }
  0x7c   : > { %682 = vmatpush2.bf16.msra.mxu0 %v1081_v1  ;;  %993 = vmatpush2.bf16.msra.mxu1 %v1081_v1 }
  0x7f   : > { %684 = vmatmul.mubr.bf16.vlgmr.msra.gmra.mxu0 %v1082_v2  ;;  %694 = vmatmul.mubr.bf16.vlgmr.msra.gmra.mxu1 %v1085_v3 }
 0x13f   : > { %v685_v11 = vpop.f32.mrf.mxu0  ;;  %v695_v12 = vpop.f32.mrf.mxu1 }
 0x140   : > { %v743_v13 = vadd.f32 %v736_v9, %v685_v11  ;;  %v747_v14 = vadd.f32 %v736_v9, %v695_v12 }
 0x141   : > { %v687_v15 = vpop.f32.mrf.mxu0  ;;  %v697_v16 = vpop.f32.mrf.mxu1 }
 0x142   : > { %751 = vst [vmem:[%s1321_s27] sm:$0xff] %v743_v13  ;;  %755 = vst [vmem:[%s1321_s27 + $0x20] sm:$0xff] %v747_v14  ;;  %v744_v17 = vadd.f32 %v740_v10, %v687_v15  ;;  %v748_v18 = vadd.f32 %v740_v10, %v697_v16 }
 0x143   : > { %v689_v19 = vpop.f32.mrf.mxu0  ;;  %v699_v20 = vpop.f32.mrf.mxu1 }
 0x144   : > { %752 = vst [vmem:[%s1321_s27 + $0x8] sm:$0xff] %v744_v17  ;;  %756 = vst [vmem:[%s1321_s27 + $0x28] sm:$0xff] %v748_v18  ;;  %v745_v21 = vadd.f32 %v736_v9, %v689_v19  ;;  %v749_v22 = vadd.f32 %v736_v9, %v699_v20  ;;  %765 = sbr.rel (!%p1183_p6) target bundleno = 338 (0x152), region = 82 }
 0x145   : > { %v691_v23 = vpop.f32.mrf.mxu0  ;;  %v701_v24 = vpop.f32.mrf.mxu1 }
 0x146   : > { %753 = vst [vmem:[%s1321_s27 + $0x10] sm:$0xff] %v745_v21  ;;  %757 = vst [vmem:[%s1321_s27 + $0x30] sm:$0xff] %v749_v22  ;;  %v746_v25 = vadd.f32 %v740_v10, %v691_v23  ;;  %v750_v26 = vadd.f32 %v740_v10, %v701_v24 }
 0x148   : > { %754 = vst [vmem:[%s1321_s27 + $0x18] sm:$0xff] %v746_v25  ;;  %758 = vst [vmem:[%s1321_s27 + $0x38] sm:$0xff] %v750_v26 }
 0x149   : > { %v784_v27 = vld [vmem:[%s1321_s27] sm:$0xff] }
 0x14a   : > { %v792_v31 = vld [vmem:[%s1321_s27 + $0x20] sm:$0xff]  ;;  %785 = vst [vmem:[%s771_s30] sm:$0xff] %v784_v27 }
 0x14b   : > { %v786_v28 = vld [vmem:[%s1321_s27 + $0x8] sm:$0xff]  ;;  %793 = vst [vmem:[%s771_s30 + $0x80] sm:$0xff] %v792_v31 }
 0x14c   : > { %v794_v32 = vld [vmem:[%s1321_s27 + $0x28] sm:$0xff]  ;;  %787 = vst [vmem:[%s771_s30 + $0x8] sm:$0xff] %v786_v28 }
 0x14d   : > { %v788_v29 = vld [vmem:[%s1321_s27 + $0x10] sm:$0xff]  ;;  %795 = vst [vmem:[%s771_s30 + $0x88] sm:$0xff] %v794_v32 }
 0x14e   : > { %789 = vst [vmem:[%s771_s30 + $0x40] sm:$0xff] %v788_v29  ;;  %v796_v33 = vld [vmem:[%s1321_s27 + $0x30] sm:$0xff] }
 0x14f   : > { %v790_v30 = vld [vmem:[%s1321_s27 + $0x18] sm:$0xff]  ;;  %797 = vst [vmem:[%s771_s30 + $0xc0] sm:$0xff] %v796_v33 }
 0x150   : > { %791 = vst [vmem:[%s771_s30 + $0x48] sm:$0xff] %v790_v30  ;;  %v798_v34 = vld [vmem:[%s1321_s27 + $0x38] sm:$0xff] }
 0x151   : > { %799 = vst [vmem:[%s771_s30 + $0xc8] sm:$0xff] %v798_v34 }
 0x152 PF: > { %s13_s16 = sadd.s32 1, %s1126_s16   ;;  %s1365_s12 = smov %s1114_s13 }
 0x153   : > { %p10_p12 = scmp.ge.s32.totalorder %s13_s16, 6   ;;  %s1366_s13 = smov %s1188_s22 }
 0x154   : > { %s1367_s14 = smov %s1122_s15  ;;  %s1368_s15 = smov %s1370_s17 }
 0x155   :  { %12 = sbr.rel (!%p10_p12) target bundleno = 3 (0x3), region = 142 }

// kernel: generator_forward.38
= control target key start
LH: loop header
LB: loop body
LE: loop exit
PB: predicated region body
PF: predicated region fallthrough
CT: control target
= control target key end

     0   :  { %s510_s6 = smov 0   ;;  %s512_s7 = smov 0   ;;  %s610_s0 = inlined_call_operand.vmem [shape: f32[2,16,1024], index: 0, kind: input, shape index: {}]   ;;  %s611_s1 = inlined_call_operand.vmem [shape: f32[2,16,1024], index: 1, kind: output, shape index: {}]  }
   0x1   :  { %s514_s8 = smov 0   ;;  %s516_s9 = smov 0  }
   0x2   :  { %s518_s10 = smov 0   ;;  %s520_s11 = smov 0  }
   0x3   :  { %s522_s12 = smov 0  }
   0x4 LB: > { %s20_s13 = sadd.s32 1, %s490_s10  ;;  %s23_s14 = sadd.s32 1, %s494_s11  ;;  %s498_s12 = sphi %s522_s12, %s11_s12   ;;  %s494_s11 = sphi %s520_s11, %s618_s11   ;;  %s490_s10 = sphi %s518_s10, %s617_s10   ;;  %s486_s9 = sphi %s516_s9, %s616_s9   ;;  %s482_s8 = sphi %s514_s8, %s615_s8   ;;  %s478_s7 = sphi %s512_s7, %s614_s7   ;;  %s474_s6 = sphi %s510_s6, %s613_s6  }
   0x5   : > { %p21_p0 = scmp.ge.s32.totalorder %s20_s13, 4  ;;  %s359_s15 = sadd.s32 4294967295, %s498_s12  }
   0x6   : > { %p39_p1 = scmp.ne.s32.totalorder %s478_s7, %s474_s6  ;;  %p40_p2 = scmp.eq.s32.totalorder %s498_s12, 0 }
   0x7   : > { %s620_s13 = smov (%p21_p0, %s20_s13), 0  ;;  %s622_s14 = smov (!%p21_p0, %s23_s14), %s494_s11 }
   0x8   : > { %p25_p3 = scmp.ge.s32.totalorder %s622_s14, 2  ;;  %p71_p4 = scmp.eq.s32.totalorder %s359_s15, 7 }
   0x9   : > { %s28_s16 = ssub.s32 %s490_s10, %s620_s13  ;;  %p41_p5 = por %p40_p2, %p39_p1 }
   0xa   : > { %s624_s14 = smov (%p25_p3, %s622_s14), 0  ;;  %p558_p6 = por %p71_p4, %p39_p1 }
   0xb   : > { %s27_s18 = ssub.s32 %s494_s11, %s624_s14  ;;  %s32_s20 = sadd.s32 1, %s478_s7 }
   0xc   : > { %s29_s19 = sor.u32 %s28_s16, %s27_s18  ;;  %p362_p8 = scmp.ge.s32.totalorder %s498_s12, 8 }
   0xd   : > { %p30_p7 = scmp.eq.s32.totalorder %s29_s19, 0 }
   0xe   : > { %93 = sbr.rel (%p362_p8) target bundleno = 28 (0x1c), region = 16 }
   0xf   : > { %s566_s21 = scalar_select %p30_p7, %s478_s7, %s32_s20  }
  0x13   : > { %96 = sbr.rel (!%p41_p5) target bundleno = 28 (0x1c), region = 20  ;;  %s98_s22 = sand.u32 (%p41_p5), 1, %s478_s7  }
  0x14   : > { %s364_s23 = sshll.u32 (%p41_p5), %s490_s10, 1  ;;  %s363_s24 = sshll.u32 (%p41_p5), %s98_s22, 5 }
  0x15   : > { %s365_s25 = sshll.u32 (%p41_p5), %s494_s11, 4  ;;  %s100_s2 = scalar_lea.vmem (%p41_p5), [#allocation2], %s363_s24 }
  0x16   : > { %s103_s26 = sadd.s32 (%p41_p5), %s365_s25, %s364_s23 }
  0x17   : > { %s366_s27 = sshll.u32 (%p41_p5), %s103_s26, 3 }
  0x18   : > { %s105_s30 = scalar_lea.vmem %s610_s0, %s366_s27 }
  0x19   : > { %v118_v0 = vld [vmem:[%s105_s30] sm:$0xff]  ;;  %v120_v1 = vld [vmem:[%s105_s30 + $0x8] sm:$0xff] }
  0x1a   : > { %v122_v2 = vld [vmem:[%s105_s30 + $0x40] sm:$0xff]  ;;  %119 = vst [vmem:[%s100_s2] sm:$0xff] %v118_v0  ;;  %121 = vst [vmem:[%s100_s2 + $0x8] sm:$0xff] %v120_v1  ;;  %v124_v3 = vld [vmem:[%s105_s30 + $0x48] sm:$0xff] }
  0x1b   : > { %123 = vst [vmem:[%s100_s2 + $0x10] sm:$0xff] %v122_v2  ;;  %125 = vst [vmem:[%s100_s2 + $0x18] sm:$0xff] %v124_v3 }
  0x1c PF: > { %p367_p9 = scmp.ge.s32.totalorder %s498_s12, 1  ;;  %p130_p10 = scmp.lt.s32.totalorder %s498_s12, 9 }
  0x1e   : > { %p131_p11 = pnand %p367_p9, %p130_p10 }
  0x1f   : > { %s137_s3 = sand.u32 (!%p131_p11), 1, %s474_s6  }
  0x20   : > { %134 = sbr.rel (%p131_p11) target bundleno = 132 (0x84), region = 43  ;;  %s578_s4 = sshll.u32 (!%p131_p11), %s137_s3, 5 }
  0x21   : > { %s139_s5 = scalar_lea.vmem (!%p131_p11), [#allocation2], %s578_s4  ;;  %s154_s6 = scalar_lea.vmem (!%p131_p11), [#allocation3], %s578_s4 }
  0x25   : > { %v157_v4 = vld [vmem:[%s139_s5] sm:$0xff]  ;;  %v158_v5 = vld [vmem:[%s139_s5 + $0x8] sm:$0xff]  ;;  %v159_v6 = vld [vmem:[%s139_s5 + $0x10] sm:$0xff]  ;;  %s371_s15 = sshll.u32 (%p558_p6), %s482_s8, 1  ;;  %s372_s16 = sshll.u32 (%p558_p6), %s486_s9, 4 }
  0x26   : > { %v160_v7 = vld [vmem:[%s139_s5 + $0x18] sm:$0xff]  ;;  %v161_v8 = vadd.f32 %v159_v6, %v157_v4  ;;  %s259_s18 = sadd.s32 (%p558_p6), %s372_s16, %s371_s15 }
  0x27   : > { %v168_v9 = vadd.f32 %v160_v7, %v158_v5  ;;  %s373_s19 = sshll.u32 (%p558_p6), %s259_s18, 3 }
  0x28   : > { %v162_v10 = vrot.slane %v161_v8, 4  ;;  %s261_s23 = scalar_lea.vmem (%p558_p6), %s611_s1, %s373_s19 }
  0x29   : > { %v169_v11 = vrot.slane %v168_v9, 4 }
  0x2a   : > { %v163_v12 = vadd.f32 %v162_v10, %v161_v8 }
  0x2b   : > { %v170_v13 = vadd.f32 %v169_v11, %v168_v9 }
  0x2c   : > { %v164_v14 = vrot.slane %v163_v12, 2 }
  0x2d   : > { %v171_v15 = vrot.slane %v170_v13, 2 }
  0x2e   : > { %v165_v16 = vadd.f32 %v164_v14, %v163_v12 }
  0x2f   : > { %v172_v17 = vadd.f32 %v171_v15, %v170_v13 }
  0x30   : > { %v166_v18 = vrot.slane %v165_v16, 1 }
  0x31   : > { %v173_v19 = vrot.slane %v172_v17, 1 }
  0x32   : > { %v167_v20 = vadd.f32 %v166_v18, %v165_v16 }
  0x33   : > { %v174_v21 = vadd.f32 %v173_v19, %v172_v17 }
  0x34   : > { %v176_v22 = vmul.f32 0.0625, %v167_v20 }
  0x35   : > { %v177_v23 = vmul.f32 0.0625, %v174_v21 }
  0x36   : > { %v178_v24 = vsub.f32 %v157_v4, %v176_v22  ;;  %v180_v25 = vsub.f32 %v159_v6, %v176_v22 }
  0x37   : > { %v179_v26 = vsub.f32 %v158_v5, %v177_v23  ;;  %v181_v27 = vsub.f32 %v160_v7, %v177_v23 }
  0x38   : > { %v182_v28 = vmul.f32 %v178_v24, %v178_v24  ;;  %v184_v29 = vmul.f32 %v180_v25, %v180_v25 }
  0x39   : > { %v183_v30 = vmul.f32 %v179_v26, %v179_v26  ;;  %v185_v31 = vmul.f32 %v181_v27, %v181_v27 }
  0x3a   : > { %v186_v32 = vadd.f32 %v184_v29, %v182_v28 }
  0x3b   : > { %v193_v33 = vadd.f32 %v185_v31, %v183_v30 }
  0x3c   : > { %v187_v34 = vrot.slane %v186_v32, 4 }
  0x3d   : > { %v194_v35 = vrot.slane %v193_v33, 4 }
  0x3e   : > { %v188_v36 = vadd.f32 %v187_v34, %v186_v32 }
  0x3f   : > { %v195_v37 = vadd.f32 %v194_v35, %v193_v33 }
  0x40   : > { %v189_v38 = vrot.slane %v188_v36, 2 }
  0x41   : > { %v196_v39 = vrot.slane %v195_v37, 2 }
  0x42   : > { %v190_v40 = vadd.f32 %v189_v38, %v188_v36 }
  0x43   : > { %v197_v41 = vadd.f32 %v196_v39, %v195_v37 }
  0x44   : > { %v191_v42 = vrot.slane %v190_v40, 1 }
  0x45   : > { %v198_v43 = vrot.slane %v197_v41, 1 }
  0x46   : > { %v192_v44 = vadd.f32 %v191_v42, %v190_v40 }
  0x47   : > { %v199_v45 = vadd.f32 %v198_v43, %v197_v41 }
  0x48   : > { %v200_v46 = vmul.f32 0.0625, %v192_v44 }
  0x49   : > { %v201_v47 = vmul.f32 0.0625, %v199_v45 }
  0x4a   : > { %v202_v48 = vadd.f32 1e-05, %v200_v46 }
  0x4b   : > { %v203_v49 = vadd.f32 1e-05, %v201_v47 }
  0x4c   : > { %432 = vrsqrt.f32 %v202_v48 }
  0x4d   : > { %434 = vrsqrt.f32 %v203_v49 }
  0x59   : > { %v433_v50 = vpop.eup %432 }
  0x5a   : > { %v435_v51 = vpop.eup %434  ;;  %v206_v52 = vmul.f32 %v433_v50, %v178_v24  ;;  %v208_v53 = vmul.f32 %v433_v50, %v180_v25 }
  0x5b   : > { %v207_v54 = vmul.f32 %v435_v51, %v179_v26  ;;  %v209_v55 = vmul.f32 %v435_v51, %v181_v27 }
  0x5c   : > { %v214_v56 = vmul.f32 0.044715, %v206_v52  ;;  %v216_v57 = vmul.f32 0.044715, %v208_v53  ;;  %v210_v12 = vmul.f32 0.5, %v206_v52  ;;  %v212_v17 = vmul.f32 0.5, %v208_v53 }
  0x5d   : > { %v215_v58 = vmul.f32 0.044715, %v207_v54  ;;  %v217_v59 = vmul.f32 0.044715, %v209_v55  ;;  %v211_v14 = vmul.f32 0.5, %v207_v54  ;;  %v213_v20 = vmul.f32 0.5, %v209_v55 }
  0x5e   : > { %v218_v60 = vmul.f32 %v214_v56, %v206_v52  ;;  %v220_v61 = vmul.f32 %v216_v57, %v208_v53 }
  0x5f   : > { %v219_v62 = vmul.f32 %v215_v58, %v207_v54  ;;  %v221_v63 = vmul.f32 %v217_v59, %v209_v55 }
  0x60   : > { %v222_v0 = vmul.f32 %v218_v60, %v206_v52  ;;  %v224_v1 = vmul.f32 %v220_v61, %v208_v53 }
  0x61   : > { %v223_v2 = vmul.f32 %v219_v62, %v207_v54  ;;  %v225_v3 = vmul.f32 %v221_v63, %v209_v55 }
  0x62   : > { %v226_v4 = vadd.f32 %v222_v0, %v206_v52  ;;  %v228_v5 = vadd.f32 %v224_v1, %v208_v53 }
  0x63   : > { %v227_v6 = vadd.f32 %v223_v2, %v207_v54  ;;  %v229_v7 = vadd.f32 %v225_v3, %v209_v55 }
  0x64   : > { %v230_v8 = vmul.f32 0.7978846, %v226_v4  ;;  %v232_v9 = vmul.f32 0.7978846, %v228_v5 }
  0x65   : > { %v231_v10 = vmul.f32 0.7978846, %v227_v6  ;;  %v233_v11 = vmul.f32 0.7978846, %v229_v7 }
  0x66   : > { %436 = vtanh.f32 %v230_v8 }
  0x67   : > { %438 = vtanh.f32 %v231_v10 }
  0x68   : > { %440 = vtanh.f32 %v232_v9 }
  0x69   : > { %442 = vtanh.f32 %v233_v11 }
  0x73   : > { %v437_v13 = vpop.eup %436 }
  0x74   : > { %v439_v15 = vpop.eup %438  ;;  %v238_v16 = vadd.f32 1.0, %v437_v13 }
  0x75   : > { %v441_v18 = vpop.eup %440  ;;  %v239_v19 = vadd.f32 1.0, %v439_v15 }
  0x76   : > { %v443_v21 = vpop.eup %442  ;;  %v242_v22 = vmul.f32 %v238_v16, %v210_v12  ;;  %v240_v23 = vadd.f32 1.0, %v441_v18 }
  0x77   : > { %v243_v24 = vmul.f32 %v239_v19, %v211_v14  ;;  %v241_v25 = vadd.f32 1.0, %v443_v21  ;;  %256 = sbr.rel (!%p558_p6) target bundleno = 132 (0x84), region = 51 }
  0x78   : > { %246 = vst [vmem:[%s154_s6] sm:$0xff] %v242_v22  ;;  %v244_v26 = vmul.f32 %v240_v23, %v212_v17 }
  0x79   : > { %247 = vst [vmem:[%s154_s6 + $0x8] sm:$0xff] %v243_v24  ;;  %v245_v27 = vmul.f32 %v241_v25, %v213_v20 }
  0x7a   : > { %248 = vst [vmem:[%s154_s6 + $0x10] sm:$0xff] %v244_v26 }
  0x7b   : > { %249 = vst [vmem:[%s154_s6 + $0x18] sm:$0xff] %v245_v27 }
  0x7f   : > { %v274_v28 = vld [vmem:[%s154_s6] sm:$0xff] }
  0x80   : > { %v276_v29 = vld [vmem:[%s154_s6 + $0x8] sm:$0xff]  ;;  %275 = vst [vmem:[%s261_s23] sm:$0xff] %v274_v28 }
  0x81   : > { %v278_v30 = vld [vmem:[%s154_s6 + $0x10] sm:$0xff]  ;;  %277 = vst [vmem:[%s261_s23 + $0x8] sm:$0xff] %v276_v29 }
  0x82   : > { %v280_v31 = vld [vmem:[%s154_s6 + $0x18] sm:$0xff]  ;;  %279 = vst [vmem:[%s261_s23 + $0x40] sm:$0xff] %v278_v30 }
  0x83   : > { %281 = vst [vmem:[%s261_s23 + $0x48] sm:$0xff] %v280_v31 }
  0x84 PF: > { %s11_s12 = sadd.s32 1, %s498_s12   ;;  %s613_s6 = smov %s478_s7 }
  0x85   : > { %p8_p12 = scmp.ge.s32.totalorder %s11_s12, 10   ;;  %s614_s7 = smov %s566_s21 }
  0x86   : > { %s615_s8 = smov %s490_s10  ;;  %s616_s9 = smov %s494_s11 }
  0x87   : > { %s617_s10 = smov %s620_s13  ;;  %s618_s11 = smov %s624_s14 }
  0x88   :  { %10 = sbr.rel (!%p8_p12) target bundleno = 4 (0x4), region = 105 }

// kernel: generator_forward.39
= control target key start
LH: loop header
LB: loop body
LE: loop exit
PB: predicated region body
PF: predicated region fallthrough
CT: control target
= control target key end

     0   :  { %s1031_s12 = smov 0   ;;  %s1033_s13 = smov 0   ;;  %s1165_s0 = inlined_call_operand.vmem [shape: bf16[32,1024], index: 0, kind: input, shape index: {}]   ;;  %s1166_s1 = inlined_call_operand.vmem [shape: bf16[1024,256], index: 1, kind: input, shape index: {}]   ;;  %s1167_s2 = inlined_call_operand.vmem [shape: f32[1,256], index: 2, kind: input, shape index: {}]   ;;  %s1168_s3 = inlined_call_operand.vmem [shape: f32[32,256], index: 3, kind: output, shape index: {}]  }
   0x1   :  { %s1035_s14 = smov 0   ;;  %s1037_s15 = smov 0  }
   0x2   :  { %s1039_s16 = smov 0  }
   0x3 LB: > { %s25_s17 = sadd.s32 1, %s1004_s15  ;;  %p48_p1 = scmp.ne.s32.totalorder %s996_s13, %s992_s12  ;;  %s1008_s16 = sphi %s1039_s16, %s13_s16   ;;  %s1004_s15 = sphi %s1037_s15, %s1172_s15   ;;  %s1000_s14 = sphi %s1035_s14, %s1171_s14   ;;  %s996_s13 = sphi %s1033_s13, %s1170_s13   ;;  %s992_s12 = sphi %s1031_s12, %s1169_s12  }
   0x4   : > { %p26_p0 = scmp.ge.s32.totalorder %s25_s17, 4  ;;  %p49_p2 = scmp.eq.s32.totalorder %s1008_s16, 0 }
   0x5   : > { %s41_s19 = sadd.s32 1, %s996_s13  ;;  %p790_p5 = scmp.ge.s32.totalorder %s1008_s16, 4 }
   0x6   : > { %s1174_s17 = smov (%p26_p0, %s25_s17), 0  ;;  %p50_p3 = por %p49_p2, %p48_p1 }
   0x7   : > { %s37_s18 = ssub.s32 %s1004_s15, %s1174_s17  ;;  %164 = sbr.rel (%p790_p5) target bundleno = 20 (0x14), region = 20 }
   0x8   : > { %p39_p4 = scmp.eq.s32.totalorder %s37_s18, 0 }
   0xa   : > { %s1066_s20 = scalar_select %p39_p4, %s996_s13, %s41_s19  }
   0xc   : > { %167 = sbr.rel (!%p50_p3) target bundleno = 20 (0x14), region = 24  ;;  %s169_s21 = sand.u32 (%p50_p3), 1, %s996_s13  }
   0xd   : > { %s841_s22 = sshll.u32 (%p50_p3), %s1004_s15, 3  ;;  %s791_s23 = sshll.u32 (%p50_p3), %s169_s21, 5 }
   0xe   : > { %s177_s26 = scalar_lea.vmem (%p50_p3), %s1165_s0, %s841_s22  ;;  %s171_s27 = scalar_lea.vmem (%p50_p3), [#allocation3], %s791_s23 }
   0xf   : > { %v212_v0 = vld [vmem:[%s177_s26] sm:$0xff] (%p50_p3) }
  0x10   : > { %v214_v1 = vld [vmem:[%s177_s26 + $0x20] sm:$0xff] (%p50_p3)  ;;  %213 = vst [vmem:[%s171_s27] sm:$0xff] (%p50_p3), %v212_v0 }
  0x11   : > { %v216_v2 = vld [vmem:[%s177_s26 + $0x40] sm:$0xff]  ;;  %215 = vst [vmem:[%s171_s27 + $0x8] sm:$0xff] %v214_v1 }
  0x12   : > { %217 = vst [vmem:[%s171_s27 + $0x10] sm:$0xff] %v216_v2  ;;  %v218_v3 = vld [vmem:[%s177_s26 + $0x60] sm:$0xff] }
  0x13   : > { %219 = vst [vmem:[%s171_s27 + $0x18] sm:$0xff] %v218_v3 }
  0x14 PF: > { %p794_p6 = scmp.ge.s32.totalorder %s1008_s16, 1  ;;  %p239_p7 = scmp.lt.s32.totalorder %s1008_s16, 5 }
  0x16   : > { %p240_p8 = pnand %p794_p6, %p239_p7 }
  0x17   : > { %s246_s28 = sand.u32 (!%p240_p8), 1, %s992_s12   ;;  %s796_s29 = sshll.u32 (!%p240_p8), %s1000_s14, 5 }
  0x18   : > { %243 = sbr.rel (%p240_p8) target bundleno = 320 (0x140), region = 66  ;;  %s795_s30 = sshll.u32 (!%p240_p8), %s246_s28, 5 }
  0x19   : > { %p292_p9 = scmp.lt.s32.totalorder (!%p240_p8), %s796_s29, 127  ;;  %s1083_s8 = scalar_lea.vmem (!%p240_p8), [#allocation3], %s795_s30 }
  0x1a   : > { %p799_p10 = scmp.ne.s32.totalorder (!%p240_p8), %s1000_s14, 0 }
  0x1d   : > { %s1176_s29 = smov (!%p292_p9, %s796_s29), 127  ;;  %322 = sbr.rel (%p799_p10) target bundleno = 39 (0x27), region = 74 }
  0x1e   : > { %s842_s4 = sshll.u32 %s1176_s29, 3 }
  0x1f   : > { %s1081_s7 = scalar_lea.vmem %s1166_s1, %s842_s4 }
  0x22   : > { %v1010_v4 = vmov 0.0  }
  0x23   : > { %323 = vst [vmem:[#allocation2 + $0x30] sm:$0xff] %v1010_v4  ;;  %324 = vst [vmem:[#allocation2] sm:$0xff] %v1010_v4 }
  0x24   : > { %325 = vst [vmem:[#allocation2 + $0x18] sm:$0xff] %v1010_v4  ;;  %326 = vst [vmem:[#allocation2 + $0x10] sm:$0xff] %v1010_v4 }
  0x25   : > { %327 = vst [vmem:[#allocation2 + $0x8] sm:$0xff] %v1010_v4  ;;  %328 = vst [vmem:[#allocation2 + $0x20] sm:$0xff] %v1010_v4 }
  0x26   : > { %329 = vst [vmem:[#allocation2 + $0x28] sm:$0xff] %v1010_v4  ;;  %330 = vst [vmem:[#allocation2 + $0x38] sm:$0xff] %v1010_v4 }
  0x27 PF: > { %v916_v5 = vld [vmem:[%s1081_s7 + $0x74] ss:$8 sps:$4 sm:$0xff]   ;;  %v918_v6 = vld [vmem:[%s1081_s7 + $0x70] ss:$8 sps:$4 sm:$0xff]   ;;  %v919_v7 = vld [vmem:[%s1081_s7 + $0x64] ss:$8 sps:$4 sm:$0xff]  }
  0x28   : > { %555 = vmatprep.subr.bf16.mxu0 %v916_v5  ;;  %843 = vmatprep.subr.bf16.mxu1 %v916_v5  ;;  %v921_v8 = vld [vmem:[%s1081_s7 + $0x60] ss:$8 sps:$4 sm:$0xff]   ;;  %v922_v9 = vld [vmem:[%s1081_s7 + $0x54] ss:$8 sps:$4 sm:$0xff]   ;;  %v924_v10 = vld [vmem:[%s1081_s7 + $0x50] ss:$8 sps:$4 sm:$0xff]  }
  0x29   : > { %556 = vmatpush1.bf16.msra.mxu0 %v918_v6  ;;  %859 = vmatpush1.bf16.msra.mxu1 %v918_v6  ;;  %v925_v11 = vld [vmem:[%s1081_s7 + $0x44] ss:$8 sps:$4 sm:$0xff]   ;;  %v927_v12 = vld [vmem:[%s1081_s7 + $0x40] ss:$8 sps:$4 sm:$0xff]   ;;  %v928_v13 = vld [vmem:[%s1081_s7 + $0x34] ss:$8 sps:$4 sm:$0xff]  }
  0x2a   : > { %557 = vmatprep.subr.bf16.mxu0 %v919_v7  ;;  %844 = vmatprep.subr.bf16.mxu1 %v919_v7  ;;  %v930_v14 = vld [vmem:[%s1081_s7 + $0x30] ss:$8 sps:$4 sm:$0xff]   ;;  %v931_v15 = vld [vmem:[%s1081_s7 + $0x24] ss:$8 sps:$4 sm:$0xff]   ;;  %v933_v16 = vld [vmem:[%s1081_s7 + $0x20] ss:$8 sps:$4 sm:$0xff]  }
  0x2b   : > { %v934_v17 = vld [vmem:[%s1081_s7 + $0x14] ss:$8 sps:$4 sm:$0xff]   ;;  %v966_v18 = vld [vmem:[%s1083_s8 + $0x4] ss:$8 sps:$4 sm:$0xff]   ;;  %v936_v19 = vld [vmem:[%s1081_s7 + $0x10] ss:$8 sps:$4 sm:$0xff]  }
  0x2c   : > { %v969_v20 = vld [vmem:[%s1083_s8 + $0x14] ss:$8 sps:$4 sm:$0xff]   ;;  %v937_v21 = vld [vmem:[%s1081_s7 + $0x4] ss:$8 sps:$4 sm:$0xff]   ;;  %587 = vmatprep.mubr.bf16.mxu0 %v966_v18  ;;  %v939_v22 = vld [vmem:[%s1081_s7] ss:$8 sps:$4 sm:$0xff]  }
  0x2d   : > { %558 = vmatpush1.bf16.msra.mxu0 %v921_v8  ;;  %860 = vmatpush1.bf16.msra.mxu1 %v921_v8  ;;  %v940_v23 = vld [vmem:[%s1081_s7 + $0xf4] ss:$8 sps:$4 sm:$0xff]   ;;  %v942_v24 = vld [vmem:[%s1081_s7 + $0xf0] ss:$8 sps:$4 sm:$0xff]   ;;  %v943_v25 = vld [vmem:[%s1081_s7 + $0xe4] ss:$8 sps:$4 sm:$0xff]  }
  0x2e   : > { %559 = vmatprep.subr.bf16.mxu0 %v922_v9  ;;  %845 = vmatprep.subr.bf16.mxu1 %v922_v9  ;;  %v945_v26 = vld [vmem:[%s1081_s7 + $0xe0] ss:$8 sps:$4 sm:$0xff]   ;;  %v946_v27 = vld [vmem:[%s1081_s7 + $0xd4] ss:$8 sps:$4 sm:$0xff]   ;;  %v948_v28 = vld [vmem:[%s1081_s7 + $0xd0] ss:$8 sps:$4 sm:$0xff]  }
  0x2f   : > { %597 = vmatprep.mubr.bf16.mxu1 %v969_v20  ;;  %v949_v29 = vld [vmem:[%s1081_s7 + $0xc4] ss:$8 sps:$4 sm:$0xff]   ;;  %v951_v30 = vld [vmem:[%s1081_s7 + $0xc0] ss:$8 sps:$4 sm:$0xff]   ;;  %v952_v31 = vld [vmem:[%s1081_s7 + $0xb4] ss:$8 sps:$4 sm:$0xff]  }
  0x30   : > { %v954_v32 = vld [vmem:[%s1081_s7 + $0xb0] ss:$8 sps:$4 sm:$0xff]   ;;  %v955_v33 = vld [vmem:[%s1081_s7 + $0xa4] ss:$8 sps:$4 sm:$0xff]   ;;  %v957_v34 = vld [vmem:[%s1081_s7 + $0xa0] ss:$8 sps:$4 sm:$0xff]  }
  0x31   : > { %560 = vmatpush1.bf16.msra.mxu0 %v924_v10  ;;  %861 = vmatpush1.bf16.msra.mxu1 %v924_v10  ;;  %v958_v35 = vld [vmem:[%s1081_s7 + $0x94] ss:$8 sps:$4 sm:$0xff]   ;;  %v960_v36 = vld [vmem:[%s1081_s7 + $0x90] ss:$8 sps:$4 sm:$0xff]   ;;  %v961_v37 = vld [vmem:[%s1081_s7 + $0x84] ss:$8 sps:$4 sm:$0xff]  }
  0x32   : > { %561 = vmatprep.subr.bf16.mxu0 %v925_v11  ;;  %846 = vmatprep.subr.bf16.mxu1 %v925_v11  ;;  %v963_v38 = vld [vmem:[%s1081_s7 + $0x80] ss:$8 sps:$4 sm:$0xff]   ;;  %v967_v40 = vld [vmem:[%s1083_s8 + $0x10] ss:$8 sps:$4 sm:$0xff]   ;;  %p836_p11 = scmp.ne.s32.totalorder %s1000_s14, 3 }
  0x33   : > { %v964_v39 = vld [vmem:[%s1083_s8] ss:$8 sps:$4 sm:$0xff]   ;;  %v331_v41 = vld [vmem:[#allocation2 + $0x30] sm:$0xff]  ;;  %v333_v51 = vld [vmem:[#allocation2 + $0x18] sm:$0xff] }
  0x34   : > { %v335_v42 = vld [vmem:[#allocation2 + $0x8] sm:$0xff]  ;;  %v332_v45 = vld [vmem:[#allocation2] sm:$0xff]  ;;  %v334_v57 = vld [vmem:[#allocation2 + $0x10] sm:$0xff] }
  0x35   : > { %562 = vmatpush1.bf16.msra.mxu0 %v927_v12  ;;  %862 = vmatpush1.bf16.msra.mxu1 %v927_v12  ;;  %v336_v46 = vld [vmem:[#allocation2 + $0x20] sm:$0xff]  ;;  %v337_v52 = vld [vmem:[#allocation2 + $0x28] sm:$0xff]  ;;  %v338_v58 = vld [vmem:[#allocation2 + $0x38] sm:$0xff] }
  0x36   : > { %563 = vmatprep.subr.bf16.mxu0 %v928_v13  ;;  %847 = vmatprep.subr.bf16.mxu1 %v928_v13 }
  0x39   : > { %564 = vmatpush1.bf16.msra.mxu0 %v930_v14  ;;  %863 = vmatpush1.bf16.msra.mxu1 %v930_v14 }
  0x3a   : > { %565 = vmatprep.subr.bf16.mxu0 %v931_v15  ;;  %848 = vmatprep.subr.bf16.mxu1 %v931_v15 }
  0x3d   : > { %566 = vmatpush1.bf16.msra.mxu0 %v933_v16  ;;  %864 = vmatpush1.bf16.msra.mxu1 %v933_v16 }
  0x3e   : > { %567 = vmatprep.subr.bf16.mxu0 %v934_v17  ;;  %849 = vmatprep.subr.bf16.mxu1 %v934_v17 }
  0x41   : > { %568 = vmatpush1.bf16.msra.mxu0 %v936_v19  ;;  %865 = vmatpush1.bf16.msra.mxu1 %v936_v19 }
  0x42   : > { %569 = vmatprep.subr.bf16.mxu0 %v937_v21  ;;  %850 = vmatprep.subr.bf16.mxu1 %v937_v21 }
  0x45   : > { %570 = vmatpush1.bf16.msra.mxu0 %v939_v22  ;;  %866 = vmatpush1.bf16.msra.mxu1 %v939_v22 }
  0x46   : > { %571 = vmatprep.subr.bf16.mxu0 %v940_v23  ;;  %851 = vmatprep.subr.bf16.mxu1 %v940_v23 }
  0x49   : > { %572 = vmatpush2.bf16.msra.mxu0 %v942_v24  ;;  %867 = vmatpush2.bf16.msra.mxu1 %v942_v24 }
  0x4a   : > { %573 = vmatprep.subr.bf16.mxu0 %v943_v25  ;;  %852 = vmatprep.subr.bf16.mxu1 %v943_v25 }
  0x4d   : > { %574 = vmatpush2.bf16.msra.mxu0 %v945_v26  ;;  %868 = vmatpush2.bf16.msra.mxu1 %v945_v26 }
  0x4e   : > { %575 = vmatprep.subr.bf16.mxu0 %v946_v27  ;;  %853 = vmatprep.subr.bf16.mxu1 %v946_v27 }
  0x51   : > { %576 = vmatpush2.bf16.msra.mxu0 %v948_v28  ;;  %869 = vmatpush2.bf16.msra.mxu1 %v948_v28 }
  0x52   : > { %577 = vmatprep.subr.bf16.mxu0 %v949_v29  ;;  %854 = vmatprep.subr.bf16.mxu1 %v949_v29 }
  0x55   : > { %578 = vmatpush2.bf16.msra.mxu0 %v951_v30  ;;  %870 = vmatpush2.bf16.msra.mxu1 %v951_v30 }
  0x56   : > { %579 = vmatprep.subr.bf16.mxu0 %v952_v31  ;;  %855 = vmatprep.subr.bf16.mxu1 %v952_v31 }
  0x59   : > { %580 = vmatpush2.bf16.msra.mxu0 %v954_v32  ;;  %871 = vmatpush2.bf16.msra.mxu1 %v954_v32 }
  0x5a   : > { %581 = vmatprep.subr.bf16.mxu0 %v955_v33  ;;  %856 = vmatprep.subr.bf16.mxu1 %v955_v33 }
  0x5d   : > { %582 = vmatpush2.bf16.msra.mxu0 %v957_v34  ;;  %872 = vmatpush2.bf16.msra.mxu1 %v957_v34 }
  0x5e   : > { %583 = vmatprep.subr.bf16.mxu0 %v958_v35  ;;  %857 = vmatprep.subr.bf16.mxu1 %v958_v35 }
  0x61   : > { %584 = vmatpush2.bf16.msra.mxu0 %v960_v36  ;;  %873 = vmatpush2.bf16.msra.mxu1 %v960_v36 }
  0x62   : > { %585 = vmatprep.subr.bf16.mxu0 %v961_v37  ;;  %858 = vmatprep.subr.bf16.mxu1 %v961_v37 }
  0x65   : > { %586 = vmatpush2.bf16.msra.mxu0 %v963_v38  ;;  %874 = vmatpush2.bf16.msra.mxu1 %v963_v38 }
  0x68   : > { %588 = vmatmul.mubr.bf16.vlgmr.msra.gmra.mxu0 %v964_v39  ;;  %598 = vmatmul.mubr.bf16.vlgmr.msra.gmra.mxu1 %v967_v40 }
 0x128   : > { %v589_v43 = vpop.f32.mrf.mxu0  ;;  %v599_v44 = vpop.f32.mrf.mxu1 }
 0x129   : > { %v608_v47 = vadd.f32 %v589_v43, %v331_v41  ;;  %v612_v48 = vadd.f32 %v599_v44, %v335_v42 }
 0x12a   : > { %v591_v49 = vpop.f32.mrf.mxu0  ;;  %v601_v50 = vpop.f32.mrf.mxu1 }
 0x12b   : > { %616 = vst [vmem:[#allocation2 + $0x30] sm:$0xff] %v608_v47  ;;  %620 = vst [vmem:[#allocation2 + $0x8] sm:$0xff] %v612_v48  ;;  %v609_v53 = vadd.f32 %v591_v49, %v332_v45  ;;  %v613_v54 = vadd.f32 %v601_v50, %v336_v46 }
 0x12c   : > { %v593_v55 = vpop.f32.mrf.mxu0  ;;  %v603_v56 = vpop.f32.mrf.mxu1 }
 0x12d   : > { %617 = vst [vmem:[#allocation2] sm:$0xff] %v609_v53  ;;  %621 = vst [vmem:[#allocation2 + $0x20] sm:$0xff] %v613_v54  ;;  %v610_v59 = vadd.f32 %v593_v55, %v333_v51  ;;  %v614_v60 = vadd.f32 %v603_v56, %v337_v52  ;;  %627 = sbr.rel (%p836_p11) target bundleno = 320 (0x140), region = 78 }
 0x12e   : > { %v595_v61 = vpop.f32.mrf.mxu0  ;;  %v605_v62 = vpop.f32.mrf.mxu1 }
 0x12f   : > { %618 = vst [vmem:[#allocation2 + $0x18] sm:$0xff] %v610_v59  ;;  %622 = vst [vmem:[#allocation2 + $0x28] sm:$0xff] %v614_v60  ;;  %v611_v63 = vadd.f32 %v595_v61, %v334_v57  ;;  %v615_v0 = vadd.f32 %v605_v62, %v338_v58 }
 0x131   : > { %619 = vst [vmem:[#allocation2 + $0x10] sm:$0xff] %v611_v63  ;;  %623 = vst [vmem:[#allocation2 + $0x38] sm:$0xff] %v615_v0 }
 0x132   : > { %v638_v1 = vlaneseq  ;;  %v636_v3 = vld [vmem:[%s1167_s2] sm:$0x3]  ;;  %v628_v4 = vld [vmem:[#allocation2 + $0x30] sm:$0xff]  ;;  %v632_v10 = vld [vmem:[#allocation2 + $0x8] sm:$0xff] }
 0x134   : > { %v639_v2 = vshrl.u32 %v638_v1, 7  ;;  %v629_v6 = vld [vmem:[#allocation2] sm:$0xff] }
 0x135   : > { %v633_v13 = vld [vmem:[#allocation2 + $0x20] sm:$0xff] }
 0x136   : > { %v640_v5 = vsub.s32 0, %v639_v2  ;;  %v644_v7 = vsub.s32 1, %v639_v2  ;;  %v630_v8 = vld [vmem:[#allocation2 + $0x18] sm:$0xff]  ;;  %v634_v14 = vld [vmem:[#allocation2 + $0x28] sm:$0xff] }
 0x138   : > { %v631_v9 = vld [vmem:[#allocation2 + $0x10] sm:$0xff]  ;;  %v641_v11 = vrot.slane %v636_v3, %v640_v5  ;;  %v645_v12 = vrot.slane %v636_v3, %v644_v7  ;;  %v635_v15 = vld [vmem:[#allocation2 + $0x38] sm:$0xff] }
 0x13a   : > { %v648_v16 = vadd.f32 %v641_v11, %v628_v4  ;;  %v649_v17 = vadd.f32 %v645_v12, %v629_v6  ;;  %v650_v18 = vadd.f32 %v641_v11, %v630_v8  ;;  %v651_v19 = vadd.f32 %v645_v12, %v631_v9 }
 0x13b   : > { %v652_v20 = vadd.f32 %v641_v11, %v632_v10  ;;  %v653_v21 = vadd.f32 %v645_v12, %v633_v13  ;;  %v654_v22 = vadd.f32 %v641_v11, %v634_v14  ;;  %v655_v23 = vadd.f32 %v645_v12, %v635_v15 }
 0x13c   : > { %656 = vst [vmem:[%s1168_s3] sm:$0xff] %v648_v16  ;;  %657 = vst [vmem:[%s1168_s3 + $0x8] sm:$0xff] %v649_v17 }
 0x13d   : > { %658 = vst [vmem:[%s1168_s3 + $0x10] sm:$0xff] %v650_v18  ;;  %659 = vst [vmem:[%s1168_s3 + $0x18] sm:$0xff] %v651_v19 }
 0x13e   : > { %660 = vst [vmem:[%s1168_s3 + $0x20] sm:$0xff] %v652_v20  ;;  %661 = vst [vmem:[%s1168_s3 + $0x28] sm:$0xff] %v653_v21 }
 0x13f   : > { %662 = vst [vmem:[%s1168_s3 + $0x30] sm:$0xff] %v654_v22  ;;  %663 = vst [vmem:[%s1168_s3 + $0x38] sm:$0xff] %v655_v23 }
 0x140 PF: > { %s13_s16 = sadd.s32 1, %s1008_s16   ;;  %s1169_s12 = smov %s996_s13 }
 0x141   : > { %p10_p12 = scmp.ge.s32.totalorder %s13_s16, 6   ;;  %s1170_s13 = smov %s1066_s20 }
 0x142   : > { %s1171_s14 = smov %s1004_s15  ;;  %s1172_s15 = smov %s1174_s17 }
 0x143   :  { %12 = sbr.rel (!%p10_p12) target bundleno = 3 (0x3), region = 119 }

// kernel: generator_forward.40
= control target key start
LH: loop header
LB: loop body
LE: loop exit
PB: predicated region body
PF: predicated region fallthrough
CT: control target
= control target key end

     0   :  { %s472_s9 = smov 0   ;;  %s474_s10 = smov 0   ;;  %s513_s0 = inlined_call_operand.vmem [shape: f32[2,16,256], index: 0, kind: input, shape index: {}]   ;;  %s514_s1 = inlined_call_operand.vmem [shape: f32[2,16,256], index: 1, kind: input, shape index: {}]   ;;  %s515_s2 = inlined_call_operand.vmem [shape: f32[2,16,256], index: 2, kind: output, shape index: {}]  }
   0x1   :  { %s476_s11 = smov 0  }
   0x2 LB: > { %s24_s12 = sadd.s32 1, %s451_s10  ;;  %p393_p0 = scmp.ge.s32.totalorder %s455_s11, 1  ;;  %s455_s11 = sphi %s476_s11, %s12_s11   ;;  %s451_s10 = sphi %s474_s10, %s517_s10   ;;  %s447_s9 = sphi %s472_s9, %s516_s9  }
   0x3   : > { %p26_p1 = scmp.ge.s32.totalorder %s24_s12, 2  ;;  %p150_p2 = scmp.lt.s32.totalorder %s455_s11, 3 }
   0x5   : > { %s519_s12 = smov (%p26_p1, %s24_s12), 0  ;;  %p151_p3 = pnand %p393_p0, %p150_p2 }
   0x6   : > { %p190_p4 = scmp.lt.s32.totalorder (!%p151_p3), %s447_s9, 1 }
   0x7   : > { %154 = sbr.rel (%p151_p3) target bundleno = 74 (0x4a), region = 28 }
   0xc   : > { %s521_s9 = smov (!%p190_p4, %s447_s9), 1 }
   0xd   : > { %s490_s13 = sshll.u32 %s521_s9, 5 }
   0xe   : > { %s197_s16 = scalar_lea.vmem %s513_s0, %s490_s13  ;;  %s207_s19 = scalar_lea.vmem %s514_s1, %s490_s13 }
   0xf   : > { %v219_v0 = vld [vmem:[%s197_s16] sm:$0xff]  ;;  %v221_v1 = vld [vmem:[%s197_s16 + $0x10] sm:$0xff]  ;;  %v220_v3 = vld [vmem:[%s197_s16 + $0x8] sm:$0xff]  ;;  %s217_s22 = scalar_lea.vmem %s515_s2, %s490_s13 }
  0x10   : > { %v223_v2 = vadd.f32 %v221_v1, %v219_v0  ;;  %v222_v4 = vld [vmem:[%s197_s16 + $0x18] sm:$0xff]  ;;  %v272_v47 = vld [vmem:[%s207_s19] sm:$0xff]  ;;  %v274_v48 = vld [vmem:[%s207_s19 + $0x10] sm:$0xff] }
  0x11   : > { %v230_v5 = vadd.f32 %v222_v4, %v220_v3  ;;  %v273_v51 = vld [vmem:[%s207_s19 + $0x8] sm:$0xff]  ;;  %v275_v53 = vld [vmem:[%s207_s19 + $0x18] sm:$0xff] }
  0x12   : > { %v224_v6 = vrot.slane %v223_v2, 4 }
  0x13   : > { %v231_v7 = vrot.slane %v230_v5, 4 }
  0x14   : > { %v225_v8 = vadd.f32 %v224_v6, %v223_v2 }
  0x15   : > { %v232_v9 = vadd.f32 %v231_v7, %v230_v5 }
  0x16   : > { %v226_v10 = vrot.slane %v225_v8, 2 }
  0x17   : > { %v233_v11 = vrot.slane %v232_v9, 2 }
  0x18   : > { %v227_v12 = vadd.f32 %v226_v10, %v225_v8 }
  0x19   : > { %v234_v13 = vadd.f32 %v233_v11, %v232_v9 }
  0x1a   : > { %v228_v14 = vrot.slane %v227_v12, 1 }
  0x1b   : > { %v235_v15 = vrot.slane %v234_v13, 1 }
  0x1c   : > { %v229_v16 = vadd.f32 %v228_v14, %v227_v12 }
  0x1d   : > { %v236_v17 = vadd.f32 %v235_v15, %v234_v13 }
  0x1e   : > { %v238_v18 = vmul.f32 0.0625, %v229_v16 }
  0x1f   : > { %v239_v19 = vmul.f32 0.0625, %v236_v17 }
  0x20   : > { %v240_v20 = vsub.f32 %v219_v0, %v238_v18  ;;  %v242_v21 = vsub.f32 %v221_v1, %v238_v18 }
  0x21   : > { %v241_v22 = vsub.f32 %v220_v3, %v239_v19  ;;  %v243_v23 = vsub.f32 %v222_v4, %v239_v19 }
  0x22   : > { %v244_v24 = vmul.f32 %v240_v20, %v240_v20  ;;  %v246_v25 = vmul.f32 %v242_v21, %v242_v21 }
  0x23   : > { %v245_v26 = vmul.f32 %v241_v22, %v241_v22  ;;  %v247_v27 = vmul.f32 %v243_v23, %v243_v23 }
  0x24   : > { %v248_v28 = vadd.f32 %v246_v25, %v244_v24 }
  0x25   : > { %v255_v29 = vadd.f32 %v247_v27, %v245_v26 }
  0x26   : > { %v249_v30 = vrot.slane %v248_v28, 4 }
  0x27   : > { %v256_v31 = vrot.slane %v255_v29, 4 }
  0x28   : > { %v250_v32 = vadd.f32 %v249_v30, %v248_v28 }
  0x29   : > { %v257_v33 = vadd.f32 %v256_v31, %v255_v29 }
  0x2a   : > { %v251_v34 = vrot.slane %v250_v32, 2 }
  0x2b   : > { %v258_v35 = vrot.slane %v257_v33, 2 }
  0x2c   : > { %v252_v36 = vadd.f32 %v251_v34, %v250_v32 }
  0x2d   : > { %v259_v37 = vadd.f32 %v258_v35, %v257_v33 }
  0x2e   : > { %v253_v38 = vrot.slane %v252_v36, 1 }
  0x2f   : > { %v260_v39 = vrot.slane %v259_v37, 1 }
  0x30   : > { %v254_v40 = vadd.f32 %v253_v38, %v252_v36 }
  0x31   : > { %v261_v41 = vadd.f32 %v260_v39, %v259_v37 }
  0x32   : > { %v262_v42 = vmul.f32 0.0625, %v254_v40 }
  0x33   : > { %v263_v43 = vmul.f32 0.0625, %v261_v41 }
  0x34   : > { %v264_v44 = vadd.f32 1e-05, %v262_v42 }
  0x35   : > { %v265_v45 = vadd.f32 1e-05, %v263_v43 }
  0x36   : > { %429 = vrsqrt.f32 %v264_v44 }
  0x37   : > { %431 = vrsqrt.f32 %v265_v45 }
  0x43   : > { %v430_v46 = vpop.eup %429 }
  0x44   : > { %v432_v49 = vpop.eup %431  ;;  %v268_v50 = vmul.f32 %v430_v46, %v240_v20  ;;  %v270_v52 = vmul.f32 %v430_v46, %v242_v21 }
  0x45   : > { %v269_v54 = vmul.f32 %v432_v49, %v241_v22  ;;  %v271_v55 = vmul.f32 %v432_v49, %v243_v23 }
  0x46   : > { %v276_v56 = vadd.f32 %v272_v47, %v268_v50  ;;  %v278_v57 = vadd.f32 %v274_v48, %v270_v52 }
  0x47   : > { %v277_v58 = vadd.f32 %v273_v51, %v269_v54  ;;  %v279_v59 = vadd.f32 %v275_v53, %v271_v55 }
  0x48   : > { %280 = vst [vmem:[%s217_s22] sm:$0xff] %v276_v56  ;;  %282 = vst [vmem:[%s217_s22 + $0x10] sm:$0xff] %v278_v57 }
  0x49   : > { %281 = vst [vmem:[%s217_s22 + $0x8] sm:$0xff] %v277_v58  ;;  %283 = vst [vmem:[%s217_s22 + $0x18] sm:$0xff] %v279_v59 }
  0x4a PF: > { %s12_s11 = sadd.s32 1, %s455_s11   ;;  %s516_s9 = smov %s451_s10 }
  0x4b   : > { %p9_p5 = scmp.ge.s32.totalorder %s12_s11, 4   ;;  %s517_s10 = smov %s519_s12 }
  0x4d   :  { %11 = sbr.rel (!%p9_p5) target bundleno = 2 (0x2), region = 61 }

// kernel: generator_forward.46
= control target key start
LH: loop header
LB: loop body
LE: loop exit
PB: predicated region body
PF: predicated region fallthrough
CT: control target
= control target key end

     0   :  { %s550_s12 = smov 0   ;;  %s552_s13 = smov 0   ;;  %s603_s0 = inlined_call_operand.vmem [shape: f32[2,16,256], index: 0, kind: input, shape index: {}]   ;;  %s604_s1 = inlined_call_operand.vmem [shape: f32[2,16,256], index: 1, kind: input, shape index: {}]   ;;  %s605_s2 = inlined_call_operand.vmem [shape: f32[1,16,256], index: 2, kind: input, shape index: {}]   ;;  %s606_s3 = inlined_call_operand.vmem [shape: f32[2,16,256], index: 3, kind: output, shape index: {}]  }
   0x1   :  { %s554_s14 = smov 0  }
   0x2 LB: > { %s25_s15 = sadd.s32 1, %s524_s13  ;;  %p466_p0 = scmp.ge.s32.totalorder %s528_s14, 1  ;;  %s528_s14 = sphi %s554_s14, %s13_s14   ;;  %s524_s13 = sphi %s552_s13, %s608_s13   ;;  %s520_s12 = sphi %s550_s12, %s607_s12  }
   0x3   : > { %p27_p1 = scmp.ge.s32.totalorder %s25_s15, 2  ;;  %p186_p2 = scmp.lt.s32.totalorder %s528_s14, 3 }
   0x5   : > { %s610_s15 = smov (%p27_p1, %s25_s15), 0  ;;  %p187_p3 = pnand %p466_p0, %p186_p2 }
   0x6   : > { %p233_p4 = scmp.lt.s32.totalorder (!%p187_p3), %s520_s12, 1 }
   0x7   : > { %190 = sbr.rel (%p187_p3) target bundleno = 76 (0x4c), region = 32 }
   0xc   : > { %s612_s12 = smov (!%p233_p4, %s520_s12), 1  ;;  %v329_v54 = vld [vmem:[%s605_s2] sm:$0xff]  ;;  %v331_v56 = vld [vmem:[%s605_s2 + $0x10] sm:$0xff]  ;;  %v330_v59 = vld [vmem:[%s605_s2 + $0x8] sm:$0xff] }
   0xd   : > { %s568_s16 = sshll.u32 %s612_s12, 5  ;;  %v332_v61 = vld [vmem:[%s605_s2 + $0x18] sm:$0xff] }
   0xe   : > { %s240_s19 = scalar_lea.vmem %s603_s0, %s568_s16  ;;  %s250_s22 = scalar_lea.vmem %s604_s1, %s568_s16 }
   0xf   : > { %v268_v0 = vld [vmem:[%s240_s19] sm:$0xff]  ;;  %v270_v1 = vld [vmem:[%s240_s19 + $0x10] sm:$0xff]  ;;  %v269_v3 = vld [vmem:[%s240_s19 + $0x8] sm:$0xff]  ;;  %s266_s6 = scalar_lea.vmem %s606_s3, %s568_s16 }
  0x10   : > { %v272_v2 = vadd.f32 %v270_v1, %v268_v0  ;;  %v271_v4 = vld [vmem:[%s240_s19 + $0x18] sm:$0xff]  ;;  %v321_v47 = vld [vmem:[%s250_s22] sm:$0xff]  ;;  %v323_v48 = vld [vmem:[%s250_s22 + $0x10] sm:$0xff] }
  0x11   : > { %v279_v5 = vadd.f32 %v271_v4, %v269_v3  ;;  %v322_v51 = vld [vmem:[%s250_s22 + $0x8] sm:$0xff]  ;;  %v324_v53 = vld [vmem:[%s250_s22 + $0x18] sm:$0xff] }
  0x12   : > { %v273_v6 = vrot.slane %v272_v2, 4 }
  0x13   : > { %v280_v7 = vrot.slane %v279_v5, 4 }
  0x14   : > { %v274_v8 = vadd.f32 %v273_v6, %v272_v2 }
  0x15   : > { %v281_v9 = vadd.f32 %v280_v7, %v279_v5 }
  0x16   : > { %v275_v10 = vrot.slane %v274_v8, 2 }
  0x17   : > { %v282_v11 = vrot.slane %v281_v9, 2 }
  0x18   : > { %v276_v12 = vadd.f32 %v275_v10, %v274_v8 }
  0x19   : > { %v283_v13 = vadd.f32 %v282_v11, %v281_v9 }
  0x1a   : > { %v277_v14 = vrot.slane %v276_v12, 1 }
  0x1b   : > { %v284_v15 = vrot.slane %v283_v13, 1 }
  0x1c   : > { %v278_v16 = vadd.f32 %v277_v14, %v276_v12 }
  0x1d   : > { %v285_v17 = vadd.f32 %v284_v15, %v283_v13 }
  0x1e   : > { %v287_v18 = vmul.f32 0.0625, %v278_v16 }
  0x1f   : > { %v288_v19 = vmul.f32 0.0625, %v285_v17 }
  0x20   : > { %v289_v20 = vsub.f32 %v268_v0, %v287_v18  ;;  %v291_v21 = vsub.f32 %v270_v1, %v287_v18 }
  0x21   : > { %v290_v22 = vsub.f32 %v269_v3, %v288_v19  ;;  %v292_v23 = vsub.f32 %v271_v4, %v288_v19 }
  0x22   : > { %v293_v24 = vmul.f32 %v289_v20, %v289_v20  ;;  %v295_v25 = vmul.f32 %v291_v21, %v291_v21 }
  0x23   : > { %v294_v26 = vmul.f32 %v290_v22, %v290_v22  ;;  %v296_v27 = vmul.f32 %v292_v23, %v292_v23 }
  0x24   : > { %v297_v28 = vadd.f32 %v295_v25, %v293_v24 }
  0x25   : > { %v304_v29 = vadd.f32 %v296_v27, %v294_v26 }
  0x26   : > { %v298_v30 = vrot.slane %v297_v28, 4 }
  0x27   : > { %v305_v31 = vrot.slane %v304_v29, 4 }
  0x28   : > { %v299_v32 = vadd.f32 %v298_v30, %v297_v28 }
  0x29   : > { %v306_v33 = vadd.f32 %v305_v31, %v304_v29 }
  0x2a   : > { %v300_v34 = vrot.slane %v299_v32, 2 }
  0x2b   : > { %v307_v35 = vrot.slane %v306_v33, 2 }
  0x2c   : > { %v301_v36 = vadd.f32 %v300_v34, %v299_v32 }
  0x2d   : > { %v308_v37 = vadd.f32 %v307_v35, %v306_v33 }
  0x2e   : > { %v302_v38 = vrot.slane %v301_v36, 1 }
  0x2f   : > { %v309_v39 = vrot.slane %v308_v37, 1 }
  0x30   : > { %v303_v40 = vadd.f32 %v302_v38, %v301_v36 }
  0x31   : > { %v310_v41 = vadd.f32 %v309_v39, %v308_v37 }
  0x32   : > { %v311_v42 = vmul.f32 0.0625, %v303_v40 }
  0x33   : > { %v312_v43 = vmul.f32 0.0625, %v310_v41 }
  0x34   : > { %v313_v44 = vadd.f32 1e-05, %v311_v42 }
  0x35   : > { %v314_v45 = vadd.f32 1e-05, %v312_v43 }
  0x36   : > { %502 = vrsqrt.f32 %v313_v44 }
  0x37   : > { %504 = vrsqrt.f32 %v314_v45 }
  0x43   : > { %v503_v46 = vpop.eup %502 }
  0x44   : > { %v505_v49 = vpop.eup %504  ;;  %v317_v50 = vmul.f32 %v503_v46, %v289_v20  ;;  %v319_v52 = vmul.f32 %v503_v46, %v291_v21 }
  0x45   : > { %v318_v55 = vmul.f32 %v505_v49, %v290_v22  ;;  %v320_v57 = vmul.f32 %v505_v49, %v292_v23 }
  0x46   : > { %v325_v58 = vadd.f32 %v321_v47, %v317_v50  ;;  %v327_v60 = vadd.f32 %v323_v48, %v319_v52 }
  0x47   : > { %v326_v62 = vadd.f32 %v322_v51, %v318_v55  ;;  %v328_v63 = vadd.f32 %v324_v53, %v320_v57 }
  0x48   : > { %v333_v0 = vadd.f32 %v329_v54, %v325_v58  ;;  %v335_v1 = vadd.f32 %v331_v56, %v327_v60 }
  0x49   : > { %v334_v2 = vadd.f32 %v330_v59, %v326_v62  ;;  %v336_v3 = vadd.f32 %v332_v61, %v328_v63 }
  0x4a   : > { %337 = vst [vmem:[%s266_s6] sm:$0xff] %v333_v0  ;;  %339 = vst [vmem:[%s266_s6 + $0x10] sm:$0xff] %v335_v1 }
  0x4b   : > { %338 = vst [vmem:[%s266_s6 + $0x8] sm:$0xff] %v334_v2  ;;  %340 = vst [vmem:[%s266_s6 + $0x18] sm:$0xff] %v336_v3 }
  0x4c PF: > { %s13_s14 = sadd.s32 1, %s528_s14   ;;  %s607_s12 = smov %s524_s13 }
  0x4d   : > { %p10_p5 = scmp.ge.s32.totalorder %s13_s14, 4   ;;  %s608_s13 = smov %s610_s15 }
  0x4f   :  { %12 = sbr.rel (!%p10_p5) target bundleno = 2 (0x2), region = 68 }

// kernel: generator_forward.47
= control target key start
LH: loop header
LB: loop body
LE: loop exit
PB: predicated region body
PF: predicated region fallthrough
CT: control target
= control target key end

     0   :  { %s1031_s12 = smov 0   ;;  %s1033_s13 = smov 0   ;;  %s1165_s0 = inlined_call_operand.vmem [shape: bf16[32,2304], index: 0, kind: input, shape index: {}]   ;;  %s1166_s1 = inlined_call_operand.vmem [shape: bf16[2304,256], index: 1, kind: input, shape index: {}]   ;;  %s1167_s2 = inlined_call_operand.vmem [shape: f32[1,256], index: 2, kind: input, shape index: {}]   ;;  %s1168_s3 = inlined_call_operand.vmem [shape: f32[32,256], index: 3, kind: output, shape index: {}]  }
   0x1   :  { %s1035_s14 = smov 0   ;;  %s1037_s15 = smov 0  }
   0x2   :  { %s1039_s16 = smov 0  }
   0x3 LB: > { %s25_s17 = sadd.s32 1, %s1004_s15  ;;  %p48_p1 = scmp.ne.s32.totalorder %s996_s13, %s992_s12  ;;  %s1008_s16 = sphi %s1039_s16, %s13_s16   ;;  %s1004_s15 = sphi %s1037_s15, %s1172_s15   ;;  %s1000_s14 = sphi %s1035_s14, %s1171_s14   ;;  %s996_s13 = sphi %s1033_s13, %s1170_s13   ;;  %s992_s12 = sphi %s1031_s12, %s1169_s12  }
   0x4   : > { %p26_p0 = scmp.ge.s32.totalorder %s25_s17, 9  ;;  %p49_p2 = scmp.eq.s32.totalorder %s1008_s16, 0 }
   0x5   : > { %s41_s19 = sadd.s32 1, %s996_s13  ;;  %p790_p5 = scmp.ge.s32.totalorder %s1008_s16, 9 }
   0x6   : > { %s1174_s17 = smov (%p26_p0, %s25_s17), 0  ;;  %p50_p3 = por %p49_p2, %p48_p1 }
   0x7   : > { %s37_s18 = ssub.s32 %s1004_s15, %s1174_s17  ;;  %164 = sbr.rel (%p790_p5) target bundleno = 18 (0x12), region = 20 }
   0x8   : > { %p39_p4 = scmp.eq.s32.totalorder %s37_s18, 0 }
   0xa   : > { %s1066_s20 = scalar_select %p39_p4, %s996_s13, %s41_s19  }
   0xc   : > { %167 = sbr.rel (!%p50_p3) target bundleno = 18 (0x12), region = 24  ;;  %s169_s21 = sand.u32 (%p50_p3), 1, %s996_s13  }
   0xd   : > { %s841_s22 = sshll.u32 (%p50_p3), %s1004_s15, 3  ;;  %s791_s23 = sshll.u32 (%p50_p3), %s169_s21, 5 }
   0xe   : > { %s177_s26 = scalar_lea.vmem (%p50_p3), %s1165_s0, %s841_s22  ;;  %s171_s27 = scalar_lea.vmem (%p50_p3), [#allocation3], %s791_s23 }
   0xf   : > { %v212_v0 = vld [vmem:[%s177_s26] sm:$0xff] (%p50_p3)  ;;  %v214_v1 = vld [vmem:[%s177_s26 + $0x48] sm:$0xff] (%p50_p3)  ;;  %v216_v2 = vld [vmem:[%s177_s26 + $0x90] sm:$0xff] (%p50_p3) }
  0x10   : > { %213 = vst [vmem:[%s171_s27] sm:$0xff] (%p50_p3), %v212_v0  ;;  %215 = vst [vmem:[%s171_s27 + $0x8] sm:$0xff] (%p50_p3), %v214_v1  ;;  %v218_v3 = vld [vmem:[%s177_s26 + $0xd8] sm:$0xff] (%p50_p3) }
  0x11   : > { %217 = vst [vmem:[%s171_s27 + $0x10] sm:$0xff] %v216_v2  ;;  %219 = vst [vmem:[%s171_s27 + $0x18] sm:$0xff] %v218_v3 }
  0x12 PF: > { %p794_p6 = scmp.ge.s32.totalorder %s1008_s16, 1  ;;  %p239_p7 = scmp.lt.s32.totalorder %s1008_s16, 10 }
  0x14   : > { %p240_p8 = pnand %p794_p6, %p239_p7 }
  0x15   : > { %s246_s28 = sand.u32 (!%p240_p8), 1, %s992_s12   ;;  %s796_s29 = sshll.u32 (!%p240_p8), %s1000_s14, 5 }
  0x16   : > { %243 = sbr.rel (%p240_p8) target bundleno = 318 (0x13e), region = 66  ;;  %s795_s30 = sshll.u32 (!%p240_p8), %s246_s28, 5 }
  0x17   : > { %p292_p9 = scmp.lt.s32.totalorder (!%p240_p8), %s796_s29, 287  ;;  %s1083_s8 = scalar_lea.vmem (!%p240_p8), [#allocation3], %s795_s30 }
  0x18   : > { %p799_p10 = scmp.ne.s32.totalorder (!%p240_p8), %s1000_s14, 0 }
  0x1b   : > { %s1176_s29 = smov (!%p292_p9, %s796_s29), 287  ;;  %322 = sbr.rel (%p799_p10) target bundleno = 37 (0x25), region = 74 }
  0x1c   : > { %s842_s4 = sshll.u32 %s1176_s29, 3 }
  0x1d   : > { %s1081_s7 = scalar_lea.vmem %s1166_s1, %s842_s4 }
  0x20   : > { %v1010_v4 = vmov 0.0  }
  0x21   : > { %323 = vst [vmem:[#allocation2 + $0x30] sm:$0xff] %v1010_v4  ;;  %324 = vst [vmem:[#allocation2] sm:$0xff] %v1010_v4 }
  0x22   : > { %325 = vst [vmem:[#allocation2 + $0x18] sm:$0xff] %v1010_v4  ;;  %326 = vst [vmem:[#allocation2 + $0x10] sm:$0xff] %v1010_v4 }
  0x23   : > { %327 = vst [vmem:[#allocation2 + $0x8] sm:$0xff] %v1010_v4  ;;  %328 = vst [vmem:[#allocation2 + $0x20] sm:$0xff] %v1010_v4 }
  0x24   : > { %329 = vst [vmem:[#allocation2 + $0x28] sm:$0xff] %v1010_v4  ;;  %330 = vst [vmem:[#allocation2 + $0x38] sm:$0xff] %v1010_v4 }
  0x25 PF: > { %v916_v5 = vld [vmem:[%s1081_s7 + $0x74] ss:$8 sps:$4 sm:$0xff]   ;;  %v918_v6 = vld [vmem:[%s1081_s7 + $0x70] ss:$8 sps:$4 sm:$0xff]   ;;  %v919_v7 = vld [vmem:[%s1081_s7 + $0x64] ss:$8 sps:$4 sm:$0xff]  }
  0x26   : > { %555 = vmatprep.subr.bf16.mxu0 %v916_v5  ;;  %843 = vmatprep.subr.bf16.mxu1 %v916_v5  ;;  %v921_v8 = vld [vmem:[%s1081_s7 + $0x60] ss:$8 sps:$4 sm:$0xff]   ;;  %v922_v9 = vld [vmem:[%s1081_s7 + $0x54] ss:$8 sps:$4 sm:$0xff]   ;;  %v924_v10 = vld [vmem:[%s1081_s7 + $0x50] ss:$8 sps:$4 sm:$0xff]  }
  0x27   : > { %556 = vmatpush1.bf16.msra.mxu0 %v918_v6  ;;  %859 = vmatpush1.bf16.msra.mxu1 %v918_v6  ;;  %v925_v11 = vld [vmem:[%s1081_s7 + $0x44] ss:$8 sps:$4 sm:$0xff]   ;;  %v927_v12 = vld [vmem:[%s1081_s7 + $0x40] ss:$8 sps:$4 sm:$0xff]   ;;  %v928_v13 = vld [vmem:[%s1081_s7 + $0x34] ss:$8 sps:$4 sm:$0xff]  }
  0x28   : > { %557 = vmatprep.subr.bf16.mxu0 %v919_v7  ;;  %844 = vmatprep.subr.bf16.mxu1 %v919_v7  ;;  %v930_v14 = vld [vmem:[%s1081_s7 + $0x30] ss:$8 sps:$4 sm:$0xff]   ;;  %v931_v15 = vld [vmem:[%s1081_s7 + $0x24] ss:$8 sps:$4 sm:$0xff]   ;;  %v933_v16 = vld [vmem:[%s1081_s7 + $0x20] ss:$8 sps:$4 sm:$0xff]  }
  0x29   : > { %v934_v17 = vld [vmem:[%s1081_s7 + $0x14] ss:$8 sps:$4 sm:$0xff]   ;;  %v966_v18 = vld [vmem:[%s1083_s8 + $0x4] ss:$8 sps:$4 sm:$0xff]   ;;  %v936_v19 = vld [vmem:[%s1081_s7 + $0x10] ss:$8 sps:$4 sm:$0xff]  }
  0x2a   : > { %v969_v20 = vld [vmem:[%s1083_s8 + $0x14] ss:$8 sps:$4 sm:$0xff]   ;;  %v937_v21 = vld [vmem:[%s1081_s7 + $0x4] ss:$8 sps:$4 sm:$0xff]   ;;  %587 = vmatprep.mubr.bf16.mxu0 %v966_v18  ;;  %v939_v22 = vld [vmem:[%s1081_s7] ss:$8 sps:$4 sm:$0xff]  }
  0x2b   : > { %558 = vmatpush1.bf16.msra.mxu0 %v921_v8  ;;  %860 = vmatpush1.bf16.msra.mxu1 %v921_v8  ;;  %v940_v23 = vld [vmem:[%s1081_s7 + $0xf4] ss:$8 sps:$4 sm:$0xff]   ;;  %v942_v24 = vld [vmem:[%s1081_s7 + $0xf0] ss:$8 sps:$4 sm:$0xff]   ;;  %v943_v25 = vld [vmem:[%s1081_s7 + $0xe4] ss:$8 sps:$4 sm:$0xff]  }
  0x2c   : > { %559 = vmatprep.subr.bf16.mxu0 %v922_v9  ;;  %845 = vmatprep.subr.bf16.mxu1 %v922_v9  ;;  %v945_v26 = vld [vmem:[%s1081_s7 + $0xe0] ss:$8 sps:$4 sm:$0xff]   ;;  %v946_v27 = vld [vmem:[%s1081_s7 + $0xd4] ss:$8 sps:$4 sm:$0xff]   ;;  %v948_v28 = vld [vmem:[%s1081_s7 + $0xd0] ss:$8 sps:$4 sm:$0xff]  }
  0x2d   : > { %597 = vmatprep.mubr.bf16.mxu1 %v969_v20  ;;  %v949_v29 = vld [vmem:[%s1081_s7 + $0xc4] ss:$8 sps:$4 sm:$0xff]   ;;  %v951_v30 = vld [vmem:[%s1081_s7 + $0xc0] ss:$8 sps:$4 sm:$0xff]   ;;  %v952_v31 = vld [vmem:[%s1081_s7 + $0xb4] ss:$8 sps:$4 sm:$0xff]  }
  0x2e   : > { %v954_v32 = vld [vmem:[%s1081_s7 + $0xb0] ss:$8 sps:$4 sm:$0xff]   ;;  %v955_v33 = vld [vmem:[%s1081_s7 + $0xa4] ss:$8 sps:$4 sm:$0xff]   ;;  %v957_v34 = vld [vmem:[%s1081_s7 + $0xa0] ss:$8 sps:$4 sm:$0xff]  }
  0x2f   : > { %560 = vmatpush1.bf16.msra.mxu0 %v924_v10  ;;  %861 = vmatpush1.bf16.msra.mxu1 %v924_v10  ;;  %v958_v35 = vld [vmem:[%s1081_s7 + $0x94] ss:$8 sps:$4 sm:$0xff]   ;;  %v960_v36 = vld [vmem:[%s1081_s7 + $0x90] ss:$8 sps:$4 sm:$0xff]   ;;  %v961_v37 = vld [vmem:[%s1081_s7 + $0x84] ss:$8 sps:$4 sm:$0xff]  }
  0x30   : > { %561 = vmatprep.subr.bf16.mxu0 %v925_v11  ;;  %846 = vmatprep.subr.bf16.mxu1 %v925_v11  ;;  %v963_v38 = vld [vmem:[%s1081_s7 + $0x80] ss:$8 sps:$4 sm:$0xff]   ;;  %v967_v40 = vld [vmem:[%s1083_s8 + $0x10] ss:$8 sps:$4 sm:$0xff]   ;;  %p836_p11 = scmp.ne.s32.totalorder %s1000_s14, 8 }
  0x31   : > { %v964_v39 = vld [vmem:[%s1083_s8] ss:$8 sps:$4 sm:$0xff]   ;;  %v331_v41 = vld [vmem:[#allocation2 + $0x30] sm:$0xff]  ;;  %v333_v51 = vld [vmem:[#allocation2 + $0x18] sm:$0xff] }
  0x32   : > { %v335_v42 = vld [vmem:[#allocation2 + $0x8] sm:$0xff]  ;;  %v332_v45 = vld [vmem:[#allocation2] sm:$0xff]  ;;  %v334_v57 = vld [vmem:[#allocation2 + $0x10] sm:$0xff] }
  0x33   : > { %562 = vmatpush1.bf16.msra.mxu0 %v927_v12  ;;  %862 = vmatpush1.bf16.msra.mxu1 %v927_v12  ;;  %v336_v46 = vld [vmem:[#allocation2 + $0x20] sm:$0xff]  ;;  %v337_v52 = vld [vmem:[#allocation2 + $0x28] sm:$0xff]  ;;  %v338_v58 = vld [vmem:[#allocation2 + $0x38] sm:$0xff] }
  0x34   : > { %563 = vmatprep.subr.bf16.mxu0 %v928_v13  ;;  %847 = vmatprep.subr.bf16.mxu1 %v928_v13 }
  0x37   : > { %564 = vmatpush1.bf16.msra.mxu0 %v930_v14  ;;  %863 = vmatpush1.bf16.msra.mxu1 %v930_v14 }
  0x38   : > { %565 = vmatprep.subr.bf16.mxu0 %v931_v15  ;;  %848 = vmatprep.subr.bf16.mxu1 %v931_v15 }
  0x3b   : > { %566 = vmatpush1.bf16.msra.mxu0 %v933_v16  ;;  %864 = vmatpush1.bf16.msra.mxu1 %v933_v16 }
  0x3c   : > { %567 = vmatprep.subr.bf16.mxu0 %v934_v17  ;;  %849 = vmatprep.subr.bf16.mxu1 %v934_v17 }
  0x3f   : > { %568 = vmatpush1.bf16.msra.mxu0 %v936_v19  ;;  %865 = vmatpush1.bf16.msra.mxu1 %v936_v19 }
  0x40   : > { %569 = vmatprep.subr.bf16.mxu0 %v937_v21  ;;  %850 = vmatprep.subr.bf16.mxu1 %v937_v21 }
  0x43   : > { %570 = vmatpush1.bf16.msra.mxu0 %v939_v22  ;;  %866 = vmatpush1.bf16.msra.mxu1 %v939_v22 }
  0x44   : > { %571 = vmatprep.subr.bf16.mxu0 %v940_v23  ;;  %851 = vmatprep.subr.bf16.mxu1 %v940_v23 }
  0x47   : > { %572 = vmatpush2.bf16.msra.mxu0 %v942_v24  ;;  %867 = vmatpush2.bf16.msra.mxu1 %v942_v24 }
  0x48   : > { %573 = vmatprep.subr.bf16.mxu0 %v943_v25  ;;  %852 = vmatprep.subr.bf16.mxu1 %v943_v25 }
  0x4b   : > { %574 = vmatpush2.bf16.msra.mxu0 %v945_v26  ;;  %868 = vmatpush2.bf16.msra.mxu1 %v945_v26 }
  0x4c   : > { %575 = vmatprep.subr.bf16.mxu0 %v946_v27  ;;  %853 = vmatprep.subr.bf16.mxu1 %v946_v27 }
  0x4f   : > { %576 = vmatpush2.bf16.msra.mxu0 %v948_v28  ;;  %869 = vmatpush2.bf16.msra.mxu1 %v948_v28 }
  0x50   : > { %577 = vmatprep.subr.bf16.mxu0 %v949_v29  ;;  %854 = vmatprep.subr.bf16.mxu1 %v949_v29 }
  0x53   : > { %578 = vmatpush2.bf16.msra.mxu0 %v951_v30  ;;  %870 = vmatpush2.bf16.msra.mxu1 %v951_v30 }
  0x54   : > { %579 = vmatprep.subr.bf16.mxu0 %v952_v31  ;;  %855 = vmatprep.subr.bf16.mxu1 %v952_v31 }
  0x57   : > { %580 = vmatpush2.bf16.msra.mxu0 %v954_v32  ;;  %871 = vmatpush2.bf16.msra.mxu1 %v954_v32 }
  0x58   : > { %581 = vmatprep.subr.bf16.mxu0 %v955_v33  ;;  %856 = vmatprep.subr.bf16.mxu1 %v955_v33 }
  0x5b   : > { %582 = vmatpush2.bf16.msra.mxu0 %v957_v34  ;;  %872 = vmatpush2.bf16.msra.mxu1 %v957_v34 }
  0x5c   : > { %583 = vmatprep.subr.bf16.mxu0 %v958_v35  ;;  %857 = vmatprep.subr.bf16.mxu1 %v958_v35 }
  0x5f   : > { %584 = vmatpush2.bf16.msra.mxu0 %v960_v36  ;;  %873 = vmatpush2.bf16.msra.mxu1 %v960_v36 }
  0x60   : > { %585 = vmatprep.subr.bf16.mxu0 %v961_v37  ;;  %858 = vmatprep.subr.bf16.mxu1 %v961_v37 }
  0x63   : > { %586 = vmatpush2.bf16.msra.mxu0 %v963_v38  ;;  %874 = vmatpush2.bf16.msra.mxu1 %v963_v38 }
  0x66   : > { %588 = vmatmul.mubr.bf16.vlgmr.msra.gmra.mxu0 %v964_v39  ;;  %598 = vmatmul.mubr.bf16.vlgmr.msra.gmra.mxu1 %v967_v40 }
 0x126   : > { %v589_v43 = vpop.f32.mrf.mxu0  ;;  %v599_v44 = vpop.f32.mrf.mxu1 }
 0x127   : > { %v608_v47 = vadd.f32 %v589_v43, %v331_v41  ;;  %v612_v48 = vadd.f32 %v599_v44, %v335_v42 }
 0x128   : > { %v591_v49 = vpop.f32.mrf.mxu0  ;;  %v601_v50 = vpop.f32.mrf.mxu1 }
 0x129   : > { %616 = vst [vmem:[#allocation2 + $0x30] sm:$0xff] %v608_v47  ;;  %620 = vst [vmem:[#allocation2 + $0x8] sm:$0xff] %v612_v48  ;;  %v609_v53 = vadd.f32 %v591_v49, %v332_v45  ;;  %v613_v54 = vadd.f32 %v601_v50, %v336_v46 }
 0x12a   : > { %v593_v55 = vpop.f32.mrf.mxu0  ;;  %v603_v56 = vpop.f32.mrf.mxu1 }
 0x12b   : > { %617 = vst [vmem:[#allocation2] sm:$0xff] %v609_v53  ;;  %621 = vst [vmem:[#allocation2 + $0x20] sm:$0xff] %v613_v54  ;;  %v610_v59 = vadd.f32 %v593_v55, %v333_v51  ;;  %v614_v60 = vadd.f32 %v603_v56, %v337_v52  ;;  %627 = sbr.rel (%p836_p11) target bundleno = 318 (0x13e), region = 78 }
 0x12c   : > { %v595_v61 = vpop.f32.mrf.mxu0  ;;  %v605_v62 = vpop.f32.mrf.mxu1 }
 0x12d   : > { %618 = vst [vmem:[#allocation2 + $0x18] sm:$0xff] %v610_v59  ;;  %622 = vst [vmem:[#allocation2 + $0x28] sm:$0xff] %v614_v60  ;;  %v611_v63 = vadd.f32 %v595_v61, %v334_v57  ;;  %v615_v0 = vadd.f32 %v605_v62, %v338_v58 }
 0x12f   : > { %619 = vst [vmem:[#allocation2 + $0x10] sm:$0xff] %v611_v63  ;;  %623 = vst [vmem:[#allocation2 + $0x38] sm:$0xff] %v615_v0 }
 0x130   : > { %v638_v1 = vlaneseq  ;;  %v636_v3 = vld [vmem:[%s1167_s2] sm:$0x3]  ;;  %v628_v4 = vld [vmem:[#allocation2 + $0x30] sm:$0xff]  ;;  %v632_v10 = vld [vmem:[#allocation2 + $0x8] sm:$0xff] }
 0x132   : > { %v639_v2 = vshrl.u32 %v638_v1, 7  ;;  %v629_v6 = vld [vmem:[#allocation2] sm:$0xff] }
 0x133   : > { %v633_v13 = vld [vmem:[#allocation2 + $0x20] sm:$0xff] }
 0x134   : > { %v640_v5 = vsub.s32 0, %v639_v2  ;;  %v644_v7 = vsub.s32 1, %v639_v2  ;;  %v630_v8 = vld [vmem:[#allocation2 + $0x18] sm:$0xff]  ;;  %v634_v14 = vld [vmem:[#allocation2 + $0x28] sm:$0xff] }
 0x136   : > { %v631_v9 = vld [vmem:[#allocation2 + $0x10] sm:$0xff]  ;;  %v641_v11 = vrot.slane %v636_v3, %v640_v5  ;;  %v645_v12 = vrot.slane %v636_v3, %v644_v7  ;;  %v635_v15 = vld [vmem:[#allocation2 + $0x38] sm:$0xff] }
 0x138   : > { %v648_v16 = vadd.f32 %v641_v11, %v628_v4  ;;  %v649_v17 = vadd.f32 %v645_v12, %v629_v6  ;;  %v650_v18 = vadd.f32 %v641_v11, %v630_v8  ;;  %v651_v19 = vadd.f32 %v645_v12, %v631_v9 }
 0x139   : > { %v652_v20 = vadd.f32 %v641_v11, %v632_v10  ;;  %v653_v21 = vadd.f32 %v645_v12, %v633_v13  ;;  %v654_v22 = vadd.f32 %v641_v11, %v634_v14  ;;  %v655_v23 = vadd.f32 %v645_v12, %v635_v15 }
 0x13a   : > { %656 = vst [vmem:[%s1168_s3] sm:$0xff] %v648_v16  ;;  %657 = vst [vmem:[%s1168_s3 + $0x8] sm:$0xff] %v649_v17 }
 0x13b   : > { %658 = vst [vmem:[%s1168_s3 + $0x10] sm:$0xff] %v650_v18  ;;  %659 = vst [vmem:[%s1168_s3 + $0x18] sm:$0xff] %v651_v19 }
 0x13c   : > { %660 = vst [vmem:[%s1168_s3 + $0x20] sm:$0xff] %v652_v20  ;;  %661 = vst [vmem:[%s1168_s3 + $0x28] sm:$0xff] %v653_v21 }
 0x13d   : > { %662 = vst [vmem:[%s1168_s3 + $0x30] sm:$0xff] %v654_v22  ;;  %663 = vst [vmem:[%s1168_s3 + $0x38] sm:$0xff] %v655_v23 }
 0x13e PF: > { %s13_s16 = sadd.s32 1, %s1008_s16   ;;  %s1169_s12 = smov %s996_s13 }
 0x13f   : > { %p10_p12 = scmp.ge.s32.totalorder %s13_s16, 11   ;;  %s1170_s13 = smov %s1066_s20 }
 0x140   : > { %s1171_s14 = smov %s1004_s15  ;;  %s1172_s15 = smov %s1174_s17 }
 0x141   :  { %12 = sbr.rel (!%p10_p12) target bundleno = 3 (0x3), region = 119 }

// kernel: generator_forward.51
= control target key start
LH: loop header
LB: loop body
LE: loop exit
PB: predicated region body
PF: predicated region fallthrough
CT: control target
= control target key end

     0   :  { %s444_s1 = inlined_call_operand.vmem [shape: bf16[256,128], index: 1, kind: input, shape index: {}]   ;;  %s445_s0 = inlined_call_operand.vmem [shape: bf16[32,256], index: 0, kind: input, shape index: {}]   ;;  %s446_s2 = inlined_call_operand.vmem [shape: f32[1,128], index: 2, kind: input, shape index: {}]   ;;  %s447_s3 = inlined_call_operand.vmem [shape: f32[32,128], index: 3, kind: output, shape index: {}]  }
   0x1   :  { %v327_v0 = vld [vmem:[%s444_s1 + $0x78] sm:$0xff]   ;;  %v329_v2 = vld [vmem:[%s444_s1 + $0x70] sm:$0xff]   ;;  %v331_v4 = vld [vmem:[%s444_s1 + $0x68] sm:$0xff]  }
   0x2   :  { %v328_v1 = vld [vmem:[%s444_s1 + $0x38] sm:$0xff]   ;;  %283 = vmatprep.subr.bf16.mxu0 %v327_v0  ;;  %311 = vmatprep.subr.bf16.mxu1 %v327_v0  ;;  %v330_v3 = vld [vmem:[%s444_s1 + $0x30] sm:$0xff]   ;;  %v332_v5 = vld [vmem:[%s444_s1 + $0x28] sm:$0xff]  }
   0x3   :  { %284 = vmatpush3.bf16.msra.mxu0 %v328_v1  ;;  %319 = vmatpush3.bf16.msra.mxu1 %v328_v1  ;;  %v333_v6 = vld [vmem:[%s444_s1 + $0x60] sm:$0xff]   ;;  %v335_v8 = vld [vmem:[%s444_s1 + $0x58] sm:$0xff]   ;;  %v337_v10 = vld [vmem:[%s444_s1 + $0x50] sm:$0xff]  }
   0x4   :  { %285 = vmatprep.subr.bf16.mxu0 %v329_v2  ;;  %312 = vmatprep.subr.bf16.mxu1 %v329_v2  ;;  %v334_v7 = vld [vmem:[%s444_s1 + $0x20] sm:$0xff]   ;;  %v336_v9 = vld [vmem:[%s444_s1 + $0x18] sm:$0xff]   ;;  %v338_v13 = vld [vmem:[%s444_s1 + $0x10] sm:$0xff]  }
   0x5   :  { %v345_v11 = vld [vmem:[%s445_s0 + $0x4] ss:$8 sps:$4 sm:$0xff]   ;;  %v348_v12 = vld [vmem:[%s445_s0 + $0x14] ss:$8 sps:$4 sm:$0xff]   ;;  %v343_v18 = vld [vmem:[%s445_s0] ss:$8 sps:$4 sm:$0xff]  }
   0x6   :  { %v339_v14 = vld [vmem:[%s444_s1 + $0x48] sm:$0xff]   ;;  %211 = vmatprep.mubr.bf16.mxu0 %v345_v11  ;;  %219 = vmatprep.mubr.bf16.mxu1 %v348_v12  ;;  %v341_v16 = vld [vmem:[%s444_s1 + $0x40] sm:$0xff]   ;;  %v346_v19 = vld [vmem:[%s445_s0 + $0x10] ss:$8 sps:$4 sm:$0xff]  }
   0x7   :  { %286 = vmatpush3.bf16.msra.mxu0 %v330_v3  ;;  %320 = vmatpush3.bf16.msra.mxu1 %v330_v3  ;;  %v340_v15 = vld [vmem:[%s444_s1 + $0x8] sm:$0xff]   ;;  %v342_v17 = vld [vmem:[%s444_s1] sm:$0xff]  }
   0x8   :  { %287 = vmatprep.subr.bf16.mxu0 %v331_v4  ;;  %313 = vmatprep.subr.bf16.mxu1 %v331_v4  ;;  %v282_v23 = vld [vmem:[%s446_s2] ss:$0 sm:$0xff] }
   0xb   :  { %288 = vmatpush3.bf16.msra.mxu0 %v332_v5  ;;  %321 = vmatpush3.bf16.msra.mxu1 %v332_v5 }
   0xc   :  { %289 = vmatprep.subr.bf16.mxu0 %v333_v6  ;;  %314 = vmatprep.subr.bf16.mxu1 %v333_v6 }
   0xf   :  { %290 = vmatpush3.bf16.msra.mxu0 %v334_v7  ;;  %322 = vmatpush3.bf16.msra.mxu1 %v334_v7 }
  0x10   :  { %291 = vmatprep.subr.bf16.mxu0 %v335_v8  ;;  %315 = vmatprep.subr.bf16.mxu1 %v335_v8 }
  0x13   :  { %292 = vmatpush3.bf16.msra.mxu0 %v336_v9  ;;  %323 = vmatpush3.bf16.msra.mxu1 %v336_v9 }
  0x14   :  { %293 = vmatprep.subr.bf16.mxu0 %v337_v10  ;;  %316 = vmatprep.subr.bf16.mxu1 %v337_v10 }
  0x17   :  { %294 = vmatpush3.bf16.msra.mxu0 %v338_v13  ;;  %324 = vmatpush3.bf16.msra.mxu1 %v338_v13 }
  0x18   :  { %295 = vmatprep.subr.bf16.mxu0 %v339_v14  ;;  %317 = vmatprep.subr.bf16.mxu1 %v339_v14 }
  0x1b   :  { %296 = vmatpush3.bf16.msra.mxu0 %v340_v15  ;;  %325 = vmatpush3.bf16.msra.mxu1 %v340_v15 }
  0x1c   :  { %297 = vmatprep.subr.bf16.mxu0 %v341_v16  ;;  %318 = vmatprep.subr.bf16.mxu1 %v341_v16 }
  0x1f   :  { %298 = vmatpush3.bf16.msra.mxu0 %v342_v17  ;;  %326 = vmatpush3.bf16.msra.mxu1 %v342_v17 }
  0x22   :  { %212 = vmatmul.mubr.bf16.vlgmr.msra.gmra.mxu0 %v343_v18  ;;  %220 = vmatmul.mubr.bf16.vlgmr.msra.gmra.mxu1 %v346_v19 }
  0xe2   :  { %v299_v20 = vpop.f32.mrf.mxu0  ;;  %v305_v21 = vpop.f32.mrf.mxu1 }
  0xe4   :  { %v300_v22 = vpop.f32.mrf.mxu0  ;;  %v306_v24 = vpop.f32.mrf.mxu1 }
  0xe5   :  { %v301_v25 = vadd.f32 %v300_v22, %v299_v20  ;;  %v307_v26 = vadd.f32 %v306_v24, %v305_v21 }
  0xe6   :  { %v302_v27 = vpop.f32.mrf.mxu0  ;;  %v308_v28 = vpop.f32.mrf.mxu1 }
  0xe7   :  { %v250_v29 = vadd.f32 %v301_v25, %v282_v23  ;;  %v252_v30 = vadd.f32 %v307_v26, %v282_v23 }
  0xe8   :  { %v303_v31 = vpop.f32.mrf.mxu0  ;;  %v309_v32 = vpop.f32.mrf.mxu1 }
  0xe9   :  { %254 = vst [vmem:[%s447_s3] sm:$0xff] %v250_v29  ;;  %256 = vst [vmem:[%s447_s3 + $0x10] sm:$0xff] %v252_v30  ;;  %v304_v33 = vadd.f32 %v303_v31, %v302_v27  ;;  %v310_v34 = vadd.f32 %v309_v32, %v308_v28 }
  0xeb   :  { %v251_v35 = vadd.f32 %v304_v33, %v282_v23  ;;  %v253_v36 = vadd.f32 %v310_v34, %v282_v23 }
  0xed   :  { %255 = vst [vmem:[%s447_s3 + $0x8] sm:$0xff] %v251_v35  ;;  %257 = vst [vmem:[%s447_s3 + $0x18] sm:$0xff] %v253_v36 }

// kernel: generator_forward.52
= control target key start
LH: loop header
LB: loop body
LE: loop exit
PB: predicated region body
PF: predicated region fallthrough
CT: control target
= control target key end

     0   :  { %s864_s12 = smov 0   ;;  %s866_s13 = smov 0   ;;  %s970_s0 = inlined_call_operand.vmem [shape: bf16[32,512], index: 0, kind: input, shape index: {}]   ;;  %s971_s1 = inlined_call_operand.vmem [shape: bf16[512,128], index: 1, kind: input, shape index: {}]   ;;  %s972_s2 = inlined_call_operand.vmem [shape: f32[1,128], index: 2, kind: input, shape index: {}]   ;;  %s973_s3 = inlined_call_operand.vmem [shape: f32[32,128], index: 3, kind: output, shape index: {}]  }
   0x1   :  { %s868_s14 = smov 0   ;;  %s870_s15 = smov 0  }
   0x2   :  { %s872_s16 = smov 0  }
   0x3 LB: > { %s25_s17 = sadd.s32 1, %s837_s15  ;;  %p48_p1 = scmp.ne.s32.totalorder %s829_s13, %s825_s12  ;;  %s841_s16 = sphi %s872_s16, %s13_s16   ;;  %s837_s15 = sphi %s870_s15, %s977_s15   ;;  %s833_s14 = sphi %s868_s14, %s976_s14   ;;  %s829_s13 = sphi %s866_s13, %s975_s13   ;;  %s825_s12 = sphi %s864_s12, %s974_s12  }
   0x4   : > { %p26_p0 = scmp.ge.s32.totalorder %s25_s17, 2  ;;  %p49_p2 = scmp.eq.s32.totalorder %s841_s16, 0 }
   0x5   : > { %s41_s19 = sadd.s32 1, %s829_s13  ;;  %p660_p5 = scmp.ge.s32.totalorder %s841_s16, 2 }
   0x6   : > { %s979_s17 = smov (%p26_p0, %s25_s17), 0  ;;  %p50_p3 = por %p49_p2, %p48_p1 }
   0x7   : > { %s37_s18 = ssub.s32 %s837_s15, %s979_s17  ;;  %162 = sbr.rel (%p660_p5) target bundleno = 18 (0x12), region = 20 }
   0x8   : > { %p39_p4 = scmp.eq.s32.totalorder %s37_s18, 0 }
   0xa   : > { %s899_s20 = scalar_select %p39_p4, %s829_s13, %s41_s19  }
   0xc   : > { %165 = sbr.rel (!%p50_p3) target bundleno = 18 (0x12), region = 24  ;;  %s167_s21 = sand.u32 (%p50_p3), 1, %s829_s13  }
   0xd   : > { %s695_s22 = sshll.u32 (%p50_p3), %s837_s15, 3  ;;  %s661_s23 = sshll.u32 (%p50_p3), %s167_s21, 5 }
   0xe   : > { %s175_s26 = scalar_lea.vmem (%p50_p3), %s970_s0, %s695_s22  ;;  %s169_s27 = scalar_lea.vmem (%p50_p3), [#allocation3], %s661_s23 }
   0xf   : > { %v210_v0 = vld [vmem:[%s175_s26] sm:$0xff] (%p50_p3)  ;;  %v212_v1 = vld [vmem:[%s175_s26 + $0x10] sm:$0xff] (%p50_p3) }
  0x10   : > { %v214_v2 = vld [vmem:[%s175_s26 + $0x20] sm:$0xff] (%p50_p3)  ;;  %211 = vst [vmem:[%s169_s27] sm:$0xff] (%p50_p3), %v210_v0  ;;  %213 = vst [vmem:[%s169_s27 + $0x8] sm:$0xff] (%p50_p3), %v212_v1  ;;  %v216_v3 = vld [vmem:[%s175_s26 + $0x30] sm:$0xff] (%p50_p3) }
  0x11   : > { %215 = vst [vmem:[%s169_s27 + $0x10] sm:$0xff] %v214_v2  ;;  %217 = vst [vmem:[%s169_s27 + $0x18] sm:$0xff] %v216_v3 }
  0x12 PF: > { %p664_p6 = scmp.ge.s32.totalorder %s841_s16, 1  ;;  %p234_p7 = scmp.lt.s32.totalorder %s841_s16, 3 }
  0x14   : > { %p235_p8 = pnand %p664_p6, %p234_p7 }
  0x15   : > { %s241_s28 = sand.u32 (!%p235_p8), 1, %s825_s12   ;;  %s666_s29 = sshll.u32 (!%p235_p8), %s833_s14, 5 }
  0x16   : > { %238 = sbr.rel (%p235_p8) target bundleno = 282 (0x11a), region = 66  ;;  %s665_s30 = sshll.u32 (!%p235_p8), %s241_s28, 5 }
  0x17   : > { %p281_p9 = scmp.lt.s32.totalorder (!%p235_p8), %s666_s29, 63  ;;  %s916_s8 = scalar_lea.vmem (!%p235_p8), [#allocation3], %s665_s30 }
  0x18   : > { %p668_p10 = scmp.ne.s32.totalorder (!%p235_p8), %s833_s14, 0 }
  0x1b   : > { %s981_s29 = smov (!%p281_p9, %s666_s29), 63  ;;  %305 = sbr.rel (%p668_p10) target bundleno = 35 (0x23), region = 74 }
  0x1c   : > { %s667_s4 = sshll.u32 %s981_s29, 2 }
  0x1d   : > { %s914_s7 = scalar_lea.vmem %s971_s1, %s667_s4 }
  0x20   : > { %v843_v4 = vmov 0.0  }
  0x21   : > { %306 = vst [vmem:[#allocation2 + $0x10] sm:$0xff] %v843_v4  ;;  %307 = vst [vmem:[#allocation2] sm:$0xff] %v843_v4 }
  0x22   : > { %308 = vst [vmem:[#allocation2 + $0x18] sm:$0xff] %v843_v4  ;;  %309 = vst [vmem:[#allocation2 + $0x8] sm:$0xff] %v843_v4 }
  0x23 PF: > { %v781_v5 = vld [vmem:[%s914_s7 + $0x78] sm:$0xff]   ;;  %v783_v7 = vld [vmem:[%s914_s7 + $0x70] sm:$0xff]   ;;  %v785_v9 = vld [vmem:[%s914_s7 + $0x68] sm:$0xff]   ;;  %p689_p11 = scmp.ne.s32.totalorder %s833_s14, 1 }
  0x24   : > { %v782_v6 = vld [vmem:[%s914_s7 + $0x38] sm:$0xff]   ;;  %696 = vmatprep.subr.bf16.mxu0 %v781_v5  ;;  %724 = vmatprep.subr.bf16.mxu1 %v781_v5  ;;  %v784_v8 = vld [vmem:[%s914_s7 + $0x30] sm:$0xff]   ;;  %v786_v10 = vld [vmem:[%s914_s7 + $0x28] sm:$0xff]  }
  0x25   : > { %697 = vmatpush3.bf16.msra.mxu0 %v782_v6  ;;  %732 = vmatpush3.bf16.msra.mxu1 %v782_v6  ;;  %v787_v11 = vld [vmem:[%s914_s7 + $0x60] sm:$0xff]   ;;  %v789_v13 = vld [vmem:[%s914_s7 + $0x58] sm:$0xff]   ;;  %v791_v15 = vld [vmem:[%s914_s7 + $0x50] sm:$0xff]  }
  0x26   : > { %698 = vmatprep.subr.bf16.mxu0 %v783_v7  ;;  %725 = vmatprep.subr.bf16.mxu1 %v783_v7  ;;  %v788_v12 = vld [vmem:[%s914_s7 + $0x20] sm:$0xff]   ;;  %v790_v14 = vld [vmem:[%s914_s7 + $0x18] sm:$0xff]   ;;  %v792_v18 = vld [vmem:[%s914_s7 + $0x10] sm:$0xff]  }
  0x27   : > { %v799_v16 = vld [vmem:[%s916_s8 + $0x4] ss:$8 sps:$4 sm:$0xff]   ;;  %v802_v17 = vld [vmem:[%s916_s8 + $0x14] ss:$8 sps:$4 sm:$0xff]   ;;  %v797_v23 = vld [vmem:[%s916_s8] ss:$8 sps:$4 sm:$0xff]  }
  0x28   : > { %v793_v19 = vld [vmem:[%s914_s7 + $0x48] sm:$0xff]   ;;  %498 = vmatprep.mubr.bf16.mxu0 %v799_v16  ;;  %506 = vmatprep.mubr.bf16.mxu1 %v802_v17  ;;  %v795_v21 = vld [vmem:[%s914_s7 + $0x40] sm:$0xff]   ;;  %v800_v24 = vld [vmem:[%s916_s8 + $0x10] ss:$8 sps:$4 sm:$0xff]  }
  0x29   : > { %699 = vmatpush3.bf16.msra.mxu0 %v784_v8  ;;  %733 = vmatpush3.bf16.msra.mxu1 %v784_v8  ;;  %v794_v20 = vld [vmem:[%s914_s7 + $0x8] sm:$0xff]   ;;  %v796_v22 = vld [vmem:[%s914_s7] sm:$0xff]   ;;  %v310_v27 = vld [vmem:[#allocation2 + $0x10] sm:$0xff] }
  0x2a   : > { %700 = vmatprep.subr.bf16.mxu0 %v785_v9  ;;  %726 = vmatprep.subr.bf16.mxu1 %v785_v9  ;;  %v312_v29 = vld [vmem:[#allocation2 + $0x18] sm:$0xff]  ;;  %v311_v37 = vld [vmem:[#allocation2] sm:$0xff]  ;;  %v313_v39 = vld [vmem:[#allocation2 + $0x8] sm:$0xff] }
  0x2d   : > { %701 = vmatpush3.bf16.msra.mxu0 %v786_v10  ;;  %734 = vmatpush3.bf16.msra.mxu1 %v786_v10 }
  0x2e   : > { %702 = vmatprep.subr.bf16.mxu0 %v787_v11  ;;  %727 = vmatprep.subr.bf16.mxu1 %v787_v11 }
  0x31   : > { %703 = vmatpush3.bf16.msra.mxu0 %v788_v12  ;;  %735 = vmatpush3.bf16.msra.mxu1 %v788_v12 }
  0x32   : > { %704 = vmatprep.subr.bf16.mxu0 %v789_v13  ;;  %728 = vmatprep.subr.bf16.mxu1 %v789_v13 }
  0x35   : > { %705 = vmatpush3.bf16.msra.mxu0 %v790_v14  ;;  %736 = vmatpush3.bf16.msra.mxu1 %v790_v14 }
  0x36   : > { %706 = vmatprep.subr.bf16.mxu0 %v791_v15  ;;  %729 = vmatprep.subr.bf16.mxu1 %v791_v15 }
  0x39   : > { %707 = vmatpush3.bf16.msra.mxu0 %v792_v18  ;;  %737 = vmatpush3.bf16.msra.mxu1 %v792_v18 }
  0x3a   : > { %708 = vmatprep.subr.bf16.mxu0 %v793_v19  ;;  %730 = vmatprep.subr.bf16.mxu1 %v793_v19 }
  0x3d   : > { %709 = vmatpush3.bf16.msra.mxu0 %v794_v20  ;;  %738 = vmatpush3.bf16.msra.mxu1 %v794_v20 }
  0x3e   : > { %710 = vmatprep.subr.bf16.mxu0 %v795_v21  ;;  %731 = vmatprep.subr.bf16.mxu1 %v795_v21 }
  0x41   : > { %711 = vmatpush3.bf16.msra.mxu0 %v796_v22  ;;  %739 = vmatpush3.bf16.msra.mxu1 %v796_v22 }
  0x44   : > { %499 = vmatmul.mubr.bf16.vlgmr.msra.gmra.mxu0 %v797_v23  ;;  %507 = vmatmul.mubr.bf16.vlgmr.msra.gmra.mxu1 %v800_v24 }
 0x104   : > { %v712_v25 = vpop.f32.mrf.mxu0  ;;  %v718_v26 = vpop.f32.mrf.mxu1 }
 0x106   : > { %v713_v28 = vpop.f32.mrf.mxu0  ;;  %v719_v30 = vpop.f32.mrf.mxu1 }
 0x107   : > { %v714_v31 = vadd.f32 %v713_v28, %v712_v25  ;;  %v720_v32 = vadd.f32 %v719_v30, %v718_v26 }
 0x108   : > { %v715_v33 = vpop.f32.mrf.mxu0  ;;  %v721_v34 = vpop.f32.mrf.mxu1 }
 0x109   : > { %v515_v35 = vadd.f32 %v714_v31, %v310_v27  ;;  %v517_v36 = vadd.f32 %v720_v32, %v312_v29 }
 0x10a   : > { %v716_v38 = vpop.f32.mrf.mxu0  ;;  %v722_v40 = vpop.f32.mrf.mxu1 }
 0x10b   : > { %519 = vst [vmem:[#allocation2 + $0x10] sm:$0xff] %v515_v35  ;;  %521 = vst [vmem:[#allocation2 + $0x18] sm:$0xff] %v517_v36  ;;  %v717_v41 = vadd.f32 %v716_v38, %v715_v33  ;;  %v723_v42 = vadd.f32 %v722_v40, %v721_v34  ;;  %526 = sbr.rel (%p689_p11) target bundleno = 282 (0x11a), region = 78 }
 0x10d   : > { %v516_v43 = vadd.f32 %v717_v41, %v311_v37  ;;  %v518_v44 = vadd.f32 %v723_v42, %v313_v39 }
 0x10f   : > { %520 = vst [vmem:[#allocation2] sm:$0xff] %v516_v43  ;;  %522 = vst [vmem:[#allocation2 + $0x8] sm:$0xff] %v518_v44 }
 0x110   : > { %v690_v46 = vld [vmem:[%s972_s2] ss:$0 sm:$0xff] }
 0x112   : > { %v527_v45 = vld [vmem:[#allocation2 + $0x10] sm:$0xff]  ;;  %v529_v50 = vld [vmem:[#allocation2 + $0x18] sm:$0xff] }
 0x113   : > { %v538_v48 = vadd.f32 %v690_v46, %v527_v45  ;;  %v540_v52 = vadd.f32 %v690_v46, %v529_v50 }
 0x115   : > { %542 = vst [vmem:[%s973_s3] sm:$0xff] %v538_v48  ;;  %544 = vst [vmem:[%s973_s3 + $0x10] sm:$0xff] %v540_v52 }
 0x116   : > { %v528_v47 = vld [vmem:[#allocation2] sm:$0xff]  ;;  %v530_v51 = vld [vmem:[#allocation2 + $0x8] sm:$0xff] }
 0x117   : > { %v539_v49 = vadd.f32 %v690_v46, %v528_v47  ;;  %v541_v53 = vadd.f32 %v690_v46, %v530_v51 }
 0x119   : > { %543 = vst [vmem:[%s973_s3 + $0x8] sm:$0xff] %v539_v49  ;;  %545 = vst [vmem:[%s973_s3 + $0x18] sm:$0xff] %v541_v53 }
 0x11a PF: > { %s13_s16 = sadd.s32 1, %s841_s16   ;;  %s974_s12 = smov %s829_s13 }
 0x11b   : > { %p10_p12 = scmp.ge.s32.totalorder %s13_s16, 4   ;;  %s975_s13 = smov %s899_s20 }
 0x11c   : > { %s976_s14 = smov %s837_s15  ;;  %s977_s15 = smov %s979_s17 }
 0x11d   :  { %12 = sbr.rel (!%p10_p12) target bundleno = 3 (0x3), region = 119 }

// kernel: generator_forward.54
= control target key start
LH: loop header
LB: loop body
LE: loop exit
PB: predicated region body
PF: predicated region fallthrough
CT: control target
= control target key end

     0   :  { %s864_s12 = smov 0   ;;  %s866_s13 = smov 0   ;;  %s970_s0 = inlined_call_operand.vmem [shape: bf16[32,1024], index: 0, kind: input, shape index: {}]   ;;  %s971_s1 = inlined_call_operand.vmem [shape: bf16[1024,128], index: 1, kind: input, shape index: {}]   ;;  %s972_s2 = inlined_call_operand.vmem [shape: f32[1,128], index: 2, kind: input, shape index: {}]   ;;  %s973_s3 = inlined_call_operand.vmem [shape: f32[32,128], index: 3, kind: output, shape index: {}]  }
   0x1   :  { %s868_s14 = smov 0   ;;  %s870_s15 = smov 0  }
   0x2   :  { %s872_s16 = smov 0  }
   0x3 LB: > { %s25_s17 = sadd.s32 1, %s837_s15  ;;  %p48_p1 = scmp.ne.s32.totalorder %s829_s13, %s825_s12  ;;  %s841_s16 = sphi %s872_s16, %s13_s16   ;;  %s837_s15 = sphi %s870_s15, %s977_s15   ;;  %s833_s14 = sphi %s868_s14, %s976_s14   ;;  %s829_s13 = sphi %s866_s13, %s975_s13   ;;  %s825_s12 = sphi %s864_s12, %s974_s12  }
   0x4   : > { %p26_p0 = scmp.ge.s32.totalorder %s25_s17, 4  ;;  %p49_p2 = scmp.eq.s32.totalorder %s841_s16, 0 }
   0x5   : > { %s41_s19 = sadd.s32 1, %s829_s13  ;;  %p660_p5 = scmp.ge.s32.totalorder %s841_s16, 4 }
   0x6   : > { %s979_s17 = smov (%p26_p0, %s25_s17), 0  ;;  %p50_p3 = por %p49_p2, %p48_p1 }
   0x7   : > { %s37_s18 = ssub.s32 %s837_s15, %s979_s17  ;;  %162 = sbr.rel (%p660_p5) target bundleno = 20 (0x14), region = 20 }
   0x8   : > { %p39_p4 = scmp.eq.s32.totalorder %s37_s18, 0 }
   0xa   : > { %s899_s20 = scalar_select %p39_p4, %s829_s13, %s41_s19  }
   0xc   : > { %165 = sbr.rel (!%p50_p3) target bundleno = 20 (0x14), region = 24  ;;  %s167_s21 = sand.u32 (%p50_p3), 1, %s829_s13  }
   0xd   : > { %s695_s22 = sshll.u32 (%p50_p3), %s837_s15, 3  ;;  %s661_s23 = sshll.u32 (%p50_p3), %s167_s21, 5 }
   0xe   : > { %s175_s26 = scalar_lea.vmem (%p50_p3), %s970_s0, %s695_s22  ;;  %s169_s27 = scalar_lea.vmem (%p50_p3), [#allocation3], %s661_s23 }
   0xf   : > { %v210_v0 = vld [vmem:[%s175_s26] sm:$0xff] (%p50_p3) }
  0x10   : > { %v212_v1 = vld [vmem:[%s175_s26 + $0x20] sm:$0xff] (%p50_p3)  ;;  %211 = vst [vmem:[%s169_s27] sm:$0xff] (%p50_p3), %v210_v0 }
  0x11   : > { %v214_v2 = vld [vmem:[%s175_s26 + $0x40] sm:$0xff]  ;;  %213 = vst [vmem:[%s169_s27 + $0x8] sm:$0xff] %v212_v1 }
  0x12   : > { %215 = vst [vmem:[%s169_s27 + $0x10] sm:$0xff] %v214_v2  ;;  %v216_v3 = vld [vmem:[%s175_s26 + $0x60] sm:$0xff] }
  0x13   : > { %217 = vst [vmem:[%s169_s27 + $0x18] sm:$0xff] %v216_v3 }
  0x14 PF: > { %p664_p6 = scmp.ge.s32.totalorder %s841_s16, 1  ;;  %p234_p7 = scmp.lt.s32.totalorder %s841_s16, 5 }
  0x16   : > { %p235_p8 = pnand %p664_p6, %p234_p7 }
  0x17   : > { %s241_s28 = sand.u32 (!%p235_p8), 1, %s825_s12   ;;  %s666_s29 = sshll.u32 (!%p235_p8), %s833_s14, 5 }
  0x18   : > { %238 = sbr.rel (%p235_p8) target bundleno = 284 (0x11c), region = 66  ;;  %s665_s30 = sshll.u32 (!%p235_p8), %s241_s28, 5 }
  0x19   : > { %p281_p9 = scmp.lt.s32.totalorder (!%p235_p8), %s666_s29, 127  ;;  %s916_s8 = scalar_lea.vmem (!%p235_p8), [#allocation3], %s665_s30 }
  0x1a   : > { %p668_p10 = scmp.ne.s32.totalorder (!%p235_p8), %s833_s14, 0 }
  0x1d   : > { %s981_s29 = smov (!%p281_p9, %s666_s29), 127  ;;  %305 = sbr.rel (%p668_p10) target bundleno = 37 (0x25), region = 74 }
  0x1e   : > { %s667_s4 = sshll.u32 %s981_s29, 2 }
  0x1f   : > { %s914_s7 = scalar_lea.vmem %s971_s1, %s667_s4 }
  0x22   : > { %v843_v4 = vmov 0.0  }
  0x23   : > { %306 = vst [vmem:[#allocation2 + $0x10] sm:$0xff] %v843_v4  ;;  %307 = vst [vmem:[#allocation2] sm:$0xff] %v843_v4 }
  0x24   : > { %308 = vst [vmem:[#allocation2 + $0x18] sm:$0xff] %v843_v4  ;;  %309 = vst [vmem:[#allocation2 + $0x8] sm:$0xff] %v843_v4 }
  0x25 PF: > { %v781_v5 = vld [vmem:[%s914_s7 + $0x78] sm:$0xff]   ;;  %v783_v7 = vld [vmem:[%s914_s7 + $0x70] sm:$0xff]   ;;  %v785_v9 = vld [vmem:[%s914_s7 + $0x68] sm:$0xff]   ;;  %p689_p11 = scmp.ne.s32.totalorder %s833_s14, 3 }
  0x26   : > { %v782_v6 = vld [vmem:[%s914_s7 + $0x38] sm:$0xff]   ;;  %696 = vmatprep.subr.bf16.mxu0 %v781_v5  ;;  %724 = vmatprep.subr.bf16.mxu1 %v781_v5  ;;  %v784_v8 = vld [vmem:[%s914_s7 + $0x30] sm:$0xff]   ;;  %v786_v10 = vld [vmem:[%s914_s7 + $0x28] sm:$0xff]  }
  0x27   : > { %697 = vmatpush3.bf16.msra.mxu0 %v782_v6  ;;  %732 = vmatpush3.bf16.msra.mxu1 %v782_v6  ;;  %v787_v11 = vld [vmem:[%s914_s7 + $0x60] sm:$0xff]   ;;  %v789_v13 = vld [vmem:[%s914_s7 + $0x58] sm:$0xff]   ;;  %v791_v15 = vld [vmem:[%s914_s7 + $0x50] sm:$0xff]  }
  0x28   : > { %698 = vmatprep.subr.bf16.mxu0 %v783_v7  ;;  %725 = vmatprep.subr.bf16.mxu1 %v783_v7  ;;  %v788_v12 = vld [vmem:[%s914_s7 + $0x20] sm:$0xff]   ;;  %v790_v14 = vld [vmem:[%s914_s7 + $0x18] sm:$0xff]   ;;  %v792_v18 = vld [vmem:[%s914_s7 + $0x10] sm:$0xff]  }
  0x29   : > { %v799_v16 = vld [vmem:[%s916_s8 + $0x4] ss:$8 sps:$4 sm:$0xff]   ;;  %v802_v17 = vld [vmem:[%s916_s8 + $0x14] ss:$8 sps:$4 sm:$0xff]   ;;  %v797_v23 = vld [vmem:[%s916_s8] ss:$8 sps:$4 sm:$0xff]  }
  0x2a   : > { %v793_v19 = vld [vmem:[%s914_s7 + $0x48] sm:$0xff]   ;;  %498 = vmatprep.mubr.bf16.mxu0 %v799_v16  ;;  %506 = vmatprep.mubr.bf16.mxu1 %v802_v17  ;;  %v795_v21 = vld [vmem:[%s914_s7 + $0x40] sm:$0xff]   ;;  %v800_v24 = vld [vmem:[%s916_s8 + $0x10] ss:$8 sps:$4 sm:$0xff]  }
  0x2b   : > { %699 = vmatpush3.bf16.msra.mxu0 %v784_v8  ;;  %733 = vmatpush3.bf16.msra.mxu1 %v784_v8  ;;  %v794_v20 = vld [vmem:[%s914_s7 + $0x8] sm:$0xff]   ;;  %v796_v22 = vld [vmem:[%s914_s7] sm:$0xff]   ;;  %v310_v27 = vld [vmem:[#allocation2 + $0x10] sm:$0xff] }
  0x2c   : > { %700 = vmatprep.subr.bf16.mxu0 %v785_v9  ;;  %726 = vmatprep.subr.bf16.mxu1 %v785_v9  ;;  %v312_v29 = vld [vmem:[#allocation2 + $0x18] sm:$0xff]  ;;  %v311_v37 = vld [vmem:[#allocation2] sm:$0xff]  ;;  %v313_v39 = vld [vmem:[#allocation2 + $0x8] sm:$0xff] }
  0x2f   : > { %701 = vmatpush3.bf16.msra.mxu0 %v786_v10  ;;  %734 = vmatpush3.bf16.msra.mxu1 %v786_v10 }
  0x30   : > { %702 = vmatprep.subr.bf16.mxu0 %v787_v11  ;;  %727 = vmatprep.subr.bf16.mxu1 %v787_v11 }
  0x33   : > { %703 = vmatpush3.bf16.msra.mxu0 %v788_v12  ;;  %735 = vmatpush3.bf16.msra.mxu1 %v788_v12 }
  0x34   : > { %704 = vmatprep.subr.bf16.mxu0 %v789_v13  ;;  %728 = vmatprep.subr.bf16.mxu1 %v789_v13 }
  0x37   : > { %705 = vmatpush3.bf16.msra.mxu0 %v790_v14  ;;  %736 = vmatpush3.bf16.msra.mxu1 %v790_v14 }
  0x38   : > { %706 = vmatprep.subr.bf16.mxu0 %v791_v15  ;;  %729 = vmatprep.subr.bf16.mxu1 %v791_v15 }
  0x3b   : > { %707 = vmatpush3.bf16.msra.mxu0 %v792_v18  ;;  %737 = vmatpush3.bf16.msra.mxu1 %v792_v18 }
  0x3c   : > { %708 = vmatprep.subr.bf16.mxu0 %v793_v19  ;;  %730 = vmatprep.subr.bf16.mxu1 %v793_v19 }
  0x3f   : > { %709 = vmatpush3.bf16.msra.mxu0 %v794_v20  ;;  %738 = vmatpush3.bf16.msra.mxu1 %v794_v20 }
  0x40   : > { %710 = vmatprep.subr.bf16.mxu0 %v795_v21  ;;  %731 = vmatprep.subr.bf16.mxu1 %v795_v21 }
  0x43   : > { %711 = vmatpush3.bf16.msra.mxu0 %v796_v22  ;;  %739 = vmatpush3.bf16.msra.mxu1 %v796_v22 }
  0x46   : > { %499 = vmatmul.mubr.bf16.vlgmr.msra.gmra.mxu0 %v797_v23  ;;  %507 = vmatmul.mubr.bf16.vlgmr.msra.gmra.mxu1 %v800_v24 }
 0x106   : > { %v712_v25 = vpop.f32.mrf.mxu0  ;;  %v718_v26 = vpop.f32.mrf.mxu1 }
 0x108   : > { %v713_v28 = vpop.f32.mrf.mxu0  ;;  %v719_v30 = vpop.f32.mrf.mxu1 }
 0x109   : > { %v714_v31 = vadd.f32 %v713_v28, %v712_v25  ;;  %v720_v32 = vadd.f32 %v719_v30, %v718_v26 }
 0x10a   : > { %v715_v33 = vpop.f32.mrf.mxu0  ;;  %v721_v34 = vpop.f32.mrf.mxu1 }
 0x10b   : > { %v515_v35 = vadd.f32 %v714_v31, %v310_v27  ;;  %v517_v36 = vadd.f32 %v720_v32, %v312_v29 }
 0x10c   : > { %v716_v38 = vpop.f32.mrf.mxu0  ;;  %v722_v40 = vpop.f32.mrf.mxu1 }
 0x10d   : > { %519 = vst [vmem:[#allocation2 + $0x10] sm:$0xff] %v515_v35  ;;  %521 = vst [vmem:[#allocation2 + $0x18] sm:$0xff] %v517_v36  ;;  %v717_v41 = vadd.f32 %v716_v38, %v715_v33  ;;  %v723_v42 = vadd.f32 %v722_v40, %v721_v34  ;;  %526 = sbr.rel (%p689_p11) target bundleno = 284 (0x11c), region = 78 }
 0x10f   : > { %v516_v43 = vadd.f32 %v717_v41, %v311_v37  ;;  %v518_v44 = vadd.f32 %v723_v42, %v313_v39 }
 0x111   : > { %520 = vst [vmem:[#allocation2] sm:$0xff] %v516_v43  ;;  %522 = vst [vmem:[#allocation2 + $0x8] sm:$0xff] %v518_v44 }
 0x112   : > { %v690_v46 = vld [vmem:[%s972_s2] ss:$0 sm:$0xff] }
 0x114   : > { %v527_v45 = vld [vmem:[#allocation2 + $0x10] sm:$0xff]  ;;  %v529_v50 = vld [vmem:[#allocation2 + $0x18] sm:$0xff] }
 0x115   : > { %v538_v48 = vadd.f32 %v690_v46, %v527_v45  ;;  %v540_v52 = vadd.f32 %v690_v46, %v529_v50 }
 0x117   : > { %542 = vst [vmem:[%s973_s3] sm:$0xff] %v538_v48  ;;  %544 = vst [vmem:[%s973_s3 + $0x10] sm:$0xff] %v540_v52 }
 0x118   : > { %v528_v47 = vld [vmem:[#allocation2] sm:$0xff]  ;;  %v530_v51 = vld [vmem:[#allocation2 + $0x8] sm:$0xff] }
 0x119   : > { %v539_v49 = vadd.f32 %v690_v46, %v528_v47  ;;  %v541_v53 = vadd.f32 %v690_v46, %v530_v51 }
 0x11b   : > { %543 = vst [vmem:[%s973_s3 + $0x8] sm:$0xff] %v539_v49  ;;  %545 = vst [vmem:[%s973_s3 + $0x18] sm:$0xff] %v541_v53 }
 0x11c PF: > { %s13_s16 = sadd.s32 1, %s841_s16   ;;  %s974_s12 = smov %s829_s13 }
 0x11d   : > { %p10_p12 = scmp.ge.s32.totalorder %s13_s16, 6   ;;  %s975_s13 = smov %s899_s20 }
 0x11e   : > { %s976_s14 = smov %s837_s15  ;;  %s977_s15 = smov %s979_s17 }
 0x11f   :  { %12 = sbr.rel (!%p10_p12) target bundleno = 3 (0x3), region = 119 }

// kernel: generator_forward.57
= control target key start
LH: loop header
LB: loop body
LE: loop exit
PB: predicated region body
PF: predicated region fallthrough
CT: control target
= control target key end

     0   :  { %s804_s1 = inlined_call_operand.vmem [shape: bf16[256,128], index: 1, kind: input, shape index: {}]   ;;  %s805_s0 = inlined_call_operand.vmem [shape: bf16[128,256], index: 0, kind: input, shape index: {}]   ;;  %s806_s2 = inlined_call_operand.vmem [shape: f32[1,128], index: 2, kind: input, shape index: {}]   ;;  %s807_s3 = inlined_call_operand.vmem [shape: f32[128,128], index: 3, kind: output, shape index: {}]  }
   0x1   :  { %v579_v0 = vld [vmem:[%s804_s1 + $0x78] sm:$0xff]   ;;  %v581_v2 = vld [vmem:[%s804_s1 + $0x70] sm:$0xff]   ;;  %v583_v4 = vld [vmem:[%s804_s1 + $0x68] sm:$0xff]  }
   0x2   :  { %v580_v1 = vld [vmem:[%s804_s1 + $0x38] sm:$0xff]   ;;  %499 = vmatprep.subr.bf16.mxu0 %v579_v0  ;;  %563 = vmatprep.subr.bf16.mxu1 %v579_v0  ;;  %v582_v3 = vld [vmem:[%s804_s1 + $0x30] sm:$0xff]   ;;  %v584_v5 = vld [vmem:[%s804_s1 + $0x28] sm:$0xff]  }
   0x3   :  { %500 = vmatpush3.bf16.msra.mxu0 %v580_v1  ;;  %571 = vmatpush3.bf16.msra.mxu1 %v580_v1  ;;  %v585_v6 = vld [vmem:[%s804_s1 + $0x60] sm:$0xff]   ;;  %v587_v8 = vld [vmem:[%s804_s1 + $0x58] sm:$0xff]   ;;  %v589_v10 = vld [vmem:[%s804_s1 + $0x50] sm:$0xff]  }
   0x4   :  { %501 = vmatprep.subr.bf16.mxu0 %v581_v2  ;;  %564 = vmatprep.subr.bf16.mxu1 %v581_v2  ;;  %v586_v7 = vld [vmem:[%s804_s1 + $0x20] sm:$0xff]   ;;  %v588_v9 = vld [vmem:[%s804_s1 + $0x18] sm:$0xff]   ;;  %v590_v13 = vld [vmem:[%s804_s1 + $0x10] sm:$0xff]  }
   0x5   :  { %v597_v11 = vld [vmem:[%s805_s0 + $0x4] ss:$8 sps:$4 sm:$0xff]   ;;  %v595_v18 = vld [vmem:[%s805_s0] ss:$8 sps:$4 sm:$0xff]   ;;  %v601_v20 = vld [vmem:[%s805_s0 + $0x14] ss:$8 sps:$4 sm:$0xff]  }
   0x6   :  { %v600_v12 = vld [vmem:[%s805_s0 + $0x44] ss:$8 sps:$4 sm:$0xff]   ;;  %307 = vmatprep.mubr.bf16.mxu0 %v597_v11  ;;  %v598_v19 = vld [vmem:[%s805_s0 + $0x40] ss:$8 sps:$4 sm:$0xff]   ;;  %v603_v21 = vld [vmem:[%s805_s0 + $0x54] ss:$8 sps:$4 sm:$0xff]  }
   0x7   :  { %502 = vmatpush3.bf16.msra.mxu0 %v582_v3  ;;  %572 = vmatpush3.bf16.msra.mxu1 %v582_v3  ;;  %v591_v14 = vld [vmem:[%s804_s1 + $0x48] sm:$0xff]   ;;  %v593_v16 = vld [vmem:[%s804_s1 + $0x40] sm:$0xff]   ;;  %v605_v22 = vld [vmem:[%s805_s0 + $0x10] ss:$8 sps:$4 sm:$0xff]  }
   0x8   :  { %503 = vmatprep.subr.bf16.mxu0 %v583_v4  ;;  %565 = vmatprep.subr.bf16.mxu1 %v583_v4  ;;  %v592_v15 = vld [vmem:[%s804_s1 + $0x8] sm:$0xff]   ;;  %v594_v17 = vld [vmem:[%s804_s1] sm:$0xff]   ;;  %v606_v23 = vld [vmem:[%s805_s0 + $0x50] ss:$8 sps:$4 sm:$0xff]  }
   0x9   :  { %339 = vmatprep.mubr.bf16.mxu1 %v600_v12  ;;  %v607_v24 = vld [vmem:[%s805_s0 + $0x24] ss:$8 sps:$4 sm:$0xff]   ;;  %v611_v26 = vld [vmem:[%s805_s0 + $0x20] ss:$8 sps:$4 sm:$0xff]   ;;  %v613_v28 = vld [vmem:[%s805_s0 + $0x34] ss:$8 sps:$4 sm:$0xff]  }
   0xa   :  { %v609_v25 = vld [vmem:[%s805_s0 + $0x64] ss:$8 sps:$4 sm:$0xff]   ;;  %v612_v27 = vld [vmem:[%s805_s0 + $0x60] ss:$8 sps:$4 sm:$0xff]   ;;  %v615_v29 = vld [vmem:[%s805_s0 + $0x74] ss:$8 sps:$4 sm:$0xff]  }
   0xb   :  { %504 = vmatpush3.bf16.msra.mxu0 %v584_v5  ;;  %573 = vmatpush3.bf16.msra.mxu1 %v584_v5  ;;  %v617_v30 = vld [vmem:[%s805_s0 + $0x30] ss:$8 sps:$4 sm:$0xff]   ;;  %v738_v35 = vld [vmem:[%s806_s2] ss:$0 sm:$0xff] }
   0xc   :  { %505 = vmatprep.subr.bf16.mxu0 %v585_v6  ;;  %566 = vmatprep.subr.bf16.mxu1 %v585_v6  ;;  %v618_v31 = vld [vmem:[%s805_s0 + $0x70] ss:$8 sps:$4 sm:$0xff]  }
   0xf   :  { %506 = vmatpush3.bf16.msra.mxu0 %v586_v7  ;;  %574 = vmatpush3.bf16.msra.mxu1 %v586_v7 }
  0x10   :  { %507 = vmatprep.subr.bf16.mxu0 %v587_v8  ;;  %567 = vmatprep.subr.bf16.mxu1 %v587_v8 }
  0x13   :  { %508 = vmatpush3.bf16.msra.mxu0 %v588_v9  ;;  %575 = vmatpush3.bf16.msra.mxu1 %v588_v9 }
  0x14   :  { %509 = vmatprep.subr.bf16.mxu0 %v589_v10  ;;  %568 = vmatprep.subr.bf16.mxu1 %v589_v10 }
  0x17   :  { %510 = vmatpush3.bf16.msra.mxu0 %v590_v13  ;;  %576 = vmatpush3.bf16.msra.mxu1 %v590_v13 }
  0x18   :  { %511 = vmatprep.subr.bf16.mxu0 %v591_v14  ;;  %569 = vmatprep.subr.bf16.mxu1 %v591_v14 }
  0x1b   :  { %512 = vmatpush3.bf16.msra.mxu0 %v592_v15  ;;  %577 = vmatpush3.bf16.msra.mxu1 %v592_v15 }
  0x1c   :  { %513 = vmatprep.subr.bf16.mxu0 %v593_v16  ;;  %570 = vmatprep.subr.bf16.mxu1 %v593_v16 }
  0x1f   :  { %514 = vmatpush3.bf16.msra.mxu0 %v594_v17  ;;  %578 = vmatpush3.bf16.msra.mxu1 %v594_v17 }
  0x22   :  { %308 = vmatmul.mubr.bf16.vlgmr.msra.gmra.mxu0 %v595_v18  ;;  %340 = vmatmul.mubr.bf16.vlgmr.msra.gmra.mxu1 %v598_v19 }
  0x23   :  { %315 = vmatprep.mubr.bf16.mxu0 %v601_v20  ;;  %347 = vmatprep.mubr.bf16.mxu1 %v603_v21 }
  0x2a   :  { %316 = vmatmul.mubr.bf16.gmra.mxu0 %v605_v22  ;;  %348 = vmatmul.mubr.bf16.gmra.mxu1 %v606_v23 }
  0x2b   :  { %323 = vmatprep.mubr.bf16.mxu0 %v607_v24  ;;  %355 = vmatprep.mubr.bf16.mxu1 %v609_v25 }
  0x32   :  { %324 = vmatmul.mubr.bf16.gmra.mxu0 %v611_v26  ;;  %356 = vmatmul.mubr.bf16.gmra.mxu1 %v612_v27 }
  0x33   :  { %331 = vmatprep.mubr.bf16.mxu0 %v613_v28  ;;  %363 = vmatprep.mubr.bf16.mxu1 %v615_v29 }
  0x3a   :  { %332 = vmatmul.mubr.bf16.gmra.mxu0 %v617_v30  ;;  %364 = vmatmul.mubr.bf16.gmra.mxu1 %v618_v31 }
  0xe2   :  { %v515_v32 = vpop.f32.mrf.mxu0  ;;  %v539_v33 = vpop.f32.mrf.mxu1 }
  0xe4   :  { %v516_v34 = vpop.f32.mrf.mxu0  ;;  %v540_v36 = vpop.f32.mrf.mxu1 }
  0xe5   :  { %v517_v37 = vadd.f32 %v516_v34, %v515_v32  ;;  %v541_v38 = vadd.f32 %v540_v36, %v539_v33 }
  0xe6   :  { %v518_v39 = vpop.f32.mrf.mxu0  ;;  %v542_v40 = vpop.f32.mrf.mxu1 }
  0xe7   :  { %v430_v41 = vadd.f32 %v517_v37, %v738_v35  ;;  %v438_v42 = vadd.f32 %v541_v38, %v738_v35 }
  0xe8   :  { %v519_v43 = vpop.f32.mrf.mxu0  ;;  %v543_v44 = vpop.f32.mrf.mxu1 }
  0xe9   :  { %446 = vst [vmem:[%s807_s3] sm:$0xff] %v430_v41  ;;  %454 = vst [vmem:[%s807_s3 + $0x40] sm:$0xff] %v438_v42  ;;  %v520_v45 = vadd.f32 %v519_v43, %v518_v39  ;;  %v544_v46 = vadd.f32 %v543_v44, %v542_v40 }
  0xea   :  { %v521_v47 = vpop.f32.mrf.mxu0  ;;  %v545_v48 = vpop.f32.mrf.mxu1 }
  0xeb   :  { %v431_v49 = vadd.f32 %v520_v45, %v738_v35  ;;  %v439_v50 = vadd.f32 %v544_v46, %v738_v35 }
  0xec   :  { %v522_v51 = vpop.f32.mrf.mxu0  ;;  %v546_v52 = vpop.f32.mrf.mxu1 }
  0xed   :  { %447 = vst [vmem:[%s807_s3 + $0x8] sm:$0xff] %v431_v49  ;;  %455 = vst [vmem:[%s807_s3 + $0x48] sm:$0xff] %v439_v50  ;;  %v523_v53 = vadd.f32 %v522_v51, %v521_v47  ;;  %v547_v54 = vadd.f32 %v546_v52, %v545_v48 }
  0xee   :  { %v524_v55 = vpop.f32.mrf.mxu0  ;;  %v548_v56 = vpop.f32.mrf.mxu1 }
  0xef   :  { %v432_v57 = vadd.f32 %v523_v53, %v738_v35  ;;  %v440_v58 = vadd.f32 %v547_v54, %v738_v35 }
  0xf0   :  { %v525_v59 = vpop.f32.mrf.mxu0  ;;  %v549_v60 = vpop.f32.mrf.mxu1 }
  0xf1   :  { %448 = vst [vmem:[%s807_s3 + $0x10] sm:$0xff] %v432_v57  ;;  %456 = vst [vmem:[%s807_s3 + $0x50] sm:$0xff] %v440_v58  ;;  %v526_v61 = vadd.f32 %v525_v59, %v524_v55  ;;  %v550_v62 = vadd.f32 %v549_v60, %v548_v56 }
  0xf2   :  { %v527_v63 = vpop.f32.mrf.mxu0  ;;  %v551_v0 = vpop.f32.mrf.mxu1 }
  0xf3   :  { %v433_v1 = vadd.f32 %v526_v61, %v738_v35  ;;  %v441_v2 = vadd.f32 %v550_v62, %v738_v35 }
  0xf4   :  { %v528_v3 = vpop.f32.mrf.mxu0  ;;  %v552_v4 = vpop.f32.mrf.mxu1 }
  0xf5   :  { %449 = vst [vmem:[%s807_s3 + $0x18] sm:$0xff] %v433_v1  ;;  %457 = vst [vmem:[%s807_s3 + $0x58] sm:$0xff] %v441_v2  ;;  %v529_v5 = vadd.f32 %v528_v3, %v527_v63  ;;  %v553_v6 = vadd.f32 %v552_v4, %v551_v0 }
  0xf6   :  { %v530_v7 = vpop.f32.mrf.mxu0  ;;  %v554_v8 = vpop.f32.mrf.mxu1 }
  0xf7   :  { %v434_v9 = vadd.f32 %v529_v5, %v738_v35  ;;  %v442_v10 = vadd.f32 %v553_v6, %v738_v35 }
  0xf8   :  { %v531_v11 = vpop.f32.mrf.mxu0  ;;  %v555_v12 = vpop.f32.mrf.mxu1 }
  0xf9   :  { %450 = vst [vmem:[%s807_s3 + $0x20] sm:$0xff] %v434_v9  ;;  %458 = vst [vmem:[%s807_s3 + $0x60] sm:$0xff] %v442_v10  ;;  %v532_v13 = vadd.f32 %v531_v11, %v530_v7  ;;  %v556_v14 = vadd.f32 %v555_v12, %v554_v8 }
  0xfa   :  { %v533_v15 = vpop.f32.mrf.mxu0  ;;  %v557_v16 = vpop.f32.mrf.mxu1 }
  0xfb   :  { %v435_v17 = vadd.f32 %v532_v13, %v738_v35  ;;  %v443_v18 = vadd.f32 %v556_v14, %v738_v35 }
  0xfc   :  { %v534_v19 = vpop.f32.mrf.mxu0  ;;  %v558_v20 = vpop.f32.mrf.mxu1 }
  0xfd   :  { %451 = vst [vmem:[%s807_s3 + $0x28] sm:$0xff] %v435_v17  ;;  %459 = vst [vmem:[%s807_s3 + $0x68] sm:$0xff] %v443_v18  ;;  %v535_v21 = vadd.f32 %v534_v19, %v533_v15  ;;  %v559_v22 = vadd.f32 %v558_v20, %v557_v16 }
  0xfe   :  { %v536_v23 = vpop.f32.mrf.mxu0  ;;  %v560_v24 = vpop.f32.mrf.mxu1 }
  0xff   :  { %v436_v25 = vadd.f32 %v535_v21, %v738_v35  ;;  %v444_v26 = vadd.f32 %v559_v22, %v738_v35 }
 0x100   :  { %v537_v27 = vpop.f32.mrf.mxu0  ;;  %v561_v28 = vpop.f32.mrf.mxu1 }
 0x101   :  { %452 = vst [vmem:[%s807_s3 + $0x30] sm:$0xff] %v436_v25  ;;  %460 = vst [vmem:[%s807_s3 + $0x70] sm:$0xff] %v444_v26  ;;  %v538_v29 = vadd.f32 %v537_v27, %v536_v23  ;;  %v562_v30 = vadd.f32 %v561_v28, %v560_v24 }
 0x103   :  { %v437_v31 = vadd.f32 %v538_v29, %v738_v35  ;;  %v445_v32 = vadd.f32 %v562_v30, %v738_v35 }
 0x105   :  { %453 = vst [vmem:[%s807_s3 + $0x38] sm:$0xff] %v437_v31  ;;  %461 = vst [vmem:[%s807_s3 + $0x78] sm:$0xff] %v445_v32 }

// kernel: generator_forward.56
= control target key start
LH: loop header
LB: loop body
LE: loop exit
PB: predicated region body
PF: predicated region fallthrough
CT: control target
= control target key end

     0   :  { %s586_s1 = inlined_call_operand.vmem [shape: bf16[128,128], index: 1, kind: input, shape index: {}]   ;;  %s587_s0 = inlined_call_operand.vmem [shape: bf16[128,128], index: 0, kind: input, shape index: {}]   ;;  %s588_s2 = inlined_call_operand.vmem [shape: f32[1,128], index: 2, kind: input, shape index: {}]   ;;  %s589_s3 = inlined_call_operand.vmem [shape: f32[128,128], index: 3, kind: output, shape index: {}]  }
   0x1   :  { %v451_v0 = vld [vmem:[%s586_s1 + $0x38] sm:$0xff]   ;;  %v452_v1 = vld [vmem:[%s586_s1 + $0x30] sm:$0xff]   ;;  %v453_v2 = vld [vmem:[%s586_s1 + $0x28] sm:$0xff]  }
   0x2   :  { %403 = vmatprep.subr.bf16.mxu0 %v451_v0  ;;  %435 = vmatprep.subr.bf16.mxu1 %v451_v0  ;;  %v454_v3 = vld [vmem:[%s586_s1 + $0x20] sm:$0xff]   ;;  %v455_v6 = vld [vmem:[%s586_s1 + $0x18] sm:$0xff]   ;;  %v456_v7 = vld [vmem:[%s586_s1 + $0x10] sm:$0xff]  }
   0x3   :  { %404 = vmatpush3.bf16.msra.mxu0 %v451_v0  ;;  %443 = vmatpush3.bf16.msra.mxu1 %v451_v0  ;;  %v459_v4 = vld [vmem:[%s587_s0] sm:$0xff]   ;;  %v457_v8 = vld [vmem:[%s586_s1 + $0x8] sm:$0xff]   ;;  %v463_v12 = vld [vmem:[%s587_s0 + $0x10] sm:$0xff]  }
   0x4   :  { %405 = vmatprep.subr.bf16.mxu0 %v452_v1  ;;  %436 = vmatprep.subr.bf16.mxu1 %v452_v1  ;;  %v460_v5 = vld [vmem:[%s587_s0 + $0x20] sm:$0xff]   ;;  %v461_v10 = vld [vmem:[%s587_s0 + $0x8] sm:$0xff]   ;;  %v464_v13 = vld [vmem:[%s587_s0 + $0x30] sm:$0xff]  }
   0x5   :  { %419 = vmatprep.mubr.bf16.mxu0 %v459_v4  ;;  %427 = vmatprep.mubr.bf16.mxu1 %v460_v5  ;;  %v458_v9 = vld [vmem:[%s586_s1] sm:$0xff]   ;;  %v462_v11 = vld [vmem:[%s587_s0 + $0x28] sm:$0xff]   ;;  %v465_v14 = vld [vmem:[%s587_s0 + $0x18] sm:$0xff]  }
   0x6   :  { %v466_v15 = vld [vmem:[%s587_s0 + $0x38] sm:$0xff]   ;;  %v386_v16 = vld [vmem:[%s588_s2] ss:$0 sm:$0xff] }
   0x7   :  { %406 = vmatpush3.bf16.msra.mxu0 %v452_v1  ;;  %444 = vmatpush3.bf16.msra.mxu1 %v452_v1 }
   0x8   :  { %407 = vmatprep.subr.bf16.mxu0 %v453_v2  ;;  %437 = vmatprep.subr.bf16.mxu1 %v453_v2 }
   0xb   :  { %408 = vmatpush3.bf16.msra.mxu0 %v453_v2  ;;  %445 = vmatpush3.bf16.msra.mxu1 %v453_v2 }
   0xc   :  { %409 = vmatprep.subr.bf16.mxu0 %v454_v3  ;;  %438 = vmatprep.subr.bf16.mxu1 %v454_v3 }
   0xf   :  { %410 = vmatpush3.bf16.msra.mxu0 %v454_v3  ;;  %446 = vmatpush3.bf16.msra.mxu1 %v454_v3 }
  0x10   :  { %411 = vmatprep.subr.bf16.mxu0 %v455_v6  ;;  %439 = vmatprep.subr.bf16.mxu1 %v455_v6 }
  0x13   :  { %412 = vmatpush3.bf16.msra.mxu0 %v455_v6  ;;  %447 = vmatpush3.bf16.msra.mxu1 %v455_v6 }
  0x14   :  { %413 = vmatprep.subr.bf16.mxu0 %v456_v7  ;;  %440 = vmatprep.subr.bf16.mxu1 %v456_v7 }
  0x17   :  { %414 = vmatpush3.bf16.msra.mxu0 %v456_v7  ;;  %448 = vmatpush3.bf16.msra.mxu1 %v456_v7 }
  0x18   :  { %415 = vmatprep.subr.bf16.mxu0 %v457_v8  ;;  %441 = vmatprep.subr.bf16.mxu1 %v457_v8 }
  0x1b   :  { %416 = vmatpush3.bf16.msra.mxu0 %v457_v8  ;;  %449 = vmatpush3.bf16.msra.mxu1 %v457_v8 }
  0x1c   :  { %417 = vmatprep.subr.bf16.mxu0 %v458_v9  ;;  %442 = vmatprep.subr.bf16.mxu1 %v458_v9 }
  0x1f   :  { %418 = vmatpush3.bf16.msra.mxu0 %v458_v9  ;;  %450 = vmatpush3.bf16.msra.mxu1 %v458_v9 }
  0x22   :  { %420 = vmatmul.mubr.bf16.vlgmr.msra.gmra.mxu0 %v461_v10  ;;  %428 = vmatmul.mubr.bf16.vlgmr.msra.gmra.mxu1 %v462_v11 }
  0x23   :  { %423 = vmatprep.mubr.bf16.mxu0 %v463_v12  ;;  %431 = vmatprep.mubr.bf16.mxu1 %v464_v13 }
  0x2a   :  { %424 = vmatmul.mubr.bf16.gmra.mxu0 %v465_v14  ;;  %432 = vmatmul.mubr.bf16.gmra.mxu1 %v466_v15 }
  0xe2   :  { %v421_v17 = vpop.f32.mrf.mxu0  ;;  %v429_v18 = vpop.f32.mrf.mxu1 }
  0xe3   :  { %v336_v19 = vadd.f32 %v421_v17, %v386_v16  ;;  %v344_v20 = vadd.f32 %v429_v18, %v386_v16 }
  0xe4   :  { %v213_v21 = vpop.f32.mrf.mxu0  ;;  %v245_v22 = vpop.f32.mrf.mxu1 }
  0xe5   :  { %352 = vst [vmem:[%s589_s3 + $0x10] sm:$0xff] %v336_v19  ;;  %360 = vst [vmem:[%s589_s3 + $0x50] sm:$0xff] %v344_v20  ;;  %v334_v23 = vadd.f32 %v386_v16, %v213_v21  ;;  %v342_v24 = vadd.f32 %v386_v16, %v245_v22 }
  0xe6   :  { %v422_v25 = vpop.f32.mrf.mxu0  ;;  %v430_v26 = vpop.f32.mrf.mxu1 }
  0xe7   :  { %350 = vst [vmem:[%s589_s3] sm:$0xff] %v334_v23  ;;  %358 = vst [vmem:[%s589_s3 + $0x40] sm:$0xff] %v342_v24  ;;  %v337_v27 = vadd.f32 %v422_v25, %v386_v16  ;;  %v345_v28 = vadd.f32 %v430_v26, %v386_v16 }
  0xe8   :  { %v216_v29 = vpop.f32.mrf.mxu0  ;;  %v248_v30 = vpop.f32.mrf.mxu1 }
  0xe9   :  { %353 = vst [vmem:[%s589_s3 + $0x18] sm:$0xff] %v337_v27  ;;  %361 = vst [vmem:[%s589_s3 + $0x58] sm:$0xff] %v345_v28  ;;  %v335_v31 = vadd.f32 %v386_v16, %v216_v29  ;;  %v343_v32 = vadd.f32 %v386_v16, %v248_v30 }
  0xea   :  { %v425_v33 = vpop.f32.mrf.mxu0  ;;  %v433_v34 = vpop.f32.mrf.mxu1 }
  0xeb   :  { %351 = vst [vmem:[%s589_s3 + $0x8] sm:$0xff] %v335_v31  ;;  %359 = vst [vmem:[%s589_s3 + $0x48] sm:$0xff] %v343_v32  ;;  %v340_v35 = vadd.f32 %v425_v33, %v386_v16  ;;  %v348_v36 = vadd.f32 %v433_v34, %v386_v16 }
  0xec   :  { %v229_v37 = vpop.f32.mrf.mxu0  ;;  %v261_v38 = vpop.f32.mrf.mxu1 }
  0xed   :  { %356 = vst [vmem:[%s589_s3 + $0x30] sm:$0xff] %v340_v35  ;;  %364 = vst [vmem:[%s589_s3 + $0x70] sm:$0xff] %v348_v36  ;;  %v338_v39 = vadd.f32 %v386_v16, %v229_v37  ;;  %v346_v40 = vadd.f32 %v386_v16, %v261_v38 }
  0xee   :  { %v426_v41 = vpop.f32.mrf.mxu0  ;;  %v434_v42 = vpop.f32.mrf.mxu1 }
  0xef   :  { %354 = vst [vmem:[%s589_s3 + $0x20] sm:$0xff] %v338_v39  ;;  %362 = vst [vmem:[%s589_s3 + $0x60] sm:$0xff] %v346_v40  ;;  %v341_v43 = vadd.f32 %v426_v41, %v386_v16  ;;  %v349_v44 = vadd.f32 %v434_v42, %v386_v16 }
  0xf0   :  { %v232_v45 = vpop.f32.mrf.mxu0  ;;  %v264_v46 = vpop.f32.mrf.mxu1 }
  0xf1   :  { %357 = vst [vmem:[%s589_s3 + $0x38] sm:$0xff] %v341_v43  ;;  %365 = vst [vmem:[%s589_s3 + $0x78] sm:$0xff] %v349_v44  ;;  %v339_v47 = vadd.f32 %v386_v16, %v232_v45  ;;  %v347_v48 = vadd.f32 %v386_v16, %v264_v46 }
  0xf3   :  { %355 = vst [vmem:[%s589_s3 + $0x28] sm:$0xff] %v339_v47  ;;  %363 = vst [vmem:[%s589_s3 + $0x68] sm:$0xff] %v347_v48 }

// kernel: generator_forward.59
= control target key start
LH: loop header
LB: loop body
LE: loop exit
PB: predicated region body
PF: predicated region fallthrough
CT: control target
= control target key end

     0   :  { %s1182_s12 = smov 0   ;;  %s1184_s13 = smov 0   ;;  %s1354_s0 = inlined_call_operand.vmem [shape: bf16[128,512], index: 0, kind: input, shape index: {}]   ;;  %s1355_s1 = inlined_call_operand.vmem [shape: bf16[512,128], index: 1, kind: input, shape index: {}]   ;;  %s1356_s2 = inlined_call_operand.vmem [shape: f32[1,128], index: 2, kind: input, shape index: {}]   ;;  %s1357_s3 = inlined_call_operand.vmem [shape: f32[128,128], index: 3, kind: output, shape index: {}]  }
   0x1   :  { %s1186_s14 = smov 0   ;;  %s1188_s15 = smov 0  }
   0x2   :  { %s1190_s16 = smov 0  }
   0x3 LB: > { %s25_s17 = sadd.s32 1, %s1155_s15  ;;  %p48_p1 = scmp.ne.s32.totalorder %s1147_s13, %s1143_s12  ;;  %s1159_s16 = sphi %s1190_s16, %s13_s16   ;;  %s1155_s15 = sphi %s1188_s15, %s1361_s15   ;;  %s1151_s14 = sphi %s1186_s14, %s1360_s14   ;;  %s1147_s13 = sphi %s1184_s13, %s1359_s13   ;;  %s1143_s12 = sphi %s1182_s12, %s1358_s12  }
   0x4   : > { %p26_p0 = scmp.ge.s32.totalorder %s25_s17, 2  ;;  %p49_p2 = scmp.eq.s32.totalorder %s1159_s16, 0 }
   0x5   : > { %s41_s19 = sadd.s32 1, %s1147_s13  ;;  %p912_p5 = scmp.ge.s32.totalorder %s1159_s16, 2 }
   0x6   : > { %s1363_s17 = smov (%p26_p0, %s25_s17), 0  ;;  %p50_p3 = por %p49_p2, %p48_p1 }
   0x7   : > { %s37_s18 = ssub.s32 %s1155_s15, %s1363_s17  ;;  %162 = sbr.rel (%p912_p5) target bundleno = 24 (0x18), region = 20 }
   0x8   : > { %p39_p4 = scmp.eq.s32.totalorder %s37_s18, 0 }
   0xa   : > { %s1217_s20 = scalar_select %p39_p4, %s1147_s13, %s41_s19  }
   0xc   : > { %165 = sbr.rel (!%p50_p3) target bundleno = 24 (0x18), region = 24  ;;  %s167_s21 = sand.u32 (%p50_p3), 1, %s1147_s13  }
   0xd   : > { %s959_s22 = sshll.u32 (%p50_p3), %s1155_s15, 3  ;;  %s913_s23 = sshll.u32 (%p50_p3), %s167_s21, 7 }
   0xe   : > { %s1225_s26 = scalar_lea.vmem (%p50_p3), %s1354_s0, %s959_s22  ;;  %s169_s27 = scalar_lea.vmem (%p50_p3), [#allocation3], %s913_s23 }
   0xf   : > { %v234_v0 = vld [vmem:[%s1225_s26] sm:$0xff] (%p50_p3)  ;;  %v236_v1 = vld [vmem:[%s1225_s26 + $0x10] sm:$0xff] (%p50_p3) }
  0x10   : > { %v238_v2 = vld [vmem:[%s1225_s26 + $0x20] sm:$0xff] (%p50_p3)  ;;  %235 = vst [vmem:[%s169_s27] sm:$0xff] (%p50_p3), %v234_v0  ;;  %237 = vst [vmem:[%s169_s27 + $0x8] sm:$0xff] (%p50_p3), %v236_v1  ;;  %v240_v3 = vld [vmem:[%s1225_s26 + $0x30] sm:$0xff] (%p50_p3) }
  0x11   : > { %239 = vst [vmem:[%s169_s27 + $0x10] sm:$0xff] %v238_v2  ;;  %v242_v4 = vld [vmem:[%s1225_s26 + $0x40] sm:$0xff]  ;;  %v244_v5 = vld [vmem:[%s1225_s26 + $0x50] sm:$0xff]  ;;  %241 = vst [vmem:[%s169_s27 + $0x18] sm:$0xff] %v240_v3 }
  0x12   : > { %243 = vst [vmem:[%s169_s27 + $0x20] sm:$0xff] %v242_v4  ;;  %245 = vst [vmem:[%s169_s27 + $0x28] sm:$0xff] %v244_v5  ;;  %v246_v6 = vld [vmem:[%s1225_s26 + $0x60] sm:$0xff]  ;;  %v248_v7 = vld [vmem:[%s1225_s26 + $0x70] sm:$0xff] }
  0x13   : > { %v250_v8 = vld [vmem:[%s1225_s26 + $0x80] sm:$0xff]  ;;  %247 = vst [vmem:[%s169_s27 + $0x30] sm:$0xff] %v246_v6  ;;  %249 = vst [vmem:[%s169_s27 + $0x38] sm:$0xff] %v248_v7  ;;  %v252_v9 = vld [vmem:[%s1225_s26 + $0x90] sm:$0xff] }
  0x14   : > { %251 = vst [vmem:[%s169_s27 + $0x40] sm:$0xff] %v250_v8  ;;  %v254_v10 = vld [vmem:[%s1225_s26 + $0xa0] sm:$0xff]  ;;  %v256_v11 = vld [vmem:[%s1225_s26 + $0xb0] sm:$0xff]  ;;  %253 = vst [vmem:[%s169_s27 + $0x48] sm:$0xff] %v252_v9 }
  0x15   : > { %255 = vst [vmem:[%s169_s27 + $0x50] sm:$0xff] %v254_v10  ;;  %257 = vst [vmem:[%s169_s27 + $0x58] sm:$0xff] %v256_v11  ;;  %v258_v12 = vld [vmem:[%s1225_s26 + $0xc0] sm:$0xff]  ;;  %v260_v13 = vld [vmem:[%s1225_s26 + $0xd0] sm:$0xff] }
  0x16   : > { %v262_v14 = vld [vmem:[%s1225_s26 + $0xe0] sm:$0xff]  ;;  %259 = vst [vmem:[%s169_s27 + $0x60] sm:$0xff] %v258_v12  ;;  %261 = vst [vmem:[%s169_s27 + $0x68] sm:$0xff] %v260_v13  ;;  %v264_v15 = vld [vmem:[%s1225_s26 + $0xf0] sm:$0xff] }
  0x17   : > { %263 = vst [vmem:[%s169_s27 + $0x70] sm:$0xff] %v262_v14  ;;  %265 = vst [vmem:[%s169_s27 + $0x78] sm:$0xff] %v264_v15 }
  0x18 PF: > { %p916_p6 = scmp.ge.s32.totalorder %s1159_s16, 1  ;;  %p282_p7 = scmp.lt.s32.totalorder %s1159_s16, 3 }
  0x1a   : > { %p283_p8 = pnand %p916_p6, %p282_p7 }
  0x1b   : > { %s289_s28 = sand.u32 (!%p283_p8), 1, %s1143_s12   ;;  %s918_s29 = sshll.u32 (!%p283_p8), %s1151_s14, 5 }
  0x1c   : > { %286 = sbr.rel (%p283_p8) target bundleno = 319 (0x13f), region = 66  ;;  %s917_s30 = sshll.u32 (!%p283_p8), %s289_s28, 7 }
  0x1d   : > { %p329_p9 = scmp.lt.s32.totalorder (!%p283_p8), %s918_s29, 63  ;;  %s1252_s8 = scalar_lea.vmem (!%p283_p8), [#allocation3], %s917_s30 }
  0x1e   : > { %p920_p10 = scmp.ne.s32.totalorder (!%p283_p8), %s1151_s14, 0 }
  0x21   : > { %s1365_s29 = smov (!%p329_p9, %s918_s29), 63  ;;  %353 = sbr.rel (%p920_p10) target bundleno = 47 (0x2f), region = 74 }
  0x22   : > { %s919_s4 = sshll.u32 %s1365_s29, 2 }
  0x23   : > { %s1250_s7 = scalar_lea.vmem %s1355_s1, %s919_s4 }
  0x26   : > { %v1161_v16 = vmov 0.0  }
  0x27   : > { %354 = vst [vmem:[#allocation2 + $0x30] sm:$0xff] %v1161_v16  ;;  %355 = vst [vmem:[#allocation2] sm:$0xff] %v1161_v16 }
  0x28   : > { %356 = vst [vmem:[#allocation2 + $0x58] sm:$0xff] %v1161_v16  ;;  %357 = vst [vmem:[#allocation2 + $0x18] sm:$0xff] %v1161_v16 }
  0x29   : > { %358 = vst [vmem:[#allocation2 + $0x50] sm:$0xff] %v1161_v16  ;;  %359 = vst [vmem:[#allocation2 + $0x68] sm:$0xff] %v1161_v16 }
  0x2a   : > { %360 = vst [vmem:[#allocation2 + $0x8] sm:$0xff] %v1161_v16  ;;  %361 = vst [vmem:[#allocation2 + $0x48] sm:$0xff] %v1161_v16 }
  0x2b   : > { %362 = vst [vmem:[#allocation2 + $0x40] sm:$0xff] %v1161_v16  ;;  %363 = vst [vmem:[#allocation2 + $0x20] sm:$0xff] %v1161_v16 }
  0x2c   : > { %364 = vst [vmem:[#allocation2 + $0x10] sm:$0xff] %v1161_v16  ;;  %365 = vst [vmem:[#allocation2 + $0x38] sm:$0xff] %v1161_v16 }
  0x2d   : > { %366 = vst [vmem:[#allocation2 + $0x60] sm:$0xff] %v1161_v16  ;;  %367 = vst [vmem:[#allocation2 + $0x70] sm:$0xff] %v1161_v16 }
  0x2e   : > { %368 = vst [vmem:[#allocation2 + $0x78] sm:$0xff] %v1161_v16  ;;  %369 = vst [vmem:[#allocation2 + $0x28] sm:$0xff] %v1161_v16 }
  0x2f PF: > { %v1081_v17 = vld [vmem:[%s1250_s7 + $0x78] sm:$0xff]   ;;  %v1083_v19 = vld [vmem:[%s1250_s7 + $0x70] sm:$0xff]   ;;  %v1085_v21 = vld [vmem:[%s1250_s7 + $0x68] sm:$0xff]   ;;  %p953_p11 = scmp.ne.s32.totalorder %s1151_s14, 1 }
  0x30   : > { %v1082_v18 = vld [vmem:[%s1250_s7 + $0x38] sm:$0xff]   ;;  %960 = vmatprep.subr.bf16.mxu0 %v1081_v17  ;;  %1024 = vmatprep.subr.bf16.mxu1 %v1081_v17  ;;  %v1084_v20 = vld [vmem:[%s1250_s7 + $0x30] sm:$0xff]   ;;  %v1086_v22 = vld [vmem:[%s1250_s7 + $0x28] sm:$0xff]  }
  0x31   : > { %961 = vmatpush3.bf16.msra.mxu0 %v1082_v18  ;;  %1032 = vmatpush3.bf16.msra.mxu1 %v1082_v18  ;;  %v1087_v23 = vld [vmem:[%s1250_s7 + $0x60] sm:$0xff]   ;;  %v1089_v25 = vld [vmem:[%s1250_s7 + $0x58] sm:$0xff]   ;;  %v1091_v27 = vld [vmem:[%s1250_s7 + $0x50] sm:$0xff]  }
  0x32   : > { %962 = vmatprep.subr.bf16.mxu0 %v1083_v19  ;;  %1025 = vmatprep.subr.bf16.mxu1 %v1083_v19  ;;  %v1088_v24 = vld [vmem:[%s1250_s7 + $0x20] sm:$0xff]   ;;  %v1090_v26 = vld [vmem:[%s1250_s7 + $0x18] sm:$0xff]   ;;  %v1092_v30 = vld [vmem:[%s1250_s7 + $0x10] sm:$0xff]  }
  0x33   : > { %v1099_v28 = vld [vmem:[%s1252_s8 + $0x4] ss:$8 sps:$4 sm:$0xff]   ;;  %v1097_v35 = vld [vmem:[%s1252_s8] ss:$8 sps:$4 sm:$0xff]   ;;  %v1103_v37 = vld [vmem:[%s1252_s8 + $0x14] ss:$8 sps:$4 sm:$0xff]  }
  0x34   : > { %v1102_v29 = vld [vmem:[%s1252_s8 + $0x44] ss:$8 sps:$4 sm:$0xff]   ;;  %642 = vmatprep.mubr.bf16.mxu0 %v1099_v28  ;;  %v1100_v36 = vld [vmem:[%s1252_s8 + $0x40] ss:$8 sps:$4 sm:$0xff]   ;;  %v1105_v38 = vld [vmem:[%s1252_s8 + $0x54] ss:$8 sps:$4 sm:$0xff]  }
  0x35   : > { %963 = vmatpush3.bf16.msra.mxu0 %v1084_v20  ;;  %1033 = vmatpush3.bf16.msra.mxu1 %v1084_v20  ;;  %v1093_v31 = vld [vmem:[%s1250_s7 + $0x48] sm:$0xff]   ;;  %v1095_v33 = vld [vmem:[%s1250_s7 + $0x40] sm:$0xff]   ;;  %v1107_v39 = vld [vmem:[%s1252_s8 + $0x10] ss:$8 sps:$4 sm:$0xff]  }
  0x36   : > { %964 = vmatprep.subr.bf16.mxu0 %v1085_v21  ;;  %1026 = vmatprep.subr.bf16.mxu1 %v1085_v21  ;;  %v1094_v32 = vld [vmem:[%s1250_s7 + $0x8] sm:$0xff]   ;;  %v1096_v34 = vld [vmem:[%s1250_s7] sm:$0xff]   ;;  %v1108_v40 = vld [vmem:[%s1252_s8 + $0x50] ss:$8 sps:$4 sm:$0xff]  }
  0x37   : > { %674 = vmatprep.mubr.bf16.mxu1 %v1102_v29  ;;  %v1109_v41 = vld [vmem:[%s1252_s8 + $0x24] ss:$8 sps:$4 sm:$0xff]   ;;  %v1113_v43 = vld [vmem:[%s1252_s8 + $0x20] ss:$8 sps:$4 sm:$0xff]   ;;  %v1115_v45 = vld [vmem:[%s1252_s8 + $0x34] ss:$8 sps:$4 sm:$0xff]  }
  0x38   : > { %v1111_v42 = vld [vmem:[%s1252_s8 + $0x64] ss:$8 sps:$4 sm:$0xff]   ;;  %v1114_v44 = vld [vmem:[%s1252_s8 + $0x60] ss:$8 sps:$4 sm:$0xff]   ;;  %v1117_v46 = vld [vmem:[%s1252_s8 + $0x74] ss:$8 sps:$4 sm:$0xff]  }
  0x39   : > { %965 = vmatpush3.bf16.msra.mxu0 %v1086_v22  ;;  %1034 = vmatpush3.bf16.msra.mxu1 %v1086_v22  ;;  %v1119_v47 = vld [vmem:[%s1252_s8 + $0x30] ss:$8 sps:$4 sm:$0xff]   ;;  %v378_v53 = vld [vmem:[#allocation2 + $0x40] sm:$0xff] }
  0x3a   : > { %966 = vmatprep.subr.bf16.mxu0 %v1087_v23  ;;  %1027 = vmatprep.subr.bf16.mxu1 %v1087_v23  ;;  %v1120_v48 = vld [vmem:[%s1252_s8 + $0x70] ss:$8 sps:$4 sm:$0xff]   ;;  %v371_v61 = vld [vmem:[#allocation2] sm:$0xff] }
  0x3b   : > { %v370_v51 = vld [vmem:[#allocation2 + $0x30] sm:$0xff]  ;;  %v379_v63 = vld [vmem:[#allocation2 + $0x20] sm:$0xff]  ;;  %v372_v7 = vld [vmem:[#allocation2 + $0x58] sm:$0xff] }
  0x3c   : > { %v380_v9 = vld [vmem:[#allocation2 + $0x10] sm:$0xff]  ;;  %v373_v17 = vld [vmem:[#allocation2 + $0x18] sm:$0xff]  ;;  %v382_v29 = vld [vmem:[#allocation2 + $0x60] sm:$0xff] }
  0x3d   : > { %967 = vmatpush3.bf16.msra.mxu0 %v1088_v24  ;;  %1035 = vmatpush3.bf16.msra.mxu1 %v1088_v24  ;;  %v381_v19 = vld [vmem:[#allocation2 + $0x38] sm:$0xff] }
  0x3e   : > { %968 = vmatprep.subr.bf16.mxu0 %v1089_v25  ;;  %1028 = vmatprep.subr.bf16.mxu1 %v1089_v25 }
  0x41   : > { %969 = vmatpush3.bf16.msra.mxu0 %v1090_v26  ;;  %1036 = vmatpush3.bf16.msra.mxu1 %v1090_v26 }
  0x42   : > { %970 = vmatprep.subr.bf16.mxu0 %v1091_v27  ;;  %1029 = vmatprep.subr.bf16.mxu1 %v1091_v27  ;;  %v374_v27 = vld [vmem:[#allocation2 + $0x50] sm:$0xff] }
  0x45   : > { %971 = vmatpush3.bf16.msra.mxu0 %v1092_v30  ;;  %1037 = vmatpush3.bf16.msra.mxu1 %v1092_v30 }
  0x46   : > { %972 = vmatprep.subr.bf16.mxu0 %v1093_v31  ;;  %1030 = vmatprep.subr.bf16.mxu1 %v1093_v31 }
  0x49   : > { %973 = vmatpush3.bf16.msra.mxu0 %v1094_v32  ;;  %1038 = vmatpush3.bf16.msra.mxu1 %v1094_v32 }
  0x4a   : > { %974 = vmatprep.subr.bf16.mxu0 %v1095_v33  ;;  %1031 = vmatprep.subr.bf16.mxu1 %v1095_v33 }
  0x4d   : > { %975 = vmatpush3.bf16.msra.mxu0 %v1096_v34  ;;  %1039 = vmatpush3.bf16.msra.mxu1 %v1096_v34 }
  0x50   : > { %643 = vmatmul.mubr.bf16.vlgmr.msra.gmra.mxu0 %v1097_v35  ;;  %675 = vmatmul.mubr.bf16.vlgmr.msra.gmra.mxu1 %v1100_v36 }
  0x51   : > { %650 = vmatprep.mubr.bf16.mxu0 %v1103_v37  ;;  %682 = vmatprep.mubr.bf16.mxu1 %v1105_v38  ;;  %v375_v37 = vld [vmem:[#allocation2 + $0x68] sm:$0xff] }
  0x58   : > { %651 = vmatmul.mubr.bf16.gmra.mxu0 %v1107_v39  ;;  %683 = vmatmul.mubr.bf16.gmra.mxu1 %v1108_v40  ;;  %v383_v39 = vld [vmem:[#allocation2 + $0x70] sm:$0xff] }
  0x59   : > { %658 = vmatprep.mubr.bf16.mxu0 %v1109_v41  ;;  %690 = vmatprep.mubr.bf16.mxu1 %v1111_v42 }
  0x60   : > { %659 = vmatmul.mubr.bf16.gmra.mxu0 %v1113_v43  ;;  %691 = vmatmul.mubr.bf16.gmra.mxu1 %v1114_v44 }
  0x61   : > { %666 = vmatprep.mubr.bf16.mxu0 %v1115_v45  ;;  %698 = vmatprep.mubr.bf16.mxu1 %v1117_v46 }
  0x68   : > { %667 = vmatmul.mubr.bf16.gmra.mxu0 %v1119_v47  ;;  %699 = vmatmul.mubr.bf16.gmra.mxu1 %v1120_v48  ;;  %v376_v47 = vld [vmem:[#allocation2 + $0x8] sm:$0xff] }
 0x110   : > { %v976_v49 = vpop.f32.mrf.mxu0  ;;  %v1000_v50 = vpop.f32.mrf.mxu1 }
 0x112   : > { %v977_v52 = vpop.f32.mrf.mxu0  ;;  %v1001_v54 = vpop.f32.mrf.mxu1 }
 0x113   : > { %v978_v55 = vadd.f32 %v977_v52, %v976_v49  ;;  %v1002_v56 = vadd.f32 %v1001_v54, %v1000_v50  ;;  %v384_v49 = vld [vmem:[#allocation2 + $0x78] sm:$0xff] }
 0x114   : > { %v979_v57 = vpop.f32.mrf.mxu0  ;;  %v1003_v58 = vpop.f32.mrf.mxu1 }
 0x115   : > { %v707_v59 = vadd.f32 %v978_v55, %v370_v51  ;;  %v715_v60 = vadd.f32 %v1002_v56, %v378_v53 }
 0x116   : > { %v980_v62 = vpop.f32.mrf.mxu0  ;;  %v1004_v0 = vpop.f32.mrf.mxu1 }
 0x117   : > { %723 = vst [vmem:[#allocation2 + $0x30] sm:$0xff] %v707_v59  ;;  %731 = vst [vmem:[#allocation2 + $0x40] sm:$0xff] %v715_v60  ;;  %v981_v1 = vadd.f32 %v980_v62, %v979_v57  ;;  %v1005_v2 = vadd.f32 %v1004_v0, %v1003_v58  ;;  %v377_v57 = vld [vmem:[#allocation2 + $0x48] sm:$0xff] }
 0x118   : > { %v982_v3 = vpop.f32.mrf.mxu0  ;;  %v1006_v4 = vpop.f32.mrf.mxu1  ;;  %v385_v59 = vld [vmem:[#allocation2 + $0x28] sm:$0xff] }
 0x119   : > { %v708_v5 = vadd.f32 %v981_v1, %v371_v61  ;;  %v716_v6 = vadd.f32 %v1005_v2, %v379_v63 }
 0x11a   : > { %v983_v8 = vpop.f32.mrf.mxu0  ;;  %v1007_v10 = vpop.f32.mrf.mxu1 }
 0x11b   : > { %724 = vst [vmem:[#allocation2] sm:$0xff] %v708_v5  ;;  %732 = vst [vmem:[#allocation2 + $0x20] sm:$0xff] %v716_v6  ;;  %v984_v11 = vadd.f32 %v983_v8, %v982_v3  ;;  %v1008_v12 = vadd.f32 %v1007_v10, %v1006_v4 }
 0x11c   : > { %v985_v13 = vpop.f32.mrf.mxu0  ;;  %v1009_v14 = vpop.f32.mrf.mxu1 }
 0x11d   : > { %v709_v15 = vadd.f32 %v984_v11, %v372_v7  ;;  %v717_v16 = vadd.f32 %v1008_v12, %v380_v9 }
 0x11e   : > { %v986_v18 = vpop.f32.mrf.mxu0  ;;  %v1010_v20 = vpop.f32.mrf.mxu1 }
 0x11f   : > { %725 = vst [vmem:[#allocation2 + $0x58] sm:$0xff] %v709_v15  ;;  %733 = vst [vmem:[#allocation2 + $0x10] sm:$0xff] %v717_v16  ;;  %v987_v21 = vadd.f32 %v986_v18, %v985_v13  ;;  %v1011_v22 = vadd.f32 %v1010_v20, %v1009_v14 }
 0x120   : > { %v988_v23 = vpop.f32.mrf.mxu0  ;;  %v1012_v24 = vpop.f32.mrf.mxu1 }
 0x121   : > { %v710_v25 = vadd.f32 %v987_v21, %v373_v17  ;;  %v718_v26 = vadd.f32 %v1011_v22, %v381_v19 }
 0x122   : > { %v989_v28 = vpop.f32.mrf.mxu0  ;;  %v1013_v30 = vpop.f32.mrf.mxu1 }
 0x123   : > { %726 = vst [vmem:[#allocation2 + $0x18] sm:$0xff] %v710_v25  ;;  %734 = vst [vmem:[#allocation2 + $0x38] sm:$0xff] %v718_v26  ;;  %v990_v31 = vadd.f32 %v989_v28, %v988_v23  ;;  %v1014_v32 = vadd.f32 %v1013_v30, %v1012_v24 }
 0x124   : > { %v991_v33 = vpop.f32.mrf.mxu0  ;;  %v1015_v34 = vpop.f32.mrf.mxu1 }
 0x125   : > { %v711_v35 = vadd.f32 %v990_v31, %v374_v27  ;;  %v719_v36 = vadd.f32 %v1014_v32, %v382_v29 }
 0x126   : > { %v992_v38 = vpop.f32.mrf.mxu0  ;;  %v1016_v40 = vpop.f32.mrf.mxu1 }
 0x127   : > { %727 = vst [vmem:[#allocation2 + $0x50] sm:$0xff] %v711_v35  ;;  %735 = vst [vmem:[#allocation2 + $0x60] sm:$0xff] %v719_v36  ;;  %v993_v41 = vadd.f32 %v992_v38, %v991_v33  ;;  %v1017_v42 = vadd.f32 %v1016_v40, %v1015_v34 }
 0x128   : > { %v994_v43 = vpop.f32.mrf.mxu0  ;;  %v1018_v44 = vpop.f32.mrf.mxu1 }
 0x129   : > { %v712_v45 = vadd.f32 %v993_v41, %v375_v37  ;;  %v720_v46 = vadd.f32 %v1017_v42, %v383_v39 }
 0x12a   : > { %v995_v48 = vpop.f32.mrf.mxu0  ;;  %v1019_v50 = vpop.f32.mrf.mxu1 }
 0x12b   : > { %728 = vst [vmem:[#allocation2 + $0x68] sm:$0xff] %v712_v45  ;;  %736 = vst [vmem:[#allocation2 + $0x70] sm:$0xff] %v720_v46  ;;  %v996_v51 = vadd.f32 %v995_v48, %v994_v43  ;;  %v1020_v52 = vadd.f32 %v1019_v50, %v1018_v44 }
 0x12c   : > { %v997_v53 = vpop.f32.mrf.mxu0  ;;  %v1021_v54 = vpop.f32.mrf.mxu1 }
 0x12d   : > { %v713_v55 = vadd.f32 %v996_v51, %v376_v47  ;;  %v721_v56 = vadd.f32 %v1020_v52, %v384_v49 }
 0x12e   : > { %v998_v58 = vpop.f32.mrf.mxu0  ;;  %v1022_v60 = vpop.f32.mrf.mxu1 }
 0x12f   : > { %729 = vst [vmem:[#allocation2 + $0x8] sm:$0xff] %v713_v55  ;;  %737 = vst [vmem:[#allocation2 + $0x78] sm:$0xff] %v721_v56  ;;  %v999_v61 = vadd.f32 %v998_v58, %v997_v53  ;;  %v1023_v62 = vadd.f32 %v1022_v60, %v1021_v54  ;;  %742 = sbr.rel (%p953_p11) target bundleno = 319 (0x13f), region = 78 }
 0x131   : > { %v714_v63 = vadd.f32 %v999_v61, %v377_v57  ;;  %v722_v0 = vadd.f32 %v1023_v62, %v385_v59 }
 0x133   : > { %730 = vst [vmem:[#allocation2 + $0x48] sm:$0xff] %v714_v63  ;;  %738 = vst [vmem:[#allocation2 + $0x28] sm:$0xff] %v722_v0 }
 0x134   : > { %v743_v1 = vld [vmem:[#allocation2 + $0x30] sm:$0xff]  ;;  %v954_v2 = vld [vmem:[%s1356_s2] ss:$0 sm:$0xff]  ;;  %v745_v6 = vld [vmem:[#allocation2 + $0x58] sm:$0xff] }
 0x135   : > { %v744_v3 = vld [vmem:[#allocation2] sm:$0xff]  ;;  %v766_v4 = vadd.f32 %v954_v2, %v743_v1  ;;  %v746_v7 = vld [vmem:[#allocation2 + $0x18] sm:$0xff]  ;;  %v747_v8 = vld [vmem:[#allocation2 + $0x50] sm:$0xff]  ;;  %v768_v9 = vadd.f32 %v954_v2, %v745_v6 }
 0x136   : > { %v767_v5 = vadd.f32 %v954_v2, %v744_v3  ;;  %v769_v10 = vadd.f32 %v954_v2, %v746_v7  ;;  %v770_v11 = vadd.f32 %v954_v2, %v747_v8  ;;  %v748_v12 = vld [vmem:[#allocation2 + $0x68] sm:$0xff]  ;;  %v751_v18 = vld [vmem:[#allocation2 + $0x40] sm:$0xff]  ;;  %v753_v20 = vld [vmem:[#allocation2 + $0x10] sm:$0xff] }
 0x137   : > { %v749_v13 = vld [vmem:[#allocation2 + $0x8] sm:$0xff]  ;;  %782 = vst [vmem:[%s1357_s3] sm:$0xff] %v766_v4  ;;  %v771_v15 = vadd.f32 %v954_v2, %v748_v12  ;;  %v752_v19 = vld [vmem:[#allocation2 + $0x20] sm:$0xff]  ;;  %784 = vst [vmem:[%s1357_s3 + $0x10] sm:$0xff] %v768_v9  ;;  %v774_v21 = vadd.f32 %v954_v2, %v751_v18  ;;  %v776_v23 = vadd.f32 %v954_v2, %v753_v20 }
 0x138   : > { %783 = vst [vmem:[%s1357_s3 + $0x8] sm:$0xff] %v767_v5  ;;  %v772_v16 = vadd.f32 %v954_v2, %v749_v13  ;;  %785 = vst [vmem:[%s1357_s3 + $0x18] sm:$0xff] %v769_v10  ;;  %v775_v22 = vadd.f32 %v954_v2, %v752_v19  ;;  %v754_v24 = vld [vmem:[#allocation2 + $0x38] sm:$0xff]  ;;  %v755_v25 = vld [vmem:[#allocation2 + $0x60] sm:$0xff] }
 0x139   : > { %786 = vst [vmem:[%s1357_s3 + $0x20] sm:$0xff] %v770_v11  ;;  %v756_v26 = vld [vmem:[#allocation2 + $0x70] sm:$0xff]  ;;  %787 = vst [vmem:[%s1357_s3 + $0x28] sm:$0xff] %v771_v15  ;;  %v777_v27 = vadd.f32 %v954_v2, %v754_v24  ;;  %v778_v28 = vadd.f32 %v954_v2, %v755_v25  ;;  %v757_v30 = vld [vmem:[#allocation2 + $0x78] sm:$0xff] }
 0x13a   : > { %v750_v14 = vld [vmem:[#allocation2 + $0x48] sm:$0xff]  ;;  %788 = vst [vmem:[%s1357_s3 + $0x30] sm:$0xff] %v772_v16  ;;  %v779_v29 = vadd.f32 %v954_v2, %v756_v26  ;;  %790 = vst [vmem:[%s1357_s3 + $0x40] sm:$0xff] %v774_v21  ;;  %v780_v32 = vadd.f32 %v954_v2, %v757_v30 }
 0x13b   : > { %v773_v17 = vadd.f32 %v954_v2, %v750_v14  ;;  %v758_v31 = vld [vmem:[#allocation2 + $0x28] sm:$0xff]  ;;  %791 = vst [vmem:[%s1357_s3 + $0x48] sm:$0xff] %v775_v22  ;;  %792 = vst [vmem:[%s1357_s3 + $0x50] sm:$0xff] %v776_v23 }
 0x13c   : > { %v781_v33 = vadd.f32 %v954_v2, %v758_v31  ;;  %793 = vst [vmem:[%s1357_s3 + $0x58] sm:$0xff] %v777_v27  ;;  %794 = vst [vmem:[%s1357_s3 + $0x60] sm:$0xff] %v778_v28 }
 0x13d   : > { %789 = vst [vmem:[%s1357_s3 + $0x38] sm:$0xff] %v773_v17  ;;  %795 = vst [vmem:[%s1357_s3 + $0x68] sm:$0xff] %v779_v29 }
 0x13e   : > { %796 = vst [vmem:[%s1357_s3 + $0x70] sm:$0xff] %v780_v32  ;;  %797 = vst [vmem:[%s1357_s3 + $0x78] sm:$0xff] %v781_v33 }
 0x13f PF: > { %s13_s16 = sadd.s32 1, %s1159_s16   ;;  %s1358_s12 = smov %s1147_s13 }
 0x140   : > { %p10_p12 = scmp.ge.s32.totalorder %s13_s16, 4   ;;  %s1359_s13 = smov %s1217_s20 }
 0x141   : > { %s1360_s14 = smov %s1155_s15  ;;  %s1361_s15 = smov %s1363_s17 }
 0x142   :  { %12 = sbr.rel (!%p10_p12) target bundleno = 3 (0x3), region = 119 }

// kernel: generator_forward.61
= control target key start
LH: loop header
LB: loop body
LE: loop exit
PB: predicated region body
PF: predicated region fallthrough
CT: control target
= control target key end

     0   :  { %s2456_s12 = smov 0   ;;  %s2458_s13 = smov 0   ;;  %s3096_s0 = inlined_call_operand.vmem [shape: bf16[512,3328], index: 0, kind: input, shape index: {}]   ;;  %s3097_s1 = inlined_call_operand.vmem [shape: bf16[3328,128], index: 1, kind: input, shape index: {}]   ;;  %s3098_s2 = inlined_call_operand.vmem [shape: f32[1,128], index: 2, kind: input, shape index: {}]   ;;  %s3099_s3 = inlined_call_operand.vmem [shape: f32[512,128], index: 3, kind: output, shape index: {}]  }
   0x1   :  { %s2460_s14 = smov 0   ;;  %s2462_s15 = smov 0  }
   0x2   :  { %s2464_s16 = smov 0  }
   0x3 LB: > { %s25_s17 = sadd.s32 1, %s2428_s15  ;;  %p48_p1 = scmp.ne.s32.totalorder %s2420_s13, %s2416_s12  ;;  %s2432_s16 = sphi %s2464_s16, %s13_s16   ;;  %s2428_s15 = sphi %s2462_s15, %s3103_s15   ;;  %s2424_s14 = sphi %s2460_s14, %s3102_s14   ;;  %s2420_s13 = sphi %s2458_s13, %s3101_s13   ;;  %s2416_s12 = sphi %s2456_s12, %s3100_s12  }
   0x4   : > { %p26_p0 = scmp.ge.s32.totalorder %s25_s17, 13  ;;  %p49_p2 = scmp.eq.s32.totalorder %s2432_s16, 0 }
   0x5   : > { %s41_s19 = sadd.s32 1, %s2420_s13  ;;  %p1984_p5 = scmp.ge.s32.totalorder %s2432_s16, 13 }
   0x6   : > { %s3105_s17 = smov (%p26_p0, %s25_s17), 0  ;;  %p50_p3 = por %p49_p2, %p48_p1 }
   0x7   : > { %s37_s18 = ssub.s32 %s2428_s15, %s3105_s17  ;;  %162 = sbr.rel (%p1984_p5) target bundleno = 48 (0x30), region = 20 }
   0x8   : > { %p39_p4 = scmp.eq.s32.totalorder %s37_s18, 0 }
   0xa   : > { %s2491_s20 = scalar_select %p39_p4, %s2420_s13, %s41_s19  }
   0xc   : > { %165 = sbr.rel (!%p50_p3) target bundleno = 48 (0x30), region = 24  ;;  %s167_s21 = sand.u32 (%p50_p3), 1, %s2420_s13  }
   0xd   : > { %s2079_s22 = sshll.u32 (%p50_p3), %s2428_s15, 3  ;;  %s1985_s23 = sshll.u32 (%p50_p3), %s167_s21, 9 }
   0xe   : > { %s2499_s26 = scalar_lea.vmem (%p50_p3), %s3096_s0, %s2079_s22  ;;  %s2504_s27 = scalar_lea.vmem (%p50_p3), [#allocation3], %s1985_s23 }
   0xf   : > { %v330_v0 = vld [vmem:[%s2499_s26] sm:$0xff] (%p50_p3)  ;;  %v332_v1 = vld [vmem:[%s2499_s26 + $0x68] sm:$0xff] (%p50_p3)  ;;  %v334_v2 = vld [vmem:[%s2499_s26 + $0xd0] sm:$0xff] (%p50_p3) }
  0x10   : > { %331 = vst [vmem:[%s2504_s27] sm:$0xff] (%p50_p3), %v330_v0  ;;  %333 = vst [vmem:[%s2504_s27 + $0x8] sm:$0xff] (%p50_p3), %v332_v1  ;;  %v336_v3 = vld [vmem:[%s2499_s26 + $0x138] sm:$0xff] (%p50_p3)  ;;  %v338_v4 = vld [vmem:[%s2499_s26 + $0x1a0] sm:$0xff] (%p50_p3) }
  0x11   : > { %335 = vst [vmem:[%s2504_s27 + $0x10] sm:$0xff] %v334_v2  ;;  %v340_v5 = vld [vmem:[%s2499_s26 + $0x208] sm:$0xff]  ;;  %337 = vst [vmem:[%s2504_s27 + $0x18] sm:$0xff] %v336_v3  ;;  %v342_v6 = vld [vmem:[%s2499_s26 + $0x270] sm:$0xff] }
  0x12   : > { %339 = vst [vmem:[%s2504_s27 + $0x20] sm:$0xff] %v338_v4  ;;  %341 = vst [vmem:[%s2504_s27 + $0x28] sm:$0xff] %v340_v5  ;;  %v344_v7 = vld [vmem:[%s2499_s26 + $0x2d8] sm:$0xff]  ;;  %v346_v8 = vld [vmem:[%s2499_s26 + $0x340] sm:$0xff] }
  0x13   : > { %343 = vst [vmem:[%s2504_s27 + $0x30] sm:$0xff] %v342_v6  ;;  %345 = vst [vmem:[%s2504_s27 + $0x38] sm:$0xff] %v344_v7  ;;  %v348_v9 = vld [vmem:[%s2499_s26 + $0x3a8] sm:$0xff]  ;;  %v350_v10 = vld [vmem:[%s2499_s26 + $0x410] sm:$0xff] }
  0x14   : > { %347 = vst [vmem:[%s2504_s27 + $0x40] sm:$0xff] %v346_v8  ;;  %v352_v11 = vld [vmem:[%s2499_s26 + $0x478] sm:$0xff]  ;;  %349 = vst [vmem:[%s2504_s27 + $0x48] sm:$0xff] %v348_v9  ;;  %v354_v12 = vld [vmem:[%s2499_s26 + $0x4e0] sm:$0xff] }
  0x15   : > { %351 = vst [vmem:[%s2504_s27 + $0x50] sm:$0xff] %v350_v10  ;;  %353 = vst [vmem:[%s2504_s27 + $0x58] sm:$0xff] %v352_v11  ;;  %v356_v13 = vld [vmem:[%s2499_s26 + $0x548] sm:$0xff]  ;;  %v358_v14 = vld [vmem:[%s2499_s26 + $0x5b0] sm:$0xff] }
  0x16   : > { %355 = vst [vmem:[%s2504_s27 + $0x60] sm:$0xff] %v354_v12  ;;  %357 = vst [vmem:[%s2504_s27 + $0x68] sm:$0xff] %v356_v13  ;;  %v360_v15 = vld [vmem:[%s2499_s26 + $0x618] sm:$0xff]  ;;  %v362_v16 = vld [vmem:[%s2499_s26 + $0x680] sm:$0xff] }
  0x17   : > { %359 = vst [vmem:[%s2504_s27 + $0x70] sm:$0xff] %v358_v14  ;;  %v364_v17 = vld [vmem:[%s2499_s26 + $0x6e8] sm:$0xff]  ;;  %361 = vst [vmem:[%s2504_s27 + $0x78] sm:$0xff] %v360_v15  ;;  %v366_v18 = vld [vmem:[%s2499_s26 + $0x750] sm:$0xff] }
  0x18   : > { %363 = vst [vmem:[%s2504_s27 + $0x80] sm:$0xff] %v362_v16  ;;  %365 = vst [vmem:[%s2504_s27 + $0x88] sm:$0xff] %v364_v17  ;;  %v368_v19 = vld [vmem:[%s2499_s26 + $0x7b8] sm:$0xff]  ;;  %v370_v20 = vld [vmem:[%s2499_s26 + $0x820] sm:$0xff] }
  0x19   : > { %367 = vst [vmem:[%s2504_s27 + $0x90] sm:$0xff] %v366_v18  ;;  %369 = vst [vmem:[%s2504_s27 + $0x98] sm:$0xff] %v368_v19  ;;  %v372_v21 = vld [vmem:[%s2499_s26 + $0x888] sm:$0xff]  ;;  %v374_v22 = vld [vmem:[%s2499_s26 + $0x8f0] sm:$0xff] }
  0x1a   : > { %371 = vst [vmem:[%s2504_s27 + $0xa0] sm:$0xff] %v370_v20  ;;  %v376_v23 = vld [vmem:[%s2499_s26 + $0x958] sm:$0xff]  ;;  %373 = vst [vmem:[%s2504_s27 + $0xa8] sm:$0xff] %v372_v21  ;;  %v378_v24 = vld [vmem:[%s2499_s26 + $0x9c0] sm:$0xff] }
  0x1b   : > { %375 = vst [vmem:[%s2504_s27 + $0xb0] sm:$0xff] %v374_v22  ;;  %377 = vst [vmem:[%s2504_s27 + $0xb8] sm:$0xff] %v376_v23  ;;  %v380_v25 = vld [vmem:[%s2499_s26 + $0xa28] sm:$0xff]  ;;  %v382_v26 = vld [vmem:[%s2499_s26 + $0xa90] sm:$0xff] }
  0x1c   : > { %379 = vst [vmem:[%s2504_s27 + $0xc0] sm:$0xff] %v378_v24  ;;  %381 = vst [vmem:[%s2504_s27 + $0xc8] sm:$0xff] %v380_v25  ;;  %v384_v27 = vld [vmem:[%s2499_s26 + $0xaf8] sm:$0xff]  ;;  %v386_v28 = vld [vmem:[%s2499_s26 + $0xb60] sm:$0xff] }
  0x1d   : > { %383 = vst [vmem:[%s2504_s27 + $0xd0] sm:$0xff] %v382_v26  ;;  %v388_v29 = vld [vmem:[%s2499_s26 + $0xbc8] sm:$0xff]  ;;  %385 = vst [vmem:[%s2504_s27 + $0xd8] sm:$0xff] %v384_v27  ;;  %v390_v30 = vld [vmem:[%s2499_s26 + $0xc30] sm:$0xff] }
  0x1e   : > { %387 = vst [vmem:[%s2504_s27 + $0xe0] sm:$0xff] %v386_v28  ;;  %389 = vst [vmem:[%s2504_s27 + $0xe8] sm:$0xff] %v388_v29  ;;  %v392_v31 = vld [vmem:[%s2499_s26 + $0xc98] sm:$0xff]  ;;  %v394_v32 = vld [vmem:[%s2499_s26 + $0xd00] sm:$0xff] }
  0x1f   : > { %391 = vst [vmem:[%s2504_s27 + $0xf0] sm:$0xff] %v390_v30  ;;  %393 = vst [vmem:[%s2504_s27 + $0xf8] sm:$0xff] %v392_v31  ;;  %v396_v33 = vld [vmem:[%s2499_s26 + $0xd68] sm:$0xff]  ;;  %v398_v34 = vld [vmem:[%s2499_s26 + $0xdd0] sm:$0xff] }
  0x20   : > { %395 = vst [vmem:[%s2504_s27 + $0x100] sm:$0xff] %v394_v32  ;;  %v400_v35 = vld [vmem:[%s2499_s26 + $0xe38] sm:$0xff]  ;;  %397 = vst [vmem:[%s2504_s27 + $0x108] sm:$0xff] %v396_v33  ;;  %v402_v36 = vld [vmem:[%s2499_s26 + $0xea0] sm:$0xff] }
  0x21   : > { %399 = vst [vmem:[%s2504_s27 + $0x110] sm:$0xff] %v398_v34  ;;  %401 = vst [vmem:[%s2504_s27 + $0x118] sm:$0xff] %v400_v35  ;;  %v404_v37 = vld [vmem:[%s2499_s26 + $0xf08] sm:$0xff]  ;;  %v406_v38 = vld [vmem:[%s2499_s26 + $0xf70] sm:$0xff] }
  0x22   : > { %403 = vst [vmem:[%s2504_s27 + $0x120] sm:$0xff] %v402_v36  ;;  %405 = vst [vmem:[%s2504_s27 + $0x128] sm:$0xff] %v404_v37  ;;  %v408_v39 = vld [vmem:[%s2499_s26 + $0xfd8] sm:$0xff]  ;;  %v410_v40 = vld [vmem:[%s2499_s26 + $0x1040] sm:$0xff] }
  0x23   : > { %407 = vst [vmem:[%s2504_s27 + $0x130] sm:$0xff] %v406_v38  ;;  %v412_v41 = vld [vmem:[%s2499_s26 + $0x10a8] sm:$0xff]  ;;  %409 = vst [vmem:[%s2504_s27 + $0x138] sm:$0xff] %v408_v39  ;;  %v414_v42 = vld [vmem:[%s2499_s26 + $0x1110] sm:$0xff] }
  0x24   : > { %411 = vst [vmem:[%s2504_s27 + $0x140] sm:$0xff] %v410_v40  ;;  %413 = vst [vmem:[%s2504_s27 + $0x148] sm:$0xff] %v412_v41  ;;  %v416_v43 = vld [vmem:[%s2499_s26 + $0x1178] sm:$0xff]  ;;  %v418_v44 = vld [vmem:[%s2499_s26 + $0x11e0] sm:$0xff] }
  0x25   : > { %415 = vst [vmem:[%s2504_s27 + $0x150] sm:$0xff] %v414_v42  ;;  %417 = vst [vmem:[%s2504_s27 + $0x158] sm:$0xff] %v416_v43  ;;  %v420_v45 = vld [vmem:[%s2499_s26 + $0x1248] sm:$0xff]  ;;  %v422_v46 = vld [vmem:[%s2499_s26 + $0x12b0] sm:$0xff] }
  0x26   : > { %419 = vst [vmem:[%s2504_s27 + $0x160] sm:$0xff] %v418_v44  ;;  %v424_v47 = vld [vmem:[%s2499_s26 + $0x1318] sm:$0xff]  ;;  %421 = vst [vmem:[%s2504_s27 + $0x168] sm:$0xff] %v420_v45  ;;  %v426_v48 = vld [vmem:[%s2499_s26 + $0x1380] sm:$0xff] }
  0x27   : > { %423 = vst [vmem:[%s2504_s27 + $0x170] sm:$0xff] %v422_v46  ;;  %425 = vst [vmem:[%s2504_s27 + $0x178] sm:$0xff] %v424_v47  ;;  %v428_v49 = vld [vmem:[%s2499_s26 + $0x13e8] sm:$0xff]  ;;  %v430_v50 = vld [vmem:[%s2499_s26 + $0x1450] sm:$0xff] }
  0x28   : > { %427 = vst [vmem:[%s2504_s27 + $0x180] sm:$0xff] %v426_v48  ;;  %429 = vst [vmem:[%s2504_s27 + $0x188] sm:$0xff] %v428_v49  ;;  %v432_v51 = vld [vmem:[%s2499_s26 + $0x14b8] sm:$0xff]  ;;  %v434_v52 = vld [vmem:[%s2499_s26 + $0x1520] sm:$0xff] }
  0x29   : > { %431 = vst [vmem:[%s2504_s27 + $0x190] sm:$0xff] %v430_v50  ;;  %v436_v53 = vld [vmem:[%s2499_s26 + $0x1588] sm:$0xff]  ;;  %433 = vst [vmem:[%s2504_s27 + $0x198] sm:$0xff] %v432_v51  ;;  %v438_v54 = vld [vmem:[%s2499_s26 + $0x15f0] sm:$0xff] }
  0x2a   : > { %435 = vst [vmem:[%s2504_s27 + $0x1a0] sm:$0xff] %v434_v52  ;;  %437 = vst [vmem:[%s2504_s27 + $0x1a8] sm:$0xff] %v436_v53  ;;  %v440_v55 = vld [vmem:[%s2499_s26 + $0x1658] sm:$0xff]  ;;  %v442_v56 = vld [vmem:[%s2499_s26 + $0x16c0] sm:$0xff] }
  0x2b   : > { %439 = vst [vmem:[%s2504_s27 + $0x1b0] sm:$0xff] %v438_v54  ;;  %441 = vst [vmem:[%s2504_s27 + $0x1b8] sm:$0xff] %v440_v55  ;;  %v444_v57 = vld [vmem:[%s2499_s26 + $0x1728] sm:$0xff]  ;;  %v446_v58 = vld [vmem:[%s2499_s26 + $0x1790] sm:$0xff] }
  0x2c   : > { %443 = vst [vmem:[%s2504_s27 + $0x1c0] sm:$0xff] %v442_v56  ;;  %v448_v59 = vld [vmem:[%s2499_s26 + $0x17f8] sm:$0xff]  ;;  %445 = vst [vmem:[%s2504_s27 + $0x1c8] sm:$0xff] %v444_v57  ;;  %v450_v60 = vld [vmem:[%s2499_s26 + $0x1860] sm:$0xff] }
  0x2d   : > { %447 = vst [vmem:[%s2504_s27 + $0x1d0] sm:$0xff] %v446_v58  ;;  %449 = vst [vmem:[%s2504_s27 + $0x1d8] sm:$0xff] %v448_v59  ;;  %v452_v61 = vld [vmem:[%s2499_s26 + $0x18c8] sm:$0xff]  ;;  %v454_v62 = vld [vmem:[%s2499_s26 + $0x1930] sm:$0xff] }
  0x2e   : > { %451 = vst [vmem:[%s2504_s27 + $0x1e0] sm:$0xff] %v450_v60  ;;  %453 = vst [vmem:[%s2504_s27 + $0x1e8] sm:$0xff] %v452_v61  ;;  %v456_v63 = vld [vmem:[%s2499_s26 + $0x1998] sm:$0xff] }
  0x2f   : > { %455 = vst [vmem:[%s2504_s27 + $0x1f0] sm:$0xff] %v454_v62  ;;  %457 = vst [vmem:[%s2504_s27 + $0x1f8] sm:$0xff] %v456_v63 }
  0x30 PF: > { %p1988_p6 = scmp.ge.s32.totalorder %s2432_s16, 1  ;;  %p474_p7 = scmp.lt.s32.totalorder %s2432_s16, 14 }
  0x32   : > { %p475_p8 = pnand %p1988_p6, %p474_p7 }
  0x33   : > { %s481_s28 = sand.u32 (!%p475_p8), 1, %s2416_s12   ;;  %s1990_s29 = sshll.u32 (!%p475_p8), %s2424_s14, 5 }
  0x34   : > { %478 = sbr.rel (%p475_p8) target bundleno = 561 (0x231), region = 66  ;;  %s1989_s30 = sshll.u32 (!%p475_p8), %s481_s28, 9 }
  0x35   : > { %p521_p9 = scmp.lt.s32.totalorder (!%p475_p8), %s1990_s29, 415  ;;  %s2640_s8 = scalar_lea.vmem (!%p475_p8), [#allocation3], %s1989_s30 }
  0x36   : > { %p1992_p10 = scmp.ne.s32.totalorder (!%p475_p8), %s2424_s14, 0 }
  0x39   : > { %s3107_s29 = smov (!%p521_p9, %s1990_s29), 415  ;;  %545 = sbr.rel (%p1992_p10) target bundleno = 95 (0x5f), region = 74 }
  0x3a   : > { %s1991_s4 = sshll.u32 %s3107_s29, 2 }
  0x3b   : > { %s2638_s7 = scalar_lea.vmem %s3097_s1, %s1991_s4 }
  0x3e   : > { %v2434_v0 = vmov 0.0  }
  0x3f   : > { %546 = vst [vmem:[#allocation2 + $0xb0] sm:$0xff] %v2434_v0  ;;  %547 = vst [vmem:[#allocation2 + $0x1b0] sm:$0xff] %v2434_v0 }
  0x40   : > { %548 = vst [vmem:[#allocation2 + $0xd8] sm:$0xff] %v2434_v0  ;;  %549 = vst [vmem:[#allocation2 + $0x18] sm:$0xff] %v2434_v0 }
  0x41   : > { %550 = vst [vmem:[#allocation2 + $0x50] sm:$0xff] %v2434_v0  ;;  %551 = vst [vmem:[#allocation2 + $0x168] sm:$0xff] %v2434_v0 }
  0x42   : > { %552 = vst [vmem:[#allocation2 + $0x130] sm:$0xff] %v2434_v0  ;;  %553 = vst [vmem:[#allocation2 + $0x48] sm:$0xff] %v2434_v0 }
  0x43   : > { %554 = vst [vmem:[#allocation2 + $0x180] sm:$0xff] %v2434_v0  ;;  %555 = vst [vmem:[#allocation2 + $0x110] sm:$0xff] %v2434_v0 }
  0x44   : > { %556 = vst [vmem:[#allocation2 + $0x118] sm:$0xff] %v2434_v0  ;;  %557 = vst [vmem:[#allocation2 + $0x98] sm:$0xff] %v2434_v0 }
  0x45   : > { %558 = vst [vmem:[#allocation2 + $0x120] sm:$0xff] %v2434_v0  ;;  %559 = vst [vmem:[#allocation2 + $0x150] sm:$0xff] %v2434_v0 }
  0x46   : > { %560 = vst [vmem:[#allocation2 + $0x108] sm:$0xff] %v2434_v0  ;;  %561 = vst [vmem:[#allocation2 + $0x60] sm:$0xff] %v2434_v0 }
  0x47   : > { %562 = vst [vmem:[#allocation2 + $0xe0] sm:$0xff] %v2434_v0  ;;  %563 = vst [vmem:[#allocation2 + $0x188] sm:$0xff] %v2434_v0 }
  0x48   : > { %564 = vst [vmem:[#allocation2 + $0x138] sm:$0xff] %v2434_v0  ;;  %565 = vst [vmem:[#allocation2 + $0x140] sm:$0xff] %v2434_v0 }
  0x49   : > { %566 = vst [vmem:[#allocation2 + $0x80] sm:$0xff] %v2434_v0  ;;  %567 = vst [vmem:[#allocation2 + $0x1a8] sm:$0xff] %v2434_v0 }
  0x4a   : > { %568 = vst [vmem:[#allocation2 + $0x1b8] sm:$0xff] %v2434_v0  ;;  %569 = vst [vmem:[#allocation2 + $0x28] sm:$0xff] %v2434_v0 }
  0x4b   : > { %570 = vst [vmem:[#allocation2 + $0x1e8] sm:$0xff] %v2434_v0  ;;  %571 = vst [vmem:[#allocation2 + $0xf8] sm:$0xff] %v2434_v0 }
  0x4c   : > { %572 = vst [vmem:[#allocation2 + $0x160] sm:$0xff] %v2434_v0  ;;  %573 = vst [vmem:[#allocation2 + $0x30] sm:$0xff] %v2434_v0 }
  0x4d   : > { %574 = vst [vmem:[#allocation2 + $0x1e0] sm:$0xff] %v2434_v0  ;;  %575 = vst [vmem:[#allocation2] sm:$0xff] %v2434_v0 }
  0x4e   : > { %576 = vst [vmem:[#allocation2 + $0xf0] sm:$0xff] %v2434_v0  ;;  %577 = vst [vmem:[#allocation2 + $0x8] sm:$0xff] %v2434_v0 }
  0x4f   : > { %578 = vst [vmem:[#allocation2 + $0x148] sm:$0xff] %v2434_v0  ;;  %579 = vst [vmem:[#allocation2 + $0x1d0] sm:$0xff] %v2434_v0 }
  0x50   : > { %580 = vst [vmem:[#allocation2 + $0x100] sm:$0xff] %v2434_v0  ;;  %581 = vst [vmem:[#allocation2 + $0xc8] sm:$0xff] %v2434_v0 }
  0x51   : > { %582 = vst [vmem:[#allocation2 + $0x40] sm:$0xff] %v2434_v0  ;;  %583 = vst [vmem:[#allocation2 + $0x1f8] sm:$0xff] %v2434_v0 }
  0x52   : > { %584 = vst [vmem:[#allocation2 + $0x20] sm:$0xff] %v2434_v0  ;;  %585 = vst [vmem:[#allocation2 + $0x128] sm:$0xff] %v2434_v0 }
  0x53   : > { %586 = vst [vmem:[#allocation2 + $0x1a0] sm:$0xff] %v2434_v0  ;;  %587 = vst [vmem:[#allocation2 + $0x1f0] sm:$0xff] %v2434_v0 }
  0x54   : > { %588 = vst [vmem:[#allocation2 + $0xe8] sm:$0xff] %v2434_v0  ;;  %589 = vst [vmem:[#allocation2 + $0x78] sm:$0xff] %v2434_v0 }
  0x55   : > { %590 = vst [vmem:[#allocation2 + $0x70] sm:$0xff] %v2434_v0  ;;  %591 = vst [vmem:[#allocation2 + $0x90] sm:$0xff] %v2434_v0 }
  0x56   : > { %592 = vst [vmem:[#allocation2 + $0x1d8] sm:$0xff] %v2434_v0  ;;  %593 = vst [vmem:[#allocation2 + $0xd0] sm:$0xff] %v2434_v0 }
  0x57   : > { %594 = vst [vmem:[#allocation2 + $0xb8] sm:$0xff] %v2434_v0  ;;  %595 = vst [vmem:[#allocation2 + $0x88] sm:$0xff] %v2434_v0 }
  0x58   : > { %596 = vst [vmem:[#allocation2 + $0xa8] sm:$0xff] %v2434_v0  ;;  %597 = vst [vmem:[#allocation2 + $0x1c8] sm:$0xff] %v2434_v0 }
  0x59   : > { %598 = vst [vmem:[#allocation2 + $0x170] sm:$0xff] %v2434_v0  ;;  %599 = vst [vmem:[#allocation2 + $0x178] sm:$0xff] %v2434_v0 }
  0x5a   : > { %600 = vst [vmem:[#allocation2 + $0x68] sm:$0xff] %v2434_v0  ;;  %601 = vst [vmem:[#allocation2 + $0x190] sm:$0xff] %v2434_v0 }
  0x5b   : > { %602 = vst [vmem:[#allocation2 + $0x198] sm:$0xff] %v2434_v0  ;;  %603 = vst [vmem:[#allocation2 + $0x38] sm:$0xff] %v2434_v0 }
  0x5c   : > { %604 = vst [vmem:[#allocation2 + $0xc0] sm:$0xff] %v2434_v0  ;;  %605 = vst [vmem:[#allocation2 + $0x1c0] sm:$0xff] %v2434_v0 }
  0x5d   : > { %606 = vst [vmem:[#allocation2 + $0x158] sm:$0xff] %v2434_v0  ;;  %607 = vst [vmem:[#allocation2 + $0x10] sm:$0xff] %v2434_v0 }
  0x5e   : > { %608 = vst [vmem:[#allocation2 + $0x58] sm:$0xff] %v2434_v0  ;;  %609 = vst [vmem:[#allocation2 + $0xa0] sm:$0xff] %v2434_v0 }
  0x5f PF: > { %v2154_v1 = vld [vmem:[%s2638_s7 + $0x38] sm:$0xff]   ;;  %v2435_v2 = vmov 0   ;;  %v2155_v3 = vld [vmem:[%s2638_s7 + $0x30] sm:$0xff]   ;;  %v2156_v4 = vld [vmem:[%s2638_s7 + $0x28] sm:$0xff]   ;;  %p2073_p11 = scmp.ne.s32.totalorder %s2424_s14, 12 }
  0x60   : > { %1186 = vmatprep.subr.bf16.mxu0 %v2435_v2  ;;  %2080 = vmatprep.subr.bf16.mxu1 %v2435_v2  ;;  %v2157_v5 = vld [vmem:[%s2638_s7 + $0x20] sm:$0xff]   ;;  %v2158_v6 = vld [vmem:[%s2638_s7 + $0x18] sm:$0xff]   ;;  %v2159_v8 = vld [vmem:[%s2638_s7 + $0x10] sm:$0xff]  }
  0x61   : > { %1187 = vmatpush1.bf16.msra.mxu0 %v2154_v1  ;;  %2096 = vmatpush1.bf16.msra.mxu1 %v2154_v1  ;;  %v2172_v7 = vld [vmem:[%s2640_s8 + $0x4] ss:$8 sps:$4 sm:$0xff]   ;;  %v2162_v12 = vld [vmem:[%s2638_s7 + $0x78] sm:$0xff]   ;;  %v2163_v13 = vld [vmem:[%s2638_s7 + $0x70] sm:$0xff]  }
  0x62   : > { %1188 = vmatprep.subr.bf16.mxu0 %v2435_v2  ;;  %2081 = vmatprep.subr.bf16.mxu1 %v2435_v2  ;;  %v2175_v9 = vld [vmem:[%s2640_s8 + $0x104] ss:$8 sps:$4 sm:$0xff]   ;;  %v2166_v16 = vld [vmem:[%s2638_s7 + $0x58] sm:$0xff]   ;;  %v2167_v17 = vld [vmem:[%s2638_s7 + $0x50] sm:$0xff]  }
  0x63   : > { %1218 = vmatprep.mubr.bf16.mxu0 %v2172_v7  ;;  %1346 = vmatprep.mubr.bf16.mxu1 %v2175_v9  ;;  %v2160_v10 = vld [vmem:[%s2638_s7 + $0x8] sm:$0xff]   ;;  %v2161_v11 = vld [vmem:[%s2638_s7] sm:$0xff]   ;;  %v2176_v22 = vld [vmem:[%s2640_s8 + $0x14] ss:$8 sps:$4 sm:$0xff]  }
  0x64   : > { %v2164_v14 = vld [vmem:[%s2638_s7 + $0x68] sm:$0xff]   ;;  %v2165_v15 = vld [vmem:[%s2638_s7 + $0x60] sm:$0xff]   ;;  %v2178_v23 = vld [vmem:[%s2640_s8 + $0x114] ss:$8 sps:$4 sm:$0xff]  }
  0x65   : > { %1189 = vmatpush1.bf16.msra.mxu0 %v2155_v3  ;;  %2097 = vmatpush1.bf16.msra.mxu1 %v2155_v3  ;;  %v2168_v18 = vld [vmem:[%s2638_s7 + $0x48] sm:$0xff]   ;;  %v2169_v19 = vld [vmem:[%s2638_s7 + $0x40] sm:$0xff]   ;;  %v2180_v24 = vld [vmem:[%s2640_s8 + $0x10] ss:$8 sps:$4 sm:$0xff]  }
  0x66   : > { %1190 = vmatprep.subr.bf16.mxu0 %v2435_v2  ;;  %2082 = vmatprep.subr.bf16.mxu1 %v2435_v2  ;;  %v2170_v20 = vld [vmem:[%s2640_s8] ss:$8 sps:$4 sm:$0xff]   ;;  %v2181_v25 = vld [vmem:[%s2640_s8 + $0x110] ss:$8 sps:$4 sm:$0xff]   ;;  %v2182_v26 = vld [vmem:[%s2640_s8 + $0x24] ss:$8 sps:$4 sm:$0xff]  }
  0x67   : > { %v2173_v21 = vld [vmem:[%s2640_s8 + $0x100] ss:$8 sps:$4 sm:$0xff]   ;;  %v2184_v27 = vld [vmem:[%s2640_s8 + $0x124] ss:$8 sps:$4 sm:$0xff]   ;;  %v2188_v30 = vld [vmem:[%s2640_s8 + $0x34] ss:$8 sps:$4 sm:$0xff]  }
  0x68   : > { %v2186_v28 = vld [vmem:[%s2640_s8 + $0x20] ss:$8 sps:$4 sm:$0xff]   ;;  %v2190_v31 = vld [vmem:[%s2640_s8 + $0x134] ss:$8 sps:$4 sm:$0xff]   ;;  %v2192_v32 = vld [vmem:[%s2640_s8 + $0x30] ss:$8 sps:$4 sm:$0xff]  }
  0x69   : > { %1191 = vmatpush1.bf16.msra.mxu0 %v2156_v4  ;;  %2098 = vmatpush1.bf16.msra.mxu1 %v2156_v4  ;;  %v2187_v29 = vld [vmem:[%s2640_s8 + $0x120] ss:$8 sps:$4 sm:$0xff]   ;;  %v2193_v33 = vld [vmem:[%s2640_s8 + $0x130] ss:$8 sps:$4 sm:$0xff]   ;;  %v2194_v34 = vld [vmem:[%s2640_s8 + $0x44] ss:$8 sps:$4 sm:$0xff]  }
  0x6a   : > { %1192 = vmatprep.subr.bf16.mxu0 %v2435_v2  ;;  %2083 = vmatprep.subr.bf16.mxu1 %v2435_v2  ;;  %v2196_v35 = vld [vmem:[%s2640_s8 + $0x144] ss:$8 sps:$4 sm:$0xff]   ;;  %v2198_v36 = vld [vmem:[%s2640_s8 + $0x40] ss:$8 sps:$4 sm:$0xff]   ;;  %v2200_v38 = vld [vmem:[%s2640_s8 + $0x54] ss:$8 sps:$4 sm:$0xff]  }
  0x6b   : > { %v2199_v37 = vld [vmem:[%s2640_s8 + $0x140] ss:$8 sps:$4 sm:$0xff]   ;;  %v2202_v39 = vld [vmem:[%s2640_s8 + $0x154] ss:$8 sps:$4 sm:$0xff]   ;;  %v2204_v40 = vld [vmem:[%s2640_s8 + $0x50] ss:$8 sps:$4 sm:$0xff]  }
  0x6c   : > { %v2205_v41 = vld [vmem:[%s2640_s8 + $0x150] ss:$8 sps:$4 sm:$0xff]   ;;  %v2206_v42 = vld [vmem:[%s2640_s8 + $0x64] ss:$8 sps:$4 sm:$0xff]   ;;  %v2210_v44 = vld [vmem:[%s2640_s8 + $0x60] ss:$8 sps:$4 sm:$0xff]  }
  0x6d   : > { %1193 = vmatpush1.bf16.msra.mxu0 %v2157_v5  ;;  %2099 = vmatpush1.bf16.msra.mxu1 %v2157_v5  ;;  %v2208_v43 = vld [vmem:[%s2640_s8 + $0x164] ss:$8 sps:$4 sm:$0xff]   ;;  %v2211_v45 = vld [vmem:[%s2640_s8 + $0x160] ss:$8 sps:$4 sm:$0xff]   ;;  %v2212_v46 = vld [vmem:[%s2640_s8 + $0x74] ss:$8 sps:$4 sm:$0xff]  }
  0x6e   : > { %1194 = vmatprep.subr.bf16.mxu0 %v2435_v2  ;;  %2084 = vmatprep.subr.bf16.mxu1 %v2435_v2  ;;  %v2214_v47 = vld [vmem:[%s2640_s8 + $0x174] ss:$8 sps:$4 sm:$0xff]   ;;  %v2216_v48 = vld [vmem:[%s2640_s8 + $0x70] ss:$8 sps:$4 sm:$0xff]   ;;  %v2218_v50 = vld [vmem:[%s2640_s8 + $0x84] ss:$8 sps:$4 sm:$0xff]  }
  0x6f   : > { %v2217_v49 = vld [vmem:[%s2640_s8 + $0x170] ss:$8 sps:$4 sm:$0xff]   ;;  %v2220_v51 = vld [vmem:[%s2640_s8 + $0x184] ss:$8 sps:$4 sm:$0xff]   ;;  %v2222_v52 = vld [vmem:[%s2640_s8 + $0x80] ss:$8 sps:$4 sm:$0xff]  }
  0x70   : > { %v2223_v53 = vld [vmem:[%s2640_s8 + $0x180] ss:$8 sps:$4 sm:$0xff]   ;;  %v2224_v54 = vld [vmem:[%s2640_s8 + $0x94] ss:$8 sps:$4 sm:$0xff]   ;;  %v2228_v56 = vld [vmem:[%s2640_s8 + $0x90] ss:$8 sps:$4 sm:$0xff]  }
  0x71   : > { %1195 = vmatpush1.bf16.msra.mxu0 %v2158_v6  ;;  %2100 = vmatpush1.bf16.msra.mxu1 %v2158_v6  ;;  %v2226_v55 = vld [vmem:[%s2640_s8 + $0x194] ss:$8 sps:$4 sm:$0xff]   ;;  %v2229_v57 = vld [vmem:[%s2640_s8 + $0x190] ss:$8 sps:$4 sm:$0xff]   ;;  %v2230_v58 = vld [vmem:[%s2640_s8 + $0xa4] ss:$8 sps:$4 sm:$0xff]  }
  0x72   : > { %1196 = vmatprep.subr.bf16.mxu0 %v2435_v2  ;;  %2085 = vmatprep.subr.bf16.mxu1 %v2435_v2  ;;  %v2232_v59 = vld [vmem:[%s2640_s8 + $0x1a4] ss:$8 sps:$4 sm:$0xff]   ;;  %v2234_v60 = vld [vmem:[%s2640_s8 + $0xa0] ss:$8 sps:$4 sm:$0xff]   ;;  %v2236_v62 = vld [vmem:[%s2640_s8 + $0xb4] ss:$8 sps:$4 sm:$0xff]  }
  0x73   : > { %v2235_v61 = vld [vmem:[%s2640_s8 + $0x1a0] ss:$8 sps:$4 sm:$0xff]   ;;  %v2238_v63 = vld [vmem:[%s2640_s8 + $0x1b4] ss:$8 sps:$4 sm:$0xff]   ;;  %v2240_v0 = vld [vmem:[%s2640_s8 + $0xb0] ss:$8 sps:$4 sm:$0xff]  }
  0x74   : > { %v2241_v1 = vld [vmem:[%s2640_s8 + $0x1b0] ss:$8 sps:$4 sm:$0xff]   ;;  %v2244_v3 = vld [vmem:[%s2640_s8 + $0x1c4] ss:$8 sps:$4 sm:$0xff]   ;;  %v2246_v4 = vld [vmem:[%s2640_s8 + $0xc0] ss:$8 sps:$4 sm:$0xff]  }
  0x75   : > { %1197 = vmatpush1.bf16.msra.mxu0 %v2159_v8  ;;  %2101 = vmatpush1.bf16.msra.mxu1 %v2159_v8  ;;  %v2247_v5 = vld [vmem:[%s2640_s8 + $0x1c0] ss:$8 sps:$4 sm:$0xff]   ;;  %v2248_v6 = vld [vmem:[%s2640_s8 + $0xd4] ss:$8 sps:$4 sm:$0xff]   ;;  %v2252_v8 = vld [vmem:[%s2640_s8 + $0xd0] ss:$8 sps:$4 sm:$0xff]  }
  0x76   : > { %1198 = vmatprep.subr.bf16.mxu0 %v2435_v2  ;;  %2086 = vmatprep.subr.bf16.mxu1 %v2435_v2  ;;  %v2250_v7 = vld [vmem:[%s2640_s8 + $0x1d4] ss:$8 sps:$4 sm:$0xff]   ;;  %v2253_v9 = vld [vmem:[%s2640_s8 + $0x1d0] ss:$8 sps:$4 sm:$0xff]  }
  0x79   : > { %1199 = vmatpush1.bf16.msra.mxu0 %v2160_v10  ;;  %2102 = vmatpush1.bf16.msra.mxu1 %v2160_v10  ;;  %v2254_v10 = vld [vmem:[%s2640_s8 + $0xe4] ss:$8 sps:$4 sm:$0xff]  }
  0x7a   : > { %1200 = vmatprep.subr.bf16.mxu0 %v2435_v2  ;;  %2087 = vmatprep.subr.bf16.mxu1 %v2435_v2 }
  0x7d   : > { %1201 = vmatpush1.bf16.msra.mxu0 %v2161_v11  ;;  %2103 = vmatpush1.bf16.msra.mxu1 %v2161_v11  ;;  %v2256_v11 = vld [vmem:[%s2640_s8 + $0x1e4] ss:$8 sps:$4 sm:$0xff]  }
  0x7e   : > { %1202 = vmatprep.subr.bf16.mxu0 %v2435_v2  ;;  %2088 = vmatprep.subr.bf16.mxu1 %v2435_v2 }
  0x81   : > { %1203 = vmatpush2.bf16.msra.mxu0 %v2162_v12  ;;  %2104 = vmatpush2.bf16.msra.mxu1 %v2162_v12  ;;  %v2258_v12 = vld [vmem:[%s2640_s8 + $0xe0] ss:$8 sps:$4 sm:$0xff]  }
  0x82   : > { %1204 = vmatprep.subr.bf16.mxu0 %v2435_v2  ;;  %2089 = vmatprep.subr.bf16.mxu1 %v2435_v2 }
  0x85   : > { %1205 = vmatpush2.bf16.msra.mxu0 %v2163_v13  ;;  %2105 = vmatpush2.bf16.msra.mxu1 %v2163_v13  ;;  %v2259_v13 = vld [vmem:[%s2640_s8 + $0x1e0] ss:$8 sps:$4 sm:$0xff]  }
  0x86   : > { %1206 = vmatprep.subr.bf16.mxu0 %v2435_v2  ;;  %2090 = vmatprep.subr.bf16.mxu1 %v2435_v2 }
  0x89   : > { %1207 = vmatpush2.bf16.msra.mxu0 %v2164_v14  ;;  %2106 = vmatpush2.bf16.msra.mxu1 %v2164_v14  ;;  %v2260_v14 = vld [vmem:[%s2640_s8 + $0xf4] ss:$8 sps:$4 sm:$0xff]  }
  0x8a   : > { %1208 = vmatprep.subr.bf16.mxu0 %v2435_v2  ;;  %2091 = vmatprep.subr.bf16.mxu1 %v2435_v2 }
  0x8d   : > { %1209 = vmatpush2.bf16.msra.mxu0 %v2165_v15  ;;  %2107 = vmatpush2.bf16.msra.mxu1 %v2165_v15  ;;  %v2262_v15 = vld [vmem:[%s2640_s8 + $0x1f4] ss:$8 sps:$4 sm:$0xff]  }
  0x8e   : > { %1210 = vmatprep.subr.bf16.mxu0 %v2435_v2  ;;  %2092 = vmatprep.subr.bf16.mxu1 %v2435_v2 }
  0x91   : > { %1211 = vmatpush2.bf16.msra.mxu0 %v2166_v16  ;;  %2108 = vmatpush2.bf16.msra.mxu1 %v2166_v16  ;;  %v2264_v16 = vld [vmem:[%s2640_s8 + $0xf0] ss:$8 sps:$4 sm:$0xff]  }
  0x92   : > { %1212 = vmatprep.subr.bf16.mxu0 %v2435_v2  ;;  %2093 = vmatprep.subr.bf16.mxu1 %v2435_v2 }
  0x95   : > { %1213 = vmatpush2.bf16.msra.mxu0 %v2167_v17  ;;  %2109 = vmatpush2.bf16.msra.mxu1 %v2167_v17  ;;  %v2265_v17 = vld [vmem:[%s2640_s8 + $0x1f0] ss:$8 sps:$4 sm:$0xff]  }
  0x96   : > { %1214 = vmatprep.subr.bf16.mxu0 %v2435_v2  ;;  %2094 = vmatprep.subr.bf16.mxu1 %v2435_v2 }
  0x99   : > { %1215 = vmatpush2.bf16.msra.mxu0 %v2168_v18  ;;  %2110 = vmatpush2.bf16.msra.mxu1 %v2168_v18  ;;  %v610_v18 = vld [vmem:[#allocation2 + $0xb0] sm:$0xff] }
  0x9a   : > { %1216 = vmatprep.subr.bf16.mxu0 %v2435_v2  ;;  %2095 = vmatprep.subr.bf16.mxu1 %v2435_v2  ;;  %v2242_v2 = vld [vmem:[%s2640_s8 + $0xc4] ss:$8 sps:$4 sm:$0xff]  }
  0x9d   : > { %1217 = vmatpush2.bf16.msra.mxu0 %v2169_v19  ;;  %2111 = vmatpush2.bf16.msra.mxu1 %v2169_v19  ;;  %v642_v19 = vld [vmem:[#allocation2 + $0x148] sm:$0xff] }
  0xa0   : > { %1219 = vmatmul.mubr.bf16.vlgmr.msra.gmra.mxu0 %v2170_v20  ;;  %1347 = vmatmul.mubr.bf16.vlgmr.msra.gmra.mxu1 %v2173_v21 }
  0xa1   : > { %1226 = vmatprep.mubr.bf16.mxu0 %v2176_v22  ;;  %1354 = vmatprep.mubr.bf16.mxu1 %v2178_v23 }
  0xa8   : > { %1227 = vmatmul.mubr.bf16.gmra.mxu0 %v2180_v24  ;;  %1355 = vmatmul.mubr.bf16.gmra.mxu1 %v2181_v25 }
  0xa9   : > { %1234 = vmatprep.mubr.bf16.mxu0 %v2182_v26  ;;  %1362 = vmatprep.mubr.bf16.mxu1 %v2184_v27  ;;  %v611_v26 = vld [vmem:[#allocation2 + $0x1b0] sm:$0xff] }
  0xaa   : > { %v643_v27 = vld [vmem:[#allocation2 + $0x1d0] sm:$0xff] }
  0xb0   : > { %1235 = vmatmul.mubr.bf16.gmra.mxu0 %v2186_v28  ;;  %1363 = vmatmul.mubr.bf16.gmra.mxu1 %v2187_v29 }
  0xb1   : > { %1242 = vmatprep.mubr.bf16.mxu0 %v2188_v30  ;;  %1370 = vmatprep.mubr.bf16.mxu1 %v2190_v31 }
  0xb8   : > { %1243 = vmatmul.mubr.bf16.gmra.mxu0 %v2192_v32  ;;  %1371 = vmatmul.mubr.bf16.gmra.mxu1 %v2193_v33 }
  0xb9   : > { %1250 = vmatprep.mubr.bf16.mxu0 %v2194_v34  ;;  %1378 = vmatprep.mubr.bf16.mxu1 %v2196_v35  ;;  %v612_v34 = vld [vmem:[#allocation2 + $0xd8] sm:$0xff]  ;;  %v644_v35 = vld [vmem:[#allocation2 + $0x100] sm:$0xff] }
  0xc0   : > { %1251 = vmatmul.mubr.bf16.gmra.mxu0 %v2198_v36  ;;  %1379 = vmatmul.mubr.bf16.gmra.mxu1 %v2199_v37 }
  0xc1   : > { %1258 = vmatprep.mubr.bf16.mxu0 %v2200_v38  ;;  %1386 = vmatprep.mubr.bf16.mxu1 %v2202_v39 }
  0xc8   : > { %1259 = vmatmul.mubr.bf16.gmra.mxu0 %v2204_v40  ;;  %1387 = vmatmul.mubr.bf16.gmra.mxu1 %v2205_v41 }
  0xc9   : > { %1266 = vmatprep.mubr.bf16.mxu0 %v2206_v42  ;;  %1394 = vmatprep.mubr.bf16.mxu1 %v2208_v43  ;;  %v613_v42 = vld [vmem:[#allocation2 + $0x18] sm:$0xff]  ;;  %v645_v43 = vld [vmem:[#allocation2 + $0xc8] sm:$0xff] }
  0xd0   : > { %1267 = vmatmul.mubr.bf16.gmra.mxu0 %v2210_v44  ;;  %1395 = vmatmul.mubr.bf16.gmra.mxu1 %v2211_v45 }
  0xd1   : > { %1274 = vmatprep.mubr.bf16.mxu0 %v2212_v46  ;;  %1402 = vmatprep.mubr.bf16.mxu1 %v2214_v47 }
  0xd8   : > { %1275 = vmatmul.mubr.bf16.gmra.mxu0 %v2216_v48  ;;  %1403 = vmatmul.mubr.bf16.gmra.mxu1 %v2217_v49 }
  0xd9   : > { %1282 = vmatprep.mubr.bf16.mxu0 %v2218_v50  ;;  %1410 = vmatprep.mubr.bf16.mxu1 %v2220_v51  ;;  %v614_v50 = vld [vmem:[#allocation2 + $0x50] sm:$0xff]  ;;  %v646_v51 = vld [vmem:[#allocation2 + $0x40] sm:$0xff] }
  0xe0   : > { %1283 = vmatmul.mubr.bf16.gmra.mxu0 %v2222_v52  ;;  %1411 = vmatmul.mubr.bf16.gmra.mxu1 %v2223_v53 }
  0xe1   : > { %1290 = vmatprep.mubr.bf16.mxu0 %v2224_v54  ;;  %1418 = vmatprep.mubr.bf16.mxu1 %v2226_v55 }
  0xe8   : > { %1291 = vmatmul.mubr.bf16.gmra.mxu0 %v2228_v56  ;;  %1419 = vmatmul.mubr.bf16.gmra.mxu1 %v2229_v57 }
  0xe9   : > { %1298 = vmatprep.mubr.bf16.mxu0 %v2230_v58  ;;  %1426 = vmatprep.mubr.bf16.mxu1 %v2232_v59  ;;  %v615_v58 = vld [vmem:[#allocation2 + $0x168] sm:$0xff]  ;;  %v647_v59 = vld [vmem:[#allocation2 + $0x1f8] sm:$0xff] }
  0xf0   : > { %1299 = vmatmul.mubr.bf16.gmra.mxu0 %v2234_v60  ;;  %1427 = vmatmul.mubr.bf16.gmra.mxu1 %v2235_v61 }
  0xf1   : > { %1306 = vmatprep.mubr.bf16.mxu0 %v2236_v62  ;;  %1434 = vmatprep.mubr.bf16.mxu1 %v2238_v63 }
  0xf8   : > { %1307 = vmatmul.mubr.bf16.gmra.mxu0 %v2240_v0  ;;  %1435 = vmatmul.mubr.bf16.gmra.mxu1 %v2241_v1 }
  0xf9   : > { %1314 = vmatprep.mubr.bf16.mxu0 %v2242_v2  ;;  %1442 = vmatprep.mubr.bf16.mxu1 %v2244_v3  ;;  %v616_v2 = vld [vmem:[#allocation2 + $0x130] sm:$0xff]  ;;  %v648_v3 = vld [vmem:[#allocation2 + $0x20] sm:$0xff] }
 0x100   : > { %1315 = vmatmul.mubr.bf16.gmra.mxu0 %v2246_v4  ;;  %1443 = vmatmul.mubr.bf16.gmra.mxu1 %v2247_v5 }
 0x101   : > { %1322 = vmatprep.mubr.bf16.mxu0 %v2248_v6  ;;  %1450 = vmatprep.mubr.bf16.mxu1 %v2250_v7 }
 0x108   : > { %1323 = vmatmul.mubr.bf16.gmra.mxu0 %v2252_v8  ;;  %1451 = vmatmul.mubr.bf16.gmra.mxu1 %v2253_v9 }
 0x109   : > { %1330 = vmatprep.mubr.bf16.mxu0 %v2254_v10  ;;  %1458 = vmatprep.mubr.bf16.mxu1 %v2256_v11  ;;  %v617_v10 = vld [vmem:[#allocation2 + $0x48] sm:$0xff] }
 0x10a   : > { %v649_v11 = vld [vmem:[#allocation2 + $0x128] sm:$0xff] }
 0x110   : > { %1331 = vmatmul.mubr.bf16.gmra.mxu0 %v2258_v12  ;;  %1459 = vmatmul.mubr.bf16.gmra.mxu1 %v2259_v13 }
 0x111   : > { %1338 = vmatprep.mubr.bf16.mxu0 %v2260_v14  ;;  %1466 = vmatprep.mubr.bf16.mxu1 %v2262_v15 }
 0x118   : > { %1339 = vmatmul.mubr.bf16.gmra.mxu0 %v2264_v16  ;;  %1467 = vmatmul.mubr.bf16.gmra.mxu1 %v2265_v17 }
 0x160   : > { %v1220_v20 = vpop.f32.mrf.mxu0  ;;  %v1348_v21 = vpop.f32.mrf.mxu1 }
 0x161   : > { %v1475_v22 = vadd.f32 %v1220_v20, %v610_v18  ;;  %v1507_v23 = vadd.f32 %v1348_v21, %v642_v19  ;;  %v618_v18 = vld [vmem:[#allocation2 + $0x180] sm:$0xff] }
 0x162   : > { %v1222_v24 = vpop.f32.mrf.mxu0  ;;  %v1350_v25 = vpop.f32.mrf.mxu1  ;;  %v650_v19 = vld [vmem:[#allocation2 + $0x1a0] sm:$0xff] }
 0x163   : > { %1539 = vst [vmem:[#allocation2 + $0xb0] sm:$0xff] %v1475_v22  ;;  %1571 = vst [vmem:[#allocation2 + $0x148] sm:$0xff] %v1507_v23 }
 0x164   : > { %v1223_v28 = vpop.f32.mrf.mxu0  ;;  %v1351_v29 = vpop.f32.mrf.mxu1 }
 0x165   : > { %v1476_v30 = vadd.f32 %v1223_v28, %v611_v26  ;;  %v1508_v31 = vadd.f32 %v1351_v29, %v643_v27  ;;  %v619_v26 = vld [vmem:[#allocation2 + $0x110] sm:$0xff] }
 0x166   : > { %v1225_v32 = vpop.f32.mrf.mxu0  ;;  %v1353_v33 = vpop.f32.mrf.mxu1  ;;  %v651_v27 = vld [vmem:[#allocation2 + $0x1f0] sm:$0xff] }
 0x167   : > { %1540 = vst [vmem:[#allocation2 + $0x1b0] sm:$0xff] %v1476_v30  ;;  %1572 = vst [vmem:[#allocation2 + $0x1d0] sm:$0xff] %v1508_v31 }
 0x168   : > { %v1228_v36 = vpop.f32.mrf.mxu0  ;;  %v1356_v37 = vpop.f32.mrf.mxu1 }
 0x169   : > { %v1477_v38 = vadd.f32 %v1228_v36, %v612_v34  ;;  %v1509_v39 = vadd.f32 %v1356_v37, %v644_v35  ;;  %v620_v34 = vld [vmem:[#allocation2 + $0x118] sm:$0xff]  ;;  %v652_v35 = vld [vmem:[#allocation2 + $0xe8] sm:$0xff] }
 0x16a   : > { %v1230_v40 = vpop.f32.mrf.mxu0  ;;  %v1358_v41 = vpop.f32.mrf.mxu1 }
 0x16b   : > { %1541 = vst [vmem:[#allocation2 + $0xd8] sm:$0xff] %v1477_v38  ;;  %1573 = vst [vmem:[#allocation2 + $0x100] sm:$0xff] %v1509_v39 }
 0x16c   : > { %v1231_v44 = vpop.f32.mrf.mxu0  ;;  %v1359_v45 = vpop.f32.mrf.mxu1 }
 0x16d   : > { %v1478_v46 = vadd.f32 %v1231_v44, %v613_v42  ;;  %v1510_v47 = vadd.f32 %v1359_v45, %v645_v43  ;;  %v621_v42 = vld [vmem:[#allocation2 + $0x98] sm:$0xff] }
 0x16e   : > { %v1233_v48 = vpop.f32.mrf.mxu0  ;;  %v1361_v49 = vpop.f32.mrf.mxu1  ;;  %v653_v43 = vld [vmem:[#allocation2 + $0x78] sm:$0xff] }
 0x16f   : > { %1542 = vst [vmem:[#allocation2 + $0x18] sm:$0xff] %v1478_v46  ;;  %1574 = vst [vmem:[#allocation2 + $0xc8] sm:$0xff] %v1510_v47 }
 0x170   : > { %v1236_v52 = vpop.f32.mrf.mxu0  ;;  %v1364_v53 = vpop.f32.mrf.mxu1 }
 0x171   : > { %v1479_v54 = vadd.f32 %v1236_v52, %v614_v50  ;;  %v1511_v55 = vadd.f32 %v1364_v53, %v646_v51  ;;  %v622_v50 = vld [vmem:[#allocation2 + $0x120] sm:$0xff]  ;;  %v654_v51 = vld [vmem:[#allocation2 + $0x70] sm:$0xff] }
 0x172   : > { %v1238_v56 = vpop.f32.mrf.mxu0  ;;  %v1366_v57 = vpop.f32.mrf.mxu1 }
 0x173   : > { %1543 = vst [vmem:[#allocation2 + $0x50] sm:$0xff] %v1479_v54  ;;  %1575 = vst [vmem:[#allocation2 + $0x40] sm:$0xff] %v1511_v55 }
 0x174   : > { %v1239_v60 = vpop.f32.mrf.mxu0  ;;  %v1367_v61 = vpop.f32.mrf.mxu1 }
 0x175   : > { %v1480_v62 = vadd.f32 %v1239_v60, %v615_v58  ;;  %v1512_v63 = vadd.f32 %v1367_v61, %v647_v59  ;;  %v623_v58 = vld [vmem:[#allocation2 + $0x150] sm:$0xff] }
 0x176   : > { %v1241_v0 = vpop.f32.mrf.mxu0  ;;  %v1369_v1 = vpop.f32.mrf.mxu1  ;;  %v655_v59 = vld [vmem:[#allocation2 + $0x90] sm:$0xff] }
 0x177   : > { %1544 = vst [vmem:[#allocation2 + $0x168] sm:$0xff] %v1480_v62  ;;  %1576 = vst [vmem:[#allocation2 + $0x1f8] sm:$0xff] %v1512_v63 }
 0x178   : > { %v1244_v4 = vpop.f32.mrf.mxu0  ;;  %v1372_v5 = vpop.f32.mrf.mxu1 }
 0x179   : > { %v1481_v6 = vadd.f32 %v1244_v4, %v616_v2  ;;  %v1513_v7 = vadd.f32 %v1372_v5, %v648_v3  ;;  %v624_v2 = vld [vmem:[#allocation2 + $0x108] sm:$0xff]  ;;  %v656_v3 = vld [vmem:[#allocation2 + $0x1d8] sm:$0xff] }
 0x17a   : > { %v1246_v8 = vpop.f32.mrf.mxu0  ;;  %v1374_v9 = vpop.f32.mrf.mxu1 }
 0x17b   : > { %1545 = vst [vmem:[#allocation2 + $0x130] sm:$0xff] %v1481_v6  ;;  %1577 = vst [vmem:[#allocation2 + $0x20] sm:$0xff] %v1513_v7 }
 0x17c   : > { %v1247_v12 = vpop.f32.mrf.mxu0  ;;  %v1375_v13 = vpop.f32.mrf.mxu1 }
 0x17d   : > { %v1482_v14 = vadd.f32 %v1247_v12, %v617_v10  ;;  %v1514_v15 = vadd.f32 %v1375_v13, %v649_v11  ;;  %v625_v10 = vld [vmem:[#allocation2 + $0x60] sm:$0xff]  ;;  %v657_v11 = vld [vmem:[#allocation2 + $0xd0] sm:$0xff] }
 0x17e   : > { %v1249_v16 = vpop.f32.mrf.mxu0  ;;  %v1377_v17 = vpop.f32.mrf.mxu1 }
 0x17f   : > { %1546 = vst [vmem:[#allocation2 + $0x48] sm:$0xff] %v1482_v14  ;;  %1578 = vst [vmem:[#allocation2 + $0x128] sm:$0xff] %v1514_v15 }
 0x180   : > { %v1252_v20 = vpop.f32.mrf.mxu0  ;;  %v1380_v21 = vpop.f32.mrf.mxu1 }
 0x181   : > { %v1483_v22 = vadd.f32 %v1252_v20, %v618_v18  ;;  %v1515_v23 = vadd.f32 %v1380_v21, %v650_v19  ;;  %v626_v18 = vld [vmem:[#allocation2 + $0xe0] sm:$0xff]  ;;  %v658_v19 = vld [vmem:[#allocation2 + $0xb8] sm:$0xff] }
 0x182   : > { %v1254_v24 = vpop.f32.mrf.mxu0  ;;  %v1382_v25 = vpop.f32.mrf.mxu1 }
 0x183   : > { %1547 = vst [vmem:[#allocation2 + $0x180] sm:$0xff] %v1483_v22  ;;  %1579 = vst [vmem:[#allocation2 + $0x1a0] sm:$0xff] %v1515_v23 }
 0x184   : > { %v1255_v28 = vpop.f32.mrf.mxu0  ;;  %v1383_v29 = vpop.f32.mrf.mxu1 }
 0x185   : > { %v1484_v30 = vadd.f32 %v1255_v28, %v619_v26  ;;  %v1516_v31 = vadd.f32 %v1383_v29, %v651_v27  ;;  %v627_v26 = vld [vmem:[#allocation2 + $0x188] sm:$0xff] }
 0x186   : > { %v1257_v32 = vpop.f32.mrf.mxu0  ;;  %v1385_v33 = vpop.f32.mrf.mxu1  ;;  %v659_v27 = vld [vmem:[#allocation2 + $0x88] sm:$0xff] }
 0x187   : > { %1548 = vst [vmem:[#allocation2 + $0x110] sm:$0xff] %v1484_v30  ;;  %1580 = vst [vmem:[#allocation2 + $0x1f0] sm:$0xff] %v1516_v31 }
 0x188   : > { %v1260_v36 = vpop.f32.mrf.mxu0  ;;  %v1388_v37 = vpop.f32.mrf.mxu1 }
 0x189   : > { %v1485_v38 = vadd.f32 %v1260_v36, %v620_v34  ;;  %v1517_v39 = vadd.f32 %v1388_v37, %v652_v35  ;;  %v628_v34 = vld [vmem:[#allocation2 + $0x138] sm:$0xff]  ;;  %v660_v35 = vld [vmem:[#allocation2 + $0xa8] sm:$0xff] }
 0x18a   : > { %v1262_v40 = vpop.f32.mrf.mxu0  ;;  %v1390_v41 = vpop.f32.mrf.mxu1 }
 0x18b   : > { %1549 = vst [vmem:[#allocation2 + $0x118] sm:$0xff] %v1485_v38  ;;  %1581 = vst [vmem:[#allocation2 + $0xe8] sm:$0xff] %v1517_v39 }
 0x18c   : > { %v1263_v44 = vpop.f32.mrf.mxu0  ;;  %v1391_v45 = vpop.f32.mrf.mxu1 }
 0x18d   : > { %v1486_v46 = vadd.f32 %v1263_v44, %v621_v42  ;;  %v1518_v47 = vadd.f32 %v1391_v45, %v653_v43  ;;  %v629_v42 = vld [vmem:[#allocation2 + $0x140] sm:$0xff]  ;;  %v661_v43 = vld [vmem:[#allocation2 + $0x1c8] sm:$0xff] }
 0x18e   : > { %v1265_v48 = vpop.f32.mrf.mxu0  ;;  %v1393_v49 = vpop.f32.mrf.mxu1 }
 0x18f   : > { %1550 = vst [vmem:[#allocation2 + $0x98] sm:$0xff] %v1486_v46  ;;  %1582 = vst [vmem:[#allocation2 + $0x78] sm:$0xff] %v1518_v47 }
 0x190   : > { %v1268_v52 = vpop.f32.mrf.mxu0  ;;  %v1396_v53 = vpop.f32.mrf.mxu1 }
 0x191   : > { %v1487_v54 = vadd.f32 %v1268_v52, %v622_v50  ;;  %v1519_v55 = vadd.f32 %v1396_v53, %v654_v51  ;;  %v630_v50 = vld [vmem:[#allocation2 + $0x80] sm:$0xff]  ;;  %v662_v51 = vld [vmem:[#allocation2 + $0x170] sm:$0xff] }
 0x192   : > { %v1270_v56 = vpop.f32.mrf.mxu0  ;;  %v1398_v57 = vpop.f32.mrf.mxu1 }
 0x193   : > { %1551 = vst [vmem:[#allocation2 + $0x120] sm:$0xff] %v1487_v54  ;;  %1583 = vst [vmem:[#allocation2 + $0x70] sm:$0xff] %v1519_v55 }
 0x194   : > { %v1271_v60 = vpop.f32.mrf.mxu0  ;;  %v1399_v61 = vpop.f32.mrf.mxu1 }
 0x195   : > { %v1488_v62 = vadd.f32 %v1271_v60, %v623_v58  ;;  %v1520_v63 = vadd.f32 %v1399_v61, %v655_v59  ;;  %v631_v58 = vld [vmem:[#allocation2 + $0x1a8] sm:$0xff]  ;;  %v663_v59 = vld [vmem:[#allocation2 + $0x178] sm:$0xff] }
 0x196   : > { %v1273_v0 = vpop.f32.mrf.mxu0  ;;  %v1401_v1 = vpop.f32.mrf.mxu1 }
 0x197   : > { %1552 = vst [vmem:[#allocation2 + $0x150] sm:$0xff] %v1488_v62  ;;  %1584 = vst [vmem:[#allocation2 + $0x90] sm:$0xff] %v1520_v63 }
 0x198   : > { %v1276_v4 = vpop.f32.mrf.mxu0  ;;  %v1404_v5 = vpop.f32.mrf.mxu1 }
 0x199   : > { %v1489_v6 = vadd.f32 %v1276_v4, %v624_v2  ;;  %v1521_v7 = vadd.f32 %v1404_v5, %v656_v3  ;;  %v632_v2 = vld [vmem:[#allocation2 + $0x1b8] sm:$0xff]  ;;  %v664_v3 = vld [vmem:[#allocation2 + $0x68] sm:$0xff] }
 0x19a   : > { %v1278_v8 = vpop.f32.mrf.mxu0  ;;  %v1406_v9 = vpop.f32.mrf.mxu1 }
 0x19b   : > { %1553 = vst [vmem:[#allocation2 + $0x108] sm:$0xff] %v1489_v6  ;;  %1585 = vst [vmem:[#allocation2 + $0x1d8] sm:$0xff] %v1521_v7 }
 0x19c   : > { %v1279_v12 = vpop.f32.mrf.mxu0  ;;  %v1407_v13 = vpop.f32.mrf.mxu1 }
 0x19d   : > { %v1490_v14 = vadd.f32 %v1279_v12, %v625_v10  ;;  %v1522_v15 = vadd.f32 %v1407_v13, %v657_v11  ;;  %v633_v10 = vld [vmem:[#allocation2 + $0x28] sm:$0xff]  ;;  %v665_v11 = vld [vmem:[#allocation2 + $0x190] sm:$0xff] }
 0x19e   : > { %v1281_v16 = vpop.f32.mrf.mxu0  ;;  %v1409_v17 = vpop.f32.mrf.mxu1 }
 0x19f   : > { %1554 = vst [vmem:[#allocation2 + $0x60] sm:$0xff] %v1490_v14  ;;  %1586 = vst [vmem:[#allocation2 + $0xd0] sm:$0xff] %v1522_v15 }
 0x1a0   : > { %v1284_v20 = vpop.f32.mrf.mxu0  ;;  %v1412_v21 = vpop.f32.mrf.mxu1 }
 0x1a1   : > { %v1491_v22 = vadd.f32 %v1284_v20, %v626_v18  ;;  %v1523_v23 = vadd.f32 %v1412_v21, %v658_v19  ;;  %v634_v18 = vld [vmem:[#allocation2 + $0x1e8] sm:$0xff]  ;;  %v666_v19 = vld [vmem:[#allocation2 + $0x198] sm:$0xff] }
 0x1a2   : > { %v1286_v24 = vpop.f32.mrf.mxu0  ;;  %v1414_v25 = vpop.f32.mrf.mxu1 }
 0x1a3   : > { %1555 = vst [vmem:[#allocation2 + $0xe0] sm:$0xff] %v1491_v22  ;;  %1587 = vst [vmem:[#allocation2 + $0xb8] sm:$0xff] %v1523_v23 }
 0x1a4   : > { %v1287_v28 = vpop.f32.mrf.mxu0  ;;  %v1415_v29 = vpop.f32.mrf.mxu1 }
 0x1a5   : > { %v1492_v30 = vadd.f32 %v1287_v28, %v627_v26  ;;  %v1524_v31 = vadd.f32 %v1415_v29, %v659_v27  ;;  %v635_v26 = vld [vmem:[#allocation2 + $0xf8] sm:$0xff] }
 0x1a6   : > { %v1289_v32 = vpop.f32.mrf.mxu0  ;;  %v1417_v33 = vpop.f32.mrf.mxu1  ;;  %v667_v27 = vld [vmem:[#allocation2 + $0x38] sm:$0xff] }
 0x1a7   : > { %1556 = vst [vmem:[#allocation2 + $0x188] sm:$0xff] %v1492_v30  ;;  %1588 = vst [vmem:[#allocation2 + $0x88] sm:$0xff] %v1524_v31 }
 0x1a8   : > { %v1292_v36 = vpop.f32.mrf.mxu0  ;;  %v1420_v37 = vpop.f32.mrf.mxu1 }
 0x1a9   : > { %v1493_v38 = vadd.f32 %v1292_v36, %v628_v34  ;;  %v1525_v39 = vadd.f32 %v1420_v37, %v660_v35  ;;  %v636_v34 = vld [vmem:[#allocation2 + $0x160] sm:$0xff] }
 0x1aa   : > { %v1294_v40 = vpop.f32.mrf.mxu0  ;;  %v1422_v41 = vpop.f32.mrf.mxu1  ;;  %v668_v35 = vld [vmem:[#allocation2 + $0xc0] sm:$0xff] }
 0x1ab   : > { %1557 = vst [vmem:[#allocation2 + $0x138] sm:$0xff] %v1493_v38  ;;  %1589 = vst [vmem:[#allocation2 + $0xa8] sm:$0xff] %v1525_v39 }
 0x1ac   : > { %v1295_v44 = vpop.f32.mrf.mxu0  ;;  %v1423_v45 = vpop.f32.mrf.mxu1 }
 0x1ad   : > { %v1494_v46 = vadd.f32 %v1295_v44, %v629_v42  ;;  %v1526_v47 = vadd.f32 %v1423_v45, %v661_v43  ;;  %v637_v42 = vld [vmem:[#allocation2 + $0x30] sm:$0xff]  ;;  %v669_v43 = vld [vmem:[#allocation2 + $0x1c0] sm:$0xff] }
 0x1ae   : > { %v1297_v48 = vpop.f32.mrf.mxu0  ;;  %v1425_v49 = vpop.f32.mrf.mxu1 }
 0x1af   : > { %1558 = vst [vmem:[#allocation2 + $0x140] sm:$0xff] %v1494_v46  ;;  %1590 = vst [vmem:[#allocation2 + $0x1c8] sm:$0xff] %v1526_v47 }
 0x1b0   : > { %v1300_v52 = vpop.f32.mrf.mxu0  ;;  %v1428_v53 = vpop.f32.mrf.mxu1 }
 0x1b1   : > { %v1495_v54 = vadd.f32 %v1300_v52, %v630_v50  ;;  %v1527_v55 = vadd.f32 %v1428_v53, %v662_v51  ;;  %v638_v50 = vld [vmem:[#allocation2 + $0x1e0] sm:$0xff]  ;;  %v670_v51 = vld [vmem:[#allocation2 + $0x158] sm:$0xff] }
 0x1b2   : > { %v1302_v56 = vpop.f32.mrf.mxu0  ;;  %v1430_v57 = vpop.f32.mrf.mxu1 }
 0x1b3   : > { %1559 = vst [vmem:[#allocation2 + $0x80] sm:$0xff] %v1495_v54  ;;  %1591 = vst [vmem:[#allocation2 + $0x170] sm:$0xff] %v1527_v55 }
 0x1b4   : > { %v1303_v60 = vpop.f32.mrf.mxu0  ;;  %v1431_v61 = vpop.f32.mrf.mxu1 }
 0x1b5   : > { %v1496_v62 = vadd.f32 %v1303_v60, %v631_v58  ;;  %v1528_v63 = vadd.f32 %v1431_v61, %v663_v59  ;;  %v639_v58 = vld [vmem:[#allocation2] sm:$0xff]  ;;  %v671_v59 = vld [vmem:[#allocation2 + $0x10] sm:$0xff] }
 0x1b6   : > { %v1305_v0 = vpop.f32.mrf.mxu0  ;;  %v1433_v1 = vpop.f32.mrf.mxu1 }
 0x1b7   : > { %1560 = vst [vmem:[#allocation2 + $0x1a8] sm:$0xff] %v1496_v62  ;;  %1592 = vst [vmem:[#allocation2 + $0x178] sm:$0xff] %v1528_v63 }
 0x1b8   : > { %v1308_v4 = vpop.f32.mrf.mxu0  ;;  %v1436_v5 = vpop.f32.mrf.mxu1 }
 0x1b9   : > { %v1497_v6 = vadd.f32 %v1308_v4, %v632_v2  ;;  %v1529_v7 = vadd.f32 %v1436_v5, %v664_v3  ;;  %v640_v2 = vld [vmem:[#allocation2 + $0xf0] sm:$0xff]  ;;  %v672_v3 = vld [vmem:[#allocation2 + $0x58] sm:$0xff] }
 0x1ba   : > { %v1310_v8 = vpop.f32.mrf.mxu0  ;;  %v1438_v9 = vpop.f32.mrf.mxu1 }
 0x1bb   : > { %1561 = vst [vmem:[#allocation2 + $0x1b8] sm:$0xff] %v1497_v6  ;;  %1593 = vst [vmem:[#allocation2 + $0x68] sm:$0xff] %v1529_v7 }
 0x1bc   : > { %v1311_v12 = vpop.f32.mrf.mxu0  ;;  %v1439_v13 = vpop.f32.mrf.mxu1 }
 0x1bd   : > { %v1498_v14 = vadd.f32 %v1311_v12, %v633_v10  ;;  %v1530_v15 = vadd.f32 %v1439_v13, %v665_v11  ;;  %v641_v10 = vld [vmem:[#allocation2 + $0x8] sm:$0xff]  ;;  %v673_v11 = vld [vmem:[#allocation2 + $0xa0] sm:$0xff] }
 0x1be   : > { %v1313_v16 = vpop.f32.mrf.mxu0  ;;  %v1441_v17 = vpop.f32.mrf.mxu1 }
 0x1bf   : > { %1562 = vst [vmem:[#allocation2 + $0x28] sm:$0xff] %v1498_v14  ;;  %1594 = vst [vmem:[#allocation2 + $0x190] sm:$0xff] %v1530_v15 }
 0x1c0   : > { %v1316_v20 = vpop.f32.mrf.mxu0  ;;  %v1444_v21 = vpop.f32.mrf.mxu1 }
 0x1c1   : > { %v1499_v22 = vadd.f32 %v1316_v20, %v634_v18  ;;  %v1531_v23 = vadd.f32 %v1444_v21, %v666_v19 }
 0x1c2   : > { %v1318_v24 = vpop.f32.mrf.mxu0  ;;  %v1446_v25 = vpop.f32.mrf.mxu1 }
 0x1c3   : > { %1563 = vst [vmem:[#allocation2 + $0x1e8] sm:$0xff] %v1499_v22  ;;  %1595 = vst [vmem:[#allocation2 + $0x198] sm:$0xff] %v1531_v23 }
 0x1c4   : > { %v1319_v28 = vpop.f32.mrf.mxu0  ;;  %v1447_v29 = vpop.f32.mrf.mxu1 }
 0x1c5   : > { %v1500_v30 = vadd.f32 %v1319_v28, %v635_v26  ;;  %v1532_v31 = vadd.f32 %v1447_v29, %v667_v27 }
 0x1c6   : > { %v1321_v32 = vpop.f32.mrf.mxu0  ;;  %v1449_v33 = vpop.f32.mrf.mxu1 }
 0x1c7   : > { %1564 = vst [vmem:[#allocation2 + $0xf8] sm:$0xff] %v1500_v30  ;;  %1596 = vst [vmem:[#allocation2 + $0x38] sm:$0xff] %v1532_v31 }
 0x1c8   : > { %v1324_v36 = vpop.f32.mrf.mxu0  ;;  %v1452_v37 = vpop.f32.mrf.mxu1 }
 0x1c9   : > { %v1501_v38 = vadd.f32 %v1324_v36, %v636_v34  ;;  %v1533_v39 = vadd.f32 %v1452_v37, %v668_v35 }
 0x1ca   : > { %v1326_v40 = vpop.f32.mrf.mxu0  ;;  %v1454_v41 = vpop.f32.mrf.mxu1 }
 0x1cb   : > { %1565 = vst [vmem:[#allocation2 + $0x160] sm:$0xff] %v1501_v38  ;;  %1597 = vst [vmem:[#allocation2 + $0xc0] sm:$0xff] %v1533_v39 }
 0x1cc   : > { %v1327_v44 = vpop.f32.mrf.mxu0  ;;  %v1455_v45 = vpop.f32.mrf.mxu1 }
 0x1cd   : > { %v1502_v46 = vadd.f32 %v1327_v44, %v637_v42  ;;  %v1534_v47 = vadd.f32 %v1455_v45, %v669_v43 }
 0x1ce   : > { %v1329_v48 = vpop.f32.mrf.mxu0  ;;  %v1457_v49 = vpop.f32.mrf.mxu1 }
 0x1cf   : > { %1566 = vst [vmem:[#allocation2 + $0x30] sm:$0xff] %v1502_v46  ;;  %1598 = vst [vmem:[#allocation2 + $0x1c0] sm:$0xff] %v1534_v47 }
 0x1d0   : > { %v1332_v52 = vpop.f32.mrf.mxu0  ;;  %v1460_v53 = vpop.f32.mrf.mxu1 }
 0x1d1   : > { %v1503_v54 = vadd.f32 %v1332_v52, %v638_v50  ;;  %v1535_v55 = vadd.f32 %v1460_v53, %v670_v51 }
 0x1d2   : > { %v1334_v56 = vpop.f32.mrf.mxu0  ;;  %v1462_v57 = vpop.f32.mrf.mxu1 }
 0x1d3   : > { %1567 = vst [vmem:[#allocation2 + $0x1e0] sm:$0xff] %v1503_v54  ;;  %1599 = vst [vmem:[#allocation2 + $0x158] sm:$0xff] %v1535_v55 }
 0x1d4   : > { %v1335_v60 = vpop.f32.mrf.mxu0  ;;  %v1463_v61 = vpop.f32.mrf.mxu1 }
 0x1d5   : > { %v1504_v62 = vadd.f32 %v1335_v60, %v639_v58  ;;  %v1536_v63 = vadd.f32 %v1463_v61, %v671_v59 }
 0x1d6   : > { %v1337_v0 = vpop.f32.mrf.mxu0  ;;  %v1465_v1 = vpop.f32.mrf.mxu1 }
 0x1d7   : > { %1568 = vst [vmem:[#allocation2] sm:$0xff] %v1504_v62  ;;  %1600 = vst [vmem:[#allocation2 + $0x10] sm:$0xff] %v1536_v63 }
 0x1d8   : > { %v1340_v4 = vpop.f32.mrf.mxu0  ;;  %v1468_v5 = vpop.f32.mrf.mxu1 }
 0x1d9   : > { %v1505_v6 = vadd.f32 %v1340_v4, %v640_v2  ;;  %v1537_v7 = vadd.f32 %v1468_v5, %v672_v3 }
 0x1da   : > { %v1342_v8 = vpop.f32.mrf.mxu0  ;;  %v1470_v9 = vpop.f32.mrf.mxu1 }
 0x1db   : > { %1569 = vst [vmem:[#allocation2 + $0xf0] sm:$0xff] %v1505_v6  ;;  %1601 = vst [vmem:[#allocation2 + $0x58] sm:$0xff] %v1537_v7  ;;  %1606 = sbr.rel (%p2073_p11) target bundleno = 561 (0x231), region = 78 }
 0x1dc   : > { %v1343_v12 = vpop.f32.mrf.mxu0  ;;  %v1471_v13 = vpop.f32.mrf.mxu1 }
 0x1dd   : > { %v1506_v14 = vadd.f32 %v1343_v12, %v641_v10  ;;  %v1538_v15 = vadd.f32 %v1471_v13, %v673_v11 }
 0x1de   : > { %v1345_v16 = vpop.f32.mrf.mxu0  ;;  %v1473_v17 = vpop.f32.mrf.mxu1 }
 0x1df   : > { %1570 = vst [vmem:[#allocation2 + $0x8] sm:$0xff] %v1506_v14  ;;  %1602 = vst [vmem:[#allocation2 + $0xa0] sm:$0xff] %v1538_v15 }
 0x1e0   : > { %v1607_v18 = vld [vmem:[#allocation2 + $0xb0] sm:$0xff]  ;;  %v2823_v19 = vld [vmem:[%s3098_s2] ss:$0 sm:$0xff]  ;;  %v1609_v23 = vld [vmem:[#allocation2 + $0xd8] sm:$0xff] }
 0x1e1   : > { %v1608_v20 = vld [vmem:[#allocation2 + $0x1b0] sm:$0xff]  ;;  %v1678_v21 = vadd.f32 %v2823_v19, %v1607_v18  ;;  %v1610_v24 = vld [vmem:[#allocation2 + $0x18] sm:$0xff]  ;;  %v1680_v26 = vadd.f32 %v2823_v19, %v1609_v23  ;;  %v1612_v28 = vld [vmem:[#allocation2 + $0x168] sm:$0xff] }
 0x1e2   : > { %v1679_v22 = vadd.f32 %v2823_v19, %v1608_v20  ;;  %v1611_v25 = vld [vmem:[#allocation2 + $0x50] sm:$0xff]  ;;  %v1681_v27 = vadd.f32 %v2823_v19, %v1610_v24  ;;  %v1614_v31 = vld [vmem:[#allocation2 + $0x48] sm:$0xff]  ;;  %v1683_v32 = vadd.f32 %v2823_v19, %v1612_v28  ;;  %v1615_v33 = vld [vmem:[#allocation2 + $0x180] sm:$0xff] }
 0x1e3   : > { %v1613_v29 = vld [vmem:[#allocation2 + $0x130] sm:$0xff]  ;;  %2266 = vtanh.f32 %v1678_v21  ;;  %v1682_v30 = vadd.f32 %v2823_v19, %v1611_v25  ;;  %v1685_v36 = vadd.f32 %v2823_v19, %v1614_v31  ;;  %v1617_v37 = vld [vmem:[#allocation2 + $0x118] sm:$0xff]  ;;  %v1686_v38 = vadd.f32 %v2823_v19, %v1615_v33  ;;  %v1619_v41 = vld [vmem:[#allocation2 + $0x120] sm:$0xff] }
 0x1e4   : > { %2268 = vtanh.f32 %v1679_v22  ;;  %v1684_v34 = vadd.f32 %v2823_v19, %v1613_v29  ;;  %v1616_v35 = vld [vmem:[#allocation2 + $0x110] sm:$0xff]  ;;  %v1618_v39 = vld [vmem:[#allocation2 + $0x98] sm:$0xff]  ;;  %v1688_v42 = vadd.f32 %v2823_v19, %v1617_v37  ;;  %v1621_v45 = vld [vmem:[#allocation2 + $0x108] sm:$0xff]  ;;  %v1690_v46 = vadd.f32 %v2823_v19, %v1619_v41 }
 0x1e5   : > { %2270 = vtanh.f32 %v1680_v26  ;;  %v1687_v40 = vadd.f32 %v2823_v19, %v1616_v35  ;;  %v1620_v43 = vld [vmem:[#allocation2 + $0x150] sm:$0xff]  ;;  %v1689_v44 = vadd.f32 %v2823_v19, %v1618_v39  ;;  %v1622_v47 = vld [vmem:[#allocation2 + $0x60] sm:$0xff]  ;;  %v1692_v50 = vadd.f32 %v2823_v19, %v1621_v45  ;;  %v1624_v51 = vld [vmem:[#allocation2 + $0x188] sm:$0xff] }
 0x1e6   : > { %2272 = vtanh.f32 %v1681_v27  ;;  %v1691_v48 = vadd.f32 %v2823_v19, %v1620_v43  ;;  %v1623_v49 = vld [vmem:[#allocation2 + $0xe0] sm:$0xff]  ;;  %v1693_v52 = vadd.f32 %v2823_v19, %v1622_v47  ;;  %v1625_v53 = vld [vmem:[#allocation2 + $0x138] sm:$0xff]  ;;  %v1695_v57 = vadd.f32 %v2823_v19, %v1624_v51  ;;  %v1628_v61 = vld [vmem:[#allocation2 + $0x1a8] sm:$0xff] }
 0x1e7   : > { %2274 = vtanh.f32 %v1682_v30  ;;  %v1694_v54 = vadd.f32 %v2823_v19, %v1623_v49  ;;  %v1626_v55 = vld [vmem:[#allocation2 + $0x140] sm:$0xff]  ;;  %v1696_v60 = vadd.f32 %v2823_v19, %v1625_v53  ;;  %v1629_v0 = vld [vmem:[#allocation2 + $0x1b8] sm:$0xff]  ;;  %v1630_v3 = vld [vmem:[#allocation2 + $0x28] sm:$0xff]  ;;  %v1699_v5 = vadd.f32 %v2823_v19, %v1628_v61 }
 0x1e8   : > { %2276 = vtanh.f32 %v1683_v32  ;;  %v1627_v58 = vld [vmem:[#allocation2 + $0x80] sm:$0xff]  ;;  %v1697_v63 = vadd.f32 %v2823_v19, %v1626_v55  ;;  %v1631_v6 = vld [vmem:[#allocation2 + $0x1e8] sm:$0xff]  ;;  %v1700_v8 = vadd.f32 %v2823_v19, %v1629_v0  ;;  %v1632_v9 = vld [vmem:[#allocation2 + $0xf8] sm:$0xff]  ;;  %v1701_v11 = vadd.f32 %v2823_v19, %v1630_v3 }
 0x1e9   : > { %2278 = vtanh.f32 %v1684_v34  ;;  %v1698_v2 = vadd.f32 %v2823_v19, %v1627_v58  ;;  %v1633_v12 = vld [vmem:[#allocation2 + $0x160] sm:$0xff]  ;;  %v1702_v14 = vadd.f32 %v2823_v19, %v1631_v6  ;;  %v1634_v15 = vld [vmem:[#allocation2 + $0x30] sm:$0xff]  ;;  %v1703_v17 = vadd.f32 %v2823_v19, %v1632_v9  ;;  %v1638_v28 = vld [vmem:[#allocation2 + $0x8] sm:$0xff] }
 0x1ea   : > { %2280 = vtanh.f32 %v1685_v36  ;;  %v1635_v18 = vld [vmem:[#allocation2 + $0x1e0] sm:$0xff]  ;;  %v1704_v21 = vadd.f32 %v2823_v19, %v1633_v12  ;;  %v1705_v24 = vadd.f32 %v2823_v19, %v1634_v15  ;;  %v1637_v25 = vld [vmem:[#allocation2 + $0xf0] sm:$0xff]  ;;  %v1639_v31 = vld [vmem:[#allocation2 + $0x148] sm:$0xff]  ;;  %v1709_v36 = vadd.f32 %v2823_v19, %v1638_v28 }
 0x1eb   : > { %2282 = vtanh.f32 %v1686_v38  ;;  %v1636_v22 = vld [vmem:[#allocation2] sm:$0xff]  ;;  %v1706_v27 = vadd.f32 %v2823_v19, %v1635_v18  ;;  %v1708_v33 = vadd.f32 %v2823_v19, %v1637_v25  ;;  %v1640_v34 = vld [vmem:[#allocation2 + $0x1d0] sm:$0xff]  ;;  %v1710_v39 = vadd.f32 %v2823_v19, %v1639_v31  ;;  %v1649_v61 = vld [vmem:[#allocation2 + $0xe8] sm:$0xff] }
 0x1ec   : > { %2284 = vtanh.f32 %v1687_v40  ;;  %v1707_v30 = vadd.f32 %v2823_v19, %v1636_v22  ;;  %v1641_v37 = vld [vmem:[#allocation2 + $0x100] sm:$0xff]  ;;  %v1642_v40 = vld [vmem:[#allocation2 + $0xc8] sm:$0xff]  ;;  %v1648_v58 = vld [vmem:[#allocation2 + $0x1f0] sm:$0xff] }
 0x1ed   : > { %2286 = vtanh.f32 %v1688_v42  ;;  %v1711_v42 = vadd.f32 %v2823_v19, %v1640_v34  ;;  %v1643_v43 = vld [vmem:[#allocation2 + $0x40] sm:$0xff]  ;;  %v1712_v45 = vadd.f32 %v2823_v19, %v1641_v37  ;;  %v1650_v0 = vld [vmem:[#allocation2 + $0x78] sm:$0xff]  ;;  %v1651_v3 = vld [vmem:[#allocation2 + $0x70] sm:$0xff] }
 0x1ee   : > { %2288 = vtanh.f32 %v1689_v44  ;;  %v1645_v49 = vld [vmem:[#allocation2 + $0x20] sm:$0xff]  ;;  %v1714_v51 = vadd.f32 %v2823_v19, %v1643_v43  ;;  %v1652_v6 = vld [vmem:[#allocation2 + $0x90] sm:$0xff]  ;;  %v1653_v9 = vld [vmem:[#allocation2 + $0x1d8] sm:$0xff] }
 0x1ef   : > { %2290 = vtanh.f32 %v1690_v46  ;;  %v1644_v46 = vld [vmem:[#allocation2 + $0x1f8] sm:$0xff]  ;;  %v1647_v55 = vld [vmem:[#allocation2 + $0x1a0] sm:$0xff]  ;;  %v1654_v12 = vld [vmem:[#allocation2 + $0xd0] sm:$0xff] }
 0x1f0   : > { %v2267_v56 = vpop.eup %2266  ;;  %2292 = vtanh.f32 %v1691_v48  ;;  %v1713_v48 = vadd.f32 %v2823_v19, %v1642_v40  ;;  %v1655_v15 = vld [vmem:[#allocation2 + $0xb8] sm:$0xff]  ;;  %v1656_v18 = vld [vmem:[#allocation2 + $0x88] sm:$0xff]  ;;  %v1659_v28 = vld [vmem:[#allocation2 + $0x170] sm:$0xff] }
 0x1f1   : > { %v2269_v59 = vpop.eup %2268  ;;  %1806 = vst [vmem:[%s3099_s3] sm:$0xff] %v2267_v56  ;;  %2294 = vtanh.f32 %v1692_v50  ;;  %v1657_v22 = vld [vmem:[#allocation2 + $0xa8] sm:$0xff]  ;;  %v1660_v31 = vld [vmem:[#allocation2 + $0x178] sm:$0xff]  ;;  %v1662_v37 = vld [vmem:[#allocation2 + $0x190] sm:$0xff] }
 0x1f2   : > { %v2271_v62 = vpop.eup %2270  ;;  %1807 = vst [vmem:[%s3099_s3 + $0x8] sm:$0xff] %v2269_v59  ;;  %2296 = vtanh.f32 %v1693_v52  ;;  %v1646_v52 = vld [vmem:[#allocation2 + $0x128] sm:$0xff]  ;;  %v1663_v40 = vld [vmem:[#allocation2 + $0x198] sm:$0xff] }
 0x1f3   : > { %v2273_v1 = vpop.eup %2272  ;;  %1808 = vst [vmem:[%s3099_s3 + $0x10] sm:$0xff] %v2271_v62  ;;  %2298 = vtanh.f32 %v1694_v54  ;;  %v1715_v54 = vadd.f32 %v2823_v19, %v1644_v46  ;;  %v1658_v25 = vld [vmem:[#allocation2 + $0x1c8] sm:$0xff]  ;;  %v1664_v43 = vld [vmem:[#allocation2 + $0x38] sm:$0xff]  ;;  %v1665_v46 = vld [vmem:[#allocation2 + $0xc0] sm:$0xff] }
 0x1f4   : > { %v2275_v4 = vpop.eup %2274  ;;  %1809 = vst [vmem:[%s3099_s3 + $0x18] sm:$0xff] %v2273_v1  ;;  %2300 = vtanh.f32 %v1695_v57  ;;  %v1716_v57 = vadd.f32 %v2823_v19, %v1645_v49  ;;  %v1661_v34 = vld [vmem:[#allocation2 + $0x68] sm:$0xff]  ;;  %v1666_v49 = vld [vmem:[#allocation2 + $0x1c0] sm:$0xff] }
 0x1f5   : > { %v2277_v7 = vpop.eup %2276  ;;  %1810 = vst [vmem:[%s3099_s3 + $0x20] sm:$0xff] %v2275_v4  ;;  %2302 = vtanh.f32 %v1696_v60  ;;  %v1717_v60 = vadd.f32 %v2823_v19, %v1646_v52  ;;  %v1667_v52 = vld [vmem:[#allocation2 + $0x158] sm:$0xff] }
 0x1f6   : > { %v2279_v10 = vpop.eup %2278  ;;  %1811 = vst [vmem:[%s3099_s3 + $0x28] sm:$0xff] %v2277_v7  ;;  %2304 = vtanh.f32 %v1697_v63  ;;  %v1718_v63 = vadd.f32 %v2823_v19, %v1647_v55  ;;  %v1668_v55 = vld [vmem:[#allocation2 + $0x10] sm:$0xff] }
 0x1f7   : > { %v2281_v13 = vpop.eup %2280  ;;  %1812 = vst [vmem:[%s3099_s3 + $0x30] sm:$0xff] %v2279_v10  ;;  %2306 = vtanh.f32 %v1698_v2  ;;  %v1719_v2 = vadd.f32 %v2823_v19, %v1648_v58  ;;  %v1669_v58 = vld [vmem:[#allocation2 + $0x58] sm:$0xff] }
 0x1f8   : > { %v2283_v16 = vpop.eup %2282  ;;  %1813 = vst [vmem:[%s3099_s3 + $0x38] sm:$0xff] %v2281_v13  ;;  %2308 = vtanh.f32 %v1699_v5  ;;  %v1720_v5 = vadd.f32 %v2823_v19, %v1649_v61  ;;  %v1670_v61 = vld [vmem:[#allocation2 + $0xa0] sm:$0xff] }
 0x1f9   : > { %v2285_v20 = vpop.eup %2284  ;;  %1814 = vst [vmem:[%s3099_s3 + $0x40] sm:$0xff] %v2283_v16  ;;  %2310 = vtanh.f32 %v1700_v8  ;;  %v1721_v8 = vadd.f32 %v2823_v19, %v1650_v0 }
 0x1fa   : > { %v2287_v23 = vpop.eup %2286  ;;  %1815 = vst [vmem:[%s3099_s3 + $0x48] sm:$0xff] %v2285_v20  ;;  %2312 = vtanh.f32 %v1701_v11  ;;  %v1722_v11 = vadd.f32 %v2823_v19, %v1651_v3  ;;  %v1741_v3 = vadd.f32 %v2823_v19, %v1670_v61 }
 0x1fb   : > { %v2289_v26 = vpop.eup %2288  ;;  %1816 = vst [vmem:[%s3099_s3 + $0x50] sm:$0xff] %v2287_v23  ;;  %2314 = vtanh.f32 %v1702_v14  ;;  %v1723_v14 = vadd.f32 %v2823_v19, %v1652_v6 }
 0x1fc   : > { %v2291_v29 = vpop.eup %2290  ;;  %1817 = vst [vmem:[%s3099_s3 + $0x58] sm:$0xff] %v2289_v26  ;;  %2316 = vtanh.f32 %v1703_v17  ;;  %v1724_v17 = vadd.f32 %v2823_v19, %v1653_v9 }
 0x1fd   : > { %v2293_v32 = vpop.eup %2292  ;;  %1818 = vst [vmem:[%s3099_s3 + $0x60] sm:$0xff] %v2291_v29  ;;  %2318 = vtanh.f32 %v1704_v21  ;;  %v1725_v21 = vadd.f32 %v2823_v19, %v1654_v12 }
 0x1fe   : > { %v2295_v35 = vpop.eup %2294  ;;  %1819 = vst [vmem:[%s3099_s3 + $0x68] sm:$0xff] %v2293_v32  ;;  %2320 = vtanh.f32 %v1705_v24  ;;  %v1726_v24 = vadd.f32 %v2823_v19, %v1655_v15 }
 0x1ff   : > { %v2297_v38 = vpop.eup %2296  ;;  %1820 = vst [vmem:[%s3099_s3 + $0x70] sm:$0xff] %v2295_v35  ;;  %2322 = vtanh.f32 %v1706_v27  ;;  %v1727_v27 = vadd.f32 %v2823_v19, %v1656_v18 }
 0x200   : > { %v2299_v41 = vpop.eup %2298  ;;  %1821 = vst [vmem:[%s3099_s3 + $0x78] sm:$0xff] %v2297_v38  ;;  %2324 = vtanh.f32 %v1707_v30  ;;  %v1728_v30 = vadd.f32 %v2823_v19, %v1657_v22 }
 0x201   : > { %v2301_v44 = vpop.eup %2300  ;;  %1822 = vst [vmem:[%s3099_s3 + $0x80] sm:$0xff] %v2299_v41  ;;  %2326 = vtanh.f32 %v1708_v33  ;;  %v1729_v33 = vadd.f32 %v2823_v19, %v1658_v25 }
 0x202   : > { %v2303_v47 = vpop.eup %2302  ;;  %1823 = vst [vmem:[%s3099_s3 + $0x88] sm:$0xff] %v2301_v44  ;;  %2328 = vtanh.f32 %v1709_v36  ;;  %v1730_v36 = vadd.f32 %v2823_v19, %v1659_v28 }
 0x203   : > { %v2305_v50 = vpop.eup %2304  ;;  %1824 = vst [vmem:[%s3099_s3 + $0x90] sm:$0xff] %v2303_v47  ;;  %2330 = vtanh.f32 %v1710_v39  ;;  %v1731_v39 = vadd.f32 %v2823_v19, %v1660_v31 }
 0x204   : > { %v2307_v53 = vpop.eup %2306  ;;  %1825 = vst [vmem:[%s3099_s3 + $0x98] sm:$0xff] %v2305_v50  ;;  %2332 = vtanh.f32 %v1711_v42  ;;  %v1732_v42 = vadd.f32 %v2823_v19, %v1661_v34 }
 0x205   : > { %v2309_v56 = vpop.eup %2308  ;;  %1826 = vst [vmem:[%s3099_s3 + $0xa0] sm:$0xff] %v2307_v53  ;;  %2334 = vtanh.f32 %v1712_v45  ;;  %v1733_v45 = vadd.f32 %v2823_v19, %v1662_v37 }
 0x206   : > { %v2311_v59 = vpop.eup %2310  ;;  %1827 = vst [vmem:[%s3099_s3 + $0xa8] sm:$0xff] %v2309_v56  ;;  %2336 = vtanh.f32 %v1713_v48  ;;  %v1734_v48 = vadd.f32 %v2823_v19, %v1663_v40 }
 0x207   : > { %v2313_v62 = vpop.eup %2312  ;;  %1828 = vst [vmem:[%s3099_s3 + $0xb0] sm:$0xff] %v2311_v59  ;;  %2338 = vtanh.f32 %v1714_v51  ;;  %v1735_v51 = vadd.f32 %v2823_v19, %v1664_v43 }
 0x208   : > { %v2315_v1 = vpop.eup %2314  ;;  %1829 = vst [vmem:[%s3099_s3 + $0xb8] sm:$0xff] %v2313_v62  ;;  %2340 = vtanh.f32 %v1715_v54  ;;  %v1736_v54 = vadd.f32 %v2823_v19, %v1665_v46 }
 0x209   : > { %v2317_v4 = vpop.eup %2316  ;;  %1830 = vst [vmem:[%s3099_s3 + $0xc0] sm:$0xff] %v2315_v1  ;;  %2342 = vtanh.f32 %v1716_v57  ;;  %v1737_v57 = vadd.f32 %v2823_v19, %v1666_v49  ;;  %v1740_v1 = vadd.f32 %v2823_v19, %v1669_v58 }
 0x20a   : > { %v2319_v7 = vpop.eup %2318  ;;  %1831 = vst [vmem:[%s3099_s3 + $0xc8] sm:$0xff] %v2317_v4  ;;  %2344 = vtanh.f32 %v1717_v60  ;;  %v1738_v60 = vadd.f32 %v2823_v19, %v1667_v52 }
 0x20b   : > { %v2321_v10 = vpop.eup %2320  ;;  %1832 = vst [vmem:[%s3099_s3 + $0xd0] sm:$0xff] %v2319_v7  ;;  %2346 = vtanh.f32 %v1718_v63  ;;  %v1739_v63 = vadd.f32 %v2823_v19, %v1668_v55 }
 0x20c   : > { %v2323_v13 = vpop.eup %2322  ;;  %1833 = vst [vmem:[%s3099_s3 + $0xd8] sm:$0xff] %v2321_v10  ;;  %2348 = vtanh.f32 %v1719_v2 }
 0x20d   : > { %v2325_v16 = vpop.eup %2324  ;;  %1834 = vst [vmem:[%s3099_s3 + $0xe0] sm:$0xff] %v2323_v13  ;;  %2350 = vtanh.f32 %v1720_v5 }
 0x20e   : > { %v2327_v20 = vpop.eup %2326  ;;  %1835 = vst [vmem:[%s3099_s3 + $0xe8] sm:$0xff] %v2325_v16  ;;  %2352 = vtanh.f32 %v1721_v8 }
 0x20f   : > { %v2329_v23 = vpop.eup %2328  ;;  %1836 = vst [vmem:[%s3099_s3 + $0xf0] sm:$0xff] %v2327_v20  ;;  %2354 = vtanh.f32 %v1722_v11 }
 0x210   : > { %v2331_v26 = vpop.eup %2330  ;;  %1837 = vst [vmem:[%s3099_s3 + $0xf8] sm:$0xff] %v2329_v23  ;;  %2356 = vtanh.f32 %v1723_v14 }
 0x211   : > { %v2333_v29 = vpop.eup %2332  ;;  %1838 = vst [vmem:[%s3099_s3 + $0x100] sm:$0xff] %v2331_v26  ;;  %2358 = vtanh.f32 %v1724_v17 }
 0x212   : > { %v2335_v32 = vpop.eup %2334  ;;  %1839 = vst [vmem:[%s3099_s3 + $0x108] sm:$0xff] %v2333_v29  ;;  %2360 = vtanh.f32 %v1725_v21 }
 0x213   : > { %v2337_v35 = vpop.eup %2336  ;;  %1840 = vst [vmem:[%s3099_s3 + $0x110] sm:$0xff] %v2335_v32  ;;  %2362 = vtanh.f32 %v1726_v24 }
 0x214   : > { %v2339_v38 = vpop.eup %2338  ;;  %1841 = vst [vmem:[%s3099_s3 + $0x118] sm:$0xff] %v2337_v35  ;;  %2364 = vtanh.f32 %v1727_v27 }
 0x215   : > { %v2341_v41 = vpop.eup %2340  ;;  %1842 = vst [vmem:[%s3099_s3 + $0x120] sm:$0xff] %v2339_v38  ;;  %2366 = vtanh.f32 %v1728_v30 }
 0x216   : > { %v2343_v44 = vpop.eup %2342  ;;  %1843 = vst [vmem:[%s3099_s3 + $0x128] sm:$0xff] %v2341_v41  ;;  %2368 = vtanh.f32 %v1729_v33 }
 0x217   : > { %v2345_v47 = vpop.eup %2344  ;;  %1844 = vst [vmem:[%s3099_s3 + $0x130] sm:$0xff] %v2343_v44  ;;  %2370 = vtanh.f32 %v1730_v36 }
 0x218   : > { %v2347_v50 = vpop.eup %2346  ;;  %1845 = vst [vmem:[%s3099_s3 + $0x138] sm:$0xff] %v2345_v47  ;;  %2372 = vtanh.f32 %v1731_v39 }
 0x219   : > { %v2349_v53 = vpop.eup %2348  ;;  %1846 = vst [vmem:[%s3099_s3 + $0x140] sm:$0xff] %v2347_v50  ;;  %2374 = vtanh.f32 %v1732_v42 }
 0x21a   : > { %v2351_v56 = vpop.eup %2350  ;;  %1847 = vst [vmem:[%s3099_s3 + $0x148] sm:$0xff] %v2349_v53  ;;  %2376 = vtanh.f32 %v1733_v45 }
 0x21b   : > { %v2353_v59 = vpop.eup %2352  ;;  %1848 = vst [vmem:[%s3099_s3 + $0x150] sm:$0xff] %v2351_v56  ;;  %2378 = vtanh.f32 %v1734_v48 }
 0x21c   : > { %v2355_v62 = vpop.eup %2354  ;;  %1849 = vst [vmem:[%s3099_s3 + $0x158] sm:$0xff] %v2353_v59  ;;  %2380 = vtanh.f32 %v1735_v51 }
 0x21d   : > { %v2357_v0 = vpop.eup %2356  ;;  %1850 = vst [vmem:[%s3099_s3 + $0x160] sm:$0xff] %v2355_v62  ;;  %2382 = vtanh.f32 %v1736_v54 }
 0x21e   : > { %v2359_v2 = vpop.eup %2358  ;;  %1851 = vst [vmem:[%s3099_s3 + $0x168] sm:$0xff] %v2357_v0  ;;  %2384 = vtanh.f32 %v1737_v57 }
 0x21f   : > { %v2361_v4 = vpop.eup %2360  ;;  %1852 = vst [vmem:[%s3099_s3 + $0x170] sm:$0xff] %v2359_v2  ;;  %2386 = vtanh.f32 %v1738_v60 }
 0x220   : > { %v2363_v5 = vpop.eup %2362  ;;  %1853 = vst [vmem:[%s3099_s3 + $0x178] sm:$0xff] %v2361_v4  ;;  %2388 = vtanh.f32 %v1739_v63 }
 0x221   : > { %v2365_v6 = vpop.eup %2364  ;;  %1854 = vst [vmem:[%s3099_s3 + $0x180] sm:$0xff] %v2363_v5  ;;  %2390 = vtanh.f32 %v1740_v1 }
 0x222   : > { %v2367_v7 = vpop.eup %2366  ;;  %1855 = vst [vmem:[%s3099_s3 + $0x188] sm:$0xff] %v2365_v6  ;;  %2392 = vtanh.f32 %v1741_v3 }
 0x223   : > { %v2369_v19 = vpop.eup %2368  ;;  %1856 = vst [vmem:[%s3099_s3 + $0x190] sm:$0xff] %v2367_v7 }
 0x224   : > { %v2371_v8 = vpop.eup %2370  ;;  %1857 = vst [vmem:[%s3099_s3 + $0x198] sm:$0xff] %v2369_v19 }
 0x225   : > { %v2373_v9 = vpop.eup %2372  ;;  %1858 = vst [vmem:[%s3099_s3 + $0x1a0] sm:$0xff] %v2371_v8 }
 0x226   : > { %v2375_v10 = vpop.eup %2374  ;;  %1859 = vst [vmem:[%s3099_s3 + $0x1a8] sm:$0xff] %v2373_v9 }
 0x227   : > { %v2377_v11 = vpop.eup %2376  ;;  %1860 = vst [vmem:[%s3099_s3 + $0x1b0] sm:$0xff] %v2375_v10 }
 0x228   : > { %v2379_v12 = vpop.eup %2378  ;;  %1861 = vst [vmem:[%s3099_s3 + $0x1b8] sm:$0xff] %v2377_v11 }
 0x229   : > { %v2381_v13 = vpop.eup %2380  ;;  %1862 = vst [vmem:[%s3099_s3 + $0x1c0] sm:$0xff] %v2379_v12 }
 0x22a   : > { %v2383_v14 = vpop.eup %2382  ;;  %1863 = vst [vmem:[%s3099_s3 + $0x1c8] sm:$0xff] %v2381_v13 }
 0x22b   : > { %v2385_v15 = vpop.eup %2384  ;;  %1864 = vst [vmem:[%s3099_s3 + $0x1d0] sm:$0xff] %v2383_v14 }
 0x22c   : > { %v2387_v16 = vpop.eup %2386  ;;  %1865 = vst [vmem:[%s3099_s3 + $0x1d8] sm:$0xff] %v2385_v15 }
 0x22d   : > { %v2389_v17 = vpop.eup %2388  ;;  %1866 = vst [vmem:[%s3099_s3 + $0x1e0] sm:$0xff] %v2387_v16 }
 0x22e   : > { %v2391_v18 = vpop.eup %2390  ;;  %1867 = vst [vmem:[%s3099_s3 + $0x1e8] sm:$0xff] %v2389_v17 }
 0x22f   : > { %v2393_v20 = vpop.eup %2392  ;;  %1868 = vst [vmem:[%s3099_s3 + $0x1f0] sm:$0xff] %v2391_v18 }
 0x230   : > { %1869 = vst [vmem:[%s3099_s3 + $0x1f8] sm:$0xff] %v2393_v20 }
 0x231 PF: > { %s13_s16 = sadd.s32 1, %s2432_s16   ;;  %s3100_s12 = smov %s2420_s13 }
 0x232   : > { %p10_p12 = scmp.ge.s32.totalorder %s13_s16, 15   ;;  %s3101_s13 = smov %s2491_s20 }
 0x233   : > { %s3102_s14 = smov %s2428_s15  ;;  %s3103_s15 = smov %s3105_s17 }
 0x234   :  { %12 = sbr.rel (!%p10_p12) target bundleno = 3 (0x3), region = 119 }

</bundles_post_ra>
